<compile_context>
chip_gen: v7x
topology: tpu7x:2x2x1
jax: 0.10.0
libtpu: 0.0.40
codegen_flags: <defaults>
</compile_context>

<pallas_src>
import jax
import jax.numpy as jnp
from jax.experimental import pallas as pl
from jax.experimental.pallas import tpu as pltpu

MXU_DTYPE = jnp.bfloat16   # matmul-operand / activation-scratch dtype (f32 accumulation)


# ------------------------------- fused kernel ------------------------------ #

def _fused_estimator_kernel(x_ref,
                            wc1_ref, bc1_ref, wc2_ref, bc2_ref, wc3_ref, bc3_ref,
                            wf1_ref, bf1_ref, wf2_ref, bf2_ref,
                            o_ref,
                            pad0_ref, pad1_ref, pad2_ref):
    f32 = jnp.float32
    Bt, H, W, _ = x_ref.shape
    Ho, Wo = H // 2, W // 2          # after first MaxPool2d(2)
    Ho2, Wo2 = Ho // 2, Wo // 2      # after second MaxPool2d(2)
    C1 = pad1_ref.shape[-1]          # 32
    C2 = pad2_ref.shape[-1]          # 64
    C3 = wc3_ref.shape[-1]           # 128

    def zero_border(ref):
        """Zero only the 1-pixel border; the interior is fully rewritten below."""
        bt, hp, wp, c = ref.shape
        row = jnp.zeros((bt, 1, wp, c), ref.dtype)
        col = jnp.zeros((bt, hp, 1, c), ref.dtype)
        ref[:, 0:1, :, :] = row
        ref[:, hp - 1:hp, :, :] = row
        ref[:, :, 0:1, :] = col
        ref[:, :, wp - 1:wp, :] = col

    def conv3x3_relu(pad_ref, w_ref, b_ref, h, w):
        """'same' 3x3 conv as ONE im2col matmul: taps stacked along K in registers."""
        bt, _, _, cin = pad_ref.shape
        taps = [pad_ref[:, dh:dh + h, dw:dw + w, :].reshape(bt * h * w, cin)
                for dh in range(3) for dw in range(3)]
        a = jnp.concatenate(taps, axis=-1)                          # (bt*h*w, 9*cin) bf16
        acc = jnp.dot(a, w_ref[...], preferred_element_type=f32)    # f32 accumulation
        return jnp.maximum(acc + b_ref[...], 0.0)                   # bias + ReLU in f32

    def maxpool2x2(y, bt, h, w, c):
        """2x2 / stride-2 max pooling, entirely in registers (no scratch round trip)."""
        y = y.reshape(bt, h, w // 2, 2, c)
        y = jnp.maximum(y[:, :, :, 0, :], y[:, :, :, 1, :])         # (bt, h, w/2, c)
        y = y.reshape(bt, h // 2, 2, w // 2, c)
        y = jnp.maximum(y[:, :, 0, :, :], y[:, :, 1, :, :])         # (bt, h/2, w/2, c)
        return y

    # ---- in-kernel 'same' padding of the (bf16) input.
    zero_border(pad0_ref)
    pad0_ref[:, 1:H + 1, 1:W + 1, :] = x_ref[...]

    # ---- conv1 (Cin -> 32) + ReLU, stored zero-padded (bf16) for conv2.
    y1 = conv3x3_relu(pad0_ref, wc1_ref, bc1_ref, H, W)             # (Bt*H*W, 32) f32
    zero_border(pad1_ref)
    pad1_ref[:, 1:H + 1, 1:W + 1, :] = y1.reshape(Bt, H, W, C1).astype(pad1_ref.dtype)

    # ---- conv2 (32 -> 64) + ReLU + MaxPool2d(2), pooled in registers.
    y2 = conv3x3_relu(pad1_ref, wc2_ref, bc2_ref, H, W)             # (Bt*H*W, 64) f32
    p2 = maxpool2x2(y2, Bt, H, W, C2)                               # (Bt, Ho, Wo, 64) f32
    zero_border(pad2_ref)
    pad2_ref[:, 1:Ho + 1, 1:Wo + 1, :] = p2.astype(pad2_ref.dtype)

    # ---- conv3 (64 -> 128) + ReLU + MaxPool2d(2) + AdaptiveAvgPool2d(1).
    y3 = conv3x3_relu(pad2_ref, wc3_ref, bc3_ref, Ho, Wo)           # (Bt*Ho*Wo, 128) f32
    p3 = maxpool2x2(y3, Bt, Ho, Wo, C3)                             # (Bt, Ho2, Wo2, 128)
    feat = jnp.sum(p3.reshape(Bt, Ho2 * Wo2, C3), axis=1) * (1.0 / (Ho2 * Wo2))  # (Bt,128)

    # ---- MLP head: Linear(128,64) + ReLU + Linear(64,num_params); bf16 ops, f32 acc.
    h = jnp.dot(feat.astype(wf1_ref.dtype), wf1_ref[...], preferred_element_type=f32)
    h = jnp.maximum(h + bf1_ref[...], 0.0)
    out = jnp.dot(h.astype(wf2_ref.dtype), wf2_ref[...], preferred_element_type=f32)
    o_ref[...] = out + bf2_ref[...]


# --------------------------------- wrapper --------------------------------- #

def _resident_spec(arr):
    """Whole-array block, constant index_map -> stays resident in VMEM."""
    nd = arr.ndim
    return pl.BlockSpec(arr.shape, lambda i, _nd=nd: (0,) * _nd)


@jax.jit
def distortion_param_estimator(params, img_nchw, heatmap_nchw):
    # torch.cat([img, heatmap], dim=1) on NCHW, then channels-last + bf16.
    # TODO(synk): the NCHW->NHWC transpose + concat stay as trivial XLA glue;
    # fold them into the kernel too if H, W ever become large.
    x = jnp.concatenate([img_nchw, heatmap_nchw], axis=1)            # (B, Cin, H, W)
    x = jnp.transpose(x, (0, 2, 3, 1)).astype(MXU_DTYPE)             # (B, H, W, Cin) bf16
    B, H, W, Cin = x.shape
    assert H % 4 == 0 and W % 4 == 0, "kernel assumes two exact 2x2 max-pools"

    # Batch tiling: amortize per-step overhead while keeping >= 2 grid steps so
    # v7x's two TensorCores both get work (grid axis marked "parallel").
    block_b = max(1, min(8, (B + 1) // 2))
    nsteps = pl.cdiv(B, block_b)
    Bp = nsteps * block_b
    if Bp != B:
        x = jnp.pad(x, ((0, Bp - B), (0, 0), (0, 0), (0, 0)))

    C1 = params["wc1"].shape[-1]      # 32
    C2 = params["wc2"].shape[-1]      # 64
    C3 = params["wc3"].shape[-1]      # 128
    num_params = params["wf2"].shape[-1]

    # Conv weights HWIO (3,3,Ci,Co) -> im2col layout (9*Ci, Co); MXU operands bf16.
    wc1 = params["wc1"].reshape(9 * Cin, C1).astype(MXU_DTYPE)
    wc2 = params["wc2"].reshape(9 * C1, C2).astype(MXU_DTYPE)
    wc3 = params["wc3"].reshape(9 * C2, C3).astype(MXU_DTYPE)
    bc1 = params["bc1"].reshape(1, C1).astype(jnp.float32)
    bc2 = params["bc2"].reshape(1, C2).astype(jnp.float32)
    bc3 = params["bc3"].reshape(1, C3).astype(jnp.float32)
    wf1 = params["wf1"].astype(MXU_DTYPE)
    bf1 = params["bf1"].reshape(1, -1).astype(jnp.float32)
    wf2 = params["wf2"].astype(MXU_DTYPE)
    bf2 = params["bf2"].reshape(1, -1).astype(jnp.float32)
    weights = (wc1, bc1, wc2, bc2, wc3, bc3, wf1, bf1, wf2, bf2)

    out = pl.pallas_call(
        _fused_estimator_kernel,
        out_shape=jax.ShapeDtypeStruct((nsteps, block_b, num_params), jnp.float32),
        grid=(nsteps,),
        in_specs=[pl.BlockSpec((block_b, H, W, Cin), lambda i: (i, 0, 0, 0))]
                 + [_resident_spec(w) for w in weights],
        out_specs=pl.BlockSpec((None, block_b, num_params), lambda i: (i, 0, 0)),
        scratch_shapes=[
            pltpu.VMEM((block_b, H + 2, W + 2, Cin), MXU_DTYPE),            # padded input
            pltpu.VMEM((block_b, H + 2, W + 2, C1), MXU_DTYPE),             # padded conv1 out
            pltpu.VMEM((block_b, H // 2 + 2, W // 2 + 2, C2), MXU_DTYPE),   # padded pooled conv2
        ],
        compiler_params=pltpu.CompilerParams(
            dimension_semantics=("parallel",),      # batch shards across v7x's 2 TCs
            vmem_limit_bytes=32 * 1024 * 1024,
        ),
    )(x, *weights)
    return out.reshape(Bp, num_params)[:B]


# ---------------------------------- params ---------------------------------- #

def init_params(key, img_channels=3, heatmap_channels=1, num_params=2):
    cin = img_channels + heatmap_channels
    ks = jax.random.split(key, 5)

    def winit(k, shape, fan_in):
        return (jax.random.normal(k, shape, jnp.float32) * jnp.sqrt(2.0 / fan_in)).astype(jnp.float32)

    return {
        # conv weights stored as (kh, kw, Cin, Cout)  (HWIO)
        "wc1": winit(ks[0], (3, 3, cin, 32), 9 * cin),
        "bc1": 0.01 * jnp.arange(32, dtype=jnp.float32),
        "wc2": winit(ks[1], (3, 3, 32, 64), 9 * 32),
        "bc2": 0.01 * jnp.arange(64, dtype=jnp.float32),
        "wc3": winit(ks[2], (3, 3, 64, 128), 9 * 64),
        "bc3": 0.01 * jnp.arange(128, dtype=jnp.float32),
        # fc weights stored as (in, out)
        "wf1": winit(ks[3], (128, 64), 128),
        "bf1": 0.01 * jnp.arange(64, dtype=jnp.float32),
        "wf2": winit(ks[4], (64, num_params), 64),
        "bf2": 0.01 * jnp.arange(num_params, dtype=jnp.float32),
    }


# ----------------------------------- main ----------------------------------- #

if __name__ == "__main__":
    key = jax.random.PRNGKey(0)
    k_img, k_hm, k_param = jax.random.split(key, 3)

    B, H, W = 2, 16, 16
    img = jax.random.normal(k_img, (B, 3, H, W), jnp.float32)          # NCHW like PyTorch
    line_heatmap = jax.random.normal(k_hm, (B, 1, H, W), jnp.float32)  # NCHW like PyTorch

    params = init_params(k_param)

    out = distortion_param_estimator(params, img, line_heatmap)
    out = jax.block_until_ready(out)

    assert out.shape == (B, 2), out.shape
    assert out.dtype == jnp.float32
    assert bool(jnp.all(jnp.isfinite(out)))
    print("KERNEL_OK")
</pallas_src>

<mosaic_0001>
module attributes {stable_mosaic.version = 11 : i64} {
  func.func @_fused_estimator_kernel(%arg0: i32, %arg1: memref<1x16x16x4xbf16, #tpu.memory_space<vmem>>, %arg2: memref<36x32xbf16, #tpu.memory_space<vmem>>, %arg3: memref<1x32xf32, #tpu.memory_space<vmem>>, %arg4: memref<288x64xbf16, #tpu.memory_space<vmem>>, %arg5: memref<1x64xf32, #tpu.memory_space<vmem>>, %arg6: memref<576x128xbf16, #tpu.memory_space<vmem>>, %arg7: memref<1x128xf32, #tpu.memory_space<vmem>>, %arg8: memref<128x64xbf16, #tpu.memory_space<vmem>>, %arg9: memref<1x64xf32, #tpu.memory_space<vmem>>, %arg10: memref<64x2xbf16, #tpu.memory_space<vmem>>, %arg11: memref<1x2xf32, #tpu.memory_space<vmem>>, %arg12: memref<1x1x2xf32, #tpu.memory_space<vmem>>, %arg13: memref<1x18x18x4xbf16, #tpu.memory_space<vmem>>, %arg14: memref<1x18x18x32xbf16, #tpu.memory_space<vmem>>, %arg15: memref<1x10x10x64xbf16, #tpu.memory_space<vmem>>) attributes {dimension_semantics = [#tpu.dimension_semantics<parallel>], iteration_bounds = array<i64: 2>, scalar_prefetch = 0 : i64, scratch_operands = 3 : i64, tpu.core_type = #tpu.core_type<tc>, window_params = [{transform_indices = @transform_0, window_bounds = array<i64: 1, 16, 16, 4>}, {pipeline_mode = #tpu.pipeline_mode<synchronous>, transform_indices = @transform_1, window_bounds = array<i64: 36, 32>}, {pipeline_mode = #tpu.pipeline_mode<synchronous>, transform_indices = @transform_2, window_bounds = array<i64: 1, 32>}, {pipeline_mode = #tpu.pipeline_mode<synchronous>, transform_indices = @transform_3, window_bounds = array<i64: 288, 64>}, {pipeline_mode = #tpu.pipeline_mode<synchronous>, transform_indices = @transform_4, window_bounds = array<i64: 1, 64>}, {pipeline_mode = #tpu.pipeline_mode<synchronous>, transform_indices = @transform_5, window_bounds = array<i64: 576, 128>}, {pipeline_mode = #tpu.pipeline_mode<synchronous>, transform_indices = @transform_6, window_bounds = array<i64: 1, 128>}, {pipeline_mode = #tpu.pipeline_mode<synchronous>, transform_indices = @transform_7, window_bounds = array<i64: 128, 64>}, {pipeline_mode = #tpu.pipeline_mode<synchronous>, transform_indices = @transform_8, window_bounds = array<i64: 1, 64>}, {pipeline_mode = #tpu.pipeline_mode<synchronous>, transform_indices = @transform_9, window_bounds = array<i64: 64, 2>}, {pipeline_mode = #tpu.pipeline_mode<synchronous>, transform_indices = @transform_10, window_bounds = array<i64: 1, 2>}, {transform_indices = @transform_11, window_bounds = array<i64: 1, 1, 2>}]} {
    %cst = arith.constant 0.000000e+00 : bf16
    %0 = vector.broadcast %cst : bf16 to vector<1x1x18x4xbf16>
    %cst_0 = arith.constant 0.000000e+00 : bf16
    %1 = vector.broadcast %cst_0 : bf16 to vector<1x18x1x4xbf16>
    %c0 = arith.constant 0 : index
    %c0_1 = arith.constant 0 : index
    %c0_2 = arith.constant 0 : index
    %c0_3 = arith.constant 0 : index
    %2 = vector.load %arg13[%c0, %c0_1, %c0_2, %c0_3] : memref<1x18x18x4xbf16, #tpu.memory_space<vmem>>, vector<1x1x18x4xbf16>
    tpu.vector_store %arg13[%c0, %c0_1, %c0_2, %c0_3], %0 {strides = array<i32>} : memref<1x18x18x4xbf16, #tpu.memory_space<vmem>>, vector<1x1x18x4xbf16>,
    %c0_4 = arith.constant 0 : index
    %c17 = arith.constant 17 : index
    %c0_5 = arith.constant 0 : index
    %c0_6 = arith.constant 0 : index
    %3 = vector.load %arg13[%c0_4, %c17, %c0_5, %c0_6] : memref<1x18x18x4xbf16, #tpu.memory_space<vmem>>, vector<1x1x18x4xbf16>
    tpu.vector_store %arg13[%c0_4, %c17, %c0_5, %c0_6], %0 {strides = array<i32>} : memref<1x18x18x4xbf16, #tpu.memory_space<vmem>>, vector<1x1x18x4xbf16>,
    %c0_7 = arith.constant 0 : index
    %c0_8 = arith.constant 0 : index
    %c0_9 = arith.constant 0 : index
    %c0_10 = arith.constant 0 : index
    %4 = vector.load %arg13[%c0_7, %c0_8, %c0_9, %c0_10] : memref<1x18x18x4xbf16, #tpu.memory_space<vmem>>, vector<1x18x1x4xbf16>
    tpu.vector_store %arg13[%c0_7, %c0_8, %c0_9, %c0_10], %1 {strides = array<i32>} : memref<1x18x18x4xbf16, #tpu.memory_space<vmem>>, vector<1x18x1x4xbf16>,
    %c0_11 = arith.constant 0 : index
    %c0_12 = arith.constant 0 : index
    %c17_13 = arith.constant 17 : index
    %c0_14 = arith.constant 0 : index
    %5 = vector.load %arg13[%c0_11, %c0_12, %c17_13, %c0_14] : memref<1x18x18x4xbf16, #tpu.memory_space<vmem>>, vector<1x18x1x4xbf16>
    tpu.vector_store %arg13[%c0_11, %c0_12, %c17_13, %c0_14], %1 {strides = array<i32>} : memref<1x18x18x4xbf16, #tpu.memory_space<vmem>>, vector<1x18x1x4xbf16>,
    %c0_15 = arith.constant 0 : index
    %c0_16 = arith.constant 0 : index
    %c0_17 = arith.constant 0 : index
    %c0_18 = arith.constant 0 : index
    %6 = vector.load %arg1[%c0_15, %c0_16, %c0_17, %c0_18] : memref<1x16x16x4xbf16, #tpu.memory_space<vmem>>, vector<1x16x16x4xbf16>
    %c0_19 = arith.constant 0 : index
    %c1 = arith.constant 1 : index
    %c1_20 = arith.constant 1 : index
    %c0_21 = arith.constant 0 : index
    %7 = vector.load %arg13[%c0_19, %c1, %c1_20, %c0_21] : memref<1x18x18x4xbf16, #tpu.memory_space<vmem>>, vector<1x16x16x4xbf16>
    tpu.vector_store %arg13[%c0_19, %c1, %c1_20, %c0_21], %6 {strides = array<i32>} : memref<1x18x18x4xbf16, #tpu.memory_space<vmem>>, vector<1x16x16x4xbf16>,
    %c0_22 = arith.constant 0 : index
    %c0_23 = arith.constant 0 : index
    %c0_24 = arith.constant 0 : index
    %c0_25 = arith.constant 0 : index
    %8 = vector.load %arg13[%c0_22, %c0_23, %c0_24, %c0_25] : memref<1x18x18x4xbf16, #tpu.memory_space<vmem>>, vector<1x16x16x4xbf16>
    %9 = vector.shape_cast %8 : vector<1x16x16x4xbf16> to vector<256x4xbf16>
    %c0_26 = arith.constant 0 : index
    %c0_27 = arith.constant 0 : index
    %c1_28 = arith.constant 1 : index
    %c0_29 = arith.constant 0 : index
    %10 = vector.load %arg13[%c0_26, %c0_27, %c1_28, %c0_29] : memref<1x18x18x4xbf16, #tpu.memory_space<vmem>>, vector<1x16x16x4xbf16>
    %11 = vector.shape_cast %10 : vector<1x16x16x4xbf16> to vector<256x4xbf16>
    %c0_30 = arith.constant 0 : index
    %c0_31 = arith.constant 0 : index
    %c2 = arith.constant 2 : index
    %c0_32 = arith.constant 0 : index
    %12 = vector.load %arg13[%c0_30, %c0_31, %c2, %c0_32] : memref<1x18x18x4xbf16, #tpu.memory_space<vmem>>, vector<1x16x16x4xbf16>
    %13 = vector.shape_cast %12 : vector<1x16x16x4xbf16> to vector<256x4xbf16>
    %c0_33 = arith.constant 0 : index
    %c1_34 = arith.constant 1 : index
    %c0_35 = arith.constant 0 : index
    %c0_36 = arith.constant 0 : index
    %14 = vector.load %arg13[%c0_33, %c1_34, %c0_35, %c0_36] : memref<1x18x18x4xbf16, #tpu.memory_space<vmem>>, vector<1x16x16x4xbf16>
    %15 = vector.shape_cast %14 : vector<1x16x16x4xbf16> to vector<256x4xbf16>
    %c0_37 = arith.constant 0 : index
    %c1_38 = arith.constant 1 : index
    %c1_39 = arith.constant 1 : index
    %c0_40 = arith.constant 0 : index
    %16 = vector.load %arg13[%c0_37, %c1_38, %c1_39, %c0_40] : memref<1x18x18x4xbf16, #tpu.memory_space<vmem>>, vector<1x16x16x4xbf16>
    %17 = vector.shape_cast %16 : vector<1x16x16x4xbf16> to vector<256x4xbf16>
    %c0_41 = arith.constant 0 : index
    %c1_42 = arith.constant 1 : index
    %c2_43 = arith.constant 2 : index
    %c0_44 = arith.constant 0 : index
    %18 = vector.load %arg13[%c0_41, %c1_42, %c2_43, %c0_44] : memref<1x18x18x4xbf16, #tpu.memory_space<vmem>>, vector<1x16x16x4xbf16>
    %19 = vector.shape_cast %18 : vector<1x16x16x4xbf16> to vector<256x4xbf16>
    %c0_45 = arith.constant 0 : index
    %c2_46 = arith.constant 2 : index
    %c0_47 = arith.constant 0 : index
    %c0_48 = arith.constant 0 : index
    %20 = vector.load %arg13[%c0_45, %c2_46, %c0_47, %c0_48] : memref<1x18x18x4xbf16, #tpu.memory_space<vmem>>, vector<1x16x16x4xbf16>
    %21 = vector.shape_cast %20 : vector<1x16x16x4xbf16> to vector<256x4xbf16>
    %c0_49 = arith.constant 0 : index
    %c2_50 = arith.constant 2 : index
    %c1_51 = arith.constant 1 : index
    %c0_52 = arith.constant 0 : index
    %22 = vector.load %arg13[%c0_49, %c2_50, %c1_51, %c0_52] : memref<1x18x18x4xbf16, #tpu.memory_space<vmem>>, vector<1x16x16x4xbf16>
    %23 = vector.shape_cast %22 : vector<1x16x16x4xbf16> to vector<256x4xbf16>
    %c0_53 = arith.constant 0 : index
    %c2_54 = arith.constant 2 : index
    %c2_55 = arith.constant 2 : index
    %c0_56 = arith.constant 0 : index
    %24 = vector.load %arg13[%c0_53, %c2_54, %c2_55, %c0_56] : memref<1x18x18x4xbf16, #tpu.memory_space<vmem>>, vector<1x16x16x4xbf16>
    %25 = vector.shape_cast %24 : vector<1x16x16x4xbf16> to vector<256x4xbf16>
    %26 = tpu.concatenate %9, %11, %13, %15, %17, %19, %21, %23, %25 in 1 : vector<256x4xbf16>, vector<256x4xbf16>, vector<256x4xbf16>, vector<256x4xbf16>, vector<256x4xbf16>, vector<256x4xbf16>, vector<256x4xbf16>, vector<256x4xbf16>, vector<256x4xbf16> -> vector<256x36xbf16>
    %c0_57 = arith.constant 0 : index
    %c0_58 = arith.constant 0 : index
    %27 = vector.load %arg2[%c0_57, %c0_58] : memref<36x32xbf16, #tpu.memory_space<vmem>>, vector<36x32xbf16>
    %cst_59 = arith.constant dense<0.000000e+00> : vector<256x32xf32>
    %28 = tpu.matmul %26, %27, %cst_59 {dimension_numbers = #tpu.dot_dimension_numbers<[1], [0], [0], [1], [0, 0, 1, 1], [], []>} : vector<256x36xbf16>, vector<36x32xbf16>, vector<256x32xf32> -> vector<256x32xf32>
    %c0_60 = arith.constant 0 : index
    %c0_61 = arith.constant 0 : index
    %29 = vector.load %arg3[%c0_60, %c0_61] : memref<1x32xf32, #tpu.memory_space<vmem>>, vector<1x32xf32>
    %30 = vector.broadcast %29 : vector<1x32xf32> to vector<256x32xf32>
    %31 = arith.addf %28, %30 : vector<256x32xf32>
    %cst_62 = arith.constant 0.000000e+00 : f32
    %32 = vector.broadcast %cst_62 : f32 to vector<256x32xf32>
    %33 = arith.maximumf %31, %32 : vector<256x32xf32>
    %cst_63 = arith.constant 0.000000e+00 : bf16
    %34 = vector.broadcast %cst_63 : bf16 to vector<1x1x18x32xbf16>
    %cst_64 = arith.constant 0.000000e+00 : bf16
    %35 = vector.broadcast %cst_64 : bf16 to vector<1x18x1x32xbf16>
    %c0_65 = arith.constant 0 : index
    %c0_66 = arith.constant 0 : index
    %c0_67 = arith.constant 0 : index
    %c0_68 = arith.constant 0 : index
    %36 = vector.load %arg14[%c0_65, %c0_66, %c0_67, %c0_68] : memref<1x18x18x32xbf16, #tpu.memory_space<vmem>>, vector<1x1x18x32xbf16>
    tpu.vector_store %arg14[%c0_65, %c0_66, %c0_67, %c0_68], %34 {strides = array<i32>} : memref<1x18x18x32xbf16, #tpu.memory_space<vmem>>, vector<1x1x18x32xbf16>,
    %c0_69 = arith.constant 0 : index
    %c17_70 = arith.constant 17 : index
    %c0_71 = arith.constant 0 : index
    %c0_72 = arith.constant 0 : index
    %37 = vector.load %arg14[%c0_69, %c17_70, %c0_71, %c0_72] : memref<1x18x18x32xbf16, #tpu.memory_space<vmem>>, vector<1x1x18x32xbf16>
    tpu.vector_store %arg14[%c0_69, %c17_70, %c0_71, %c0_72], %34 {strides = array<i32>} : memref<1x18x18x32xbf16, #tpu.memory_space<vmem>>, vector<1x1x18x32xbf16>,
    %c0_73 = arith.constant 0 : index
    %c0_74 = arith.constant 0 : index
    %c0_75 = arith.constant 0 : index
    %c0_76 = arith.constant 0 : index
    %38 = vector.load %arg14[%c0_73, %c0_74, %c0_75, %c0_76] : memref<1x18x18x32xbf16, #tpu.memory_space<vmem>>, vector<1x18x1x32xbf16>
    tpu.vector_store %arg14[%c0_73, %c0_74, %c0_75, %c0_76], %35 {strides = array<i32>} : memref<1x18x18x32xbf16, #tpu.memory_space<vmem>>, vector<1x18x1x32xbf16>,
    %c0_77 = arith.constant 0 : index
    %c0_78 = arith.constant 0 : index
    %c17_79 = arith.constant 17 : index
    %c0_80 = arith.constant 0 : index
    %39 = vector.load %arg14[%c0_77, %c0_78, %c17_79, %c0_80] : memref<1x18x18x32xbf16, #tpu.memory_space<vmem>>, vector<1x18x1x32xbf16>
    tpu.vector_store %arg14[%c0_77, %c0_78, %c17_79, %c0_80], %35 {strides = array<i32>} : memref<1x18x18x32xbf16, #tpu.memory_space<vmem>>, vector<1x18x1x32xbf16>,
    %40 = vector.shape_cast %33 : vector<256x32xf32> to vector<1x16x16x32xf32>
    %41 = arith.truncf %40 : vector<1x16x16x32xf32> to vector<1x16x16x32xbf16>
    %c0_81 = arith.constant 0 : index
    %c1_82 = arith.constant 1 : index
    %c1_83 = arith.constant 1 : index
    %c0_84 = arith.constant 0 : index
    %42 = vector.load %arg14[%c0_81, %c1_82, %c1_83, %c0_84] : memref<1x18x18x32xbf16, #tpu.memory_space<vmem>>, vector<1x16x16x32xbf16>
    tpu.vector_store %arg14[%c0_81, %c1_82, %c1_83, %c0_84], %41 {strides = array<i32>} : memref<1x18x18x32xbf16, #tpu.memory_space<vmem>>, vector<1x16x16x32xbf16>,
    %c0_85 = arith.constant 0 : index
    %c0_86 = arith.constant 0 : index
    %c0_87 = arith.constant 0 : index
    %c0_88 = arith.constant 0 : index
    %43 = vector.load %arg14[%c0_85, %c0_86, %c0_87, %c0_88] : memref<1x18x18x32xbf16, #tpu.memory_space<vmem>>, vector<1x16x16x32xbf16>
    %44 = vector.shape_cast %43 : vector<1x16x16x32xbf16> to vector<256x32xbf16>
    %c0_89 = arith.constant 0 : index
    %c0_90 = arith.constant 0 : index
    %c1_91 = arith.constant 1 : index
    %c0_92 = arith.constant 0 : index
    %45 = vector.load %arg14[%c0_89, %c0_90, %c1_91, %c0_92] : memref<1x18x18x32xbf16, #tpu.memory_space<vmem>>, vector<1x16x16x32xbf16>
    %46 = vector.shape_cast %45 : vector<1x16x16x32xbf16> to vector<256x32xbf16>
    %c0_93 = arith.constant 0 : index
    %c0_94 = arith.constant 0 : index
    %c2_95 = arith.constant 2 : index
    %c0_96 = arith.constant 0 : index
    %47 = vector.load %arg14[%c0_93, %c0_94, %c2_95, %c0_96] : memref<1x18x18x32xbf16, #tpu.memory_space<vmem>>, vector<1x16x16x32xbf16>
    %48 = vector.shape_cast %47 : vector<1x16x16x32xbf16> to vector<256x32xbf16>
    %c0_97 = arith.constant 0 : index
    %c1_98 = arith.constant 1 : index
    %c0_99 = arith.constant 0 : index
    %c0_100 = arith.constant 0 : index
    %49 = vector.load %arg14[%c0_97, %c1_98, %c0_99, %c0_100] : memref<1x18x18x32xbf16, #tpu.memory_space<vmem>>, vector<1x16x16x32xbf16>
    %50 = vector.shape_cast %49 : vector<1x16x16x32xbf16> to vector<256x32xbf16>
    %c0_101 = arith.constant 0 : index
    %c1_102 = arith.constant 1 : index
    %c1_103 = arith.constant 1 : index
    %c0_104 = arith.constant 0 : index
    %51 = vector.load %arg14[%c0_101, %c1_102, %c1_103, %c0_104] : memref<1x18x18x32xbf16, #tpu.memory_space<vmem>>, vector<1x16x16x32xbf16>
    %52 = vector.shape_cast %51 : vector<1x16x16x32xbf16> to vector<256x32xbf16>
    %c0_105 = arith.constant 0 : index
    %c1_106 = arith.constant 1 : index
    %c2_107 = arith.constant 2 : index
    %c0_108 = arith.constant 0 : index
    %53 = vector.load %arg14[%c0_105, %c1_106, %c2_107, %c0_108] : memref<1x18x18x32xbf16, #tpu.memory_space<vmem>>, vector<1x16x16x32xbf16>
    %54 = vector.shape_cast %53 : vector<1x16x16x32xbf16> to vector<256x32xbf16>
    %c0_109 = arith.constant 0 : index
    %c2_110 = arith.constant 2 : index
    %c0_111 = arith.constant 0 : index
    %c0_112 = arith.constant 0 : index
    %55 = vector.load %arg14[%c0_109, %c2_110, %c0_111, %c0_112] : memref<1x18x18x32xbf16, #tpu.memory_space<vmem>>, vector<1x16x16x32xbf16>
    %56 = vector.shape_cast %55 : vector<1x16x16x32xbf16> to vector<256x32xbf16>
    %c0_113 = arith.constant 0 : index
    %c2_114 = arith.constant 2 : index
    %c1_115 = arith.constant 1 : index
    %c0_116 = arith.constant 0 : index
    %57 = vector.load %arg14[%c0_113, %c2_114, %c1_115, %c0_116] : memref<1x18x18x32xbf16, #tpu.memory_space<vmem>>, vector<1x16x16x32xbf16>
    %58 = vector.shape_cast %57 : vector<1x16x16x32xbf16> to vector<256x32xbf16>
    %c0_117 = arith.constant 0 : index
    %c2_118 = arith.constant 2 : index
    %c2_119 = arith.constant 2 : index
    %c0_120 = arith.constant 0 : index
    %59 = vector.load %arg14[%c0_117, %c2_118, %c2_119, %c0_120] : memref<1x18x18x32xbf16, #tpu.memory_space<vmem>>, vector<1x16x16x32xbf16>
    %60 = vector.shape_cast %59 : vector<1x16x16x32xbf16> to vector<256x32xbf16>
    %61 = tpu.concatenate %44, %46, %48, %50, %52, %54, %56, %58, %60 in 1 : vector<256x32xbf16>, vector<256x32xbf16>, vector<256x32xbf16>, vector<256x32xbf16>, vector<256x32xbf16>, vector<256x32xbf16>, vector<256x32xbf16>, vector<256x32xbf16>, vector<256x32xbf16> -> vector<256x288xbf16>
    %c0_121 = arith.constant 0 : index
    %c0_122 = arith.constant 0 : index
    %62 = vector.load %arg4[%c0_121, %c0_122] : memref<288x64xbf16, #tpu.memory_space<vmem>>, vector<288x64xbf16>
    %cst_123 = arith.constant dense<0.000000e+00> : vector<256x64xf32>
    %63 = tpu.matmul %61, %62, %cst_123 {dimension_numbers = #tpu.dot_dimension_numbers<[1], [0], [0], [1], [0, 0, 1, 1], [], []>} : vector<256x288xbf16>, vector<288x64xbf16>, vector<256x64xf32> -> vector<256x64xf32>
    %c0_124 = arith.constant 0 : index
    %c0_125 = arith.constant 0 : index
    %64 = vector.load %arg5[%c0_124, %c0_125] : memref<1x64xf32, #tpu.memory_space<vmem>>, vector<1x64xf32>
    %65 = vector.broadcast %64 : vector<1x64xf32> to vector<256x64xf32>
    %66 = arith.addf %63, %65 : vector<256x64xf32>
    %cst_126 = arith.constant 0.000000e+00 : f32
    %67 = vector.broadcast %cst_126 : f32 to vector<256x64xf32>
    %68 = arith.maximumf %66, %67 : vector<256x64xf32>
    %69 = vector.shape_cast %68 : vector<256x64xf32> to vector<1x16x8x2x64xf32>
    %70 = vector.extract_strided_slice %69 {offsets = [0, 0, 0, 0, 0], sizes = [1, 16, 8, 1, 64], strides = [1, 1, 1, 1, 1]} : vector<1x16x8x2x64xf32> to vector<1x16x8x1x64xf32>
    %71 = vector.shape_cast %70 : vector<1x16x8x1x64xf32> to vector<1x16x8x64xf32>
    %72 = vector.extract_strided_slice %69 {offsets = [0, 0, 0, 1, 0], sizes = [1, 16, 8, 1, 64], strides = [1, 1, 1, 1, 1]} : vector<1x16x8x2x64xf32> to vector<1x16x8x1x64xf32>
    %73 = vector.shape_cast %72 : vector<1x16x8x1x64xf32> to vector<1x16x8x64xf32>
    %74 = arith.maximumf %71, %73 : vector<1x16x8x64xf32>
    %75 = vector.shape_cast %74 : vector<1x16x8x64xf32> to vector<1x8x2x8x64xf32>
    %76 = vector.extract_strided_slice %75 {offsets = [0, 0, 0, 0, 0], sizes = [1, 8, 1, 8, 64], strides = [1, 1, 1, 1, 1]} : vector<1x8x2x8x64xf32> to vector<1x8x1x8x64xf32>
    %77 = vector.shape_cast %76 : vector<1x8x1x8x64xf32> to vector<1x8x8x64xf32>
    %78 = vector.extract_strided_slice %75 {offsets = [0, 0, 1, 0, 0], sizes = [1, 8, 1, 8, 64], strides = [1, 1, 1, 1, 1]} : vector<1x8x2x8x64xf32> to vector<1x8x1x8x64xf32>
    %79 = vector.shape_cast %78 : vector<1x8x1x8x64xf32> to vector<1x8x8x64xf32>
    %80 = arith.maximumf %77, %79 : vector<1x8x8x64xf32>
    %cst_127 = arith.constant 0.000000e+00 : bf16
    %81 = vector.broadcast %cst_127 : bf16 to vector<1x1x10x64xbf16>
    %cst_128 = arith.constant 0.000000e+00 : bf16
    %82 = vector.broadcast %cst_128 : bf16 to vector<1x10x1x64xbf16>
    %c0_129 = arith.constant 0 : index
    %c0_130 = arith.constant 0 : index
    %c0_131 = arith.constant 0 : index
    %c0_132 = arith.constant 0 : index
    %83 = vector.load %arg15[%c0_129, %c0_130, %c0_131, %c0_132] : memref<1x10x10x64xbf16, #tpu.memory_space<vmem>>, vector<1x1x10x64xbf16>
    tpu.vector_store %arg15[%c0_129, %c0_130, %c0_131, %c0_132], %81 {strides = array<i32>} : memref<1x10x10x64xbf16, #tpu.memory_space<vmem>>, vector<1x1x10x64xbf16>,
    %c0_133 = arith.constant 0 : index
    %c9 = arith.constant 9 : index
    %c0_134 = arith.constant 0 : index
    %c0_135 = arith.constant 0 : index
    %84 = vector.load %arg15[%c0_133, %c9, %c0_134, %c0_135] : memref<1x10x10x64xbf16, #tpu.memory_space<vmem>>, vector<1x1x10x64xbf16>
    tpu.vector_store %arg15[%c0_133, %c9, %c0_134, %c0_135], %81 {strides = array<i32>} : memref<1x10x10x64xbf16, #tpu.memory_space<vmem>>, vector<1x1x10x64xbf16>,
    %c0_136 = arith.constant 0 : index
    %c0_137 = arith.constant 0 : index
    %c0_138 = arith.constant 0 : index
    %c0_139 = arith.constant 0 : index
    %85 = vector.load %arg15[%c0_136, %c0_137, %c0_138, %c0_139] : memref<1x10x10x64xbf16, #tpu.memory_space<vmem>>, vector<1x10x1x64xbf16>
    tpu.vector_store %arg15[%c0_136, %c0_137, %c0_138, %c0_139], %82 {strides = array<i32>} : memref<1x10x10x64xbf16, #tpu.memory_space<vmem>>, vector<1x10x1x64xbf16>,
    %c0_140 = arith.constant 0 : index
    %c0_141 = arith.constant 0 : index
    %c9_142 = arith.constant 9 : index
    %c0_143 = arith.constant 0 : index
    %86 = vector.load %arg15[%c0_140, %c0_141, %c9_142, %c0_143] : memref<1x10x10x64xbf16, #tpu.memory_space<vmem>>, vector<1x10x1x64xbf16>
    tpu.vector_store %arg15[%c0_140, %c0_141, %c9_142, %c0_143], %82 {strides = array<i32>} : memref<1x10x10x64xbf16, #tpu.memory_space<vmem>>, vector<1x10x1x64xbf16>,
    %87 = arith.truncf %80 : vector<1x8x8x64xf32> to vector<1x8x8x64xbf16>
    %c0_144 = arith.constant 0 : index
    %c1_145 = arith.constant 1 : index
    %c1_146 = arith.constant 1 : index
    %c0_147 = arith.constant 0 : index
    %88 = vector.load %arg15[%c0_144, %c1_145, %c1_146, %c0_147] : memref<1x10x10x64xbf16, #tpu.memory_space<vmem>>, vector<1x8x8x64xbf16>
    tpu.vector_store %arg15[%c0_144, %c1_145, %c1_146, %c0_147], %87 {strides = array<i32>} : memref<1x10x10x64xbf16, #tpu.memory_space<vmem>>, vector<1x8x8x64xbf16>,
    %c0_148 = arith.constant 0 : index
    %c0_149 = arith.constant 0 : index
    %c0_150 = arith.constant 0 : index
    %c0_151 = arith.constant 0 : index
    %89 = vector.load %arg15[%c0_148, %c0_149, %c0_150, %c0_151] : memref<1x10x10x64xbf16, #tpu.memory_space<vmem>>, vector<1x8x8x64xbf16>
    %90 = vector.shape_cast %89 : vector<1x8x8x64xbf16> to vector<64x64xbf16>
    %c0_152 = arith.constant 0 : index
    %c0_153 = arith.constant 0 : index
    %c1_154 = arith.constant 1 : index
    %c0_155 = arith.constant 0 : index
    %91 = vector.load %arg15[%c0_152, %c0_153, %c1_154, %c0_155] : memref<1x10x10x64xbf16, #tpu.memory_space<vmem>>, vector<1x8x8x64xbf16>
    %92 = vector.shape_cast %91 : vector<1x8x8x64xbf16> to vector<64x64xbf16>
    %c0_156 = arith.constant 0 : index
    %c0_157 = arith.constant 0 : index
    %c2_158 = arith.constant 2 : index
    %c0_159 = arith.constant 0 : index
    %93 = vector.load %arg15[%c0_156, %c0_157, %c2_158, %c0_159] : memref<1x10x10x64xbf16, #tpu.memory_space<vmem>>, vector<1x8x8x64xbf16>
    %94 = vector.shape_cast %93 : vector<1x8x8x64xbf16> to vector<64x64xbf16>
    %c0_160 = arith.constant 0 : index
    %c1_161 = arith.constant 1 : index
    %c0_162 = arith.constant 0 : index
    %c0_163 = arith.constant 0 : index
    %95 = vector.load %arg15[%c0_160, %c1_161, %c0_162, %c0_163] : memref<1x10x10x64xbf16, #tpu.memory_space<vmem>>, vector<1x8x8x64xbf16>
    %96 = vector.shape_cast %95 : vector<1x8x8x64xbf16> to vector<64x64xbf16>
    %c0_164 = arith.constant 0 : index
    %c1_165 = arith.constant 1 : index
    %c1_166 = arith.constant 1 : index
    %c0_167 = arith.constant 0 : index
    %97 = vector.load %arg15[%c0_164, %c1_165, %c1_166, %c0_167] : memref<1x10x10x64xbf16, #tpu.memory_space<vmem>>, vector<1x8x8x64xbf16>
    %98 = vector.shape_cast %97 : vector<1x8x8x64xbf16> to vector<64x64xbf16>
    %c0_168 = arith.constant 0 : index
    %c1_169 = arith.constant 1 : index
    %c2_170 = arith.constant 2 : index
    %c0_171 = arith.constant 0 : index
    %99 = vector.load %arg15[%c0_168, %c1_169, %c2_170, %c0_171] : memref<1x10x10x64xbf16, #tpu.memory_space<vmem>>, vector<1x8x8x64xbf16>
    %100 = vector.shape_cast %99 : vector<1x8x8x64xbf16> to vector<64x64xbf16>
    %c0_172 = arith.constant 0 : index
    %c2_173 = arith.constant 2 : index
    %c0_174 = arith.constant 0 : index
    %c0_175 = arith.constant 0 : index
    %101 = vector.load %arg15[%c0_172, %c2_173, %c0_174, %c0_175] : memref<1x10x10x64xbf16, #tpu.memory_space<vmem>>, vector<1x8x8x64xbf16>
    %102 = vector.shape_cast %101 : vector<1x8x8x64xbf16> to vector<64x64xbf16>
    %c0_176 = arith.constant 0 : index
    %c2_177 = arith.constant 2 : index
    %c1_178 = arith.constant 1 : index
    %c0_179 = arith.constant 0 : index
    %103 = vector.load %arg15[%c0_176, %c2_177, %c1_178, %c0_179] : memref<1x10x10x64xbf16, #tpu.memory_space<vmem>>, vector<1x8x8x64xbf16>
    %104 = vector.shape_cast %103 : vector<1x8x8x64xbf16> to vector<64x64xbf16>
    %c0_180 = arith.constant 0 : index
    %c2_181 = arith.constant 2 : index
    %c2_182 = arith.constant 2 : index
    %c0_183 = arith.constant 0 : index
    %105 = vector.load %arg15[%c0_180, %c2_181, %c2_182, %c0_183] : memref<1x10x10x64xbf16, #tpu.memory_space<vmem>>, vector<1x8x8x64xbf16>
    %106 = vector.shape_cast %105 : vector<1x8x8x64xbf16> to vector<64x64xbf16>
    %107 = tpu.concatenate %90, %92, %94, %96, %98, %100, %102, %104, %106 in 1 : vector<64x64xbf16>, vector<64x64xbf16>, vector<64x64xbf16>, vector<64x64xbf16>, vector<64x64xbf16>, vector<64x64xbf16>, vector<64x64xbf16>, vector<64x64xbf16>, vector<64x64xbf16> -> vector<64x576xbf16>
    %c0_184 = arith.constant 0 : index
    %c0_185 = arith.constant 0 : index
    %108 = vector.load %arg6[%c0_184, %c0_185] : memref<576x128xbf16, #tpu.memory_space<vmem>>, vector<576x128xbf16>
    %cst_186 = arith.constant dense<0.000000e+00> : vector<64x128xf32>
    %109 = tpu.matmul %107, %108, %cst_186 {dimension_numbers = #tpu.dot_dimension_numbers<[1], [0], [0], [1], [0, 0, 1, 1], [], []>} : vector<64x576xbf16>, vector<576x128xbf16>, vector<64x128xf32> -> vector<64x128xf32>
    %c0_187 = arith.constant 0 : index
    %c0_188 = arith.constant 0 : index
    %110 = vector.load %arg7[%c0_187, %c0_188] : memref<1x128xf32, #tpu.memory_space<vmem>>, vector<1x128xf32>
    %111 = vector.broadcast %110 : vector<1x128xf32> to vector<64x128xf32>
    %112 = arith.addf %109, %111 : vector<64x128xf32>
    %cst_189 = arith.constant 0.000000e+00 : f32
    %113 = vector.broadcast %cst_189 : f32 to vector<64x128xf32>
    %114 = arith.maximumf %112, %113 : vector<64x128xf32>
    %115 = vector.shape_cast %114 : vector<64x128xf32> to vector<1x8x4x2x128xf32>
    %116 = vector.extract_strided_slice %115 {offsets = [0, 0, 0, 0, 0], sizes = [1, 8, 4, 1, 128], strides = [1, 1, 1, 1, 1]} : vector<1x8x4x2x128xf32> to vector<1x8x4x1x128xf32>
    %117 = vector.shape_cast %116 : vector<1x8x4x1x128xf32> to vector<1x8x4x128xf32>
    %118 = vector.extract_strided_slice %115 {offsets = [0, 0, 0, 1, 0], sizes = [1, 8, 4, 1, 128], strides = [1, 1, 1, 1, 1]} : vector<1x8x4x2x128xf32> to vector<1x8x4x1x128xf32>
    %119 = vector.shape_cast %118 : vector<1x8x4x1x128xf32> to vector<1x8x4x128xf32>
    %120 = arith.maximumf %117, %119 : vector<1x8x4x128xf32>
    %121 = vector.shape_cast %120 : vector<1x8x4x128xf32> to vector<1x4x2x4x128xf32>
    %122 = vector.extract_strided_slice %121 {offsets = [0, 0, 0, 0, 0], sizes = [1, 4, 1, 4, 128], strides = [1, 1, 1, 1, 1]} : vector<1x4x2x4x128xf32> to vector<1x4x1x4x128xf32>
    %123 = vector.shape_cast %122 : vector<1x4x1x4x128xf32> to vector<1x4x4x128xf32>
    %124 = vector.extract_strided_slice %121 {offsets = [0, 0, 1, 0, 0], sizes = [1, 4, 1, 4, 128], strides = [1, 1, 1, 1, 1]} : vector<1x4x2x4x128xf32> to vector<1x4x1x4x128xf32>
    %125 = vector.shape_cast %124 : vector<1x4x1x4x128xf32> to vector<1x4x4x128xf32>
    %126 = arith.maximumf %123, %125 : vector<1x4x4x128xf32>
    %127 = vector.shape_cast %126 : vector<1x4x4x128xf32> to vector<1x16x128xf32>
    %cst_190 = arith.constant dense<0.000000e+00> : vector<1x128xf32>
    %128 = vector.multi_reduction <add>, %127, %cst_190 [1] : vector<1x16x128xf32> to vector<1x128xf32>
    %cst_191 = arith.constant 6.250000e-02 : f32
    %129 = vector.broadcast %cst_191 : f32 to vector<1x128xf32>
    %130 = arith.mulf %128, %129 : vector<1x128xf32>
    %131 = arith.truncf %130 : vector<1x128xf32> to vector<1x128xbf16>
    %c0_192 = arith.constant 0 : index
    %c0_193 = arith.constant 0 : index
    %132 = vector.load %arg8[%c0_192, %c0_193] : memref<128x64xbf16, #tpu.memory_space<vmem>>, vector<128x64xbf16>
    %cst_194 = arith.constant dense<0.000000e+00> : vector<1x64xf32>
    %133 = tpu.matmul %131, %132, %cst_194 {dimension_numbers = #tpu.dot_dimension_numbers<[1], [0], [0], [1], [0, 0, 1, 1], [], []>} : vector<1x128xbf16>, vector<128x64xbf16>, vector<1x64xf32> -> vector<1x64xf32>
    %c0_195 = arith.constant 0 : index
    %c0_196 = arith.constant 0 : index
    %134 = vector.load %arg9[%c0_195, %c0_196] : memref<1x64xf32, #tpu.memory_space<vmem>>, vector<1x64xf32>
    %135 = arith.addf %133, %134 : vector<1x64xf32>
    %cst_197 = arith.constant 0.000000e+00 : f32
    %136 = vector.broadcast %cst_197 : f32 to vector<1x64xf32>
    %137 = arith.maximumf %135, %136 : vector<1x64xf32>
    %138 = arith.truncf %137 : vector<1x64xf32> to vector<1x64xbf16>
    %c0_198 = arith.constant 0 : index
    %c0_199 = arith.constant 0 : index
    %139 = vector.load %arg10[%c0_198, %c0_199] : memref<64x2xbf16, #tpu.memory_space<vmem>>, vector<64x2xbf16>
    %cst_200 = arith.constant dense<0.000000e+00> : vector<1x2xf32>
    %140 = tpu.matmul %138, %139, %cst_200 {dimension_numbers = #tpu.dot_dimension_numbers<[1], [0], [0], [1], [0, 0, 1, 1], [], []>} : vector<1x64xbf16>, vector<64x2xbf16>, vector<1x2xf32> -> vector<1x2xf32>
    %c0_201 = arith.constant 0 : index
    %c0_202 = arith.constant 0 : index
    %141 = vector.load %arg11[%c0_201, %c0_202] : memref<1x2xf32, #tpu.memory_space<vmem>>, vector<1x2xf32>
    %142 = arith.addf %140, %141 : vector<1x2xf32>
    %c0_203 = arith.constant 0 : index
    %c0_204 = arith.constant 0 : index
    %c0_205 = arith.constant 0 : index
    %143 = vector.load %arg12[%c0_203, %c0_204, %c0_205] : memref<1x1x2xf32, #tpu.memory_space<vmem>>, vector<1x1x2xf32>
    %144 = vector.shape_cast %143 : vector<1x1x2xf32> to vector<1x2xf32>
    %145 = vector.shape_cast %142 : vector<1x2xf32> to vector<1x1x2xf32>
    tpu.vector_store %arg12[%c0_203, %c0_204, %c0_205], %145 {strides = array<i32>} : memref<1x1x2xf32, #tpu.memory_space<vmem>>, vector<1x1x2xf32>,
    return
  }
  func.func @transform_0(%arg0: i32) -> (i32, i32, i32, i32) {
    %c0_i32 = arith.constant 0 : i32
    %c0_i32_0 = arith.constant 0 : i32
    %c0_i32_1 = arith.constant 0 : i32
    %c0_i32_2 = arith.constant 0 : i32
    return %arg0, %c0_i32, %c0_i32_0, %c0_i32_1 : i32, i32, i32, i32
  }
  func.func @transform_1(%arg0: i32) -> (i32, i32) {
    %c0_i32 = arith.constant 0 : i32
    %c0_i32_0 = arith.constant 0 : i32
    %c0_i32_1 = arith.constant 0 : i32
    return %c0_i32, %c0_i32_0 : i32, i32
  }
  func.func @transform_2(%arg0: i32) -> (i32, i32) {
    %c0_i32 = arith.constant 0 : i32
    %c0_i32_0 = arith.constant 0 : i32
    %c0_i32_1 = arith.constant 0 : i32
    return %c0_i32, %c0_i32_0 : i32, i32
  }
  func.func @transform_3(%arg0: i32) -> (i32, i32) {
    %c0_i32 = arith.constant 0 : i32
    %c0_i32_0 = arith.constant 0 : i32
    %c0_i32_1 = arith.constant 0 : i32
    return %c0_i32, %c0_i32_0 : i32, i32
  }
  func.func @transform_4(%arg0: i32) -> (i32, i32) {
    %c0_i32 = arith.constant 0 : i32
    %c0_i32_0 = arith.constant 0 : i32
    %c0_i32_1 = arith.constant 0 : i32
    return %c0_i32, %c0_i32_0 : i32, i32
  }
  func.func @transform_5(%arg0: i32) -> (i32, i32) {
    %c0_i32 = arith.constant 0 : i32
    %c0_i32_0 = arith.constant 0 : i32
    %c0_i32_1 = arith.constant 0 : i32
    return %c0_i32, %c0_i32_0 : i32, i32
  }
  func.func @transform_6(%arg0: i32) -> (i32, i32) {
    %c0_i32 = arith.constant 0 : i32
    %c0_i32_0 = arith.constant 0 : i32
    %c0_i32_1 = arith.constant 0 : i32
    return %c0_i32, %c0_i32_0 : i32, i32
  }
  func.func @transform_7(%arg0: i32) -> (i32, i32) {
    %c0_i32 = arith.constant 0 : i32
    %c0_i32_0 = arith.constant 0 : i32
    %c0_i32_1 = arith.constant 0 : i32
    return %c0_i32, %c0_i32_0 : i32, i32
  }
  func.func @transform_8(%arg0: i32) -> (i32, i32) {
    %c0_i32 = arith.constant 0 : i32
    %c0_i32_0 = arith.constant 0 : i32
    %c0_i32_1 = arith.constant 0 : i32
    return %c0_i32, %c0_i32_0 : i32, i32
  }
  func.func @transform_9(%arg0: i32) -> (i32, i32) {
    %c0_i32 = arith.constant 0 : i32
    %c0_i32_0 = arith.constant 0 : i32
    %c0_i32_1 = arith.constant 0 : i32
    return %c0_i32, %c0_i32_0 : i32, i32
  }
  func.func @transform_10(%arg0: i32) -> (i32, i32) {
    %c0_i32 = arith.constant 0 : i32
    %c0_i32_0 = arith.constant 0 : i32
    %c0_i32_1 = arith.constant 0 : i32
    return %c0_i32, %c0_i32_0 : i32, i32
  }
  func.func @transform_11(%arg0: i32) -> (i32, i32, i32) {
    %c0_i32 = arith.constant 0 : i32
    %c0_i32_0 = arith.constant 0 : i32
    %c0_i32_1 = arith.constant 0 : i32
    return %arg0, %c0_i32, %c0_i32_0 : i32, i32, i32
  }
}

</mosaic_0001>

<bundles_post_ra>
// kernel: distortion_param_estimator.1
= control target key start
LH: loop header
LB: loop body
LE: loop exit
PB: predicated region body
PF: predicated region fallthrough
CT: control target
= control target key end

     0   :  { %16 = vsyncpa [#allocation6], 0  ;;  %s18927_s0 = inlined_call_operand.vmem [shape: bf16[2,16,16,4], index: 0, kind: input, shape index: {}]   ;;  %s18928_s1 = inlined_call_operand.vmem [shape: bf16[36,32], index: 1, kind: input, shape index: {}]   ;;  %s18929_s2 = inlined_call_operand.vmem [shape: f32[1,32], index: 2, kind: input, shape index: {}]   ;;  %s18930_s3 = inlined_call_operand.vmem [shape: bf16[288,64], index: 3, kind: input, shape index: {}]   ;;  %s18931_s4 = inlined_call_operand.vmem [shape: f32[1,64], index: 4, kind: input, shape index: {}]   ;;  %s18932_s5 = inlined_call_operand.vmem [shape: bf16[576,128], index: 5, kind: input, shape index: {}]   ;;  %s18933_s6 = inlined_call_operand.vmem [shape: f32[1,128], index: 6, kind: input, shape index: {}]   ;;  %s18934_s7 = inlined_call_operand.vmem [shape: bf16[128,64], index: 7, kind: input, shape index: {}]   ;;  %s18935_s8 = inlined_call_operand.vmem [shape: f32[1,64], index: 8, kind: input, shape index: {}]   ;;  %s18936_s9 = inlined_call_operand.vmem [shape: bf16[64,2], index: 9, kind: input, shape index: {}]   ;;  %s18937_s10 = inlined_call_operand.vmem [shape: f32[1,2], index: 10, kind: input, shape index: {}]   ;;  %s18938_s11 = inlined_call_operand.hbm [shape: f32[2,1,2], index: 11, kind: output, shape index: {}]  }
   0x1   :  { %18 = vsyncpa [#allocation6 + $0x1], 0  ;;  %s13627_s17 = smov 0   ;;  %s13629_s18 = smov 0  }
   0x2   :  { %s13631_s19 = smov 0   ;;  %s13633_s20 = smov 0  }
   0x3 LB: > { %s13648_s21 = sadd.s32 4294967295, %s13550_s20   ;;  %s11872_s22 = sadd.s32 4294967294, %s13550_s20   ;;  %s13550_s20 = sphi %s13633_s20, %s19158_s20   ;;  %s13546_s19 = sphi %s13631_s19, %s19157_s19   ;;  %s13542_s18 = sphi %s13629_s18, %s19156_s18   ;;  %s13538_s17 = sphi %s13627_s17, %s19155_s17  }
   0x4   : > { %s13652_s23 = sadd.s32 1, %s13550_s20   ;;  %s267_s24 = sadd.s32 1, %s13546_s19 }
   0x5   : > { %s264_s25 = ssub.s32 %s13550_s20, %s13652_s23  ;;  %p277_p0 = scmp.ne.s32.totalorder %s13546_s19, %s13542_s18 }
   0x6   : > { %p265_p1 = scmp.eq.s32.totalorder %s264_s25, 0  ;;  %p278_p2 = scmp.eq.s32.totalorder %s13648_s21, 1 }
   0x7   : > { %p283_p3 = scmp.ne.s32.totalorder %s13542_s18, %s13538_s17  ;;  %p284_p4 = scmp.eq.s32.totalorder %s11872_s22, 1 }
   0x8   : > { %s13663_s26 = scalar_select %p265_p1, %s13546_s19, %s267_s24  }
   0x9   : > { %p13665_p5 = por %p278_p2, %p277_p0  ;;  %p13669_p6 = por %p284_p4, %p283_p3 }
   0xa   : > { %p11875_p7 = scmp.ge.s32.totalorder %s13550_s20, 1  ;;  %p340_p8 = scmp.lt.s32.totalorder %s13550_s20, 3 }
   0xc   : > { %p341_p9 = pnand %p11875_p7, %p340_p8 }
   0xe   : > { %344 = sbr.rel (%p341_p9) target bundleno = 2115 (0x843), region = 64 }
  0x15   : > { %vm385_vm0 = vcmask 27648   ;;  %vm388_vm1 = vcmask 24576   ;;  %vm18945_vm2 = vsmask.f32 256  ;;  %v18947_v0 = vmov 0   ;;  %p379_p10 = scmp.lt.s32.totalorder %s13648_s21, 1 }
  0x16   : > { %386 = vst.msk [vmem:[#allocation2] sm:$0xf] %vm385_vm0, %v18947_v0  ;;  %387 = vst.msk [vmem:[#allocation2 + $0x4] sm:$0xf] %vm385_vm0, %v18947_v0  ;;  %vm18943_vm4 = vcmask 257024   ;;  %vm1475_vm7 = vcmask 1042432  }
  0x17   : > { %389 = vst.msk [vmem:[#allocation2 + $0x8] sm:$0x1] %vm388_vm1, %v18947_v0  ;;  %vm13683_vm3 = vmand %vm388_vm1, %vm18945_vm2  ;;  %vm18944_vm5 = vsmask.f32 7938  ;;  %v400_v2 = vld [vmem:[#allocation2 + $0xc] sm:$0x1] }
  0x18   : > { %391 = vst.msk [vmem:[#allocation2 + $0xcc] sm:$0xf] %vm385_vm0, %v18947_v0  ;;  %392 = vst.msk [vmem:[#allocation2 + $0xd0] sm:$0xf] %vm385_vm0, %v18947_v0  ;;  %s380_s29 = scalar_select %p379_p10, %s13648_s21, 1  ;;  %v401_v3 = vsel %vm13683_vm3, 0, %v400_v2 }
  0x19   : > { %393 = vst.msk [vmem:[#allocation2 + $0xd4] sm:$0x1] %vm388_vm1, %v18947_v0  ;;  %v403_v4 = vld [vmem:[#allocation2 + $0x18] sm:$0x1]  ;;  %v406_v5 = vld [vmem:[#allocation2 + $0x24] sm:$0x1]  ;;  %vm13711_vm6 = vmand %vm388_vm1, %vm18944_vm5 }
  0x1a   : > { %4081 = vst.msk [vmem:[#allocation3] sm:$0xf] %vm18943_vm4, %v18947_v0  ;;  %4082 = vst.msk [vmem:[#allocation3 + $0x4] sm:$0xf] %vm18943_vm4, %v18947_v0  ;;  %v404_v6 = vsel %vm13683_vm3, 0, %v403_v4  ;;  %v407_v7 = vsel %vm13683_vm3, 0, %v406_v5 }
  0x1b   : > { %4086 = vst.msk [vmem:[#allocation3 + $0xcc] sm:$0xf] %vm18943_vm4, %v18947_v0  ;;  %4087 = vst.msk [vmem:[#allocation3 + $0xd0] sm:$0xf] %vm18943_vm4, %v18947_v0  ;;  %s12698_s30 = sshll.u32 %s380_s29, 7  ;;  %vm1476_vm8 = vcmask 1046532  }
  0x1c   : > { %402 = vst [vmem:[#allocation2 + $0xc] sm:$0x1] %v401_v3  ;;  %405 = vst [vmem:[#allocation2 + $0x18] sm:$0x1] %v404_v6  ;;  %v456_v9 = vld [vmem:[#allocation2 + $0x14] sm:$0x1]  ;;  %s13718_s14 = scalar_lea.vmem %s18927_s0, %s12698_s30 }
  0x1d   : > { %408 = vst [vmem:[#allocation2 + $0x24] sm:$0x1] %v407_v7  ;;  %v459_v10 = vld [vmem:[#allocation2 + $0x20] sm:$0x1]  ;;  %vm539_vm9 = vsmask.f32 4368  ;;  %vm13737_vm10 = vmor %vm1475_vm7, %vm1476_vm8 }
  0x1e   : > { %v457_v11 = vsel %vm13711_vm6, 0, %v456_v9  ;;  %v460_v12 = vsel %vm13711_vm6, 0, %v459_v10  ;;  %v507_v13 = vld [vmem:[%s13718_s14] sm:$0xf]  ;;  %v508_v14 = vld [vmem:[%s13718_s14 + $0x4] sm:$0xf]  ;;  %vm13743_vm11 = vmand %vm385_vm0, %vm18944_vm5 }
  0x1f   : > { %v509_v15 = vld [vmem:[%s13718_s14 + $0x8] sm:$0xf]  ;;  %458 = vst [vmem:[#allocation2 + $0x14] sm:$0x1] %v457_v11  ;;  %461 = vst [vmem:[#allocation2 + $0x20] sm:$0x1] %v460_v12 }
  0x20   : > { %v453_v16 = vld [vmem:[#allocation2 + $0x8] sm:$0x1]  ;;  %v13727_v17 = vld [vmem:[#allocation2 + $0x4] sm:$0xf]  ;;  %v1411_v18 = vld [vmem:[#allocation2] sm:$0xe] }
  0x21   : > { %v454_v19 = vsel %vm13711_vm6, 0, %v453_v16  ;;  %v11878_v20 = vrot.slane %v1411_v18, 9  ;;  %v1480_v21 = vrot.slane %v13727_v17, 5  ;;  %v397_v22 = vld [vmem:[#allocation2] sm:$0x1]  ;;  %v542_v23 = vshrl.u32 %v507_v13, 16  ;;  %vm13749_vm12 = vmor %vm18945_vm2, %vm539_vm9 }
  0x22   : > { %455 = vst [vmem:[#allocation2 + $0x8] sm:$0x1] %v454_v19  ;;  %v398_v24 = vsel %vm13683_vm3, 0, %v397_v22  ;;  %v545_v25 = vshll.u32 %v507_v13, 16  ;;  %v550_v26 = vshrl.u32 %v508_v14, 16  ;;  %v553_v27 = vshll.u32 %v508_v14, 16 }
  0x23   : > { %v510_v28 = vld [vmem:[%s13718_s14 + $0xc] sm:$0xf]  ;;  %399 = vst [vmem:[#allocation2] sm:$0x1] %v398_v24  ;;  %v544_v30 = vrot.slane %v542_v23, 7  ;;  %v559_v31 = vshrl.u32 %v509_v15, 16  ;;  %v1481_v44 = vsel %vm13737_vm10, %v11878_v20, %v1480_v21 }
  0x24   : > { %v552_v33 = vrot.slane %v550_v26, 7  ;;  %v864_v34 = vld [vmem:[#allocation2 + $0xc] sm:$0xf]  ;;  %v562_v35 = vshll.u32 %v509_v15, 16  ;;  %v567_v36 = vshrl.u32 %v510_v28, 16  ;;  %v570_v37 = vshll.u32 %v510_v28, 16 }
  0x25   : > { %v1482_v38 = vrot.slane %v1480_v21, 4  ;;  %v547_v40 = vor.u32 %v545_v25, %v544_v30  ;;  %v548_v41 = vrot.slane %v544_v30, 4  ;;  %v561_v42 = vrot.slane %v559_v31, 7  ;;  %v511_v43 = vld [vmem:[%s13718_s14 + $0x10] sm:$0xf]  ;;  %s13553_s15 = smov 8  }
  0x26   : > { %v555_v45 = vor.u32 %v553_v27, %v552_v33  ;;  %v569_v46 = vrot.slane %v567_v36, 7  ;;  %v871_v47 = vld [vmem:[#allocation2 + $0x18] sm:$0xf]  ;;  %v512_v48 = vld [vmem:[%s13718_s14 + $0x14] sm:$0xf]  ;;  %v576_v49 = vshrl.u32 %v511_v43, 16 }
  0x27   : > { %v865_v50 = vsel %vm13743_vm11, %v547_v40, %v864_v34  ;;  %v564_v51 = vor.u32 %v562_v35, %v561_v42  ;;  %v565_v52 = vrot.slane %v561_v42, 4  ;;  %v579_v53 = vshll.u32 %v511_v43, 16  ;;  %v878_v58 = vld [vmem:[#allocation2 + $0x24] sm:$0xf]  ;;  %v868_v12 = vld [vmem:[#allocation2 + $0x14] sm:$0x1] }
  0x28   : > { %v556_v54 = vsel %vm13749_vm12, %v548_v41, %v555_v45  ;;  %v557_v55 = vrot.slane %v552_v33, 4  ;;  %866 = vst [vmem:[#allocation2 + $0xc] sm:$0xf] %v865_v50  ;;  %v572_v56 = vor.u32 %v570_v37, %v569_v46  ;;  %v578_v57 = vrot.slane %v576_v49, 7  ;;  %v875_v18 = vld [vmem:[#allocation2 + $0x20] sm:$0x1] }
  0x29   : > { %v1008_v59 = vld [vmem:[#allocation2 + $0x8] sm:$0x1]  ;;  %867 = vst.msk [vmem:[#allocation2 + $0x10] sm:$0xf] %vm385_vm0, %v556_v54  ;;  %v872_v60 = vsel %vm13743_vm11, %v564_v51, %v871_v47  ;;  %v584_v61 = vshrl.u32 %v512_v48, 16  ;;  %v587_v62 = vshll.u32 %v512_v48, 16 }
  0x2a   : > { %v1037_v63 = vshll.u32 %v13727_v17, 16  ;;  %v1483_v2 = vrot.slane %v1008_v59, 5  ;;  %v573_v3 = vsel %vm13749_vm12, %v565_v52, %v572_v56  ;;  %v574_v4 = vrot.slane %v569_v46, 4  ;;  %873 = vst [vmem:[#allocation2 + $0x18] sm:$0xf] %v872_v60  ;;  %s18939_s16 = smov 12  }
  0x2b   : > { %v581_v5 = vor.u32 %v579_v53, %v578_v57  ;;  %v976_v6 = vld [vmem:[#allocation2] sm:$0xf]  ;;  %874 = vst.msk [vmem:[#allocation2 + $0x1c] sm:$0xf] %vm385_vm0, %v573_v3  ;;  %v582_v7 = vrot.slane %v578_v57, 4  ;;  %v13768_v9 = vrot.slane %v584_v61, 7  ;;  %v869_v25 = vsel %vm13683_vm3, %v557_v55, %v868_v12 }
  0x2c   : > { %v1028_v10 = vshrl.u32 %v976_v6, 16  ;;  %v1031_v11 = vshll.u32 %v976_v6, 16  ;;  %v1047_v13 = vshll.u32 %v1008_v59, 16  ;;  %v1484_v14 = vsel %vm13737_vm10, %v1482_v38, %v1483_v2  ;;  %870 = vst [vmem:[#allocation2 + $0x14] sm:$0x1] %v869_v25  ;;  %s13555_s22 = smov 24  }
  0x2d   : > { %v879_v15 = vsel %vm13743_vm11, %v581_v5, %v878_v58  ;;  %v1041_v16 = vshrl.u32 %v13727_v17, 16  ;;  %v11958_v19 = vcombine.low %v1481_v44, %v1484_v14  ;;  %v589_v20 = vor.u32 %v587_v62, %v13768_v9  ;;  %s18941_s24 = smov 4   ;;  %s13557_s25 = smov 20  }
  0x2e   : > { %880 = vst [vmem:[#allocation2 + $0x24] sm:$0xf] %v879_v15  ;;  %v1030_v21 = vrot.slane %v1028_v10, 4  ;;  %v13776_v22 = vrot.slane %v1037_v63, 5  ;;  %v1033_v23 = vrot.slane %v1031_v11, 5  ;;  %v876_v27 = vsel %vm13683_vm3, %v574_v4, %v875_v18  ;;  %s13558_s29 = smov 32  }
  0x2f   : > { %v1043_v24 = vrot.slane %v1041_v16, 4  ;;  %2999 = vrot.lane.b32.xlu1 %v11958_v19, %s13553_s15  ;;  %v1590_v26 = vld [vmem:[#allocation2 + $0xc] sm:$0xf]  ;;  %v590_v17 = vsel %vm13749_vm12, %v582_v7, %v589_v20  ;;  %vm1024_vm13 = vsmask.f32 3328  ;;  %v591_v33 = vrot.slane %v13768_v9, 4 }
  0x30   : > { %vm1025_vm14 = vsmask.f32 7440  ;;  %v13785_v28 = vld [vmem:[#allocation2 + $0x10] sm:$0xf]  ;;  %v1639_v30 = vshrl.u32 %v1590_v26, 16  ;;  %v1642_v31 = vshll.u32 %v1590_v26, 16  ;;  %v1034_v40 = vor.u32 %v1033_v23, %v1030_v21 }
  0x31   : > { %881 = vst.msk [vmem:[#allocation2 + $0x28] sm:$0xf] %vm385_vm0, %v590_v17  ;;  %v1049_v34 = vrot.slane %v1047_v13, 5  ;;  %877 = vst [vmem:[#allocation2 + $0x20] sm:$0x1] %v876_v27  ;;  %v1652_v35 = vshrl.u32 %v13785_v28, 16  ;;  %v11974_v36 = vcombine.low %v1590_v26, %v13785_v28  ;;  %v1044_v41 = vor.u32 %v1043_v24, %v13776_v22 }
  0x32   : > { %v1592_v37 = vld [vmem:[#allocation2 + $0x18] sm:$0xf]  ;;  %v13794_v42 = vrot.slane %v1639_v30, 4  ;;  %v13796_v43 = vrot.slane %v1642_v31, 5  ;;  %v13798_v44 = vld [vmem:[#allocation2 + $0x1c] sm:$0xf]  ;;  %vm13824_vm15 = vmor %vm1024_vm13, %vm1025_vm14 }
  0x33   : > { %v13791_v38 = vld [vmem:[#allocation2 + $0x18] sm:$0xf]  ;;  %v1663_v45 = vshrl.u32 %v1592_v37, 16  ;;  %v1666_v46 = vshll.u32 %v1592_v37, 16  ;;  %v13800_v47 = vld [vmem:[#allocation2 + $0x10] sm:$0xf]  ;;  %3095 = vrot.lane.b32.xlu0 %v11974_v36, %s18939_s16  ;;  %v11975_v51 = vcombine.low %v1592_v37, %v13798_v44 }
  0x34   : > { %v1412_v48 = vld [vmem:[#allocation2 + $0xc] sm:$0xe]  ;;  %v1648_v49 = vshll.u32 %v13785_v28, 16  ;;  %v13803_v50 = vrot.slane %v1652_v35, 4  ;;  %v13807_v52 = vld [vmem:[#allocation2 + $0x1c] sm:$0xf]  ;;  %v1645_v3 = vor.u32 %v13796_v43, %v13794_v42 }
  0x35   : > { %v2248_v53 = vshrl.u32 %v13791_v38, 16  ;;  %v1676_v54 = vshrl.u32 %v13798_v44, 16  ;;  %v13811_v55 = vrot.slane %v1663_v45, 4  ;;  %v13813_v56 = vrot.slane %v1666_v46, 5  ;;  %v2201_v58 = vld [vmem:[#allocation2 + $0x24] sm:$0xf]  ;;  %3097 = vrot.lane.b32.xlu1 %v11975_v51, %s18939_s16 }
  0x36   : > { %v2251_v57 = vshll.u32 %v13791_v38, 16  ;;  %v2261_v60 = vshrl.u32 %v13807_v52, 16  ;;  %v12022_v61 = vcombine.low %v13791_v38, %v13807_v52  ;;  %v2272_v62 = vshrl.u32 %v2201_v58, 16  ;;  %v2022_v2 = vld [vmem:[#allocation2 + $0xc] sm:$0xe]  ;;  %s13559_s30 = smov 16  }
  0x37   : > { %v13817_v59 = vrot.slane %v2248_v53, 4  ;;  %v2275_v4 = vshll.u32 %v2201_v58, 16  ;;  %v1035_v5 = vrot.slane %v1034_v40, 4  ;;  %v13830_v6 = vld [vmem:[#allocation2 + $0x14] sm:$0x1]  ;;  %v1045_v12 = vrot.slane %v1044_v41, 4 }
  0x38   : > { %v2023_v7 = vld [vmem:[#allocation2 + $0x18] sm:$0xe]  ;;  %3351 = vrot.lane.b32.xlu0 %v12022_v61, %s13555_s22  ;;  %v13833_v10 = vld [vmem:[#allocation2 + $0x28] sm:$0xf]  ;;  %v13835_v11 = vrot.slane %v2272_v62, 4  ;;  %v11879_v13 = vrot.slane %v1412_v48, 9  ;;  %v1669_v61 = vor.u32 %v13813_v56, %v13811_v55 }
  0x39   : > { %v1487_v14 = vrot.slane %v13800_v47, 5  ;;  %v13838_v15 = vrot.slane %v2275_v4, 5  ;;  %v2285_v16 = vshrl.u32 %v13833_v10, 16  ;;  %v12023_v18 = vcombine.low %v2201_v58, %v13833_v10  ;;  %v13845_v20 = vld [vmem:[#allocation2 + $0x14] sm:$0x1]  ;;  %s13560_s12 = smov 28  }
  0x3a   : > { %v1040_v19 = vsel %vm13824_vm15, %v1035_v5, %v13776_v22  ;;  %v1623_v21 = vld [vmem:[#allocation2 + $0x20] sm:$0x1]  ;;  %v1050_v23 = vsel %vm13824_vm15, %v1045_v12, %v1049_v34  ;;  %v1490_v26 = vrot.slane %v13830_v6, 5  ;;  %v2631_v17 = vld [vmem:[#allocation2 + $0x18] sm:$0xe]  ;;  %v11894_v30 = vrot.slane %v2022_v2, 9 }
  0x3b   : > { %v1488_v24 = vsel %vm13737_vm10, %v11879_v13, %v1487_v14  ;;  %v1489_v25 = vrot.slane %v1487_v14, 4  ;;  %3353 = vrot.lane.b32.xlu1 %v12023_v18, %s13555_s22  ;;  %v11942_v27 = vcombine.low %v1040_v19, %v1050_v23  ;;  %v2088_v31 = vrot.slane %v13785_v28, 5  ;;  %v13855_v35 = vld [vmem:[#allocation2 + $0x20] sm:$0x1]  ;;  %v462_v4 = vld [vmem:[#allocation2 + $0x2c] sm:$0x1] }
  0x3c   : > { %v2091_v22 = vrot.slane %v13845_v20, 5  ;;  %v11895_v36 = vrot.slane %v2023_v7, 9  ;;  %v2095_v37 = vrot.slane %v13798_v44, 5  ;;  %v2098_v40 = vrot.slane %v1623_v21, 5  ;;  %v2632_v5 = vld [vmem:[#allocation2 + $0x24] sm:$0xe] }
  0x3d   : > { %v1491_v34 = vsel %vm13737_vm10, %v1489_v25, %v1490_v26  ;;  %2919 = vrot.lane.b32.xlu0 %v11942_v27, %s18941_s24  ;;  %v2089_v42 = vsel %vm13737_vm10, %v11894_v30, %v2088_v31  ;;  %v2090_v43 = vrot.slane %v2088_v31, 4  ;;  %v11910_v45 = vrot.slane %v2631_v17, 9  ;;  %v978_v56 = vld [vmem:[#allocation2 + $0xc] sm:$0xf]  ;;  %s13562_s13 = smov 96  }
  0x3e   : > { %v11959_v41 = vcombine.low %v1488_v24, %v1491_v34  ;;  %v2096_v46 = vsel %vm13737_vm10, %v11895_v36, %v2095_v37  ;;  %v2097_v48 = vrot.slane %v2095_v37, 4  ;;  %v2697_v51 = vrot.slane %v13807_v52, 5 }
  0x3f   : > { %v2700_v53 = vrot.slane %v13855_v35, 5  ;;  %v2092_v58 = vsel %vm13737_vm10, %v2090_v43, %v2091_v22  ;;  %v1672_v62 = vshll.u32 %v13798_v44, 16  ;;  %v1678_v2 = vrot.slane %v1676_v54, 4 }
  0x40   : > { %3001 = vrot.lane.b32.xlu1 %v11959_v41, %s13553_s15  ;;  %v12006_v7 = vcombine.low %v2089_v42, %v2092_v58  ;;  %v2099_v12 = vsel %vm13737_vm10, %v2097_v48, %v2098_v40  ;;  %v2698_v13 = vsel %vm13737_vm10, %v11910_v45, %v2697_v51  ;;  %v2699_v14 = vrot.slane %v2697_v51, 4  ;;  %v13907_v45 = vld [vmem:[#allocation2 + $0x1c] sm:$0xf] }
  0x41   : > { %v12007_v18 = vcombine.low %v2096_v46, %v2099_v12  ;;  %v1670_v19 = vrot.slane %v1669_v61, 4  ;;  %v1674_v23 = vrot.slane %v1672_v62, 5  ;;  %v1682_v24 = vshll.u32 %v1623_v21, 16  ;;  %v13914_v62 = vld [vmem:[#allocation2 + $0x20] sm:$0x1] }
  0x42   : > { %v13877_v25 = vrot.slane %v1645_v3, 4  ;;  %3255 = vrot.lane.b32.xlu0 %v12006_v7, %s13557_s25  ;;  %v2701_v44 = vsel %vm13737_vm10, %v2699_v14, %v2700_v53  ;;  %v463_v54 = vsel %vm13711_vm6, 0, %v462_v4  ;;  %v11911_v55 = vrot.slane %v2632_v5, 9 }
  0x43   : > { %v13886_v26 = vrot.slane %v2251_v57, 5  ;;  %v12054_v21 = vcombine.low %v2698_v13, %v2701_v44  ;;  %v1679_v3 = vor.u32 %v1678_v2, %v1674_v23  ;;  %v1684_v17 = vrot.slane %v1682_v24, 5  ;;  %464 = vst [vmem:[#allocation2 + $0x2c] sm:$0x1] %v463_v54 }
  0x44   : > { %3257 = vrot.lane.b32.xlu1 %v12007_v18, %s13557_s25  ;;  %v1675_v27 = vsel %vm13824_vm15, %v1670_v19, %v1674_v23  ;;  %v2704_v30 = vrot.slane %v13833_v10, 5  ;;  %v2278_v31 = vor.u32 %v13838_v15, %v13835_v11  ;;  %v2281_v22 = vshll.u32 %v13833_v10, 16  ;;  %v980_v11 = vld [vmem:[#allocation2 + $0x18] sm:$0xf]  ;;  %v982_v23 = vld [vmem:[#allocation2 + $0x24] sm:$0xf] }
  0x45   : > { %v1680_v34 = vrot.slane %v1679_v3, 4  ;;  %v2287_v38 = vrot.slane %v2285_v16, 4  ;;  %v1052_v57 = vshrl.u32 %v978_v56, 16  ;;  %v1055_v36 = vshll.u32 %v978_v56, 16 }
  0x46   : > { %3511 = vrot.lane.b32.xlu0 %v12054_v21, %s13558_s29  ;;  %v13898_v37 = vsel %vm13737_vm10, %v11911_v55, %v2704_v30  ;;  %v13900_v40 = vrot.slane %v2281_v22, 5  ;;  %v1061_v41 = vshll.u32 %v13800_v47, 16  ;;  %v1065_v42 = vshrl.u32 %v13800_v47, 16 }
  0x47   : > { %v1685_v10 = vsel %vm13824_vm15, %v1680_v34, %v1684_v17  ;;  %v1054_v15 = vrot.slane %v1052_v57, 4  ;;  %v1057_v16 = vrot.slane %v1055_v36, 5  ;;  %v1071_v43 = vshll.u32 %v13830_v6, 16 }
  0x48   : > { %v11991_v46 = vcombine.low %v1675_v27, %v1685_v10  ;;  %v13909_v48 = vrot.slane %v2704_v30, 4  ;;  %v13911_v51 = vrot.slane %v2278_v31, 4  ;;  %v1063_v53 = vrot.slane %v1061_v41, 5  ;;  %v13933_v30 = vld [vmem:[#allocation2 + $0x28] sm:$0xf] }
  0x49   : > { %v2288_v58 = vor.u32 %v2287_v38, %v13900_v40  ;;  %v1058_v61 = vor.u32 %v1057_v16, %v1054_v15  ;;  %v1067_v47 = vrot.slane %v1065_v42, 4  ;;  %v1076_v2 = vshrl.u32 %v980_v11, 16 }
  0x4a   : > { %3177 = vrot.lane.b32.xlu1 %v11991_v46, %s13559_s30  ;;  %v882_v4 = vld [vmem:[#allocation2 + $0x2c] sm:$0x1]  ;;  %v1073_v6 = vrot.slane %v1071_v43, 5  ;;  %v1079_v5 = vshll.u32 %v980_v11, 16  ;;  %v1085_v7 = vshll.u32 %v13907_v45, 16  ;;  %v1089_v12 = vshrl.u32 %v13907_v45, 16 }
  0x4b   : > { %v883_v13 = vsel %vm13683_vm3, %v591_v33, %v882_v4  ;;  %v1059_v14 = vrot.slane %v1058_v61, 4  ;;  %v1068_v18 = vor.u32 %v1067_v47, %v1063_v53  ;;  %v1078_v19 = vrot.slane %v1076_v2, 4 }
  0x4c   : > { %884 = vst [vmem:[#allocation2 + $0x2c] sm:$0x1] %v883_v13  ;;  %v1081_v24 = vrot.slane %v1079_v5, 5  ;;  %v1087_v44 = vrot.slane %v1085_v7, 5  ;;  %v1091_v54 = vrot.slane %v1089_v12, 4  ;;  %v1095_v55 = vshll.u32 %v13914_v62, 16 }
  0x4d   : > { %v2284_v56 = vsel %vm13824_vm15, %v13911_v51, %v13900_v40  ;;  %v1069_v21 = vrot.slane %v1068_v18, 4  ;;  %v13930_v9 = vrot.slane %v1648_v49, 5  ;;  %v1658_v33 = vshll.u32 %v13845_v20, 16  ;;  %v1414_v13 = vld [vmem:[#allocation2 + $0x24] sm:$0xe] }
  0x4e   : > { %v1082_v3 = vor.u32 %v1081_v24, %v1078_v19  ;;  %v1092_v17 = vor.u32 %v1091_v54, %v1087_v44  ;;  %v1097_v27 = vrot.slane %v1095_v55, 5  ;;  %v1100_v31 = vshrl.u32 %v982_v23, 16  ;;  %v409_v55 = vld [vmem:[#allocation2 + $0x30] sm:$0x1] }
  0x4f   : > { %v2289_v22 = vrot.slane %v2288_v58, 4  ;;  %v1064_v34 = vsel %vm13824_vm15, %v1059_v14, %v1063_v53  ;;  %v1074_v38 = vsel %vm13824_vm15, %v1069_v21, %v1073_v6  ;;  %v1655_v28 = vor.u32 %v13803_v50, %v13930_v9 }
  0x50   : > { %v1083_v49 = vrot.slane %v1082_v3, 4  ;;  %v1093_v57 = vrot.slane %v1092_v17, 4  ;;  %v1660_v36 = vrot.slane %v1658_v33, 5  ;;  %v1102_v20 = vrot.slane %v1100_v31, 4  ;;  %v513_v3 = vld [vmem:[%s13718_s14 + $0x18] sm:$0xf] }
  0x51   : > { %v1656_v40 = vrot.slane %v1655_v28, 4  ;;  %v1103_v41 = vshll.u32 %v982_v23, 16  ;;  %v1109_v42 = vshll.u32 %v13933_v30, 16  ;;  %v1113_v11 = vshrl.u32 %v13933_v30, 16  ;;  %v13973_v28 = vld [vmem:[#allocation2 + $0x24] sm:$0xf] }
  0x52   : > { %v1088_v10 = vsel %vm13824_vm15, %v1083_v49, %v1087_v44  ;;  %v1098_v15 = vsel %vm13824_vm15, %v1093_v57, %v1097_v27  ;;  %v1651_v50 = vsel %vm13824_vm15, %v13877_v25, %v13930_v9  ;;  %v2257_v16 = vshll.u32 %v13807_v52, 16  ;;  %v514_v27 = vld [vmem:[%s13718_s14 + $0x1c] sm:$0xf] }
  0x53   : > { %v2232_v43 = vld [vmem:[#allocation2 + $0x2c] sm:$0x1]  ;;  %v11943_v46 = vcombine.low %v1064_v34, %v1074_v38  ;;  %v1105_v53 = vrot.slane %v1103_v41, 5  ;;  %v1111_v58 = vrot.slane %v1109_v42, 5  ;;  %v2254_v61 = vor.u32 %v13886_v26, %v13817_v59  ;;  %v1413_v26 = vld [vmem:[#allocation2 + $0x18] sm:$0xe] }
  0x54   : > { %v1011_v51 = vld [vmem:[#allocation2 + $0x2c] sm:$0x1]  ;;  %v2707_v47 = vrot.slane %v2232_v43, 5  ;;  %v2291_v2 = vshll.u32 %v2232_v43, 16  ;;  %v11944_v4 = vcombine.low %v1088_v10, %v1098_v15  ;;  %v1115_v6 = vrot.slane %v1113_v11, 4 }
  0x55   : > { %v1661_v5 = vsel %vm13824_vm15, %v1656_v40, %v1660_v36  ;;  %v1106_v7 = vor.u32 %v1105_v53, %v1102_v20  ;;  %v1119_v12 = vshll.u32 %v1011_v51, 16  ;;  %v2259_v25 = vrot.slane %v2257_v16, 5  ;;  %v13978_v36 = vld [vmem:[#allocation2 + $0x28] sm:$0xf] }
  0x56   : > { %v2708_v14 = vsel %vm13737_vm10, %v13909_v48, %v2707_v47  ;;  %v2293_v18 = vrot.slane %v2291_v2, 5  ;;  %v1116_v19 = vor.u32 %v1115_v6, %v1111_v58  ;;  %v2263_v59 = vrot.slane %v2261_v60, 4  ;;  %v2024_v47 = vld [vmem:[#allocation2 + $0x24] sm:$0xe] }
  0x57   : > { %v12055_v23 = vcombine.low %v13898_v37, %v2708_v14  ;;  %v1107_v24 = vrot.slane %v1106_v7, 4  ;;  %v1121_v44 = vrot.slane %v1119_v12, 5  ;;  %v2255_v54 = vrot.slane %v2254_v61, 4  ;;  %v412_v12 = vld [vmem:[#allocation2 + $0x3c] sm:$0x1] }
  0x58   : > { %v2294_v21 = vsel %vm13824_vm15, %v2289_v22, %v2293_v18  ;;  %v1117_v9 = vrot.slane %v1116_v19, 4  ;;  %v2264_v33 = vor.u32 %v2263_v59, %v2259_v25  ;;  %v2267_v48 = vshll.u32 %v13855_v35, 16  ;;  %v515_v18 = vld [vmem:[%s13718_s14 + $0x20] sm:$0xf] }
  0x59   : > { %3513 = vrot.lane.b32.xlu0 %v12055_v23, %s13558_s29  ;;  %v12039_v52 = vcombine.low %v2284_v56, %v2294_v21  ;;  %v1112_v60 = vsel %vm13824_vm15, %v1107_v24, %v1111_v58  ;;  %v11881_v17 = vrot.slane %v1414_v13, 9  ;;  %v1501_v37 = vrot.slane %v13933_v30, 5  ;;  %v516_v24 = vld [vmem:[%s13718_s14 + $0x24] sm:$0xf] }
  0x5a   : > { %v1122_v31 = vsel %vm13824_vm15, %v1117_v9, %v1121_v44  ;;  %v2265_v34 = vrot.slane %v2264_v33, 4  ;;  %v2269_v22 = vrot.slane %v2267_v48, 5  ;;  %v1504_v38 = vrot.slane %v1011_v51, 5  ;;  %v1624_v51 = vld [vmem:[#allocation2 + $0x2c] sm:$0x1] }
  0x5b   : > { %3433 = vrot.lane.b32.xlu1 %v12039_v52, %s13560_s12  ;;  %v11990_v35 = vcombine.low %v1651_v50, %v1661_v5  ;;  %v2260_v56 = vsel %vm13824_vm15, %v2255_v54, %v2259_v25  ;;  %v1503_v49 = vrot.slane %v1501_v37, 4  ;;  %v11880_v57 = vrot.slane %v1413_v26, 9  ;;  %v465_v50 = vld [vmem:[#allocation2 + $0x38] sm:$0x1]  ;;  %v468_v9 = vld [vmem:[#allocation2 + $0x44] sm:$0x1] }
  0x5c   : > { %v11945_v30 = vcombine.low %v1112_v60, %v1122_v31  ;;  %v1494_v20 = vrot.slane %v13907_v45, 5  ;;  %v1497_v40 = vrot.slane %v13914_v62, 5  ;;  %v410_v41 = vsel %vm13683_vm3, 0, %v409_v55 }
  0x5d   : > { %2921 = vrot.lane.b32.xlu0 %v11943_v46, %s18941_s24  ;;  %v2270_v42 = vsel %vm13824_vm15, %v2265_v34, %v2269_v22  ;;  %v1502_v11 = vsel %vm13737_vm10, %v11881_v17, %v1501_v37  ;;  %411 = vst [vmem:[#allocation2 + $0x30] sm:$0x1] %v410_v41  ;;  %v593_v10 = vshrl.u32 %v513_v3, 16  ;;  %v596_v15 = vshll.u32 %v513_v3, 16  ;;  %v415_v17 = vld [vmem:[#allocation2 + $0x48] sm:$0x1] }
  0x5e   : > { %v1505_v45 = vsel %vm13737_vm10, %v1503_v49, %v1504_v38  ;;  %v1495_v62 = vsel %vm13737_vm10, %v11880_v57, %v1494_v20  ;;  %v1496_v16 = vrot.slane %v1494_v20, 4  ;;  %v601_v43 = vshrl.u32 %v514_v27, 16 }
  0x5f   : > { %2923 = vrot.lane.b32.xlu1 %v11944_v4, %s18941_s24  ;;  %v595_v46 = vrot.slane %v593_v10, 7  ;;  %v604_v53 = vshll.u32 %v514_v27, 16  ;;  %v1687_v58 = vshrl.u32 %v13973_v28, 16  ;;  %v1690_v61 = vshll.u32 %v13973_v28, 16 }
  0x60   : > { %v12038_v2 = vcombine.low %v2260_v56, %v2270_v42  ;;  %v1498_v6 = vsel %vm13737_vm10, %v1496_v16, %v1497_v40  ;;  %v603_v5 = vrot.slane %v601_v43, 7  ;;  %v1700_v7 = vshrl.u32 %v13978_v36, 16 }
  0x61   : > { %3175 = vrot.lane.b32.xlu0 %v11990_v35, %s13559_s30  ;;  %v11961_v4 = vcombine.low %v1502_v11, %v1505_v45  ;;  %v598_v25 = vor.u32 %v596_v15, %v595_v46  ;;  %v599_v13 = vrot.slane %v595_v46, 4  ;;  %v1689_v14 = vrot.slane %v1687_v58, 4 }
  0x62   : > { %v11960_v19 = vcombine.low %v1495_v62, %v1498_v6  ;;  %v606_v59 = vor.u32 %v604_v53, %v603_v5  ;;  %v1692_v26 = vrot.slane %v1690_v61, 5  ;;  %v466_v23 = vsel %vm13711_vm6, 0, %v465_v50 }
  0x63   : > { %2925 = vrot.lane.b32.xlu1 %v11945_v30, %s18941_s24  ;;  %v608_v44 = vrot.slane %v603_v5, 4  ;;  %467 = vst [vmem:[#allocation2 + $0x38] sm:$0x1] %v466_v23  ;;  %v1696_v54 = vshll.u32 %v13978_v36, 16  ;;  %v1702_v55 = vrot.slane %v1700_v7, 4  ;;  %v1706_v21 = vshll.u32 %v1624_v51, 16 }
  0x64   : > { %v607_v33 = vsel %vm13749_vm12, %v599_v13, %v606_v59  ;;  %v885_v48 = vld [vmem:[#allocation2 + $0x30] sm:$0xf]  ;;  %v1693_v3 = vor.u32 %v1692_v26, %v1689_v14  ;;  %v11896_v52 = vrot.slane %v2024_v47, 9  ;;  %v2102_v60 = vrot.slane %v13978_v36, 5 }
  0x65   : > { %3431 = vrot.lane.b32.xlu0 %v12038_v2, %s13560_s12  ;;  %v886_v37 = vsel %vm13743_vm11, %v598_v25, %v885_v48  ;;  %888 = vst.msk [vmem:[#allocation2 + $0x34] sm:$0xf] %vm385_vm0, %v607_v33  ;;  %v1698_v27 = vrot.slane %v1696_v54, 5  ;;  %v2105_v31 = vrot.slane %v1624_v51, 5  ;;  %v413_v34 = vsel %vm13683_vm3, 0, %v412_v12 }
  0x66   : > { %887 = vst [vmem:[#allocation2 + $0x30] sm:$0xf] %v886_v37  ;;  %v1694_v22 = vrot.slane %v1693_v3, 4  ;;  %v1708_v38 = vrot.slane %v1706_v21, 5  ;;  %v2104_v35 = vrot.slane %v2102_v60, 4  ;;  %v610_v56 = vshrl.u32 %v515_v18, 16 }
  0x67   : > { %414 = vst [vmem:[#allocation2 + $0x3c] sm:$0x1] %v413_v34  ;;  %3005 = vrot.lane.b32.xlu1 %v11961_v4, %s13553_s15  ;;  %v1703_v49 = vor.u32 %v1702_v55, %v1698_v27  ;;  %v613_v57 = vshll.u32 %v515_v18, 16  ;;  %v618_v30 = vshrl.u32 %v516_v24, 16  ;;  %v621_v20 = vshll.u32 %v516_v24, 16 }
  0x68   : > { %v11976_v40 = vcombine.low %v13973_v28, %v13978_v36  ;;  %v14020_v41 = vsel %vm13737_vm10, %v11896_v52, %v2102_v60  ;;  %v612_v42 = vrot.slane %v610_v56, 7  ;;  %v469_v11 = vsel %vm13711_vm6, 0, %v468_v9  ;;  %v14042_v2 = vld [vmem:[%s13718_s14 + $0x28] sm:$0xf] }
  0x69   : > { %3003 = vrot.lane.b32.xlu0 %v11960_v19, %s13553_s15  ;;  %v1704_v10 = vrot.slane %v1703_v49, 4  ;;  %v14027_v15 = vsel %vm13737_vm10, %v2104_v35, %v2105_v31  ;;  %v620_v50 = vrot.slane %v618_v30, 7  ;;  %470 = vst [vmem:[#allocation2 + $0x44] sm:$0x1] %v469_v11  ;;  %v416_v28 = vsel %vm13683_vm3, 0, %v415_v17 }
  0x6a   : > { %v889_v36 = vld [vmem:[#allocation2 + $0x38] sm:$0x1]  ;;  %v1699_v45 = vsel %vm13824_vm15, %v1694_v22, %v1698_v27  ;;  %v616_v62 = vrot.slane %v612_v42, 4  ;;  %417 = vst [vmem:[#allocation2 + $0x48] sm:$0x1] %v416_v28  ;;  %v615_v51 = vor.u32 %v613_v57, %v612_v42  ;;  %v12008_v58 = vcombine.low %v14020_v41, %v14027_v15 }
  0x6b   : > { %v890_v16 = vsel %vm13683_vm3, %v608_v44, %v889_v36  ;;  %v1709_v43 = vsel %vm13824_vm15, %v1704_v10, %v1708_v38  ;;  %v623_v46 = vor.u32 %v621_v20, %v620_v50  ;;  %v625_v61 = vrot.slane %v620_v50, 4 }
  0x6c   : > { %v1597_v53 = vld [vmem:[#allocation2 + $0x34] sm:$0xf]  ;;  %891 = vst [vmem:[#allocation2 + $0x38] sm:$0x1] %v890_v16  ;;  %v11992_v12 = vcombine.low %v1699_v45, %v1709_v43  ;;  %v627_v17 = vshrl.u32 %v14042_v2, 16  ;;  %vm3543_vm1 = vcmask 31744  }
  0x6d   : > { %v14039_v47 = vld [vmem:[#allocation2 + $0x34] sm:$0xf]  ;;  %v1596_v6 = vld [vmem:[#allocation2 + $0x30] sm:$0xf]  ;;  %v1724_v5 = vshrl.u32 %v1597_v53, 16  ;;  %3099 = vrot.lane.b32.xlu0 %v11976_v40, %s18939_s16  ;;  %v1720_v7 = vshll.u32 %v1597_v53, 16  ;;  %v624_v25 = vsel %vm13749_vm12, %v616_v62, %v623_v46 }
  0x6e   : > { %v2025_v4 = vld [vmem:[#allocation2 + $0x30] sm:$0xe]  ;;  %v1711_v13 = vshrl.u32 %v1596_v6, 16  ;;  %v1714_v14 = vshll.u32 %v1596_v6, 16  ;;  %v11977_v18 = vcombine.low %v1596_v6, %v1597_v53  ;;  %v892_v59 = vld [vmem:[#allocation2 + $0x3c] sm:$0xf] }
  0x6f   : > { %v11897_v19 = vrot.slane %v2025_v4, 9  ;;  %895 = vst.msk [vmem:[#allocation2 + $0x40] sm:$0xf] %vm385_vm0, %v624_v25  ;;  %v1722_v26 = vrot.slane %v1720_v7, 5  ;;  %v1726_v23 = vrot.slane %v1724_v5, 4  ;;  %v2109_v24 = vrot.slane %v1597_v53, 5 }
  0x70   : > { %v893_v44 = vsel %vm13743_vm11, %v615_v51, %v892_v59  ;;  %v2203_v54 = vld [vmem:[#allocation2 + $0x30] sm:$0xf]  ;;  %v1713_v55 = vrot.slane %v1711_v13, 4  ;;  %v1716_v21 = vrot.slane %v1714_v14, 5  ;;  %3101 = vrot.lane.b32.xlu1 %v11977_v18, %s18939_s16  ;;  %v896_v48 = vld [vmem:[#allocation2 + $0x44] sm:$0x1] }
  0x71   : > { %894 = vst [vmem:[#allocation2 + $0x3c] sm:$0xf] %v893_v44  ;;  %v2296_v9 = vshrl.u32 %v2203_v54, 16  ;;  %v2299_v33 = vshll.u32 %v2203_v54, 16  ;;  %v1727_v3 = vor.u32 %v1726_v23, %v1722_v26  ;;  %3179 = vrot.lane.b32.xlu0 %v11992_v12, %s13559_s30  ;;  %v14054_v52 = vsel %vm13737_vm10, %v11897_v19, %v2109_v24  ;;  %v14058_v22 = vld [vmem:[#allocation2 + $0x30] sm:$0xe] }
  0x72   : > { %v2309_v60 = vshrl.u32 %v14039_v47, 16  ;;  %v1717_v37 = vor.u32 %v1716_v21, %v1713_v55  ;;  %v2111_v27 = vrot.slane %v2109_v24, 4  ;;  %v12024_v56 = vcombine.low %v2203_v54, %v14039_v47  ;;  %v13248_v23 = vld [vmem:[%s18928_s1] sm:$0xff]   ;;  %s18988_s16 = smov 12  }
  0x73   : > { %v2298_v31 = vrot.slane %v2296_v9, 4  ;;  %v2301_v34 = vrot.slane %v2299_v33, 5  ;;  %v1625_v38 = vld [vmem:[#allocation2 + $0x38] sm:$0x1]  ;;  %v1728_v35 = vrot.slane %v1727_v3, 4  ;;  %v897_v49 = vsel %vm13683_vm3, %v625_v61, %v896_v48  ;;  %13054 = vmatprep.subr.bf16.mxu0 %v13248_v23 }
  0x74   : > { %v14063_v57 = vld [vmem:[#allocation2 + $0x38] sm:$0x1]  ;;  %v2305_v30 = vshll.u32 %v14039_v47, 16  ;;  %v1718_v20 = vrot.slane %v1717_v37, 4  ;;  %v1730_v40 = vshll.u32 %v1625_v38, 16  ;;  %v2112_v41 = vrot.slane %v1625_v38, 5  ;;  %13055 = vmatpush3.bf16.msra.mxu0 %v13248_v23 }
  0x75   : > { %898 = vst [vmem:[#allocation2 + $0x44] sm:$0x1] %v897_v49  ;;  %v2302_v42 = vor.u32 %v2301_v34, %v2298_v31  ;;  %3259 = vrot.lane.b32.xlu0 %v12008_v58, %s13557_s25  ;;  %v2311_v15 = vrot.slane %v2309_v60, 4  ;;  %v2315_v50 = vshll.u32 %v14063_v57, 16  ;;  %v11912_v28 = vrot.slane %v14058_v22, 9 }
  0x76   : > { %v14067_v11 = vld [vmem:[#allocation2 + $0x40] sm:$0xf]  ;;  %v2307_v10 = vrot.slane %v2305_v30, 5  ;;  %v1723_v36 = vsel %vm13824_vm15, %v1718_v20, %v1722_v26  ;;  %v1732_v45 = vrot.slane %v1730_v40, 5  ;;  %v2113_v62 = vsel %vm13737_vm10, %v2111_v27, %v2112_v41  ;;  %v14105_v49 = vld [vmem:[#allocation2 + $0x34] sm:$0xf] }
  0x77   : > { %v2333_v16 = vshrl.u32 %v14067_v11, 16  ;;  %v12009_v43 = vcombine.low %v14054_v52, %v2113_v62  ;;  %v2329_v46 = vshll.u32 %v14067_v11, 16  ;;  %v2303_v53 = vrot.slane %v2302_v42, 4  ;;  %v14101_v34 = vld [vmem:[#allocation2 + $0x40] sm:$0xf] }
  0x78   : > { %v14077_v51 = vld [vmem:[#allocation2 + $0x3c] sm:$0xf]  ;;  %v2312_v58 = vor.u32 %v2311_v15, %v2307_v10  ;;  %v1733_v61 = vsel %vm13824_vm15, %v1728_v35, %v1732_v45  ;;  %v2317_v26 = vrot.slane %v2315_v50, 5  ;;  %v2718_v55 = vrot.slane %v14067_v11, 5 }
  0x79   : > { %v2320_v6 = vshrl.u32 %v14077_v51, 16  ;;  %v2323_v5 = vshll.u32 %v14077_v51, 16  ;;  %v12025_v7 = vcombine.low %v14077_v51, %v14067_v11  ;;  %v2634_v12 = vld [vmem:[#allocation2 + $0x3c] sm:$0xe]  ;;  %v11993_v4 = vcombine.low %v1723_v36, %v1733_v61  ;;  %3355 = vrot.lane.b32.xlu0 %v12024_v56, %s13555_s22  ;;  %v984_v56 = vld [vmem:[#allocation2 + $0x30] sm:$0xf] }
  0x7a   : > { %v2331_v25 = vrot.slane %v2329_v46, 5  ;;  %v2335_v13 = vrot.slane %v2333_v16, 4  ;;  %v2308_v14 = vsel %vm13824_vm15, %v2303_v53, %v2307_v10  ;;  %v2313_v59 = vrot.slane %v2312_v58, 4  ;;  %v986_v52 = vld [vmem:[#allocation2 + $0x3c] sm:$0xf] }
  0x7b   : > { %v2322_v18 = vrot.slane %v2320_v6, 4  ;;  %v2325_v19 = vrot.slane %v2323_v5, 5  ;;  %3181 = vrot.lane.b32.xlu1 %v11993_v4, %s13559_s30  ;;  %v11913_v54 = vrot.slane %v2634_v12, 9  ;;  %v2711_v21 = vrot.slane %v14039_v47, 5  ;;  %v14116_v11 = vld [vmem:[#allocation2 + $0x38] sm:$0x1] }
  0x7c   : > { %v2234_v24 = vld [vmem:[#allocation2 + $0x44] sm:$0x1]  ;;  %v2336_v44 = vor.u32 %v2335_v13, %v2331_v25  ;;  %v2318_v48 = vsel %vm13824_vm15, %v2313_v59, %v2317_v26  ;;  %v2720_v31 = vrot.slane %v2718_v55, 4  ;;  %v2714_v20 = vrot.slane %v14063_v57, 5  ;;  %v1416_v16 = vld [vmem:[#allocation2 + $0x3c] sm:$0xe] }
  0x7d   : > { %v2326_v9 = vor.u32 %v2325_v19, %v2322_v18  ;;  %v2339_v33 = vshll.u32 %v2234_v24, 16  ;;  %v2721_v3 = vrot.slane %v2234_v24, 5  ;;  %v12040_v37 = vcombine.low %v2308_v14, %v2318_v48  ;;  %v14114_v40 = vld [vmem:[#allocation2 + $0x44] sm:$0x1]  ;;  %v1415_v12 = vld [vmem:[#allocation2 + $0x30] sm:$0xe] }
  0x7e   : > { %v2337_v60 = vrot.slane %v2336_v44, 4  ;;  %v14099_v27 = vsel %vm13737_vm10, %v11913_v54, %v2718_v55  ;;  %v2712_v38 = vsel %vm13737_vm10, %v11912_v28, %v2711_v21  ;;  %v2713_v35 = vrot.slane %v2711_v21, 4  ;;  %v13249_v18 = vld [vmem:[%s18928_s1 + $0x8] sm:$0xff]  }
  0x7f   : > { %v2327_v22 = vrot.slane %v2326_v9, 4  ;;  %v2341_v47 = vrot.slane %v2339_v33, 5  ;;  %3261 = vrot.lane.b32.xlu1 %v12009_v43, %s13557_s25  ;;  %3435 = vrot.lane.b32.xlu0 %v12040_v37, %s13560_s12  ;;  %v14111_v30 = vsel %vm13737_vm10, %v2720_v31, %v2721_v3  ;;  %v1148_v41 = vshrl.u32 %v986_v52, 16  ;;  %v518_v37 = vld [vmem:[%s13718_s14 + $0x2c] sm:$0xf] }
  0x80   : > { %v1151_v42 = vshll.u32 %v986_v52, 16  ;;  %v12057_v50 = vcombine.low %v14099_v27, %v14111_v30  ;;  %v1157_v28 = vshll.u32 %v14101_v34, 16  ;;  %v2715_v57 = vsel %vm13737_vm10, %v2713_v35, %v2714_v20  ;;  %13056 = vmatprep.subr.bf16.mxu0 %v13249_v18  ;;  %v899_v20 = vld [vmem:[#allocation2 + $0x48] sm:$0xf] }
  0x81   : > { %v2332_v10 = vsel %vm13824_vm15, %v2327_v22, %v2331_v25  ;;  %v2342_v15 = vsel %vm13824_vm15, %v2337_v60, %v2341_v47  ;;  %v1150_v45 = vrot.slane %v1148_v41, 4  ;;  %v12056_v43 = vcombine.low %v2712_v38, %v2715_v57  ;;  %13057 = vmatpush3.bf16.msra.mxu0 %v13249_v18  ;;  %v14146_v38 = vld [vmem:[#allocation2 + $0x3c] sm:$0xf]  ;;  %v1626_v57 = vld [vmem:[#allocation2 + $0x44] sm:$0x1] }
  0x82   : > { %v12041_v36 = vcombine.low %v2332_v10, %v2342_v15  ;;  %v1153_v62 = vrot.slane %v1151_v42, 5  ;;  %v1159_v51 = vrot.slane %v1157_v28, 5  ;;  %v1161_v46 = vshrl.u32 %v14101_v34, 16 }
  0x83   : > { %v1167_v53 = vshll.u32 %v14114_v40, 16  ;;  %3357 = vrot.lane.b32.xlu1 %v12025_v7, %s13555_s22  ;;  %v1124_v61 = vshrl.u32 %v984_v56, 16  ;;  %v1127_v6 = vshll.u32 %v984_v56, 16  ;;  %v1133_v5 = vshll.u32 %v14105_v49, 16  ;;  %3515 = vrot.lane.b32.xlu0 %v12056_v43, %s13558_s29 }
  0x84   : > { %v1154_v58 = vor.u32 %v1153_v62, %v1150_v45  ;;  %v1163_v4 = vrot.slane %v1161_v46, 4  ;;  %v1137_v13 = vshrl.u32 %v14105_v49, 16  ;;  %v1143_v14 = vshll.u32 %v14116_v11, 16  ;;  %v2026_v45 = vld [vmem:[#allocation2 + $0x3c] sm:$0xe] }
  0x85   : > { %v1169_v25 = vrot.slane %v1167_v53, 5  ;;  %v1126_v7 = vrot.slane %v1124_v61, 4  ;;  %v1129_v59 = vrot.slane %v1127_v6, 5  ;;  %v1135_v26 = vrot.slane %v1133_v5, 5  ;;  %v519_v61 = vld [vmem:[%s13718_s14 + $0x30] sm:$0xf] }
  0x86   : > { %v1155_v19 = vrot.slane %v1154_v58, 4  ;;  %v1164_v23 = vor.u32 %v1163_v4, %v1159_v51  ;;  %v1139_v24 = vrot.slane %v1137_v13, 4  ;;  %v1145_v44 = vrot.slane %v1143_v14, 5  ;;  %v418_v58 = vld [vmem:[#allocation2 + $0x54] sm:$0x1] }
  0x87   : > { %v11883_v54 = vrot.slane %v1416_v16, 9  ;;  %3437 = vrot.lane.b32.xlu1 %v12041_v36, %s13560_s12  ;;  %v1130_v21 = vor.u32 %v1129_v59, %v1126_v7  ;;  %v1515_v9 = vrot.slane %v14101_v34, 5  ;;  %v1518_v33 = vrot.slane %v14114_v40, 5  ;;  %v14152_v40 = vld [vmem:[#allocation2 + $0x40] sm:$0xf] }
  0x88   : > { %v1160_v55 = vsel %vm13824_vm15, %v1155_v19, %v1159_v51  ;;  %v1165_v48 = vrot.slane %v1164_v23, 4  ;;  %v1140_v3 = vor.u32 %v1139_v24, %v1135_v26  ;;  %v11882_v52 = vrot.slane %v1415_v12, 9  ;;  %v520_v19 = vld [vmem:[%s13718_s14 + $0x34] sm:$0xf]  ;;  %v474_v24 = vld [vmem:[#allocation2 + $0x5c] sm:$0x1] }
  0x89   : > { %v1508_v60 = vrot.slane %v14105_v49, 5  ;;  %v1131_v27 = vrot.slane %v1130_v21, 4  ;;  %v1517_v31 = vrot.slane %v1515_v9, 4  ;;  %v1511_v22 = vrot.slane %v14116_v11, 5  ;;  %v471_v49 = vld [vmem:[#allocation2 + $0x50] sm:$0x1] }
  0x8a   : > { %v630_v47 = vshll.u32 %v14042_v2, 16  ;;  %v1170_v34 = vsel %vm13824_vm15, %v1165_v48, %v1169_v25  ;;  %v1141_v35 = vrot.slane %v1140_v3, 4  ;;  %v1516_v56 = vsel %vm13737_vm10, %v11883_v54, %v1515_v9 }
  0x8b   : > { %v1510_v30 = vrot.slane %v1508_v60, 4  ;;  %3517 = vrot.lane.b32.xlu1 %v12057_v50, %s13558_s29  ;;  %v11947_v41 = vcombine.low %v1160_v55, %v1170_v34  ;;  %v1136_v42 = vsel %vm13824_vm15, %v1131_v27, %v1135_v26  ;;  %v1519_v11 = vsel %vm13737_vm10, %v1517_v31, %v1518_v33 }
  0x8c   : > { %v629_v10 = vrot.slane %v627_v17, 7  ;;  %v1146_v15 = vsel %vm13824_vm15, %v1141_v35, %v1145_v44  ;;  %v1509_v28 = vsel %vm13737_vm10, %v11882_v52, %v1508_v60  ;;  %v635_v36 = vshrl.u32 %v518_v37, 16  ;;  %v421_v44 = vld [vmem:[#allocation2 + $0x60] sm:$0x1] }
  0x8d   : > { %v1512_v50 = vsel %vm13737_vm10, %v1510_v30, %v1511_v22  ;;  %v11946_v62 = vcombine.low %v1136_v42, %v1146_v15  ;;  %v11963_v16 = vcombine.low %v1516_v56, %v1519_v11  ;;  %v638_v2 = vshll.u32 %v518_v37, 16 }
  0x8e   : > { %v632_v43 = vor.u32 %v630_v47, %v629_v10  ;;  %v633_v51 = vrot.slane %v629_v10, 4  ;;  %v637_v46 = vrot.slane %v635_v36, 7  ;;  %v1735_v17 = vshrl.u32 %v14146_v38, 16 }
  0x8f   : > { %v1738_v53 = vshll.u32 %v14146_v38, 16  ;;  %2929 = vrot.lane.b32.xlu1 %v11947_v41, %s18941_s24  ;;  %2927 = vrot.lane.b32.xlu0 %v11946_v62, %s18941_s24  ;;  %v11962_v6 = vcombine.low %v1509_v28, %v1512_v50  ;;  %v1748_v12 = vshrl.u32 %v14152_v40, 16  ;;  %v472_v4 = vsel %vm13711_vm6, 0, %v471_v49 }
  0x90   : > { %v900_v5 = vsel %vm13743_vm11, %v632_v43, %v899_v20  ;;  %v640_v25 = vor.u32 %v638_v2, %v637_v46  ;;  %v1737_v13 = vrot.slane %v1735_v17, 4  ;;  %v11978_v18 = vcombine.low %v14146_v38, %v14152_v40  ;;  %473 = vst [vmem:[#allocation2 + $0x50] sm:$0x1] %v472_v4  ;;  %v14212_v2 = vld [vmem:[#allocation2] sm:$0xf] }
  0x91   : > { %901 = vst [vmem:[#allocation2 + $0x48] sm:$0xf] %v900_v5  ;;  %v1740_v14 = vrot.slane %v1738_v53, 5  ;;  %v1744_v7 = vshll.u32 %v14152_v40, 16  ;;  %v1750_v59 = vrot.slane %v1748_v12, 4  ;;  %v1754_v26 = vshll.u32 %v1626_v57, 16 }
  0x92   : > { %v11898_v23 = vrot.slane %v2026_v45, 9  ;;  %v641_v54 = vsel %vm13749_vm12, %v633_v51, %v640_v25  ;;  %v2116_v21 = vrot.slane %v14152_v40, 5  ;;  %v2119_v9 = vrot.slane %v1626_v57, 5  ;;  %v14208_v51 = vld [vmem:[%s13718_s14 + $0x38] sm:$0xf] }
  0x93   : > { %v1741_v55 = vor.u32 %v1740_v14, %v1737_v13  ;;  %3009 = vrot.lane.b32.xlu1 %v11963_v16, %s13553_s15  ;;  %3007 = vrot.lane.b32.xlu0 %v11962_v6, %s13553_s15  ;;  %v642_v33 = vrot.slane %v637_v46, 4  ;;  %902 = vst.msk [vmem:[#allocation2 + $0x4c] sm:$0xf] %vm385_vm0, %v641_v54  ;;  %v1746_v48 = vrot.slane %v1744_v7, 5  ;;  %v419_v3 = vsel %vm13683_vm3, 0, %v418_v58 }
  0x94   : > { %v644_v52 = vshrl.u32 %v519_v61, 16  ;;  %v1756_v37 = vrot.slane %v1754_v26, 5  ;;  %v2118_v27 = vrot.slane %v2116_v21, 4  ;;  %420 = vst [vmem:[#allocation2 + $0x54] sm:$0x1] %v419_v3  ;;  %v647_v31 = vshll.u32 %v519_v61, 16 }
  0x95   : > { %v1742_v60 = vrot.slane %v1741_v55, 4  ;;  %v1751_v22 = vor.u32 %v1750_v59, %v1746_v48  ;;  %v652_v38 = vshrl.u32 %v520_v19, 16  ;;  %v655_v34 = vshll.u32 %v520_v19, 16  ;;  %v14210_v46 = vld [vmem:[#allocation2 + $0x4] sm:$0xf] }
  0x96   : > { %v646_v47 = vrot.slane %v644_v52, 7  ;;  %v14191_v35 = vsel %vm13737_vm10, %v11898_v23, %v2116_v21  ;;  %v2120_v56 = vsel %vm13737_vm10, %v2118_v27, %v2119_v9  ;;  %v475_v30 = vsel %vm13711_vm6, 0, %v474_v24 }
  0x97   : > { %v422_v20 = vsel %vm13683_vm3, 0, %v421_v44  ;;  %3103 = vrot.lane.b32.xlu0 %v11978_v18, %s18988_s16  ;;  %v903_v49 = vld [vmem:[#allocation2 + $0x50] sm:$0x1]  ;;  %v1747_v41 = vsel %vm13824_vm15, %v1742_v60, %v1746_v48  ;;  %v1752_v42 = vrot.slane %v1751_v22, 4  ;;  %476 = vst [vmem:[#allocation2 + $0x5c] sm:$0x1] %v475_v30  ;;  %v12010_v16 = vcombine.low %v14191_v35, %v2120_v56 }
  0x98   : > { %v1600_v40 = vld [vmem:[#allocation2 + $0x48] sm:$0xf]  ;;  %v649_v11 = vor.u32 %v647_v31, %v646_v47  ;;  %v650_v10 = vrot.slane %v646_v47, 4  ;;  %423 = vst [vmem:[#allocation2 + $0x60] sm:$0x1] %v422_v20  ;;  %v904_v50 = vsel %vm13683_vm3, %v642_v33, %v903_v49  ;;  %v654_v57 = vrot.slane %v652_v38, 7 }
  0x99   : > { %v1759_v15 = vshrl.u32 %v1600_v40, 16  ;;  %v1762_v28 = vshll.u32 %v1600_v40, 16  ;;  %v2027_v36 = vld [vmem:[#allocation2 + $0x48] sm:$0xe]  ;;  %905 = vst [vmem:[#allocation2 + $0x50] sm:$0x1] %v904_v50  ;;  %v1757_v45 = vsel %vm13824_vm15, %v1752_v42, %v1756_v37  ;;  %v11926_v17 = vcombine.low %v14212_v2, %v14210_v46 }
  0x9a   : > { %v11899_v62 = vrot.slane %v2027_v36, 9  ;;  %v2207_v43 = vld [vmem:[#allocation2 + $0x48] sm:$0xf]  ;;  %v1601_v53 = vld [vmem:[#allocation2 + $0x4c] sm:$0xf]  ;;  %v11994_v6 = vcombine.low %v1747_v41, %v1757_v45  ;;  %v657_v5 = vor.u32 %v655_v34, %v654_v57  ;;  %v659_v59 = vrot.slane %v654_v57, 4 }
  0x9b   : > { %v1761_v58 = vrot.slane %v1759_v15, 4  ;;  %v1764_v61 = vrot.slane %v1762_v28, 5  ;;  %v14216_v12 = vld [vmem:[#allocation2 + $0x4c] sm:$0xf]  ;;  %v1772_v4 = vshrl.u32 %v1601_v53, 16  ;;  %v11979_v25 = vcombine.low %v1600_v40, %v1601_v53 }
  0x9c   : > { %v1768_v13 = vshll.u32 %v1601_v53, 16  ;;  %v2123_v14 = vrot.slane %v1601_v53, 5  ;;  %v906_v18 = vld [vmem:[#allocation2 + $0x54] sm:$0xf]  ;;  %3183 = vrot.lane.b32.xlu0 %v11994_v6, %s13559_s30  ;;  %v658_v7 = vsel %vm13749_vm12, %v650_v10, %v657_v5  ;;  %v661_v54 = vshrl.u32 %v14208_v51, 16 }
  0x9d   : > { %v1765_v19 = vor.u32 %v1764_v61, %v1761_v58  ;;  %v907_v26 = vsel %vm13743_vm11, %v649_v11, %v906_v18  ;;  %3105 = vrot.lane.b32.xlu1 %v11979_v25, %s18988_s16  ;;  %v1774_v24 = vrot.slane %v1772_v4, 4  ;;  %909 = vst.msk [vmem:[#allocation2 + $0x58] sm:$0xf] %vm385_vm0, %v658_v7  ;;  %v2344_v21 = vshrl.u32 %v2207_v43, 16  ;;  %v2635_v27 = vld [vmem:[#allocation2 + $0x48] sm:$0xe] }
  0x9e   : > { %v1770_v23 = vrot.slane %v1768_v13, 5  ;;  %v14226_v44 = vsel %vm13737_vm10, %v11899_v62, %v2123_v14  ;;  %908 = vst [vmem:[#allocation2 + $0x54] sm:$0xf] %v907_v26  ;;  %v2347_v9 = vshll.u32 %v2207_v43, 16  ;;  %v2357_v33 = vshrl.u32 %v14216_v12, 16 }
  0x9f   : > { %v1766_v55 = vrot.slane %v1765_v19, 4  ;;  %v910_v48 = vld [vmem:[#allocation2 + $0x5c] sm:$0x1]  ;;  %v2125_v52 = vrot.slane %v2123_v14, 4  ;;  %v2353_v37 = vshll.u32 %v14216_v12, 16  ;;  %v2346_v47 = vrot.slane %v2344_v21, 4 }
  0xa0   : > { %v1775_v3 = vor.u32 %v1774_v24, %v1770_v23  ;;  %v911_v60 = vsel %vm13683_vm3, %v659_v59, %v910_v48  ;;  %v1627_v31 = vld [vmem:[#allocation2 + $0x50] sm:$0x1]  ;;  %3263 = vrot.lane.b32.xlu0 %v12010_v16, %s13557_s25  ;;  %v2349_v38 = vrot.slane %v2347_v9, 5  ;;  %v12026_v34 = vcombine.low %v2207_v43, %v14216_v12 }
  0xa1   : > { %v1771_v22 = vsel %vm13824_vm15, %v1766_v55, %v1770_v23  ;;  %912 = vst [vmem:[#allocation2 + $0x5c] sm:$0x1] %v911_v60  ;;  %v14238_v35 = vld [vmem:[#allocation2 + $0x50] sm:$0x1]  ;;  %v1778_v30 = vshll.u32 %v1627_v31, 16  ;;  %v2126_v20 = vrot.slane %v1627_v31, 5 }
  0xa2   : > { %v1776_v56 = vrot.slane %v1775_v3, 4  ;;  %v2355_v40 = vrot.slane %v2353_v37, 5  ;;  %v2350_v49 = vor.u32 %v2349_v38, %v2346_v47  ;;  %v2359_v41 = vrot.slane %v2357_v33, 4 }
  0xa3   : > { %v2363_v42 = vshll.u32 %v14238_v35, 16  ;;  %v11914_v11 = vrot.slane %v2635_v27, 9  ;;  %v1780_v10 = vrot.slane %v1778_v30, 5  ;;  %v2127_v15 = vsel %vm13737_vm10, %v2125_v52, %v2126_v20 }
  0xa4   : > { %v2725_v28 = vrot.slane %v14216_v12, 5  ;;  %v2728_v50 = vrot.slane %v14238_v35, 5  ;;  %v12011_v36 = vcombine.low %v14226_v44, %v2127_v15  ;;  %v14248_v45 = vld [vmem:[#allocation2 + $0x58] sm:$0xf]  ;;  %3359 = vrot.lane.b32.xlu0 %v12026_v34, %s13555_s22  ;;  %v2351_v62 = vrot.slane %v2350_v49, 4  ;;  %v14273_v35 = vpop.permute.xlu1 %2999 }
  0xa5   : > { %v14246_v57 = vld [vmem:[#allocation2 + $0x54] sm:$0xf]  ;;  %v2360_v16 = vor.u32 %v2359_v41, %v2355_v40  ;;  %v2365_v43 = vrot.slane %v2363_v42, 5  ;;  %v1781_v53 = vsel %vm13824_vm15, %v1776_v56, %v1780_v10  ;;  %v2381_v6 = vshrl.u32 %v14248_v45, 16  ;;  %v14267_v3 = vld [vmem:[#allocation2 + $0x58] sm:$0xf] }
  0xa6   : > { %v2368_v58 = vshrl.u32 %v14246_v57, 16  ;;  %v2371_v61 = vshll.u32 %v14246_v57, 16  ;;  %v2636_v5 = vld [vmem:[#allocation2 + $0x54] sm:$0xe]  ;;  %v11995_v12 = vcombine.low %v1771_v22, %v1781_v53  ;;  %v12027_v4 = vcombine.low %v14246_v57, %v14248_v45  ;;  %v988_v34 = vld [vmem:[#allocation2 + $0x48] sm:$0xf] }
  0xa7   : > { %v2377_v25 = vshll.u32 %v14248_v45, 16  ;;  %v2356_v13 = vsel %vm13824_vm15, %v2351_v62, %v2355_v40  ;;  %v2383_v7 = vrot.slane %v2381_v6, 4  ;;  %v2361_v59 = vrot.slane %v2360_v16, 4  ;;  %v990_v55 = vld [vmem:[#allocation2 + $0x54] sm:$0xf] }
  0xa8   : > { %v2370_v14 = vrot.slane %v2368_v58, 4  ;;  %v2373_v18 = vrot.slane %v2371_v61, 5  ;;  %v2236_v19 = vld [vmem:[#allocation2 + $0x5c] sm:$0x1]  ;;  %3185 = vrot.lane.b32.xlu1 %v11995_v12, %s13559_s30  ;;  %v11915_v24 = vrot.slane %v2636_v5, 9  ;;  %v2732_v44 = vrot.slane %v14248_v45, 5 }
  0xa9   : > { %v2379_v26 = vrot.slane %v2377_v25, 5  ;;  %v2387_v23 = vshll.u32 %v2236_v19, 16  ;;  %v2366_v9 = vsel %vm13824_vm15, %v2361_v59, %v2365_v43  ;;  %v2735_v33 = vrot.slane %v2236_v19, 5  ;;  %v14277_v30 = vld [vmem:[#allocation2 + $0x5c] sm:$0x1]  ;;  %v14302_v59 = vpop.permute.xlu1 %3097 }
  0xaa   : > { %v2374_v21 = vor.u32 %v2373_v18, %v2370_v14  ;;  %v2726_v48 = vsel %vm13737_vm10, %v11914_v11, %v2725_v28  ;;  %v12042_v37 = vcombine.low %v2356_v13, %v2366_v9  ;;  %v14271_v27 = vsel %vm13737_vm10, %v11915_v24, %v2732_v44  ;;  %v14287_v15 = vld [vmem:[#allocation2 + $0x4c] sm:$0xf]  ;;  %v1418_v43 = vld [vmem:[#allocation2 + $0x54] sm:$0xe]  ;;  %v1417_v13 = vld [vmem:[#allocation2 + $0x48] sm:$0xe] }
  0xab   : > { %v2384_v52 = vor.u32 %v2383_v7, %v2379_v26  ;;  %v2389_v60 = vrot.slane %v2387_v23, 5  ;;  %v2734_v22 = vrot.slane %v2732_v44, 4  ;;  %v2727_v47 = vrot.slane %v2725_v28, 4  ;;  %v14289_v28 = vld [vmem:[#allocation2 + $0x50] sm:$0x1] }
  0xac   : > { %v2375_v31 = vrot.slane %v2374_v21, 4  ;;  %v1196_v38 = vshrl.u32 %v990_v55, 16  ;;  %3265 = vrot.lane.b32.xlu1 %v12011_v36, %s13557_s25  ;;  %3439 = vrot.lane.b32.xlu0 %v12042_v37, %s13560_s12  ;;  %v1199_v20 = vshll.u32 %v990_v55, 16  ;;  %v1205_v40 = vshll.u32 %v14267_v3, 16  ;;  %v14291_v36 = vpop.permute.xlu0 %3095 }
  0xad   : > { %v2385_v56 = vrot.slane %v2384_v52, 4  ;;  %v1209_v49 = vshrl.u32 %v14267_v3, 16  ;;  %v2736_v42 = vsel %vm13737_vm10, %v2734_v22, %v2735_v33  ;;  %v2729_v11 = vsel %vm13737_vm10, %v2727_v47, %v2728_v50 }
  0xae   : > { %v2380_v41 = vsel %vm13824_vm15, %v2375_v31, %v2379_v26  ;;  %v1198_v10 = vrot.slane %v1196_v38, 4  ;;  %v12059_v45 = vcombine.low %v14271_v27, %v2736_v42  ;;  %v12058_v62 = vcombine.low %v2726_v48, %v2729_v11  ;;  %v522_v27 = vld [vmem:[%s13718_s14 + $0x3c] sm:$0xf] }
  0xaf   : > { %v2390_v57 = vsel %vm13824_vm15, %v2385_v56, %v2389_v60  ;;  %v1201_v16 = vrot.slane %v1199_v20, 5  ;;  %v1207_v58 = vrot.slane %v1205_v40, 5  ;;  %v1211_v61 = vrot.slane %v1209_v49, 4  ;;  %v14315_v40 = vld [vmem:[#allocation2 + $0x54] sm:$0xf] }
  0xb0   : > { %v12043_v53 = vcombine.low %v2380_v41, %v2390_v57  ;;  %v1215_v50 = vshll.u32 %v14277_v30, 16  ;;  %3361 = vrot.lane.b32.xlu1 %v12027_v4, %s13555_s22  ;;  %3519 = vrot.lane.b32.xlu0 %v12058_v62, %s13558_s29  ;;  %v1172_v5 = vshrl.u32 %v988_v34, 16  ;;  %v1175_v12 = vshll.u32 %v988_v34, 16  ;;  %v14304_v33 = vpop.permute.xlu0 %3351  ;;  %v14317_v49 = vld [vmem:[#allocation2 + $0x10] sm:$0xf] }
  0xb1   : > { %v1202_v6 = vor.u32 %v1201_v16, %v1198_v10  ;;  %v1181_v25 = vshll.u32 %v14287_v15, 16  ;;  %v1212_v14 = vor.u32 %v1211_v61, %v1207_v58  ;;  %v1185_v19 = vshrl.u32 %v14287_v15, 16  ;;  %v14319_v41 = vld [vmem:[#allocation2 + $0xc] sm:$0xf]  ;;  %v14326_v57 = vld [vmem:[#allocation2 + $0x58] sm:$0xf]  ;;  %v14328_v16 = vpop.permute.xlu1 %3353 }
  0xb2   : > { %v1217_v18 = vrot.slane %v1215_v50, 5  ;;  %v1191_v7 = vshll.u32 %v14289_v28, 16  ;;  %v1174_v23 = vrot.slane %v1172_v5, 4  ;;  %v1177_v4 = vrot.slane %v1175_v12, 5  ;;  %v477_v62 = vld [vmem:[#allocation2 + $0x68] sm:$0x1] }
  0xb3   : > { %v1203_v26 = vrot.slane %v1202_v6, 4  ;;  %v1183_v24 = vrot.slane %v1181_v25, 5  ;;  %v1213_v44 = vrot.slane %v1212_v14, 4  ;;  %v1187_v55 = vrot.slane %v1185_v19, 4  ;;  %v1628_v5 = vld [vmem:[#allocation2 + $0x5c] sm:$0x1] }
  0xb4   : > { %v1193_v21 = vrot.slane %v1191_v7, 5  ;;  %v11885_v9 = vrot.slane %v1418_v43, 9  ;;  %3441 = vrot.lane.b32.xlu1 %v12043_v53, %s13560_s12  ;;  %v1178_v52 = vor.u32 %v1177_v4, %v1174_v23  ;;  %v1529_v60 = vrot.slane %v14267_v3, 5  ;;  %v2028_v12 = vld [vmem:[#allocation2 + $0x54] sm:$0xe]  ;;  %v14344_v25 = vpop.permute.xlu0 %2919 }
  0xb5   : > { %v1208_v48 = vsel %vm13824_vm15, %v1203_v26, %v1207_v58  ;;  %v1532_v37 = vrot.slane %v14277_v30, 5  ;;  %v1218_v31 = vsel %vm13824_vm15, %v1213_v44, %v1217_v18  ;;  %v1188_v22 = vor.u32 %v1187_v55, %v1183_v24  ;;  %v424_v23 = vld [vmem:[#allocation2 + $0x6c] sm:$0x1] }
  0xb6   : > { %v11884_v47 = vrot.slane %v1417_v13, 9  ;;  %v1522_v38 = vrot.slane %v14287_v15, 5  ;;  %v11949_v34 = vcombine.low %v1208_v48, %v1218_v31  ;;  %v1179_v56 = vrot.slane %v1178_v52, 4  ;;  %v913_v15 = vld [vmem:[#allocation2 + $0x60] sm:$0xf] }
  0xb7   : > { %v1531_v20 = vrot.slane %v1529_v60, 4  ;;  %v11927_v3 = vcombine.low %v14319_v41, %v14317_v49  ;;  %v1189_v30 = vrot.slane %v1188_v22, 4  ;;  %v1530_v42 = vsel %vm13737_vm10, %v11885_v9, %v1529_v60  ;;  %v524_v60 = vld [vmem:[%s13718_s14 + $0x44] sm:$0xf]  ;;  %v14364_v31 = vld [vmem:[#allocation2 + $0x1c] sm:$0xf] }
  0xb8   : > { %v1524_v11 = vrot.slane %v1522_v38, 4  ;;  %v1525_v10 = vrot.slane %v14289_v28, 5  ;;  %3521 = vrot.lane.b32.xlu1 %v12059_v45, %s13558_s29  ;;  %v1184_v43 = vsel %vm13824_vm15, %v1179_v56, %v1183_v24  ;;  %v663_v58 = vrot.slane %v661_v54, 7 }
  0xb9   : > { %v1533_v53 = vsel %vm13737_vm10, %v1531_v20, %v1532_v37  ;;  %v664_v61 = vshll.u32 %v14208_v51, 16  ;;  %v1194_v28 = vsel %vm13824_vm15, %v1189_v30, %v1193_v21  ;;  %v1523_v50 = vsel %vm13737_vm10, %v11884_v47, %v1522_v38  ;;  %v523_v21 = vld [vmem:[%s13718_s14 + $0x40] sm:$0xf]  ;;  %v14360_v37 = vpop.permute.xlu1 %3001  ;;  %v480_v20 = vld [vmem:[#allocation2 + $0x74] sm:$0x1] }
  0xba   : > { %v1526_v45 = vsel %vm13737_vm10, %v1524_v11, %v1525_v10  ;;  %v669_v6 = vshrl.u32 %v522_v27, 16  ;;  %v11948_v13 = vcombine.low %v1184_v43, %v1194_v28  ;;  %v11965_v14 = vcombine.low %v1530_v42, %v1533_v53 }
  0xbb   : > { %v666_v54 = vor.u32 %v664_v61, %v663_v58  ;;  %v667_v18 = vrot.slane %v663_v58, 4  ;;  %v672_v19 = vshll.u32 %v522_v27, 16  ;;  %v1783_v7 = vshrl.u32 %v14315_v40, 16  ;;  %v14362_v27 = vld [vmem:[#allocation2 + $0x18] sm:$0xf] }
  0xbc   : > { %v14346_v51 = vrot.slane %v669_v6, 7  ;;  %v1786_v26 = vshll.u32 %v14315_v40, 16  ;;  %2933 = vrot.lane.b32.xlu1 %v11949_v34, %s18941_s24  ;;  %2931 = vrot.lane.b32.xlu0 %v11948_v13, %s18941_s24  ;;  %v11964_v4 = vcombine.low %v1523_v50, %v1526_v45  ;;  %v1796_v44 = vshrl.u32 %v14326_v57, 16 }
  0xbd   : > { %v914_v24 = vsel %vm13743_vm11, %v666_v54, %v913_v15  ;;  %v478_v55 = vsel %vm13711_vm6, 0, %v477_v62  ;;  %v1785_v48 = vrot.slane %v1783_v7, 4  ;;  %v11928_v22 = vcombine.low %v14362_v27, %v14364_v31  ;;  %v14372_v15 = vpop.permute.xlu0 %3255 }
  0xbe   : > { %v674_v9 = vor.u32 %v672_v19, %v14346_v51  ;;  %915 = vst [vmem:[#allocation2 + $0x60] sm:$0xf] %v914_v24  ;;  %v1788_v52 = vrot.slane %v1786_v26, 5  ;;  %479 = vst [vmem:[#allocation2 + $0x68] sm:$0x1] %v478_v55  ;;  %v1792_v47 = vshll.u32 %v14326_v57, 16  ;;  %v11980_v62 = vcombine.low %v14315_v40, %v14326_v57 }
  0xbf   : > { %v1798_v38 = vrot.slane %v1796_v44, 4  ;;  %v1802_v34 = vshll.u32 %v1628_v5, 16  ;;  %v11900_v56 = vrot.slane %v2028_v12, 9  ;;  %v2130_v11 = vrot.slane %v14326_v57, 5 }
  0xc0   : > { %v675_v30 = vsel %vm13749_vm12, %v667_v18, %v674_v9  ;;  %v1789_v42 = vor.u32 %v1788_v52, %v1785_v48  ;;  %v2133_v10 = vrot.slane %v1628_v5, 5  ;;  %3013 = vrot.lane.b32.xlu1 %v11965_v14, %s13553_s15  ;;  %3011 = vrot.lane.b32.xlu0 %v11964_v4, %s13553_s15  ;;  %v1794_v43 = vrot.slane %v1792_v47, 5  ;;  %v14390_v18 = vpop.permute.xlu1 %3257 }
  0xc1   : > { %916 = vst.msk [vmem:[#allocation2 + $0x64] sm:$0xf] %vm385_vm0, %v675_v30  ;;  %v425_v53 = vsel %vm13683_vm3, 0, %v424_v23  ;;  %v678_v58 = vshrl.u32 %v523_v21, 16  ;;  %v676_v61 = vrot.slane %v14346_v51, 4  ;;  %v2132_v50 = vrot.slane %v2130_v11, 4  ;;  %v14397_v48 = vpop.permute.xlu0 %3511 }
  0xc2   : > { %v1790_v28 = vrot.slane %v1789_v42, 4  ;;  %426 = vst [vmem:[#allocation2 + $0x6c] sm:$0x1] %v425_v53  ;;  %v681_v45 = vshll.u32 %v523_v21, 16  ;;  %v1799_v6 = vor.u32 %v1798_v38, %v1794_v43  ;;  %v1804_v5 = vrot.slane %v1802_v34, 5 }
  0xc3   : > { %v680_v12 = vrot.slane %v678_v58, 7  ;;  %v686_v13 = vshrl.u32 %v524_v60, 16  ;;  %v14384_v14 = vsel %vm13737_vm10, %v11900_v56, %v2130_v11  ;;  %v2134_v40 = vsel %vm13737_vm10, %v2132_v50, %v2133_v10 }
  0xc4   : > { %v689_v57 = vshll.u32 %v524_v60, 16  ;;  %v481_v54 = vsel %vm13711_vm6, 0, %v480_v20  ;;  %3107 = vrot.lane.b32.xlu0 %v11980_v62, %s18988_s16  ;;  %v1795_v7 = vsel %vm13824_vm15, %v1790_v28, %v1794_v43  ;;  %v1800_v26 = vrot.slane %v1799_v6, 4  ;;  %v14409_v6 = vpop.permute.xlu1 %3177 }
  0xc5   : > { %v1604_v51 = vld [vmem:[#allocation2 + $0x60] sm:$0xf]  ;;  %v917_v19 = vld [vmem:[#allocation2 + $0x68] sm:$0x1]  ;;  %v683_v23 = vor.u32 %v681_v45, %v680_v12  ;;  %v684_v4 = vrot.slane %v680_v12, 4  ;;  %v688_v9 = vrot.slane %v686_v13, 7  ;;  %v12012_v47 = vcombine.low %v14384_v14, %v2134_v40 }
  0xc6   : > { %482 = vst [vmem:[#allocation2 + $0x74] sm:$0x1] %v481_v54  ;;  %v1807_v24 = vshrl.u32 %v1604_v51, 16  ;;  %v1810_v44 = vshll.u32 %v1604_v51, 16  ;;  %v918_v55 = vsel %vm13683_vm3, %v676_v61, %v917_v19  ;;  %v2029_v21 = vld [vmem:[#allocation2 + $0x60] sm:$0xe]  ;;  %v1805_v52 = vsel %vm13824_vm15, %v1800_v26, %v1804_v5 }
  0xc7   : > { %919 = vst [vmem:[#allocation2 + $0x68] sm:$0x1] %v918_v55  ;;  %v11901_v60 = vrot.slane %v2029_v21, 9  ;;  %v2211_v38 = vld [vmem:[#allocation2 + $0x60] sm:$0xf]  ;;  %v11996_v30 = vcombine.low %v1795_v7, %v1805_v52  ;;  %v691_v42 = vor.u32 %v689_v57, %v688_v9  ;;  %v693_v50 = vrot.slane %v688_v9, 4 }
  0xc8   : > { %v1605_v34 = vld [vmem:[#allocation2 + $0x64] sm:$0xf]  ;;  %v1809_v56 = vrot.slane %v1807_v24, 4  ;;  %v1812_v20 = vrot.slane %v1810_v44, 5  ;;  %v14422_v14 = vsel %vm3543_vm1, %v11926_v17, %v14344_v25  ;;  %v14424_v40 = vld [vmem:[#allocation2 + $0x60] sm:$0xe] }
  0xc9   : > { %v14402_v11 = vld [vmem:[#allocation2 + $0x64] sm:$0xf]  ;;  %v1820_v10 = vshrl.u32 %v1605_v34, 16  ;;  %v11981_v62 = vcombine.low %v1604_v51, %v1605_v34  ;;  %v1816_v43 = vshll.u32 %v1605_v34, 16  ;;  %v2137_v53 = vrot.slane %v1605_v34, 5  ;;  %3187 = vrot.lane.b32.xlu0 %v11996_v30, %s13559_s30 }
  0xca   : > { %v920_v58 = vld [vmem:[#allocation2 + $0x6c] sm:$0xf]  ;;  %v1813_v61 = vor.u32 %v1812_v20, %v1809_v56  ;;  %v692_v28 = vsel %vm13749_vm12, %v684_v4, %v691_v42  ;;  %v2392_v54 = vshrl.u32 %v2211_v38, 16  ;;  %v2395_v51 = vshll.u32 %v2211_v38, 16 }
  0xcb   : > { %v921_v45 = vsel %vm13743_vm11, %v683_v23, %v920_v58  ;;  %3109 = vrot.lane.b32.xlu1 %v11981_v62, %s18988_s16  ;;  %v1818_v5 = vrot.slane %v1816_v43, 5  ;;  %v1822_v12 = vrot.slane %v1820_v10, 4  ;;  %v14414_v13 = vsel %vm13737_vm10, %v11901_v60, %v2137_v53  ;;  %923 = vst.msk [vmem:[#allocation2 + $0x70] sm:$0xf] %vm385_vm0, %v692_v28  ;;  %v14427_v26 = vpop.permute.xlu0 %3513 }
  0xcc   : > { %922 = vst [vmem:[#allocation2 + $0x6c] sm:$0xf] %v921_v45  ;;  %v1814_v57 = vrot.slane %v1813_v61, 4  ;;  %v2405_v19 = vshrl.u32 %v14402_v11, 16  ;;  %v2139_v4 = vrot.slane %v2137_v53, 4  ;;  %v2401_v46 = vshll.u32 %v14402_v11, 16 }
  0xcd   : > { %v924_v7 = vld [vmem:[#allocation2 + $0x74] sm:$0x1]  ;;  %v1823_v23 = vor.u32 %v1822_v12, %v1818_v5  ;;  %3267 = vrot.lane.b32.xlu0 %v12012_v47, %s13557_s25  ;;  %v2394_v25 = vrot.slane %v2392_v54, 4  ;;  %v2397_v44 = vrot.slane %v2395_v51, 5  ;;  %v12028_v55 = vcombine.low %v2211_v38, %v14402_v11  ;;  %v14440_v10 = vpop.permute.xlu1 %3433 }
  0xce   : > { %v925_v24 = vsel %vm13683_vm3, %v693_v50, %v924_v7  ;;  %v1629_v2 = vld [vmem:[#allocation2 + $0x68] sm:$0x1]  ;;  %v1819_v17 = vsel %vm13824_vm15, %v1814_v57, %v1818_v5  ;;  %v2403_v34 = vrot.slane %v2401_v46, 5  ;;  %v2407_v20 = vrot.slane %v2405_v19, 4 }
  0xcf   : > { %926 = vst [vmem:[#allocation2 + $0x74] sm:$0x1] %v925_v24  ;;  %v14436_v21 = vld [vmem:[#allocation2 + $0x68] sm:$0x1]  ;;  %v1824_v9 = vrot.slane %v1823_v23, 4  ;;  %v1826_v52 = vshll.u32 %v1629_v2, 16  ;;  %v2398_v56 = vor.u32 %v2397_v44, %v2394_v25  ;;  %v14442_v47 = vpop.permute.xlu0 %2921 }
  0xd0   : > { %v2140_v60 = vrot.slane %v1629_v2, 5  ;;  %v2411_v30 = vshll.u32 %v14436_v21, 16  ;;  %v11916_v42 = vrot.slane %v14424_v40, 9  ;;  %v2739_v43 = vrot.slane %v14402_v11, 5 }
  0xd1   : > { %v1828_v62 = vrot.slane %v1826_v52, 5  ;;  %v2742_v53 = vrot.slane %v14436_v21, 5  ;;  %3363 = vrot.lane.b32.xlu0 %v12028_v55, %s13555_s22  ;;  %v2399_v50 = vrot.slane %v2398_v56, 4  ;;  %v2408_v45 = vor.u32 %v2407_v20, %v2403_v34  ;;  %v14468_v52 = vpop.permute.xlu1 %2923 }
  0xd2   : > { %v2141_v38 = vsel %vm13737_vm10, %v2139_v4, %v2140_v60  ;;  %v14451_v28 = vld [vmem:[#allocation2 + $0x70] sm:$0xf]  ;;  %v2413_v5 = vrot.slane %v2411_v30, 5  ;;  %v2740_v20 = vsel %vm13737_vm10, %v11916_v42, %v2739_v43  ;;  %vm18946_vm7 = vcmask 64512  }
  0xd3   : > { %v12013_v58 = vcombine.low %v14414_v13, %v2141_v38  ;;  %v14449_v61 = vld [vmem:[#allocation2 + $0x6c] sm:$0xf]  ;;  %v1829_v12 = vsel %vm13824_vm15, %v1824_v9, %v1828_v62  ;;  %v2429_v57 = vshrl.u32 %v14451_v28, 16  ;;  %v2425_v19 = vshll.u32 %v14451_v28, 16  ;;  %v14464_v23 = vpop.permute.xlu0 %3175  ;;  %v14474_v30 = vld [vmem:[#allocation2 + $0x70] sm:$0xf] }
  0xd4   : > { %v2416_v40 = vshrl.u32 %v14449_v61, 16  ;;  %v2419_v11 = vshll.u32 %v14449_v61, 16  ;;  %v2638_v54 = vld [vmem:[#allocation2 + $0x6c] sm:$0xe]  ;;  %v11997_v13 = vcombine.low %v1819_v17, %v1829_v12  ;;  %v12029_v51 = vcombine.low %v14449_v61, %v14451_v28 }
  0xd5   : > { %v2404_v7 = vsel %vm13824_vm15, %v2399_v50, %v2403_v34  ;;  %v2431_v2 = vrot.slane %v2429_v57, 4  ;;  %v2409_v25 = vrot.slane %v2408_v45, 4  ;;  %v2427_v44 = vrot.slane %v2425_v19, 5  ;;  %v994_v9 = vld [vmem:[#allocation2 + $0x6c] sm:$0xf] }
  0xd6   : > { %v2418_v4 = vrot.slane %v2416_v40, 4  ;;  %v2421_v24 = vrot.slane %v2419_v11, 5  ;;  %v2238_v46 = vld [vmem:[#allocation2 + $0x74] sm:$0x1]  ;;  %3189 = vrot.lane.b32.xlu1 %v11997_v13, %s13559_s30  ;;  %v11917_v17 = vrot.slane %v2638_v54, 9  ;;  %v2746_v21 = vrot.slane %v14451_v28, 5 }
  0xd7   : > { %v2435_v55 = vshll.u32 %v2238_v46, 16  ;;  %v2414_v34 = vsel %vm13824_vm15, %v2409_v25, %v2413_v5  ;;  %v2749_v56 = vrot.slane %v2238_v46, 5  ;;  %v2432_v62 = vor.u32 %v2431_v2, %v2427_v44  ;;  %v14480_v28 = vpop.permute.xlu0 %3431  ;;  %v992_v11 = vld [vmem:[#allocation2 + $0x60] sm:$0xf]  ;;  %v14482_v57 = vld [vmem:[#allocation2 + $0x64] sm:$0xf] }
  0xd8   : > { %v2422_v60 = vor.u32 %v2421_v24, %v2418_v4  ;;  %v12044_v61 = vcombine.low %v2404_v7, %v2414_v34  ;;  %v14478_v50 = vsel %vm13737_vm10, %v11917_v17, %v2746_v21  ;;  %v2748_v12 = vrot.slane %v2746_v21, 4  ;;  %v14486_v54 = vld [vmem:[#allocation2 + $0x74] sm:$0x1]  ;;  %v14496_v46 = vld [vmem:[#allocation2 + $0x68] sm:$0x1]  ;;  %v14501_v21 = vpop.permute.xlu1 %2925 }
  0xd9   : > { %v2437_v38 = vrot.slane %v2435_v55, 5  ;;  %v2741_v40 = vrot.slane %v2739_v43, 4  ;;  %v1244_v5 = vshrl.u32 %v994_v9, 16  ;;  %v2433_v42 = vrot.slane %v2432_v62, 4 }
  0xda   : > { %v2423_v45 = vrot.slane %v2422_v60, 4  ;;  %3269 = vrot.lane.b32.xlu1 %v12013_v58, %s13557_s25  ;;  %3443 = vrot.lane.b32.xlu0 %v12044_v61, %s13560_s12  ;;  %v1247_v13 = vshll.u32 %v994_v9, 16  ;;  %v1253_v19 = vshll.u32 %v14474_v30, 16  ;;  %v1257_v7 = vshrl.u32 %v14474_v30, 16 }
  0xdb   : > { %v2750_v43 = vsel %vm13737_vm10, %v2748_v12, %v2749_v56  ;;  %v2743_v24 = vsel %vm13737_vm10, %v2741_v40, %v2742_v53  ;;  %v1246_v58 = vrot.slane %v1244_v5, 4  ;;  %v2438_v2 = vsel %vm13824_vm15, %v2433_v42, %v2437_v38  ;;  %v14503_v9 = vpop.permute.xlu0 %3003  ;;  %v1419_v5 = vld [vmem:[#allocation2 + $0x60] sm:$0xe] }
  0xdc   : > { %v2428_v4 = vsel %vm13824_vm15, %v2423_v45, %v2427_v44  ;;  %v12061_v25 = vcombine.low %v14478_v50, %v2750_v43  ;;  %v12060_v55 = vcombine.low %v2740_v20, %v2743_v24  ;;  %v1249_v17 = vrot.slane %v1247_v13, 5  ;;  %v1420_v20 = vld [vmem:[#allocation2 + $0x6c] sm:$0xe] }
  0xdd   : > { %v12045_v44 = vcombine.low %v2428_v4, %v2438_v2  ;;  %v1255_v60 = vrot.slane %v1253_v19, 5  ;;  %v1259_v34 = vrot.slane %v1257_v7, 4  ;;  %v1263_v56 = vshll.u32 %v14486_v54, 16  ;;  %v525_v2 = vld [vmem:[%s13718_s14 + $0x48] sm:$0xf] }
  0xde   : > { %3365 = vrot.lane.b32.xlu1 %v12029_v51, %s13555_s22  ;;  %3523 = vrot.lane.b32.xlu0 %v12060_v55, %s13558_s29  ;;  %v1250_v53 = vor.u32 %v1249_v17, %v1246_v58  ;;  %v1220_v62 = vshrl.u32 %v992_v11, 16  ;;  %v1223_v38 = vshll.u32 %v992_v11, 16  ;;  %v1229_v61 = vshll.u32 %v14482_v57, 16  ;;  %v427_v58 = vld [vmem:[#allocation2 + $0x78] sm:$0x1] }
  0xdf   : > { %v1260_v50 = vor.u32 %v1259_v34, %v1255_v60  ;;  %v1265_v45 = vrot.slane %v1263_v56, 5  ;;  %v1233_v12 = vshrl.u32 %v14482_v57, 16  ;;  %v1239_v40 = vshll.u32 %v14496_v46, 16  ;;  %v14511_v7 = vpop.permute.xlu0 %3099 }
  0xe0   : > { %v1251_v42 = vrot.slane %v1250_v53, 4  ;;  %v1222_v13 = vrot.slane %v1220_v62, 4  ;;  %v1225_v19 = vrot.slane %v1223_v38, 5  ;;  %v1231_v51 = vrot.slane %v1229_v61, 5  ;;  %v14519_v53 = vpop.permute.xlu1 %3005 }
  0xe1   : > { %v1261_v4 = vrot.slane %v1260_v50, 4  ;;  %v1235_v11 = vrot.slane %v1233_v12, 4  ;;  %v1241_v43 = vrot.slane %v1239_v40, 5  ;;  %v11887_v24 = vrot.slane %v1420_v20, 9  ;;  %v526_v50 = vld [vmem:[%s13718_s14 + $0x4c] sm:$0xf] }
  0xe2   : > { %3445 = vrot.lane.b32.xlu1 %v12045_v44, %s13560_s12  ;;  %v1256_v55 = vsel %vm13824_vm15, %v1251_v42, %v1255_v60  ;;  %v1226_v17 = vor.u32 %v1225_v19, %v1222_v13  ;;  %v1543_v34 = vrot.slane %v14474_v30, 5  ;;  %v1546_v56 = vrot.slane %v14486_v54, 5  ;;  %v14530_v40 = vld [vmem:[#allocation2 + $0x6c] sm:$0xf]  ;;  %v14532_v54 = vld [vmem:[#allocation2 + $0x70] sm:$0xf] }
  0xe3   : > { %v1266_v62 = vsel %vm13824_vm15, %v1261_v4, %v1265_v45  ;;  %v1236_v38 = vor.u32 %v1235_v11, %v1231_v51  ;;  %v11886_v61 = vrot.slane %v1419_v5, 9  ;;  %v1536_v20 = vrot.slane %v14482_v57, 5  ;;  %v14534_v42 = vpop.permute.xlu0 %3179 }
  0xe4   : > { %v14528_v44 = vsel %vm18946_vm7, %v14422_v14, %v14273_v35  ;;  %v11951_v60 = vcombine.low %v1256_v55, %v1266_v62  ;;  %v1227_v12 = vrot.slane %v1226_v17, 4  ;;  %v1545_v30 = vrot.slane %v1543_v34, 4  ;;  %v483_v55 = vld [vmem:[#allocation2 + $0x80] sm:$0x1]  ;;  %v14552_v62 = vpop.permute.xlu1 %3101 }
  0xe5   : > { %v1237_v45 = vrot.slane %v1236_v38, 4  ;;  %v1544_v5 = vsel %vm13737_vm10, %v11887_v24, %v1543_v34  ;;  %v1538_v57 = vrot.slane %v1536_v20, 4  ;;  %v1539_v13 = vrot.slane %v14496_v46, 5 }
  0xe6   : > { %3525 = vrot.lane.b32.xlu1 %v12061_v25, %s13558_s29  ;;  %v1232_v35 = vsel %vm13824_vm15, %v1227_v12, %v1231_v51  ;;  %v1547_v14 = vsel %vm13737_vm10, %v1545_v30, %v1546_v56  ;;  %v428_v19 = vsel %vm13683_vm3, 0, %v427_v58  ;;  %v695_v4 = vshrl.u32 %v525_v2, 16 }
  0xe7   : > { %v1242_v11 = vsel %vm13824_vm15, %v1237_v45, %v1241_v43  ;;  %v1537_v24 = vsel %vm13737_vm10, %v11886_v61, %v1536_v20  ;;  %v1540_v46 = vsel %vm13737_vm10, %v1538_v57, %v1539_v13  ;;  %429 = vst [vmem:[#allocation2 + $0x78] sm:$0x1] %v428_v19  ;;  %v698_v25 = vshll.u32 %v525_v2, 16  ;;  %v14557_v61 = vld [vmem:[#allocation2 + $0x74] sm:$0x1] }
  0xe8   : > { %v11950_v51 = vcombine.low %v1232_v35, %v1242_v11  ;;  %v11967_v17 = vcombine.low %v1544_v5, %v1547_v14  ;;  %v697_v34 = vrot.slane %v695_v4, 7  ;;  %v703_v56 = vshrl.u32 %v526_v50, 16  ;;  %v14563_v5 = vpop.permute.xlu0 %3259  ;;  %v2030_v35 = vld [vmem:[#allocation2 + $0x6c] sm:$0xe] }
  0xe9   : > { %v706_v58 = vshll.u32 %v526_v50, 16  ;;  %v1831_v38 = vshrl.u32 %v14530_v40, 16  ;;  %v1834_v43 = vshll.u32 %v14530_v40, 16  ;;  %v1844_v12 = vshrl.u32 %v14532_v54, 16 }
  0xea   : > { %2937 = vrot.lane.b32.xlu1 %v11951_v60, %s18941_s24  ;;  %2935 = vrot.lane.b32.xlu0 %v11950_v51, %s18941_s24  ;;  %v11966_v2 = vcombine.low %v1537_v24, %v1540_v46  ;;  %v700_v20 = vor.u32 %v698_v25, %v697_v34  ;;  %v701_v30 = vrot.slane %v697_v34, 4  ;;  %v14561_v45 = vrot.slane %v703_v56, 7  ;;  %v13250_v46 = vld [vmem:[%s18928_s1 + $0x10] ss:$0 sps:$4 sm:$0x33]   ;;  %s18989_s24 = smov 4  }
  0xeb   : > { %v1833_v50 = vrot.slane %v1831_v38, 4  ;;  %v1836_v57 = vrot.slane %v1834_v43, 5  ;;  %v11982_v13 = vcombine.low %v14530_v40, %v14532_v54  ;;  %vm3625_vm8 = vcmask 97280  }
  0xec   : > { %v708_v14 = vor.u32 %v706_v58, %v14561_v45  ;;  %vm3658_vm9 = vcmask 130048   ;;  %v3549_v60 = vsel %vm3543_vm1, %v11927_v3, %v14442_v47  ;;  %v484_v19 = vsel %vm13711_vm6, 0, %v483_v55  ;;  %v14604_v38 = vpop.permute.xlu0 %3355 }
  0xed   : > { %v3596_v4 = vsel %vm18946_vm7, %v3549_v60, %v14360_v37  ;;  %485 = vst [vmem:[#allocation2 + $0x80] sm:$0x1] %v484_v19  ;;  %v1837_v11 = vor.u32 %v1836_v57, %v1833_v50  ;;  %v1840_v40 = vshll.u32 %v14532_v54, 16  ;;  %v1846_v24 = vrot.slane %v1844_v12, 4  ;;  %v14589_v25 = vpop.permute.xlu1 %3181 }
  0xee   : > { %3017 = vrot.lane.b32.xlu1 %v11967_v17, %s13553_s15  ;;  %3015 = vrot.lane.b32.xlu0 %v11966_v2, %s13553_s15  ;;  %v709_v49 = vsel %vm13749_vm12, %v701_v30, %v708_v14  ;;  %v710_v41 = vrot.slane %v14561_v45, 4  ;;  %v927_v3 = vld [vmem:[#allocation2 + $0x78] sm:$0xf]  ;;  %v3629_v37 = vsel %vm3625_vm8, %v3596_v4, %v14302_v59  ;;  %v1850_v47 = vshll.u32 %v14557_v61, 16  ;;  %v13384_v2 = vld [vmem:[#allocation2 + $0x28] sm:$0xf] }
  0xef   : > { %v928_v55 = vsel %vm13743_vm11, %v700_v20, %v927_v3  ;;  %930 = vst.msk [vmem:[#allocation2 + $0x7c] sm:$0xf] %vm385_vm0, %v709_v49  ;;  %v1838_v51 = vrot.slane %v1837_v11, 4  ;;  %v1842_v17 = vrot.slane %v1840_v40, 5  ;;  %v14599_v34 = vsel %vm3543_vm1, %v11928_v22, %v14468_v52  ;;  %v430_v22 = vld [vmem:[#allocation2 + $0x84] sm:$0x1] }
  0xf0   : > { %929 = vst [vmem:[#allocation2 + $0x78] sm:$0xf] %v928_v55  ;;  %v1852_v59 = vrot.slane %v1850_v47, 5  ;;  %v3627_v56 = vsel %vm3625_vm8, %v14528_v44, %v14291_v36  ;;  %vm3691_vm13 = vcmask 162816   ;;  %v11902_v58 = vrot.slane %v2030_v35, 9 }
  0xf1   : > { %v1843_v43 = vsel %vm13824_vm15, %v1838_v51, %v1842_v17  ;;  %v1847_v12 = vor.u32 %v1846_v24, %v1842_v17  ;;  %v3660_v27 = vsel %vm3658_vm9, %v3627_v56, %v14464_v23  ;;  %v2144_v31 = vrot.slane %v14532_v54, 5  ;;  %v13383_v44 = vld [vmem:[#allocation2 + $0x24] sm:$0xf]  ;;  %v527_v30 = vld [vmem:[%s13718_s14 + $0x50] sm:$0xf]  ;;  %v14618_v54 = vpop.permute.xlu1 %3261  ;;  %v14639_v24 = vpop.permute.xlu0 %3435 }
  0xf2   : > { %3111 = vrot.lane.b32.xlu0 %v11982_v13, %s18988_s16  ;;  %v3693_v36 = vsel %vm3691_vm13, %v3660_v27, %v14372_v15  ;;  %v2147_v52 = vrot.slane %v14557_v61, 5  ;;  %v11929_v20 = vcombine.low %v13383_v44, %v13384_v2  ;;  %vm3883_vm14 = vcmask 1041408   ;;  %v528_v11 = vld [vmem:[%s13718_s14 + $0x54] sm:$0xf] }
  0xf3   : > { %v1848_v45 = vrot.slane %v1847_v12, 4  ;;  %v2145_v50 = vsel %vm13737_vm10, %v11902_v58, %v2144_v31  ;;  %v2146_v23 = vrot.slane %v2144_v31, 4  ;;  %13176 = vmatprep.subr.msk.bf16.mxu0 %vm3883_vm14, %v13250_v46  ;;  %vm3724_vm4 = vcmask 195584  }
  0xf4   : > { %v931_v57 = vld [vmem:[#allocation2 + $0x80] sm:$0x1]  ;;  %v3555_v15 = vsel %vm3543_vm1, %v11929_v20, %v14501_v21  ;;  %v3726_v61 = vsel %vm3724_vm4, %v3693_v36, %v14304_v33  ;;  %vm3757_vm5 = vcmask 228352   ;;  %v3885_v13 = vsel %vm3883_vm14, %v13250_v46, 0 }
  0xf5   : > { %v3662_v35 = vsel %vm3658_vm9, %v3629_v37, %v14409_v6  ;;  %v932_v14 = vsel %vm13683_vm3, %v710_v41, %v931_v57  ;;  %v1853_v60 = vsel %vm13824_vm15, %v1848_v45, %v1852_v59  ;;  %v2148_v19 = vsel %vm13737_vm10, %v2146_v23, %v2147_v52  ;;  %13059 = vmatpush3.bf16.msra.mxu0 %v3885_v13  ;;  %v14646_v12 = vpop.permute.xlu1 %3357 }
  0xf6   : > { %v1609_v4 = vld [vmem:[#allocation2 + $0x7c] sm:$0xf]  ;;  %933 = vst [vmem:[#allocation2 + $0x80] sm:$0x1] %v932_v14  ;;  %v11998_v21 = vcombine.low %v1843_v43, %v1853_v60  ;;  %v14634_v33 = vsel %vm3757_vm5, %v3726_v61, %v14480_v28  ;;  %v431_v6 = vsel %vm13683_vm3, 0, %v430_v22  ;;  %v712_v40 = vshrl.u32 %v527_v30, 16 }
  0xf7   : > { %v1608_v46 = vld [vmem:[#allocation2 + $0x78] sm:$0xf]  ;;  %v1868_v49 = vshrl.u32 %v1609_v4, 16  ;;  %v1864_v41 = vshll.u32 %v1609_v4, 16  ;;  %v12014_v37 = vcombine.low %v2145_v50, %v2148_v19  ;;  %432 = vst [vmem:[#allocation2 + $0x84] sm:$0x1] %v431_v6  ;;  %v14643_v47 = vsel %vm18946_vm7, %v3555_v15, %v14519_v53  ;;  %v14660_v15 = vpop.permute.xlu0 %3515 }
  0xf8   : > { %v2031_v3 = vld [vmem:[#allocation2 + $0x78] sm:$0xe]  ;;  %v1855_v55 = vshrl.u32 %v1608_v46, 16  ;;  %v1858_v28 = vshll.u32 %v1608_v46, 16  ;;  %v11983_v51 = vcombine.low %v1608_v46, %v1609_v4  ;;  %3191 = vrot.lane.b32.xlu0 %v11998_v21, %s13559_s30  ;;  %v2151_v58 = vrot.slane %v1609_v4, 5 }
  0xf9   : > { %v11903_v17 = vrot.slane %v2031_v3, 9  ;;  %v1866_v59 = vrot.slane %v1864_v41, 5  ;;  %v1870_v56 = vrot.slane %v1868_v49, 4  ;;  %v714_v43 = vrot.slane %v712_v40, 7  ;;  %v2215_v53 = vld [vmem:[#allocation2 + $0x78] sm:$0xf]  ;;  %v14666_v41 = vpop.permute.xlu1 %3437 }
  0xfa   : > { %v1857_v27 = vrot.slane %v1855_v55, 4  ;;  %v1860_v31 = vrot.slane %v1858_v28, 5  ;;  %3113 = vrot.lane.b32.xlu1 %v11983_v51, %s18988_s16  ;;  %v715_v22 = vshll.u32 %v527_v30, 16  ;;  %v720_v36 = vshrl.u32 %v528_v11, 16  ;;  %v14653_v20 = vld [vmem:[#allocation2 + $0x7c] sm:$0xf] }
  0xfb   : > { %v1871_v52 = vor.u32 %v1870_v56, %v1866_v59  ;;  %v14651_v44 = vsel %vm13737_vm10, %v11903_v17, %v2151_v58  ;;  %v718_v2 = vrot.slane %v714_v43, 4  ;;  %v3695_v45 = vsel %vm3691_vm13, %v3662_v35, %v14390_v18  ;;  %v486_v51 = vld [vmem:[#allocation2 + $0x8c] sm:$0x1] }
  0xfc   : > { %v1861_v50 = vor.u32 %v1860_v31, %v1857_v27  ;;  %3271 = vrot.lane.b32.xlu0 %v12014_v37, %s13557_s25  ;;  %v717_v23 = vor.u32 %v715_v22, %v714_v43  ;;  %v14658_v57 = vrot.slane %v720_v36, 7  ;;  %v723_v30 = vshll.u32 %v528_v11, 16 }
  0xfd   : > { %v1631_v61 = vld [vmem:[#allocation2 + $0x80] sm:$0x1]  ;;  %v1872_v13 = vrot.slane %v1871_v52, 4  ;;  %v2153_v14 = vrot.slane %v2151_v58, 4  ;;  %v2440_v60 = vshrl.u32 %v2215_v53, 16  ;;  %v2443_v19 = vshll.u32 %v2215_v53, 16 }
  0xfe   : > { %v1862_v4 = vrot.slane %v1861_v50, 4  ;;  %v1874_v21 = vshll.u32 %v1631_v61, 16  ;;  %v2154_v6 = vrot.slane %v1631_v61, 5  ;;  %v725_v40 = vor.u32 %v723_v30, %v14658_v57  ;;  %v934_v18 = vld [vmem:[#allocation2 + $0x84] sm:$0xf] }
  0xff   : > { %v935_v35 = vsel %vm13743_vm11, %v717_v23, %v934_v18  ;;  %v2442_v46 = vrot.slane %v2440_v60, 4  ;;  %v2445_v49 = vrot.slane %v2443_v19, 5  ;;  %v2453_v11 = vshrl.u32 %v14653_v20, 16  ;;  %v14677_v58 = vld [vmem:[#allocation2 + $0x80] sm:$0x1]  ;;  %v14709_v23 = vpop.permute.xlu1 %3517 }
 0x100   : > { %v1867_v3 = vsel %vm13824_vm15, %v1862_v4, %v1866_v59  ;;  %v1876_v37 = vrot.slane %v1874_v21, 5  ;;  %v726_v55 = vsel %vm13749_vm12, %v718_v2, %v725_v40  ;;  %v727_v28 = vrot.slane %v14658_v57, 4  ;;  %936 = vst [vmem:[#allocation2 + $0x84] sm:$0xf] %v935_v35  ;;  %v2639_v52 = vld [vmem:[#allocation2 + $0x78] sm:$0xe] }
 0x101   : > { %v2155_v17 = vsel %vm13737_vm10, %v2153_v14, %v2154_v6  ;;  %937 = vst.msk [vmem:[#allocation2 + $0x88] sm:$0xf] %vm385_vm0, %v726_v55  ;;  %v12030_v56 = vcombine.low %v2215_v53, %v14653_v20  ;;  %vm3790_vm14 = vcmask 261120   ;;  %vm3850_vm2 = vcmask 293888   ;;  %v14689_v22 = vpop.permute.xlu0 %2927 }
 0x102   : > { %v1877_v59 = vsel %vm13824_vm15, %v1872_v13, %v1876_v37  ;;  %v3792_v43 = vsel %vm3790_vm14, %v14634_v33, %v14397_v48  ;;  %v3728_v27 = vsel %vm3724_vm4, %v3695_v45, %v14328_v16  ;;  %v3598_v31 = vsel %vm18946_vm7, %v14599_v34, %v14503_v9 }
 0x103   : > { %v11999_v36 = vcombine.low %v1867_v3, %v1877_v59  ;;  %3367 = vrot.lane.b32.xlu0 %v12030_v56, %s13555_s22  ;;  %13060 = vmatprep.mubr.msk.bf16.mxu0 %vm3850_vm2, %v3792_v43  ;;  %v3761_v53 = vsel %vm3757_vm5, %v3728_v27, %v14440_v10  ;;  %v487_v48 = vsel %vm13711_vm6, 0, %v486_v51  ;;  %v2446_v33 = vor.u32 %v2445_v49, %v2442_v46  ;;  %v14734_v27 = vpop.permute.xlu1 %2929 }
 0x104   : > { %v3794_v16 = vsel %vm3790_vm14, %v3761_v53, %v14427_v26  ;;  %488 = vst [vmem:[#allocation2 + $0x8c] sm:$0x1] %v487_v48  ;;  %v2449_v9 = vshll.u32 %v14653_v20, 16  ;;  %v2455_v34 = vrot.slane %v2453_v11, 4  ;;  %v2459_v2 = vshll.u32 %v14677_v58, 16 }
 0x105   : > { %3193 = vrot.lane.b32.xlu1 %v11999_v36, %s13559_s30  ;;  %v12015_v45 = vcombine.low %v14651_v44, %v2155_v17  ;;  %13061 = vmatmul.mubr.msk.bf16.vlgmr.msra.gmra.mrb[0].mxu0 %vm3850_vm2, %v3794_v16  ;;  %v2447_v10 = vrot.slane %v2446_v33, 4  ;;  %v3633_v50 = vsel %vm3625_vm8, %v14643_v47, %v14552_v62  ;;  %v3631_v26 = vsel %vm3625_vm8, %v3598_v31, %v14511_v7  ;;  %v14712_v60 = vpop.permute.xlu0 %3007  ;;  %v14723_v62 = vld [vmem:[#allocation2 + $0x3c] sm:$0xf]  ;;  %v14725_v47 = vld [vmem:[#allocation2 + $0x40] sm:$0xf] }
 0x106   : > { %v2451_v30 = vrot.slane %v2449_v9, 5  ;;  %v2461_v61 = vrot.slane %v2459_v2, 5  ;;  %v11918_v13 = vrot.slane %v2639_v52, 9  ;;  %v2753_v14 = vrot.slane %v14653_v20, 5  ;;  %v14736_v31 = vld [vmem:[#allocation2 + $0x30] sm:$0xf] }
 0x107   : > { %v2217_v44 = vld [vmem:[#allocation2 + $0x84] sm:$0xf]  ;;  %v2756_v4 = vrot.slane %v14677_v58, 5  ;;  %v14717_v21 = vsel %vm3658_vm9, %v3633_v50, %v14589_v25  ;;  %v14721_v7 = vsel %vm3658_vm9, %v3631_v26, %v14534_v42  ;;  %v11931_v20 = vcombine.low %v14723_v62, %v14725_v47  ;;  %v14738_v36 = vld [vmem:[#allocation2 + $0x34] sm:$0xf] }
 0x108   : > { %v2640_v19 = vld [vmem:[#allocation2 + $0x84] sm:$0xe]  ;;  %v2218_v6 = vld [vmem:[#allocation2 + $0x88] sm:$0xf]  ;;  %v2464_v40 = vshrl.u32 %v2217_v44, 16  ;;  %v2467_v18 = vshll.u32 %v2217_v44, 16  ;;  %v2452_v35 = vsel %vm13824_vm15, %v2447_v10, %v2451_v30  ;;  %v2456_v46 = vor.u32 %v2455_v34, %v2451_v30 }
 0x109   : > { %3273 = vrot.lane.b32.xlu1 %v12015_v45, %s13557_s25  ;;  %v2477_v25 = vshrl.u32 %v2218_v6, 16  ;;  %v12031_v49 = vcombine.low %v2217_v44, %v2218_v6  ;;  %v2473_v42 = vshll.u32 %v2218_v6, 16  ;;  %v11919_v11 = vrot.slane %v2640_v19, 9  ;;  %v998_v17 = vld [vmem:[#allocation2 + $0x84] sm:$0xf]  ;;  %v14742_v48 = vpop.permute.xlu0 %3103 }
 0x10a   : > { %v2466_v3 = vrot.slane %v2464_v40, 4  ;;  %v2469_v37 = vrot.slane %v2467_v18, 5  ;;  %v2457_v55 = vrot.slane %v2456_v46, 4  ;;  %v2760_v51 = vrot.slane %v2218_v6, 5  ;;  %v14752_v34 = vld [vmem:[#allocation2 + $0x88] sm:$0xf] }
 0x10b   : > { %v938_v56 = vld [vmem:[#allocation2 + $0x8c] sm:$0x1]  ;;  %v14732_v58 = vrot.slane %v2473_v42, 5  ;;  %v2479_v59 = vrot.slane %v2477_v25, 4  ;;  %v2755_v43 = vrot.slane %v2753_v14, 4  ;;  %v11930_v53 = vcombine.low %v14736_v31, %v14738_v36 }
 0x10c   : > { %v939_v33 = vsel %vm13683_vm3, %v727_v28, %v938_v56  ;;  %v2470_v52 = vor.u32 %v2469_v37, %v2466_v3  ;;  %v2462_v16 = vsel %vm13824_vm15, %v2457_v55, %v2461_v61  ;;  %v2754_v9 = vsel %vm13737_vm10, %v11918_v13, %v2753_v14  ;;  %v996_v2 = vld [vmem:[#allocation2 + $0x78] sm:$0xf]  ;;  %v14764_v13 = vld [vmem:[#allocation2 + $0x7c] sm:$0xf]  ;;  %v14769_v6 = vld [vmem:[#allocation2 + $0x80] sm:$0x1]  ;;  %v14772_v3 = vpop.permute.xlu1 %3009 }
 0x10d   : > { %3369 = vrot.lane.b32.xlu1 %v12031_v49, %s13555_s22  ;;  %940 = vst [vmem:[#allocation2 + $0x8c] sm:$0x1] %v939_v33  ;;  %v2480_v45 = vor.u32 %v2479_v59, %v14732_v58  ;;  %v12046_v10 = vcombine.low %v2452_v35, %v2462_v16  ;;  %v14758_v57 = vsel %vm13737_vm10, %v11919_v11, %v2760_v51  ;;  %v2762_v26 = vrot.slane %v2760_v51, 4 }
 0x10e   : > { %v2757_v28 = vsel %vm13737_vm10, %v2755_v43, %v2756_v4  ;;  %v14762_v50 = vrot.slane %v2470_v52, 4  ;;  %v1292_v30 = vshrl.u32 %v998_v17, 16  ;;  %v1295_v61 = vshll.u32 %v998_v17, 16  ;;  %v14774_v37 = vpop.permute.xlu0 %3183 }
 0x10f   : > { %3447 = vrot.lane.b32.xlu0 %v12046_v10, %s13560_s12  ;;  %v12062_v14 = vcombine.low %v2754_v9, %v2757_v28  ;;  %v1301_v44 = vshll.u32 %v14752_v34, 16  ;;  %v1305_v19 = vshrl.u32 %v14752_v34, 16  ;;  %v1268_v40 = vshrl.u32 %v996_v2, 16 }
 0x110   : > { %v2481_v18 = vrot.slane %v2480_v45, 4  ;;  %v1294_v35 = vrot.slane %v1292_v30, 4  ;;  %v1297_v4 = vrot.slane %v1295_v61, 5  ;;  %v1271_v46 = vshll.u32 %v996_v2, 16 }
 0x111   : > { %v1303_v25 = vrot.slane %v1301_v44, 5  ;;  %v1307_v49 = vrot.slane %v1305_v19, 4  ;;  %v1270_v42 = vrot.slane %v1268_v40, 4  ;;  %v1277_v11 = vshll.u32 %v14764_v13, 16 }
 0x112   : > { %v1298_v55 = vor.u32 %v1297_v4, %v1294_v35  ;;  %v1273_v51 = vrot.slane %v1271_v46, 5  ;;  %v1281_v17 = vshrl.u32 %v14764_v13, 16  ;;  %v1287_v56 = vshll.u32 %v14769_v6, 16  ;;  %v1421_v35 = vld [vmem:[#allocation2 + $0x78] sm:$0xe]  ;;  %v14797_v46 = vpop.permute.xlu1 %3105 }
 0x113   : > { %v2476_v59 = vsel %vm13824_vm15, %v14762_v50, %v14732_v58  ;;  %3527 = vrot.lane.b32.xlu0 %v12062_v14, %s13558_s29  ;;  %v1308_v43 = vor.u32 %v1307_v49, %v1303_v25  ;;  %v1279_v33 = vrot.slane %v1277_v11, 5  ;;  %v3699_v52 = vsel %vm3691_vm13, %v14717_v21, %v14618_v54  ;;  %v1422_v14 = vld [vmem:[#allocation2 + $0x84] sm:$0xe]  ;;  %v14799_v49 = vpop.permute.xlu0 %3263 }
 0x114   : > { %v2240_v16 = vld [vmem:[#allocation2 + $0x8c] sm:$0x1]  ;;  %v1299_v2 = vrot.slane %v1298_v55, 4  ;;  %v1274_v45 = vor.u32 %v1273_v51, %v1270_v42  ;;  %v1283_v10 = vrot.slane %v1281_v17, 4  ;;  %v3697_v28 = vsel %vm3691_vm13, %v14721_v7, %v14563_v5 }
 0x115   : > { %v1019_v9 = vld [vmem:[#allocation2 + $0x8c] sm:$0x1]  ;;  %v2483_v30 = vshll.u32 %v2240_v16, 16  ;;  %v2763_v61 = vrot.slane %v2240_v16, 5  ;;  %v1309_v58 = vrot.slane %v1308_v43, 4  ;;  %v1289_v40 = vrot.slane %v1287_v56, 5 }
 0x116   : > { %v1311_v50 = vshll.u32 %v1019_v9, 16  ;;  %v1275_v44 = vrot.slane %v1274_v45, 4  ;;  %v1284_v19 = vor.u32 %v1283_v10, %v1279_v33  ;;  %v14791_v54 = vsel %vm3724_vm4, %v3699_v52, %v14646_v12  ;;  %v433_v56 = vld [vmem:[#allocation2 + $0x90] sm:$0x1]  ;;  %v529_v43 = vld [vmem:[%s13718_s14 + $0x58] sm:$0xf] }
 0x117   : > { %v2485_v21 = vrot.slane %v2483_v30, 5  ;;  %v2764_v4 = vsel %vm13737_vm10, %v2762_v26, %v2763_v61  ;;  %v1304_v5 = vsel %vm13824_vm15, %v1299_v2, %v1303_v25  ;;  %v11889_v12 = vrot.slane %v1422_v14, 9  ;;  %v530_v45 = vld [vmem:[%s13718_s14 + $0x5c] sm:$0xf]  ;;  %v14815_v61 = vld [vmem:[#allocation2 + $0x84] sm:$0xf] }
 0x118   : > { %v1313_v7 = vrot.slane %v1311_v50, 5  ;;  %v1280_v42 = vsel %vm13824_vm15, %v1275_v44, %v1279_v33  ;;  %v1285_v11 = vrot.slane %v1284_v19, 4  ;;  %v1557_v55 = vrot.slane %v14752_v34, 5  ;;  %v14824_v50 = vld [vmem:[#allocation2 + $0x88] sm:$0xf] }
 0x119   : > { %v2486_v51 = vsel %vm13824_vm15, %v2481_v18, %v2485_v21  ;;  %v1560_v25 = vrot.slane %v1019_v9, 5  ;;  %v11888_v17 = vrot.slane %v1421_v35, 9  ;;  %v12063_v16 = vcombine.low %v14758_v57, %v2764_v4 }
 0x11a   : > { %v1314_v26 = vsel %vm13824_vm15, %v1309_v58, %v1313_v7  ;;  %v12047_v52 = vcombine.low %v2476_v59, %v2486_v51  ;;  %v1290_v33 = vsel %vm13824_vm15, %v1285_v11, %v1289_v40  ;;  %v1559_v34 = vrot.slane %v1557_v55, 4  ;;  %v14833_v19 = vpop.permute.xlu1 %3185  ;;  %v14835_v40 = vpop.permute.xlu0 %3359 }
 0x11b   : > { %v11953_v2 = vcombine.low %v1304_v5, %v1314_v26  ;;  %v11952_v10 = vcombine.low %v1280_v42, %v1290_v33  ;;  %v1550_v30 = vrot.slane %v14764_v13, 5  ;;  %v1553_v18 = vrot.slane %v14769_v6, 5  ;;  %v2032_v33 = vld [vmem:[#allocation2 + $0x84] sm:$0xe] }
 0x11c   : > { %3449 = vrot.lane.b32.xlu1 %v12047_v52, %s13560_s12  ;;  %v14820_v59 = vsel %vm13737_vm10, %v11889_v12, %v1557_v55  ;;  %v434_v57 = vsel %vm13683_vm3, 0, %v433_v56  ;;  %v729_v9 = vshrl.u32 %v529_v43, 16  ;;  %v732_v58 = vshll.u32 %v529_v43, 16  ;;  %v489_v55 = vld [vmem:[#allocation2 + $0x98] sm:$0x1] }
 0x11d   : > { %2939 = vrot.lane.b32.xlu0 %v11952_v10, %s18989_s24  ;;  %v14829_v13 = vsel %vm13737_vm10, %v1559_v34, %v1560_v25  ;;  %v1551_v6 = vsel %vm13737_vm10, %v11888_v17, %v1550_v30  ;;  %v1552_v14 = vrot.slane %v1550_v30, 4  ;;  %435 = vst [vmem:[#allocation2 + $0x90] sm:$0x1] %v434_v57  ;;  %v737_v44 = vshrl.u32 %v530_v45, 16  ;;  %v1632_v25 = vld [vmem:[#allocation2 + $0x8c] sm:$0x1] }
 0x11e   : > { %v3730_v35 = vsel %vm3724_vm4, %v3697_v28, %v14604_v38  ;;  %v731_v21 = vrot.slane %v729_v9, 7  ;;  %v740_v4 = vshll.u32 %v530_v45, 16  ;;  %v1879_v5 = vshrl.u32 %v14815_v61, 16  ;;  %v14861_v9 = vpop.permute.xlu1 %3265 }
 0x11f   : > { %v1554_v7 = vsel %vm13737_vm10, %v1552_v14, %v1553_v18  ;;  %v14842_v42 = vrot.slane %v737_v44, 7  ;;  %v1882_v11 = vshll.u32 %v14815_v61, 16  ;;  %v1892_v12 = vshrl.u32 %v14824_v50, 16  ;;  %v436_v44 = vld [vmem:[#allocation2 + $0x9c] sm:$0x1] }
 0x120   : > { %3529 = vrot.lane.b32.xlu1 %v12063_v16, %s13558_s29  ;;  %v11969_v51 = vcombine.low %v14820_v59, %v14829_v13  ;;  %v11968_v38 = vcombine.low %v1551_v6, %v1554_v7  ;;  %v735_v28 = vrot.slane %v731_v21, 4  ;;  %v1881_v26 = vrot.slane %v1879_v5, 4  ;;  %v531_v5 = vld [vmem:[%s13718_s14 + $0x60] sm:$0xf]  ;;  %v532_v7 = vld [vmem:[%s13718_s14 + $0x64] sm:$0xf] }
 0x121   : > { %v734_v17 = vor.u32 %v732_v58, %v731_v21  ;;  %v742_v56 = vor.u32 %v740_v4, %v14842_v42  ;;  %v744_v43 = vrot.slane %v14842_v42, 4  ;;  %v1884_v52 = vrot.slane %v1882_v11, 5 }
 0x122   : > { %3019 = vrot.lane.b32.xlu0 %v11968_v38, %s13553_s15  ;;  %v11984_v45 = vcombine.low %v14815_v61, %v14824_v50  ;;  %v3763_v16 = vsel %vm3757_vm5, %v3730_v35, %v14639_v24  ;;  %v490_v10 = vsel %vm13711_vm6, 0, %v489_v55  ;;  %v1888_v34 = vshll.u32 %v14824_v50, 16  ;;  %v14863_v61 = vpop.permute.xlu0 %3439 }
 0x123   : > { %v743_v30 = vsel %vm13749_vm12, %v735_v28, %v742_v56  ;;  %491 = vst [vmem:[#allocation2 + $0x98] sm:$0x1] %v490_v10  ;;  %v1885_v18 = vor.u32 %v1884_v52, %v1881_v26  ;;  %v1894_v59 = vrot.slane %v1892_v12, 4  ;;  %v1898_v57 = vshll.u32 %v1632_v25, 16 }
 0x124   : > { %2941 = vrot.lane.b32.xlu1 %v11953_v2, %s18989_s24  ;;  %v941_v24 = vld [vmem:[#allocation2 + $0x90] sm:$0xf]  ;;  %944 = vst.msk [vmem:[#allocation2 + $0x94] sm:$0xf] %vm385_vm0, %v743_v30  ;;  %v3765_v58 = vsel %vm3757_vm5, %v14791_v54, %v14666_v41  ;;  %v1890_v13 = vrot.slane %v1888_v34, 5  ;;  %v3796_v6 = vsel %vm3790_vm14, %v3763_v16, %v14660_v15  ;;  %v11904_v14 = vrot.slane %v2032_v33, 9 }
 0x125   : > { %v942_v35 = vsel %vm13743_vm11, %v734_v17, %v941_v24  ;;  %v1886_v21 = vrot.slane %v1885_v18, 4  ;;  %v3798_v2 = vsel %vm3790_vm14, %v3765_v58, %v14709_v23  ;;  %v2158_v4 = vrot.slane %v14824_v50, 5  ;;  %13064 = vmatprep.mubr.msk.bf16.mxu0 %vm3850_vm2, %v3796_v6 }
 0x126   : > { %943 = vst [vmem:[#allocation2 + $0x90] sm:$0xf] %v942_v35  ;;  %3115 = vrot.lane.b32.xlu0 %v11984_v45, %s18988_s16  ;;  %v1895_v41 = vor.u32 %v1894_v59, %v1890_v13  ;;  %v1900_v15 = vrot.slane %v1898_v57, 5  ;;  %v2161_v54 = vrot.slane %v1632_v25, 5  ;;  %v3561_v42 = vsel %vm3543_vm1, %v11931_v20, %v14734_v27  ;;  %13065 = vmatmul.mubr.msk.bf16.gmra.mrb[4].mxu0 %vm3850_vm2, %v3798_v2  ;;  %v492_v20 = vld [vmem:[#allocation2 + $0xa4] sm:$0x1]  ;;  %v14905_v17 = vpop.permute.xlu0 %3519 }
 0x127   : > { %v1891_v23 = vsel %vm13824_vm15, %v1886_v21, %v1890_v13  ;;  %v2159_v50 = vsel %vm13737_vm10, %v11904_v14, %v2158_v4  ;;  %v2160_v11 = vrot.slane %v2158_v4, 4  ;;  %v437_v12 = vsel %vm13683_vm3, 0, %v436_v44 }
 0x128   : > { %3021 = vrot.lane.b32.xlu1 %v11969_v51, %s13553_s15  ;;  %v1896_v55 = vrot.slane %v1895_v41, 4  ;;  %438 = vst [vmem:[#allocation2 + $0x9c] sm:$0x1] %v437_v12  ;;  %v746_v38 = vshrl.u32 %v531_v5, 16  ;;  %v749_v62 = vshll.u32 %v531_v5, 16  ;;  %v754_v47 = vshrl.u32 %v532_v7, 16  ;;  %v14903_v51 = vpop.permute.xlu1 %3361 }
 0x129   : > { %v2162_v27 = vsel %vm13737_vm10, %v2160_v11, %v2161_v54  ;;  %v3558_v28 = vsel %vm3543_vm1, %v11930_v53, %v14689_v22  ;;  %v757_v26 = vshll.u32 %v532_v7, 16  ;;  %v3604_v25 = vsel %vm18946_vm7, %v3561_v42, %v14772_v3 }
 0x12a   : > { %v945_v56 = vld [vmem:[#allocation2 + $0x98] sm:$0x1]  ;;  %v1901_v52 = vsel %vm13824_vm15, %v1896_v55, %v1900_v15  ;;  %v748_v33 = vrot.slane %v746_v38, 7  ;;  %v756_v45 = vrot.slane %v754_v47, 7  ;;  %v3602_v16 = vsel %vm18946_vm7, %v3558_v28, %v14712_v60 }
 0x12b   : > { %v1613_v31 = vld [vmem:[#allocation2 + $0x94] sm:$0xf]  ;;  %v946_v22 = vsel %vm13683_vm3, %v744_v43, %v945_v56  ;;  %v12000_v36 = vcombine.low %v1891_v23, %v1901_v52  ;;  %v12016_v53 = vcombine.low %v2159_v50, %v2162_v27  ;;  %v493_v3 = vsel %vm13711_vm6, 0, %v492_v20 }
 0x12c   : > { %v1916_v10 = vshrl.u32 %v1613_v31, 16  ;;  %947 = vst [vmem:[#allocation2 + $0x98] sm:$0x1] %v946_v22  ;;  %v1912_v34 = vshll.u32 %v1613_v31, 16  ;;  %v2165_v30 = vrot.slane %v1613_v31, 5  ;;  %v751_v18 = vor.u32 %v749_v62, %v748_v33  ;;  %v14924_v15 = vpop.permute.xlu1 %3441 }
 0x12d   : > { %v14915_v59 = vld [vmem:[#allocation2 + $0x94] sm:$0xf]  ;;  %494 = vst [vmem:[#allocation2 + $0xa4] sm:$0x1] %v493_v3  ;;  %v1612_v57 = vld [vmem:[#allocation2 + $0x90] sm:$0xf]  ;;  %3195 = vrot.lane.b32.xlu0 %v12000_v36, %s13559_s30  ;;  %v759_v58 = vor.u32 %v757_v26, %v756_v45  ;;  %v3637_v13 = vsel %vm3625_vm8, %v3604_v25, %v14797_v46  ;;  %v3635_v41 = vsel %vm3625_vm8, %v3602_v16, %v14742_v48 }
 0x12e   : > { %v2033_v60 = vld [vmem:[#allocation2 + $0x90] sm:$0xe]  ;;  %v752_v24 = vrot.slane %v748_v33, 4  ;;  %v761_v43 = vrot.slane %v756_v45, 4  ;;  %v1903_v6 = vshrl.u32 %v1612_v57, 16  ;;  %v1906_v14 = vshll.u32 %v1612_v57, 16  ;;  %v14926_v54 = vpop.permute.xlu0 %2931 }
 0x12f   : > { %v11985_v44 = vcombine.low %v1612_v57, %v1613_v31  ;;  %v1914_v35 = vrot.slane %v1912_v34, 5  ;;  %v2219_v21 = vld [vmem:[#allocation2 + $0x90] sm:$0xf]  ;;  %v1918_v2 = vrot.slane %v1916_v10, 4  ;;  %v11905_v4 = vrot.slane %v2033_v60, 9 }
 0x130   : > { %v760_v5 = vsel %vm13749_vm12, %v752_v24, %v759_v58  ;;  %v948_v7 = vld [vmem:[#allocation2 + $0x9c] sm:$0xf]  ;;  %v1905_v42 = vrot.slane %v1903_v6, 4  ;;  %v1908_v46 = vrot.slane %v1906_v14, 5  ;;  %v2488_v50 = vshrl.u32 %v2219_v21, 16 }
 0x131   : > { %3117 = vrot.lane.b32.xlu1 %v11985_v44, %s18988_s16  ;;  %v949_v23 = vsel %vm13743_vm11, %v751_v18, %v948_v7  ;;  %951 = vst.msk [vmem:[#allocation2 + $0xa0] sm:$0xf] %vm385_vm0, %v760_v5  ;;  %v1919_v11 = vor.u32 %v1918_v2, %v1914_v35  ;;  %v2167_v12 = vrot.slane %v2165_v30, 4  ;;  %3275 = vrot.lane.b32.xlu0 %v12016_v53, %s13557_s25  ;;  %v2491_v48 = vshll.u32 %v2219_v21, 16  ;;  %v14936_v27 = vld [vmem:[#allocation2 + $0x90] sm:$0xe] }
 0x132   : > { %950 = vst [vmem:[#allocation2 + $0x9c] sm:$0xf] %v949_v23  ;;  %v2501_v55 = vshrl.u32 %v14915_v59, 16  ;;  %v1909_v38 = vor.u32 %v1908_v46, %v1905_v42  ;;  %v2490_v62 = vrot.slane %v2488_v50, 4  ;;  %v12032_v47 = vcombine.low %v2219_v21, %v14915_v59 }
 0x133   : > { %v2497_v20 = vshll.u32 %v14915_v59, 16  ;;  %v1633_v28 = vld [vmem:[#allocation2 + $0x98] sm:$0x1]  ;;  %v1920_v26 = vrot.slane %v1919_v11, 4  ;;  %v14940_v25 = vsel %vm13737_vm10, %v11905_v4, %v2165_v30  ;;  %v2493_v56 = vrot.slane %v2491_v48, 5  ;;  %v14952_v30 = vpop.permute.xlu1 %3521 }
 0x134   : > { %v952_v52 = vld [vmem:[#allocation2 + $0xa4] sm:$0x1]  ;;  %v14944_v33 = vsel %vm3658_vm9, %v3637_v13, %v14833_v19  ;;  %v1910_v45 = vrot.slane %v1909_v38, 4  ;;  %v1922_v16 = vshll.u32 %v1633_v28, 16  ;;  %v2168_v31 = vrot.slane %v1633_v28, 5  ;;  %v14954_v19 = vpop.permute.xlu0 %3011 }
 0x135   : > { %v953_v22 = vsel %vm13683_vm3, %v761_v43, %v952_v52  ;;  %v14948_v36 = vld [vmem:[#allocation2 + $0x98] sm:$0x1]  ;;  %3371 = vrot.lane.b32.xlu0 %v12032_v47, %s13555_s22  ;;  %v2494_v53 = vor.u32 %v2493_v56, %v2490_v62  ;;  %v2499_v3 = vrot.slane %v2497_v20, 5  ;;  %v2503_v10 = vrot.slane %v2501_v55, 4 }
 0x136   : > { %954 = vst [vmem:[#allocation2 + $0xa4] sm:$0x1] %v953_v22  ;;  %v2507_v34 = vshll.u32 %v14948_v36, 16  ;;  %v1915_v18 = vsel %vm13824_vm15, %v1910_v45, %v1914_v35  ;;  %v1924_v57 = vrot.slane %v1922_v16, 5  ;;  %v2169_v60 = vsel %vm13737_vm10, %v2167_v12, %v2168_v31 }
 0x137   : > { %v14962_v24 = vsel %vm3658_vm9, %v3635_v41, %v14774_v37  ;;  %v2495_v43 = vrot.slane %v2494_v53, 4  ;;  %v2504_v13 = vor.u32 %v2503_v10, %v2499_v3  ;;  %v11920_v14 = vrot.slane %v14936_v27, 9  ;;  %v14977_v62 = vpop.permute.xlu1 %2933 }
 0x138   : > { %v14964_v58 = vld [vmem:[#allocation2 + $0xa0] sm:$0xf]  ;;  %v2509_v6 = vrot.slane %v2507_v34, 5  ;;  %v1925_v44 = vsel %vm13824_vm15, %v1920_v26, %v1924_v57  ;;  %v12017_v35 = vcombine.low %v14940_v25, %v2169_v60  ;;  %v14979_v47 = vpop.permute.xlu0 %3107  ;;  %v2767_v26 = vrot.slane %v14915_v59, 5 }
 0x139   : > { %v2221_v21 = vld [vmem:[#allocation2 + $0x9c] sm:$0xf]  ;;  %v2525_v2 = vshrl.u32 %v14964_v58, 16  ;;  %v2521_v4 = vshll.u32 %v14964_v58, 16  ;;  %v12001_v37 = vcombine.low %v1915_v18, %v1925_v44  ;;  %v2500_v50 = vsel %vm13824_vm15, %v2495_v43, %v2499_v3  ;;  %v14989_v22 = vld [vmem:[#allocation2 + $0xa0] sm:$0xf] }
 0x13a   : > { %v2642_v5 = vld [vmem:[#allocation2 + $0x9c] sm:$0xe]  ;;  %v2512_v7 = vshrl.u32 %v2221_v21, 16  ;;  %v2515_v41 = vshll.u32 %v2221_v21, 16  ;;  %v12033_v42 = vcombine.low %v2221_v21, %v14964_v58  ;;  %v2505_v11 = vrot.slane %v2504_v13, 4 }
 0x13b   : > { %v2523_v46 = vrot.slane %v2521_v4, 5  ;;  %v2527_v23 = vrot.slane %v2525_v2, 4  ;;  %3197 = vrot.lane.b32.xlu1 %v12001_v37, %s13559_s30  ;;  %v11921_v55 = vrot.slane %v2642_v5, 9  ;;  %v2774_v38 = vrot.slane %v14964_v58, 5  ;;  %v1002_v56 = vld [vmem:[#allocation2 + $0x9c] sm:$0xf]  ;;  %v15010_v5 = vpop.permute.xlu1 %3013 }
 0x13c   : > { %v2514_v12 = vrot.slane %v2512_v7, 4  ;;  %v2517_v48 = vrot.slane %v2515_v41, 5  ;;  %v2510_v28 = vsel %vm13824_vm15, %v2505_v11, %v2509_v6  ;;  %v2770_v25 = vrot.slane %v14948_v36, 5  ;;  %v1000_v21 = vld [vmem:[#allocation2 + $0x90] sm:$0xf]  ;;  %v15012_v37 = vpop.permute.xlu0 %3187 }
 0x13d   : > { %v2242_v20 = vld [vmem:[#allocation2 + $0xa4] sm:$0x1]  ;;  %v2528_v27 = vor.u32 %v2527_v23, %v2523_v46  ;;  %v12048_v16 = vcombine.low %v2500_v50, %v2510_v28  ;;  %v14987_v31 = vsel %vm13737_vm10, %v11921_v55, %v2774_v38  ;;  %v2776_v3 = vrot.slane %v2774_v38, 4  ;;  %v1001_v2 = vld [vmem:[#allocation2 + $0x94] sm:$0xf] }
 0x13e   : > { %v2518_v52 = vor.u32 %v2517_v48, %v2514_v12  ;;  %v2531_v45 = vshll.u32 %v2242_v20, 16  ;;  %v2777_v10 = vrot.slane %v2242_v20, 5  ;;  %v2768_v34 = vsel %vm13737_vm10, %v11920_v14, %v2767_v26  ;;  %v14997_v58 = vld [vmem:[#allocation2 + $0xa4] sm:$0x1]  ;;  %v15015_v50 = vld [vmem:[#allocation2 + $0x98] sm:$0x1] }
 0x13f   : > { %v2529_v53 = vrot.slane %v2528_v27, 4  ;;  %3277 = vrot.lane.b32.xlu1 %v12017_v35, %s13557_s25  ;;  %3451 = vrot.lane.b32.xlu0 %v12048_v16, %s13560_s12  ;;  %v2769_v18 = vrot.slane %v2767_v26, 4  ;;  %v1340_v57 = vshrl.u32 %v1002_v56, 16  ;;  %v1343_v43 = vshll.u32 %v1002_v56, 16  ;;  %v1424_v56 = vld [vmem:[#allocation2 + $0x9c] sm:$0xe] }
 0x140   : > { %v2519_v59 = vrot.slane %v2518_v52, 4  ;;  %v2533_v36 = vrot.slane %v2531_v45, 5  ;;  %v2778_v60 = vsel %vm13737_vm10, %v2776_v3, %v2777_v10  ;;  %v1349_v13 = vshll.u32 %v14989_v22, 16 }
 0x141   : > { %v1353_v6 = vshrl.u32 %v14989_v22, 16  ;;  %v2771_v35 = vsel %vm13737_vm10, %v2769_v18, %v2770_v25  ;;  %v3703_v4 = vsel %vm3691_vm13, %v14944_v33, %v14861_v9  ;;  %v12065_v7 = vcombine.low %v14987_v31, %v2778_v60  ;;  %v1423_v31 = vld [vmem:[#allocation2 + $0x90] sm:$0xe] }
 0x142   : > { %v2524_v14 = vsel %vm13824_vm15, %v2519_v59, %v2523_v46  ;;  %v2534_v44 = vsel %vm13824_vm15, %v2529_v53, %v2533_v36  ;;  %v12064_v41 = vcombine.low %v2768_v34, %v2771_v35  ;;  %v1342_v46 = vrot.slane %v1340_v57, 4  ;;  %v15023_v59 = vpop.permute.xlu1 %3109  ;;  %v15025_v36 = vpop.permute.xlu0 %3267 }
 0x143   : > { %v1345_v23 = vrot.slane %v1343_v43, 5  ;;  %3373 = vrot.lane.b32.xlu1 %v12033_v42, %s13555_s22  ;;  %v12049_v11 = vcombine.low %v2524_v14, %v2534_v44  ;;  %v1351_v12 = vrot.slane %v1349_v13, 5  ;;  %v1355_v48 = vrot.slane %v1353_v6, 4  ;;  %v439_v44 = vld [vmem:[#allocation2 + $0xa8] sm:$0x1] }
 0x144   : > { %v1359_v55 = vshll.u32 %v14997_v58, 16  ;;  %3531 = vrot.lane.b32.xlu0 %v12064_v41, %s13558_s29  ;;  %v1316_v33 = vshrl.u32 %v1000_v21, 16  ;;  %v1319_v38 = vshll.u32 %v1000_v21, 16  ;;  %v1325_v20 = vshll.u32 %v1001_v2, 16 }
 0x145   : > { %v1346_v9 = vor.u32 %v1345_v23, %v1342_v46  ;;  %v1356_v27 = vor.u32 %v1355_v48, %v1351_v12  ;;  %v1329_v26 = vshrl.u32 %v1001_v2, 16  ;;  %v1335_v25 = vshll.u32 %v15015_v50, 16  ;;  %v533_v23 = vld [vmem:[%s13718_s14 + $0x68] sm:$0xf]  ;;  %v534_v48 = vld [vmem:[%s13718_s14 + $0x6c] sm:$0xf] }
 0x146   : > { %v1361_v28 = vrot.slane %v1359_v55, 5  ;;  %v1318_v45 = vrot.slane %v1316_v33, 4  ;;  %v1321_v42 = vrot.slane %v1319_v38, 5  ;;  %v1327_v16 = vrot.slane %v1325_v20, 5  ;;  %v15055_v38 = vld [vmem:[#allocation2 + $0xa0] sm:$0xf] }
 0x147   : > { %v1347_v52 = vrot.slane %v1346_v9, 4  ;;  %3453 = vrot.lane.b32.xlu1 %v12049_v11, %s13560_s12  ;;  %v1357_v53 = vrot.slane %v1356_v27, 4  ;;  %v1574_v3 = vrot.slane %v14997_v58, 5  ;;  %v1331_v10 = vrot.slane %v1329_v26, 4  ;;  %v15059_v27 = vpop.permute.xlu0 %3363 }
 0x148   : > { %v1337_v34 = vrot.slane %v1335_v25, 5  ;;  %v1322_v57 = vor.u32 %v1321_v42, %v1318_v45  ;;  %v1567_v60 = vrot.slane %v15015_v50, 5  ;;  %v11891_v43 = vrot.slane %v1424_v56, 9  ;;  %v15057_v20 = vpop.permute.xlu1 %3189 }
 0x149   : > { %v1352_v18 = vsel %vm13824_vm15, %v1347_v52, %v1351_v12  ;;  %v1362_v13 = vsel %vm13824_vm15, %v1357_v53, %v1361_v28  ;;  %v1332_v6 = vor.u32 %v1331_v10, %v1327_v16  ;;  %v1571_v58 = vrot.slane %v14989_v22, 5 }
 0x14a   : > { %v11890_v14 = vrot.slane %v1423_v31, 9  ;;  %v11955_v35 = vcombine.low %v1352_v18, %v1362_v13  ;;  %v1323_v21 = vrot.slane %v1322_v57, 4  ;;  %v3701_v41 = vsel %vm3691_vm13, %v14962_v24, %v14799_v49  ;;  %v495_v31 = vld [vmem:[#allocation2 + $0xb0] sm:$0x1]  ;;  %v1634_v18 = vld [vmem:[#allocation2 + $0xa4] sm:$0x1] }
 0x14b   : > { %v1564_v46 = vrot.slane %v1001_v2, 5  ;;  %3533 = vrot.lane.b32.xlu1 %v12065_v7, %s13558_s29  ;;  %v1333_v50 = vrot.slane %v1332_v6, 4  ;;  %v1572_v11 = vsel %vm13737_vm10, %v11891_v43, %v1571_v58  ;;  %v1573_v12 = vrot.slane %v1571_v58, 4  ;;  %v15049_v2 = vld [vmem:[#allocation2 + $0x9c] sm:$0xf] }
 0x14c   : > { %v3736_v22 = vsel %vm3724_vm4, %v3703_v4, %v14903_v51  ;;  %v1328_v55 = vsel %vm13824_vm15, %v1323_v21, %v1327_v16  ;;  %v440_v24 = vsel %vm13683_vm3, 0, %v439_v44  ;;  %v763_v51 = vshrl.u32 %v533_v23, 16  ;;  %v2034_v44 = vld [vmem:[#allocation2 + $0x9c] sm:$0xe] }
 0x14d   : > { %v1565_v9 = vsel %vm13737_vm10, %v11890_v14, %v1564_v46  ;;  %v1566_v49 = vrot.slane %v1564_v46, 4  ;;  %v1338_v7 = vsel %vm13824_vm15, %v1333_v50, %v1337_v34  ;;  %v1575_v33 = vsel %vm13737_vm10, %v1573_v12, %v1574_v3  ;;  %441 = vst [vmem:[#allocation2 + $0xa8] sm:$0x1] %v440_v24  ;;  %v15085_v50 = vpop.permute.xlu0 %3443 }
 0x14e   : > { %v766_v4 = vshll.u32 %v533_v23, 16  ;;  %v11954_v28 = vcombine.low %v1328_v55, %v1338_v7  ;;  %v3734_v25 = vsel %vm3724_vm4, %v3701_v41, %v14835_v40  ;;  %v771_v56 = vshrl.u32 %v534_v48, 16  ;;  %v15083_v23 = vpop.permute.xlu1 %3269  ;;  %v535_v55 = vld [vmem:[%s13718_s14 + $0x70] sm:$0xf] }
 0x14f   : > { %v1568_v26 = vsel %vm13737_vm10, %v1566_v49, %v1567_v60  ;;  %2945 = vrot.lane.b32.xlu1 %v11955_v35, %s18989_s24  ;;  %v11971_v52 = vcombine.low %v1572_v11, %v1575_v33  ;;  %v765_v45 = vrot.slane %v763_v51, 7  ;;  %v774_v42 = vshll.u32 %v534_v48, 16  ;;  %v442_v48 = vld [vmem:[#allocation2 + $0xb4] sm:$0x1] }
 0x150   : > { %v1927_v16 = vshrl.u32 %v15049_v2, 16  ;;  %2943 = vrot.lane.b32.xlu0 %v11954_v28, %s18989_s24  ;;  %v11970_v53 = vcombine.low %v1565_v9, %v1568_v26  ;;  %v15068_v3 = vrot.slane %v771_v56, 7  ;;  %v1930_v10 = vshll.u32 %v15049_v2, 16  ;;  %v13389_v51 = vld [vmem:[#allocation2 + $0x54] sm:$0xf] }
 0x151   : > { %v1940_v34 = vshrl.u32 %v15055_v38, 16  ;;  %v768_v40 = vor.u32 %v766_v4, %v765_v45  ;;  %v769_v57 = vrot.slane %v765_v45, 4  ;;  %v11986_v43 = vcombine.low %v15049_v2, %v15055_v38  ;;  %v13391_v26 = vld [vmem:[#allocation2 + $0x48] sm:$0xf]  ;;  %v536_v45 = vld [vmem:[%s13718_s14 + $0x74] sm:$0xf] }
 0x152   : > { %v1929_v60 = vrot.slane %v1927_v16, 4  ;;  %v776_v13 = vor.u32 %v774_v42, %v15068_v3  ;;  %v1932_v6 = vrot.slane %v1930_v10, 5  ;;  %v3769_v58 = vsel %vm3757_vm5, %v3736_v22, %v14924_v15 }
 0x153   : > { %v3767_v14 = vsel %vm3757_vm5, %v3734_v25, %v14863_v61  ;;  %3025 = vrot.lane.b32.xlu1 %v11971_v52, %s13553_s15  ;;  %v496_v35 = vsel %vm13711_vm6, 0, %v495_v31  ;;  %v1936_v21 = vshll.u32 %v15055_v38, 16  ;;  %v1942_v41 = vrot.slane %v1940_v34, 4  ;;  %v13392_v25 = vld [vmem:[#allocation2 + $0x4c] sm:$0xf] }
 0x154   : > { %v1946_v46 = vshll.u32 %v1634_v18, 16  ;;  %3023 = vrot.lane.b32.xlu0 %v11970_v53, %s13553_s15  ;;  %v777_v61 = vsel %vm13749_vm12, %v769_v57, %v776_v13  ;;  %v955_v15 = vld [vmem:[#allocation2 + $0xa8] sm:$0xf]  ;;  %497 = vst [vmem:[#allocation2 + $0xb0] sm:$0x1] %v496_v35  ;;  %v1933_v11 = vor.u32 %v1932_v6, %v1929_v60  ;;  %v3802_v12 = vsel %vm3790_vm14, %v3769_v58, %v14952_v30  ;;  %v15112_v57 = vpop.permute.xlu0 %3523 }
 0x155   : > { %v3800_v22 = vsel %vm3790_vm14, %v3767_v14, %v14905_v17  ;;  %v956_v9 = vsel %vm13743_vm11, %v768_v40, %v955_v15  ;;  %958 = vst.msk [vmem:[#allocation2 + $0xac] sm:$0xf] %vm385_vm0, %v777_v61  ;;  %v1938_v49 = vrot.slane %v1936_v21, 5  ;;  %v11906_v2 = vrot.slane %v2034_v44, 9  ;;  %v13390_v17 = vld [vmem:[#allocation2 + $0x58] sm:$0xf]  ;;  %v15110_v40 = vpop.permute.xlu1 %3365 }
 0x156   : > { %v1948_v24 = vrot.slane %v1946_v46, 5  ;;  %13068 = vmatprep.mubr.msk.bf16.mxu0 %vm3850_vm2, %v3800_v22  ;;  %957 = vst [vmem:[#allocation2 + $0xa8] sm:$0xf] %v956_v9  ;;  %v1934_v7 = vrot.slane %v1933_v11, 4  ;;  %v2172_v30 = vrot.slane %v15055_v38, 5  ;;  %v2175_v33 = vrot.slane %v1634_v18, 5 }
 0x157   : > { %v11933_v4 = vcombine.low %v13389_v51, %v13390_v17  ;;  %13069 = vmatmul.mubr.msk.bf16.gmra.mrb[8].mxu0 %vm3850_vm2, %v3802_v12  ;;  %v1943_v28 = vor.u32 %v1942_v41, %v1938_v49  ;;  %v11932_v56 = vcombine.low %v13391_v26, %v13392_v25  ;;  %v443_v52 = vsel %vm13683_vm3, 0, %v442_v48 }
 0x158   : > { %v780_v42 = vshrl.u32 %v535_v55, 16  ;;  %v778_v16 = vrot.slane %v15068_v3, 4  ;;  %3119 = vrot.lane.b32.xlu0 %v11986_v43, %s18988_s16  ;;  %v2174_v38 = vrot.slane %v2172_v30, 4  ;;  %444 = vst [vmem:[#allocation2 + $0xb4] sm:$0x1] %v443_v52  ;;  %v1939_v53 = vsel %vm13824_vm15, %v1934_v7, %v1938_v49 }
 0x159   : > { %v3567_v31 = vsel %vm3543_vm1, %v11933_v4, %v14977_v62  ;;  %v1944_v10 = vrot.slane %v1943_v28, 4  ;;  %v783_v18 = vshll.u32 %v535_v55, 16  ;;  %v2173_v3 = vsel %vm13737_vm10, %v11906_v2, %v2172_v30 }
 0x15a   : > { %v782_v34 = vrot.slane %v780_v42, 7  ;;  %v2176_v60 = vsel %vm13737_vm10, %v2174_v38, %v2175_v33  ;;  %v3564_v62 = vsel %vm3543_vm1, %v11932_v56, %v14926_v54  ;;  %v788_v43 = vshrl.u32 %v536_v45, 16 }
 0x15b   : > { %v959_v13 = vld [vmem:[#allocation2 + $0xb0] sm:$0x1]  ;;  %v1949_v6 = vsel %vm13824_vm15, %v1944_v10, %v1948_v24  ;;  %v791_v14 = vshll.u32 %v536_v45, 16  ;;  %v3608_v44 = vsel %vm18946_vm7, %v3567_v31, %v15010_v5  ;;  %v12018_v12 = vcombine.low %v2173_v3, %v2176_v60 }
 0x15c   : > { %v785_v58 = vor.u32 %v783_v18, %v782_v34  ;;  %v15124_v35 = vld [vmem:[#allocation2 + $0xac] sm:$0xf]  ;;  %v960_v21 = vsel %vm13683_vm3, %v778_v16, %v959_v13  ;;  %v12002_v41 = vcombine.low %v1939_v53, %v1949_v6  ;;  %v786_v46 = vrot.slane %v782_v34, 4  ;;  %v15146_v4 = vpop.permute.xlu0 %2935 }
 0x15d   : > { %v15128_v61 = vrot.slane %v788_v43, 7  ;;  %v1616_v54 = vld [vmem:[#allocation2 + $0xa8] sm:$0xf]  ;;  %v1964_v15 = vshrl.u32 %v15124_v35, 16  ;;  %961 = vst [vmem:[#allocation2 + $0xb0] sm:$0x1] %v960_v21  ;;  %v3606_v5 = vsel %vm18946_vm7, %v3564_v62, %v14954_v19  ;;  %v15140_v2 = vsel %vm3625_vm8, %v3608_v44, %v15023_v59  ;;  %v15144_v19 = vpop.permute.xlu1 %3445 }
 0x15e   : > { %v1960_v11 = vshll.u32 %v15124_v35, 16  ;;  %v15132_v22 = vld [vmem:[#allocation2 + $0xac] sm:$0xf]  ;;  %v1951_v48 = vshrl.u32 %v1616_v54, 16  ;;  %v1954_v55 = vshll.u32 %v1616_v54, 16  ;;  %v11987_v9 = vcombine.low %v1616_v54, %v15124_v35  ;;  %3199 = vrot.lane.b32.xlu0 %v12002_v41, %s13559_s30 }
 0x15f   : > { %v2035_v49 = vld [vmem:[#allocation2 + $0xa8] sm:$0xe]  ;;  %v1966_v30 = vrot.slane %v1964_v15, 4  ;;  %v2179_v33 = vrot.slane %v15124_v35, 5  ;;  %v793_v51 = vor.u32 %v791_v14, %v15128_v61  ;;  %v962_v17 = vld [vmem:[#allocation2 + $0xb4] sm:$0xf]  ;;  %v15153_v56 = vsel %vm3625_vm8, %v3606_v5, %v14979_v47 }
 0x160   : > { %v2223_v24 = vld [vmem:[#allocation2 + $0xa8] sm:$0xf]  ;;  %v1962_v7 = vrot.slane %v1960_v11, 5  ;;  %v1953_v28 = vrot.slane %v1951_v48, 4  ;;  %v1956_v26 = vrot.slane %v1954_v55, 5  ;;  %3121 = vrot.lane.b32.xlu1 %v11987_v9, %s18988_s16  ;;  %v963_v25 = vsel %vm13743_vm11, %v785_v58, %v962_v17 }
 0x161   : > { %v498_v59 = vld [vmem:[#allocation2 + $0xbc] sm:$0x1]  ;;  %v11907_v45 = vrot.slane %v2035_v49, 9  ;;  %v794_v42 = vsel %vm13749_vm12, %v786_v46, %v793_v51  ;;  %v795_v16 = vrot.slane %v15128_v61, 4  ;;  %964 = vst [vmem:[#allocation2 + $0xb4] sm:$0xf] %v963_v25  ;;  %v12034_v47 = vcombine.low %v2223_v24, %v15132_v22  ;;  %v15165_v46 = vpop.permute.xlu1 %3525  ;;  %v15167_v61 = vpop.permute.xlu0 %3015 }
 0x162   : > { %v1967_v52 = vor.u32 %v1966_v30, %v1962_v7  ;;  %v1957_v38 = vor.u32 %v1956_v26, %v1953_v28  ;;  %3279 = vrot.lane.b32.xlu0 %v12018_v12, %s13557_s25  ;;  %965 = vst.msk [vmem:[#allocation2 + $0xb8] sm:$0xf] %vm385_vm0, %v794_v42  ;;  %v2536_v31 = vshrl.u32 %v2223_v24, 16  ;;  %v2539_v53 = vshll.u32 %v2223_v24, 16  ;;  %v2643_v60 = vld [vmem:[#allocation2 + $0xa8] sm:$0xe] }
 0x163   : > { %v2549_v10 = vshrl.u32 %v15132_v22, 16  ;;  %v2181_v34 = vrot.slane %v2179_v33, 4  ;;  %v499_v18 = vsel %vm13711_vm6, 0, %v498_v59  ;;  %v2545_v3 = vshll.u32 %v15132_v22, 16 }
 0x164   : > { %v1635_v62 = vld [vmem:[#allocation2 + $0xb0] sm:$0x1]  ;;  %v1958_v43 = vrot.slane %v1957_v38, 4  ;;  %v2538_v13 = vrot.slane %v2536_v31, 4  ;;  %v2541_v6 = vrot.slane %v2539_v53, 5  ;;  %v1968_v14 = vrot.slane %v1967_v52, 4 }
 0x165   : > { %500 = vst [vmem:[#allocation2 + $0xbc] sm:$0x1] %v499_v18  ;;  %v2551_v58 = vrot.slane %v2549_v10, 4  ;;  %v1970_v44 = vshll.u32 %v1635_v62, 16  ;;  %v2182_v35 = vrot.slane %v1635_v62, 5  ;;  %v2547_v41 = vrot.slane %v2545_v3, 5  ;;  %v15193_v18 = vpop.permute.xlu1 %2937  ;;  %v15195_v3 = vpop.permute.xlu0 %3111 }
 0x166   : > { %v2243_v21 = vld [vmem:[#allocation2 + $0xb0] sm:$0x1]  ;;  %v2180_v54 = vsel %vm13737_vm10, %v11907_v45, %v2179_v33  ;;  %3375 = vrot.lane.b32.xlu0 %v12034_v47, %s13555_s22  ;;  %v2542_v15 = vor.u32 %v2541_v6, %v2538_v13  ;;  %v11922_v12 = vrot.slane %v2643_v60, 9  ;;  %v1963_v5 = vsel %vm13824_vm15, %v1958_v43, %v1962_v7 }
 0x167   : > { %v2555_v11 = vshll.u32 %v2243_v21, 16  ;;  %v1972_v48 = vrot.slane %v1970_v44, 5  ;;  %v2183_v55 = vsel %vm13737_vm10, %v2181_v34, %v2182_v35  ;;  %v2552_v9 = vor.u32 %v2551_v58, %v2547_v41 }
 0x168   : > { %v15176_v49 = vld [vmem:[#allocation2 + $0xb4] sm:$0xf]  ;;  %v2543_v24 = vrot.slane %v2542_v15, 4  ;;  %v2781_v51 = vrot.slane %v15132_v22, 5  ;;  %v2784_v33 = vrot.slane %v2243_v21, 5  ;;  %v12019_v52 = vcombine.low %v2180_v54, %v2183_v55 }
 0x169   : > { %v2557_v30 = vrot.slane %v2555_v11, 5  ;;  %v1973_v17 = vsel %vm13824_vm15, %v1968_v14, %v1972_v48  ;;  %v15181_v28 = vld [vmem:[#allocation2 + $0xb8] sm:$0xf]  ;;  %v2560_v26 = vshrl.u32 %v15176_v49, 16  ;;  %v2563_v7 = vshll.u32 %v15176_v49, 16 }
 0x16a   : > { %v2553_v25 = vrot.slane %v2552_v9, 4  ;;  %v12003_v59 = vcombine.low %v1963_v5, %v1973_v17  ;;  %v2573_v45 = vshrl.u32 %v15181_v28, 16  ;;  %v2569_v42 = vshll.u32 %v15181_v28, 16  ;;  %v2644_v38 = vld [vmem:[#allocation2 + $0xb4] sm:$0xe] }
 0x16b   : > { %v2562_v31 = vrot.slane %v2560_v26, 4  ;;  %v2565_v22 = vrot.slane %v2563_v7, 5  ;;  %v2548_v10 = vsel %vm13824_vm15, %v2543_v24, %v2547_v41  ;;  %v15191_v47 = vld [vmem:[#allocation2 + $0xb4] sm:$0xf]  ;;  %v2788_v58 = vrot.slane %v15181_v28, 5 }
 0x16c   : > { %v966_v53 = vld [vmem:[#allocation2 + $0xbc] sm:$0x1]  ;;  %v2558_v34 = vsel %vm13824_vm15, %v2553_v25, %v2557_v30  ;;  %3201 = vrot.lane.b32.xlu1 %v12003_v59, %s13559_s30  ;;  %v15200_v62 = vrot.slane %v2569_v42, 5  ;;  %v2575_v43 = vrot.slane %v2573_v45, 4  ;;  %v2782_v14 = vsel %vm13737_vm10, %v11922_v12, %v2781_v51  ;;  %v15209_v41 = vld [vmem:[#allocation2 + $0xb8] sm:$0xf] }
 0x16d   : > { %v967_v60 = vsel %vm13683_vm3, %v795_v16, %v966_v53  ;;  %v12050_v13 = vcombine.low %v2548_v10, %v2558_v34  ;;  %v2566_v6 = vor.u32 %v2565_v22, %v2562_v31  ;;  %v2783_v44 = vrot.slane %v2781_v51, 4  ;;  %v15212_v15 = vld [vmem:[#allocation2 + $0xa8] sm:$0xf]  ;;  %v15224_v55 = vld [vmem:[#allocation2 + $0xac] sm:$0xf] }
 0x16e   : > { %968 = vst [vmem:[#allocation2 + $0xbc] sm:$0x1] %v967_v60  ;;  %v12035_v35 = vcombine.low %v15176_v49, %v15181_v28  ;;  %v2576_v21 = vor.u32 %v2575_v43, %v15200_v62  ;;  %v11923_v16 = vrot.slane %v2644_v38, 9  ;;  %v1388_v54 = vshrl.u32 %v15191_v47, 16  ;;  %v15228_v51 = vld [vmem:[#allocation2 + $0xb0] sm:$0x1] }
 0x16f   : > { %3455 = vrot.lane.b32.xlu0 %v12050_v13, %s13560_s12  ;;  %v2567_v11 = vrot.slane %v2566_v6, 4  ;;  %v2785_v5 = vsel %vm13737_vm10, %v2783_v44, %v2784_v33  ;;  %v3674_v12 = vsel %vm3658_vm9, %v15140_v2, %v15057_v20  ;;  %v15222_v48 = vsel %vm3658_vm9, %v15153_v56, %v15012_v37  ;;  %v15233_v37 = vpop.permute.xlu1 %3017  ;;  %v15235_v56 = vpop.permute.xlu0 %3191 }
 0x170   : > { %3281 = vrot.lane.b32.xlu1 %v12019_v52, %s13557_s25  ;;  %v2790_v9 = vrot.slane %v2788_v58, 4  ;;  %v12066_v49 = vcombine.low %v2782_v14, %v2785_v5  ;;  %v1390_v24 = vrot.slane %v1388_v54, 4  ;;  %v1391_v30 = vshll.u32 %v15191_v47, 16  ;;  %v1426_v54 = vld [vmem:[#allocation2 + $0xb4] sm:$0xe] }
 0x171   : > { %v2577_v33 = vrot.slane %v2576_v21, 4  ;;  %v1397_v17 = vshll.u32 %v15209_v41, 16  ;;  %v1401_v20 = vshrl.u32 %v15209_v41, 16  ;;  %v1364_v2 = vshrl.u32 %v15212_v15, 16 }
 0x172   : > { %v1393_v28 = vrot.slane %v1391_v30, 5  ;;  %v1367_v26 = vshll.u32 %v15212_v15, 16  ;;  %v1373_v7 = vshll.u32 %v15224_v55, 16  ;;  %v1377_v25 = vshrl.u32 %v15224_v55, 16 }
 0x173   : > { %3535 = vrot.lane.b32.xlu0 %v12066_v49, %s13558_s29  ;;  %v1399_v59 = vrot.slane %v1397_v17, 5  ;;  %v1403_v52 = vrot.slane %v1401_v20, 4  ;;  %v1366_v45 = vrot.slane %v1364_v2, 4  ;;  %v1383_v42 = vshll.u32 %v15228_v51, 16  ;;  %v15254_v30 = vpop.permute.xlu0 %3271 }
 0x174   : > { %3377 = vrot.lane.b32.xlu1 %v12035_v35, %s13555_s22  ;;  %v15245_v31 = vsel %vm13737_vm10, %v11923_v16, %v2788_v58  ;;  %v1394_v53 = vor.u32 %v1393_v28, %v1390_v24  ;;  %v1369_v10 = vrot.slane %v1367_v26, 5  ;;  %v1375_v34 = vrot.slane %v1373_v7, 5  ;;  %v15252_v24 = vpop.permute.xlu1 %3113 }
 0x175   : > { %v2244_v38 = vld [vmem:[#allocation2 + $0xbc] sm:$0x1]  ;;  %v1404_v13 = vor.u32 %v1403_v52, %v1399_v59  ;;  %v2572_v14 = vsel %vm13824_vm15, %v2567_v11, %v15200_v62  ;;  %v1379_v35 = vrot.slane %v1377_v25, 4  ;;  %v1385_v2 = vrot.slane %v1383_v42, 5  ;;  %v1425_v11 = vld [vmem:[#allocation2 + $0xa8] sm:$0xe] }
 0x176   : > { %v1023_v22 = vld [vmem:[#allocation2 + $0xbc] sm:$0x1]  ;;  %v2579_v60 = vshll.u32 %v2244_v38, 16  ;;  %v2791_v43 = vrot.slane %v2244_v38, 5  ;;  %v1395_v44 = vrot.slane %v1394_v53, 4  ;;  %v1370_v21 = vor.u32 %v1369_v10, %v1366_v45 }
 0x177   : > { %v1407_v6 = vshll.u32 %v1023_v22, 16  ;;  %v1405_v16 = vrot.slane %v1404_v13, 4  ;;  %v1380_v20 = vor.u32 %v1379_v35, %v1375_v34  ;;  %v3707_v62 = vsel %vm3691_vm13, %v3674_v12, %v15083_v23  ;;  %v445_v23 = vld [vmem:[#allocation2 + $0xc0] sm:$0x1]  ;;  %v1618_v13 = vld [vmem:[#allocation2 + $0xb4] sm:$0xf]  ;;  %v15286_v35 = vpop.permute.xlu0 %3367 }
 0x178   : > { %v2581_v5 = vrot.slane %v2579_v60, 5  ;;  %v2792_v58 = vsel %vm13737_vm10, %v2790_v9, %v2791_v43  ;;  %v1371_v17 = vrot.slane %v1370_v21, 4  ;;  %v1400_v9 = vsel %vm13824_vm15, %v1395_v44, %v1399_v59  ;;  %v537_v59 = vld [vmem:[%s13718_s14 + $0x78] sm:$0xf]  ;;  %v538_v43 = vld [vmem:[%s13718_s14 + $0x7c] sm:$0xf]  ;;  %v15284_v21 = vpop.permute.xlu1 %3193 }
 0x179   : > { %v1409_v49 = vrot.slane %v1407_v6, 5  ;;  %v11893_v7 = vrot.slane %v1426_v54, 9  ;;  %v12067_v52 = vcombine.low %v15245_v31, %v2792_v58  ;;  %v1381_v42 = vrot.slane %v1380_v20, 4 }
 0x17a   : > { %v2582_v28 = vsel %vm13824_vm15, %v2577_v33, %v2581_v5  ;;  %v1376_v45 = vsel %vm13824_vm15, %v1371_v17, %v1375_v34  ;;  %v1585_v12 = vrot.slane %v15209_v41, 5  ;;  %v1588_v38 = vrot.slane %v1023_v22, 5  ;;  %v15290_v5 = vld [vmem:[#allocation2 + $0xb8] sm:$0xf] }
 0x17b   : > { %v1410_v26 = vsel %vm13824_vm15, %v1405_v16, %v1409_v49  ;;  %v12051_v25 = vcombine.low %v2572_v14, %v2582_v28  ;;  %v11892_v33 = vrot.slane %v1425_v11, 9  ;;  %v1578_v53 = vrot.slane %v15224_v55, 5 }
 0x17c   : > { %v11957_v10 = vcombine.low %v1400_v9, %v1410_v26  ;;  %v1386_v60 = vsel %vm13824_vm15, %v1381_v42, %v1385_v2  ;;  %v3705_v31 = vsel %vm3691_vm13, %v15222_v48, %v15025_v36  ;;  %v1581_v34 = vrot.slane %v15228_v51, 5 }
 0x17d   : > { %3457 = vrot.lane.b32.xlu1 %v12051_v25, %s13560_s12  ;;  %v11956_v6 = vcombine.low %v1376_v45, %v1386_v60  ;;  %v15280_v22 = vsel %vm13737_vm10, %v11893_v7, %v1585_v12  ;;  %v1587_v14 = vrot.slane %v1585_v12, 4  ;;  %v1579_v44 = vsel %vm13737_vm10, %v11892_v33, %v1578_v53  ;;  %v501_v45 = vld [vmem:[#allocation2 + $0xc8] sm:$0x1] }
 0x17e   : > { %v1580_v54 = vrot.slane %v1578_v53, 4  ;;  %v446_v36 = vsel %vm13683_vm3, 0, %v445_v23  ;;  %v797_v48 = vshrl.u32 %v537_v59, 16  ;;  %v800_v51 = vshll.u32 %v537_v59, 16  ;;  %v15311_v59 = vpop.permute.xlu1 %3273 }
 0x17f   : > { %2947 = vrot.lane.b32.xlu0 %v11956_v6, %s18989_s24  ;;  %v1589_v58 = vsel %vm13737_vm10, %v1587_v14, %v1588_v38  ;;  %447 = vst [vmem:[#allocation2 + $0xc0] sm:$0x1] %v446_v36  ;;  %v805_v16 = vshrl.u32 %v538_v43, 16  ;;  %v808_v49 = vshll.u32 %v538_v43, 16  ;;  %v1975_v17 = vshrl.u32 %v1618_v13, 16 }
 0x180   : > { %v1582_v20 = vsel %vm13737_vm10, %v1580_v54, %v1581_v34  ;;  %v3740_v2 = vsel %vm3724_vm4, %v3707_v62, %v15110_v40  ;;  %v799_v11 = vrot.slane %v797_v48, 7  ;;  %v1978_v28 = vshll.u32 %v1618_v13, 16  ;;  %v1636_v38 = vld [vmem:[#allocation2 + $0xbc] sm:$0x1]  ;;  %v2036_v6 = vld [vmem:[#allocation2 + $0xb4] sm:$0xe] }
 0x181   : > { %3537 = vrot.lane.b32.xlu1 %v12067_v52, %s13558_s29  ;;  %v11972_v9 = vcombine.low %v1579_v44, %v1582_v20  ;;  %v15300_v26 = vrot.slane %v805_v16, 7  ;;  %v1977_v7 = vrot.slane %v1975_v17, 4  ;;  %v1988_v25 = vshrl.u32 %v15290_v5, 16  ;;  %v15313_v60 = vpop.permute.xlu0 %3447  ;;  %v13394_v16 = vld [vmem:[#allocation2 + $0x70] sm:$0xf] }
 0x182   : > { %v11973_v42 = vcombine.low %v15280_v22, %v1589_v58  ;;  %v3738_v52 = vsel %vm3724_vm4, %v3705_v31, %v15059_v27  ;;  %v803_v23 = vrot.slane %v799_v11, 4  ;;  %v1980_v12 = vrot.slane %v1978_v28, 5  ;;  %v504_v17 = vld [vmem:[#allocation2 + $0xd4] sm:$0x1] }
 0x183   : > { %3027 = vrot.lane.b32.xlu0 %v11972_v9, %s13553_s15  ;;  %v802_v40 = vor.u32 %v800_v51, %v799_v11  ;;  %v810_v62 = vor.u32 %v808_v49, %v15300_v26  ;;  %v11988_v33 = vcombine.low %v1618_v13, %v15290_v5  ;;  %v3771_v53 = vsel %vm3757_vm5, %v3738_v52, %v15085_v50  ;;  %v15335_v11 = vld [vmem:[#allocation2 + $0xd0] sm:$0xf]  ;;  %v15340_v9 = vpop.permute.xlu1 %3369  ;;  %v13396_v52 = vld [vmem:[#allocation2 + $0x64] sm:$0xf] }
 0x184   : > { %v502_v27 = vsel %vm13711_vm6, 0, %v501_v45  ;;  %v1981_v31 = vor.u32 %v1980_v12, %v1977_v7  ;;  %v1984_v34 = vshll.u32 %v15290_v5, 16  ;;  %v1990_v43 = vrot.slane %v1988_v25, 4 }
 0x185   : > { %2949 = vrot.lane.b32.xlu1 %v11957_v10, %s18989_s24  ;;  %v811_v13 = vsel %vm13749_vm12, %v803_v23, %v810_v62  ;;  %v3773_v50 = vsel %vm3757_vm5, %v3740_v2, %v15144_v19  ;;  %503 = vst [vmem:[#allocation2 + $0xc8] sm:$0x1] %v502_v27  ;;  %v1994_v22 = vshll.u32 %v1636_v38, 16  ;;  %v3804_v14 = vsel %vm3790_vm14, %v3771_v53, %v15112_v57  ;;  %v448_v10 = vld [vmem:[#allocation2 + $0xcc] sm:$0x1]  ;;  %v15342_v7 = vpop.permute.xlu0 %3527 }
 0x186   : > { %v969_v44 = vld [vmem:[#allocation2 + $0xc0] sm:$0xf]  ;;  %972 = vst.msk [vmem:[#allocation2 + $0xc4] sm:$0xf] %vm385_vm0, %v811_v13  ;;  %v1982_v54 = vrot.slane %v1981_v31, 4  ;;  %v1986_v36 = vrot.slane %v1984_v34, 5  ;;  %v3806_v48 = vsel %vm3790_vm14, %v3773_v50, %v15165_v46  ;;  %13072 = vmatprep.mubr.msk.bf16.mxu0 %vm3850_vm2, %v3804_v14 }
 0x187   : > { %v2186_v51 = vrot.slane %v15290_v5, 5  ;;  %v970_v19 = vsel %vm13743_vm11, %v802_v40, %v969_v44  ;;  %3123 = vrot.lane.b32.xlu0 %v11988_v33, %s18988_s16  ;;  %v11908_v58 = vrot.slane %v2036_v6, 9  ;;  %v13393_v57 = vld [vmem:[#allocation2 + $0x6c] sm:$0xf]  ;;  %13073 = vmatmul.mubr.msk.bf16.gmra.mrb[12].mxu0 %vm3850_vm2, %v3806_v48  ;;  %v1996_v20 = vrot.slane %v1994_v22, 5 }
 0x188   : > { %v11935_v49 = vcombine.low %v13393_v57, %v13394_v16  ;;  %971 = vst [vmem:[#allocation2 + $0xc0] sm:$0xf] %v970_v19  ;;  %v1991_v46 = vor.u32 %v1990_v43, %v1986_v36  ;;  %v2189_v2 = vrot.slane %v1636_v38, 5  ;;  %v812_v32 = vrot.slane %v15300_v26, 4 }
 0x189   : > { %3029 = vrot.lane.b32.xlu1 %v11973_v42, %s13553_s15  ;;  %v2188_v5 = vrot.slane %v2186_v51, 4  ;;  %v449_v28 = vsel %vm13683_vm3, 0, %v448_v10  ;;  %v1987_v25 = vsel %vm13824_vm15, %v1982_v54, %v1986_v36  ;;  %v13395_v42 = vld [vmem:[#allocation2 + $0x60] sm:$0xf]  ;;  %v505_v12 = vsel %vm13711_vm6, 0, %v504_v17 }
 0x18a   : > { %v1992_v45 = vrot.slane %v1991_v46, 4  ;;  %v11934_v23 = vcombine.low %v13395_v42, %v13396_v52  ;;  %450 = vst [vmem:[#allocation2 + $0xcc] sm:$0x1] %v449_v28  ;;  %v3573_v26 = vsel %vm3543_vm1, %v11935_v49, %v15193_v18  ;;  %v2621_v38 = vshrl.u32 %v15335_v11, 16  ;;  %506 = vst [vmem:[#allocation2 + $0xd4] sm:$0x1] %v505_v12 }
 0x18b   : > { %v2617_v40 = vshll.u32 %v15335_v11, 16  ;;  %v2187_v53 = vsel %vm13737_vm10, %v11908_v58, %v2186_v51  ;;  %v2190_v27 = vsel %vm13737_vm10, %v2188_v5, %v2189_v2  ;;  %v3612_v50 = vsel %vm18946_vm7, %v3573_v26, %v15233_v37 }
 0x18c   : > { %v973_v62 = vld [vmem:[#allocation2 + $0xc8] sm:$0x1]  ;;  %v1997_v33 = vsel %vm13824_vm15, %v1992_v45, %v1996_v20  ;;  %v3570_v6 = vsel %vm3543_vm1, %v11934_v23, %v15146_v4  ;;  %v12020_v14 = vcombine.low %v2187_v53, %v2190_v27  ;;  %v2623_v54 = vrot.slane %v2621_v38, 4  ;;  %v15393_v38 = vld [vmem:[#allocation2 + $0xcc] sm:$0xe] }
 0x18d   : > { %v15358_v8 = vld [vmem:[#allocation2 + $0xc4] sm:$0xf]  ;;  %v974_v18 = vsel %vm13683_vm3, %v812_v32, %v973_v62  ;;  %v12004_v31 = vcombine.low %v1987_v25, %v1997_v33  ;;  %v15373_v10 = vsel %vm18946_vm7, %v3570_v6, %v15167_v61  ;;  %v15375_v44 = vrot.slane %v2617_v40, 5 }
 0x18e   : > { %v2012_v34 = vshrl.u32 %v15358_v8, 16  ;;  %975 = vst [vmem:[#allocation2 + $0xc8] sm:$0x1] %v974_v18  ;;  %v2008_v43 = vshll.u32 %v15358_v8, 16  ;;  %v15366_v13 = vld [vmem:[#allocation2 + $0xc4] sm:$0xf]  ;;  %v15377_v36 = vpop.permute.xlu1 %3449 }
 0x18f   : > { %v1620_v22 = vld [vmem:[#allocation2 + $0xc0] sm:$0xf]  ;;  %3203 = vrot.lane.b32.xlu0 %v12004_v31, %s13559_s30  ;;  %v15379_v4 = vpop.permute.xlu0 %2939  ;;  %v2193_v16 = vrot.slane %v15358_v8, 5  ;;  %v2597_v17 = vshrl.u32 %v15366_v13, 16  ;;  %v2624_v42 = vor.u32 %v2623_v54, %v15375_v44  ;;  %vm4083_vm0 = vcmask 253952  }
 0x190   : > { %v2227_v1 = vld [vmem:[#allocation2 + $0xc0] sm:$0xf]  ;;  %v1999_v48 = vshrl.u32 %v1620_v22, 16  ;;  %v2002_v51 = vshll.u32 %v1620_v22, 16  ;;  %v11989_v37 = vcombine.low %v1620_v22, %v15358_v8  ;;  %v2010_v19 = vrot.slane %v2008_v43, 5 }
 0x191   : > { %v2037_v58 = vld [vmem:[#allocation2 + $0xc0] sm:$0xe]  ;;  %v2014_v57 = vrot.slane %v2012_v34, 4  ;;  %v15383_v49 = vld [vmem:[#allocation2 + $0xcc] sm:$0xf]  ;;  %v2584_v61 = vshrl.u32 %v2227_v1, 16  ;;  %v12036_v27 = vcombine.low %v2227_v1, %v15366_v13 }
 0x192   : > { %v2001_v46 = vrot.slane %v1999_v48, 4  ;;  %v2004_v20 = vrot.slane %v2002_v51, 5  ;;  %3125 = vrot.lane.b32.xlu1 %v11989_v37, %s18988_s16  ;;  %v2608_v5 = vshrl.u32 %v15383_v49, 16  ;;  %v2611_v2 = vshll.u32 %v15383_v49, 16  ;;  %v15389_v32 = vld [vmem:[#allocation2 + $0xd4] sm:$0x1]  ;;  %v15399_v18 = vpop.permute.xlu1 %3529 }
 0x193   : > { %v2015_v28 = vor.u32 %v2014_v57, %v2010_v19  ;;  %v11909_v25 = vrot.slane %v2037_v58, 9  ;;  %3283 = vrot.lane.b32.xlu0 %v12020_v14, %s13557_s25  ;;  %v2586_v45 = vrot.slane %v2584_v61, 4  ;;  %v2587_v26 = vshll.u32 %v2227_v1, 16  ;;  %4084 = vst.msk [vmem:[#allocation3 + $0x8] sm:$0x1] %vm4083_vm0, %v18947_v0 }
 0x194   : > { %v2005_v52 = vor.u32 %v2004_v20, %v2001_v46  ;;  %v2610_v23 = vrot.slane %v2608_v5, 4  ;;  %v2613_v12 = vrot.slane %v2611_v2, 5  ;;  %v15395_v40 = vpop.permute.xlu0 %3019  ;;  %v2195_v53 = vrot.slane %v2193_v16, 4  ;;  %4088 = vst.msk [vmem:[#allocation3 + $0xd4] sm:$0x1] %vm4083_vm0, %v18947_v0 }
 0x195   : > { %v1637_v62 = vld [vmem:[#allocation2 + $0xc8] sm:$0x1]  ;;  %v2016_v33 = vrot.slane %v2015_v28, 4  ;;  %v2627_v8 = vshll.u32 %v15389_v32, 16  ;;  %v2589_v6 = vrot.slane %v2587_v26, 5  ;;  %v2593_v14 = vshll.u32 %v15366_v13, 16 }
 0x196   : > { %v2006_v31 = vrot.slane %v2005_v52, 4  ;;  %v2018_v34 = vshll.u32 %v1637_v62, 16  ;;  %v2196_v43 = vrot.slane %v1637_v62, 5  ;;  %v2245_v22 = vld [vmem:[#allocation2 + $0xc8] sm:$0x1]  ;;  %v2599_v54 = vrot.slane %v2597_v17, 4 }
 0x197   : > { %3379 = vrot.lane.b32.xlu0 %v12036_v27, %s13555_s22  ;;  %v3645_v48 = vsel %vm3625_vm8, %v3612_v50, %v15252_v24  ;;  %v11925_v51 = vrot.slane %v15393_v38, 9  ;;  %v2614_v58 = vor.u32 %v2613_v12, %v2610_v23  ;;  %v2590_v57 = vor.u32 %v2589_v6, %v2586_v45  ;;  %v15421_v45 = vpop.permute.xlu1 %2941 }
 0x198   : > { %v2011_v1 = vsel %vm13824_vm15, %v2006_v31, %v2010_v19  ;;  %v2020_v37 = vrot.slane %v2018_v34, 5  ;;  %v2194_v61 = vsel %vm13737_vm10, %v11909_v25, %v2193_v16  ;;  %v2197_v46 = vsel %vm13737_vm10, %v2195_v53, %v2196_v43  ;;  %v15412_v17 = vpop.permute.xlu0 %3115  ;;  %v2645_v19 = vld [vmem:[#allocation2 + $0xc0] sm:$0xe] }
 0x199   : > { %v2625_v20 = vrot.slane %v2624_v42, 4  ;;  %v2595_v5 = vrot.slane %v2593_v14, 5  ;;  %v2629_v50 = vrot.slane %v2627_v8, 5  ;;  %v2591_v2 = vrot.slane %v2590_v57, 4  ;;  %v4097_v57 = vld [vmem:[#allocation3 + $0x18] sm:$0x1] }
 0x19a   : > { %v2021_v24 = vsel %vm13824_vm15, %v2016_v33, %v2020_v37  ;;  %v2603_v28 = vshll.u32 %v2245_v22, 16  ;;  %v3643_v16 = vsel %vm3625_vm8, %v15373_v10, %v15195_v3  ;;  %v3678_v25 = vsel %vm3658_vm9, %v3645_v48, %v15284_v21  ;;  %v4091_v37 = vld [vmem:[#allocation3] sm:$0x1] }
 0x19b   : > { %v12005_v52 = vcombine.low %v2011_v1, %v2021_v24  ;;  %v2600_v23 = vor.u32 %v2599_v54, %v2595_v5  ;;  %v12021_v42 = vcombine.low %v2194_v61, %v2197_v46  ;;  %v2615_v12 = vrot.slane %v2614_v58, 4  ;;  %v15457_v1 = vpop.permute.xlu1 %3021  ;;  %v4094_v61 = vld [vmem:[#allocation3 + $0xc] sm:$0x1] }
 0x19c   : > { %v2605_v26 = vrot.slane %v2603_v28, 5  ;;  %v3676_v62 = vsel %vm3658_vm9, %v3643_v16, %v15235_v56  ;;  %v2596_v33 = vsel %vm13824_vm15, %v2591_v2, %v2595_v5  ;;  %v11924_v27 = vrot.slane %v2645_v19, 9  ;;  %v13268_v46 = vld [vmem:[%s18930_s3 + $0x80] sm:$0xff]   ;;  %v4103_v5 = vld [vmem:[#allocation3 + $0x30] sm:$0x1] }
 0x19d   : > { %3205 = vrot.lane.b32.xlu1 %v12005_v52, %s13559_s30  ;;  %v2601_v53 = vrot.slane %v2600_v23, 4  ;;  %v2795_v3 = vrot.slane %v15366_v13, 5  ;;  %v12037_v21 = vcombine.low %v15383_v49, %v15335_v11  ;;  %v2630_v10 = vsel %vm13824_vm15, %v2625_v20, %v2629_v50  ;;  %v13271_v20 = vld [vmem:[%s18930_s3 + $0x88] sm:$0xff]   ;;  %v4100_v19 = vld [vmem:[#allocation3 + $0x24] sm:$0x1]  ;;  %13092 = vmatprep.subr.bf16.mxu0 %v13268_v46  ;;  %s13566_s30 = smov [#allocation5]  }
 0x19e   : > { %v2802_v8 = vrot.slane %v15335_v11, 5  ;;  %v2798_v31 = vrot.slane %v2245_v22, 5  ;;  %v3709_v6 = vsel %vm3691_vm13, %v3676_v62, %v15254_v30  ;;  %v2620_v49 = vsel %vm13824_vm15, %v2615_v12, %v15375_v44  ;;  %v4158_v52 = vld [vmem:[#allocation3 + $0x38] sm:$0x1]  ;;  %13093 = vmatpush3.bf16.msra.mxu0 %v13268_v46 }
 0x19f   : > { %v2606_v56 = vsel %vm13824_vm15, %v2601_v53, %v2605_v26  ;;  %v2796_v34 = vsel %vm13737_vm10, %v11924_v27, %v2795_v3  ;;  %v2797_v43 = vrot.slane %v2795_v3, 4  ;;  %v15440_v13 = vpop.permute.xlu0 %3195  ;;  %v3711_v11 = vsel %vm3691_vm13, %v3678_v25, %v15311_v59  ;;  %13094 = vmatprep.subr.bf16.mxu0 %v13271_v20 }
 0x1a0   : > { %v12052_v14 = vcombine.low %v2596_v33, %v2606_v56  ;;  %v3742_v22 = vsel %vm3724_vm4, %v3709_v6, %v15286_v35  ;;  %v2805_v54 = vrot.slane %v15389_v32, 5  ;;  %v3744_v48 = vsel %vm3724_vm4, %v3711_v11, %v15340_v9  ;;  %v15516_v33 = vld [vmem:[#allocation3 + $0x4] sm:$0xf] }
 0x1a1   : > { %3285 = vrot.lane.b32.xlu1 %v12021_v42, %s13557_s25  ;;  %v2799_v30 = vsel %vm13737_vm10, %v2797_v43, %v2798_v31  ;;  %v3775_v44 = vsel %vm3757_vm5, %v3742_v22, %v15313_v60  ;;  %v2804_v59 = vrot.slane %v2802_v8, 4  ;;  %v3777_v58 = vsel %vm3757_vm5, %v3744_v48, %v15377_v36  ;;  %v4152_v60 = vld [vmem:[#allocation3 + $0x20] sm:$0x1]  ;;  %v4155_v42 = vld [vmem:[#allocation3 + $0x2c] sm:$0x1]  ;;  %s377_s25 = sand.u32 1, %s13542_s18  }
 0x1a2   : > { %3459 = vrot.lane.b32.xlu0 %v12052_v14, %s13560_s12  ;;  %v12068_v35 = vcombine.low %v2796_v34, %v2799_v30  ;;  %v3808_v32 = vsel %vm3790_vm14, %v3775_v44, %v15342_v7  ;;  %v3810_v9 = vsel %vm3790_vm14, %v3777_v58, %v15399_v18  ;;  %v11941_v7 = vcombine.low %v15191_v47, %v15209_v41  ;;  %v4149_v18 = vld [vmem:[#allocation3 + $0x14] sm:$0x1]  ;;  %v13397_v34 = vld [vmem:[#allocation2 + $0x78] sm:$0xf]  ;;  %v13398_v43 = vld [vmem:[#allocation2 + $0x7c] sm:$0xf] }
 0x1a3   : > { %13076 = vmatprep.mubr.msk.bf16.mxu0 %vm3850_vm2, %v3808_v32  ;;  %v11940_v36 = vcombine.low %v15212_v15, %v15224_v55  ;;  %v12053_v24 = vcombine.low %v2620_v49, %v2630_v10  ;;  %v2803_v50 = vsel %vm13737_vm10, %v11925_v51, %v2802_v8  ;;  %v15483_v2 = vpop.permute.xlu0 %3275  ;;  %vm18990_vm3 = vsmask.f32 256  ;;  %v15510_v12 = vpop.permute.xlu1 %3117  ;;  %13095 = vmatpush3.bf16.msra.mxu0 %v13271_v20  ;;  %v4146_v49 = vld [vmem:[#allocation3 + $0x8] sm:$0x1]  ;;  %v13400_v58 = vld [vmem:[#allocation2 + $0x88] sm:$0xf] }
 0x1a4   : > { %13077 = vmatmul.mubr.msk.bf16.gmra.mrb[16].mxu0 %vm3850_vm2, %v3810_v9  ;;  %vm15487_vm6 = vmand %vm4083_vm0, %vm18990_vm3  ;;  %v2806_v38 = vsel %vm13737_vm10, %v2804_v59, %v2805_v54  ;;  %vm18993_vm11 = vsmask.f32 7938  ;;  %v18994_v16 = vmov 0  ;;  %v4789_v8 = vshll.u32 %v15516_v33, 16  ;;  %v4109_v14 = vld [vmem:[#allocation3 + $0x48] sm:$0x1] }
 0x1a5   : > { %3381 = vrot.lane.b32.xlu1 %v12037_v21, %s13555_s22  ;;  %v4098_v51 = vsel %vm15487_vm6, 0, %v4097_v57  ;;  %v4095_v23 = vsel %vm15487_vm6, 0, %v4094_v61  ;;  %vm15504_vm3 = vmand %vm4083_vm0, %vm18993_vm11  ;;  %v4092_v25 = vsel %vm15487_vm6, 0, %v4091_v37  ;;  %v4104_v53 = vsel %vm15487_vm6, 0, %v4103_v5  ;;  %s13561_s22 = smov 64   ;;  %v13282_v41 = vld [vmem:[%s18930_s3 + $0x40] sm:$0xff]  }
 0x1a6   : > { %3539 = vrot.lane.b32.xlu0 %v12068_v35, %s13558_s29  ;;  %v18995_v16 = vsel %vm15504_vm3, 4294967295, %v18994_v16  ;;  %4099 = vst [vmem:[#allocation3 + $0x18] sm:$0x1] %v4098_v51  ;;  %4096 = vst [vmem:[#allocation3 + $0xc] sm:$0x1] %v4095_v23  ;;  %v4153_v26 = vsel %vm15504_vm3, 0, %v4152_v60  ;;  %v12069_v27 = vcombine.low %v2803_v50, %v2806_v38  ;;  %v11936_v6 = vcombine.low %v13397_v34, %v13398_v43 }
 0x1a7   : > { %18996 = vst [vmem:[#allocation8_spill] sm:$0xff] %v18995_v16  ;;  %v4150_v62 = vsel %vm15504_vm3, 0, %v4149_v18  ;;  %4093 = vst [vmem:[#allocation3] sm:$0x1] %v4092_v25  ;;  %v4101_v3 = vsel %vm15487_vm6, 0, %v4100_v19  ;;  %v4159_v21 = vsel %vm15504_vm3, 0, %v4158_v52  ;;  %v3372_v56 = vpop.permute.xlu0 %3371  ;;  %12822 = vmatprep.subr.bf16.mxu1 %v13282_v41 }
 0x1a8   : > { %4154 = vst [vmem:[#allocation3 + $0x20] sm:$0x1] %v4153_v26  ;;  %4151 = vst [vmem:[#allocation3 + $0x14] sm:$0x1] %v4150_v62  ;;  %v4156_v10 = vsel %vm15504_vm3, 0, %v4155_v42  ;;  %v4793_v31 = vshrl.u32 %v15516_v33, 16  ;;  %v3576_v57 = vsel %vm3543_vm1, %v11936_v6, %v15379_v4 }
 0x1a9   : > { %3461 = vrot.lane.b32.xlu1 %v12053_v24, %s13560_s12  ;;  %4105 = vst [vmem:[#allocation3 + $0x30] sm:$0x1] %v4104_v53  ;;  %4102 = vst [vmem:[#allocation3 + $0x24] sm:$0x1] %v4101_v3  ;;  %v4147_v22 = vsel %vm15504_vm3, 0, %v4146_v49  ;;  %v4110_v54 = vsel %vm15487_vm6, 0, %v4109_v14  ;;  %v3614_v61 = vsel %vm18946_vm7, %v3576_v57, %v15395_v40 }
 0x1aa   : > { %4160 = vst [vmem:[#allocation3 + $0x38] sm:$0x1] %v4159_v21  ;;  %4157 = vst [vmem:[#allocation3 + $0x2c] sm:$0x1] %v4156_v10  ;;  %v4791_v48 = vrot.slane %v4789_v8, 5  ;;  %v4795_v44 = vrot.slane %v4793_v31, 4  ;;  %v3647_v5 = vsel %vm3625_vm8, %v3614_v61, %v15412_v17 }
 0x1ab   : > { %4148 = vst [vmem:[#allocation3 + $0x8] sm:$0x1] %v4147_v22  ;;  %4111 = vst [vmem:[#allocation3 + $0x48] sm:$0x1] %v4110_v54  ;;  %v13399_v35 = vld [vmem:[#allocation2 + $0x84] sm:$0xf]  ;;  %v3680_v19 = vsel %vm3658_vm9, %v3647_v5, %v15440_v13 }
 0x1ac   : > { %v11937_v32 = vcombine.low %v13399_v35, %v13400_v58  ;;  %v5229_v18 = vrot.slane %v15516_v33, 5  ;;  %v4796_v24 = vor.u32 %v4795_v44, %v4791_v48  ;;  %v5163_v50 = vld [vmem:[#allocation3] sm:$0xe]  ;;  %v3713_v40 = vsel %vm3691_vm13, %v3680_v19, %v15483_v2  ;;  %v4106_v3 = vld [vmem:[#allocation3 + $0x3c] sm:$0x1]  ;;  %vm18997_vm0 = vmmov %vm18993_vm11  ;;  %s12695_s12 = sshll.u32 %s13648_s21, 4 }
 0x1ad   : > { %3541 = vrot.lane.b32.xlu1 %v12069_v27, %s13558_s29  ;;  %v3198_v11 = vpop.permute.xlu1 %3197  ;;  %v3746_v51 = vsel %vm3724_vm4, %v3713_v40, %v3372_v56  ;;  %v12122_v42 = vrot.slane %v5163_v50, 9  ;;  %v4107_v10 = vsel %vm15487_vm6, 0, %v4106_v3  ;;  %v4164_v8 = vld [vmem:[#allocation3 + $0x50] sm:$0x1]  ;;  %v4161_v43 = vld [vmem:[#allocation3 + $0x44] sm:$0x1]  ;;  %s18885_s14 = scalar_lea.hbm %s18938_s11, %s12695_s12 }
 0x1ae   : > { %v4731_v30 = vld [vmem:[#allocation3] sm:$0xf]  ;;  %v3579_v4 = vsel %vm3543_vm1, %v11937_v32, %v15421_v45  ;;  %v5231_v26 = vrot.slane %v5229_v18, 4  ;;  %v4797_v33 = vrot.slane %v4796_v24, 4  ;;  %4108 = vst [vmem:[#allocation3 + $0x3c] sm:$0x1] %v4107_v10 }
 0x1af   : > { %v4780_v37 = vshrl.u32 %v4731_v30, 16  ;;  %v4783_v59 = vshll.u32 %v4731_v30, 16  ;;  %v3616_v45 = vsel %vm18946_vm7, %v3579_v4, %v15457_v1  ;;  %v5230_v34 = vsel %vm13737_vm10, %v12122_v42, %v5229_v18  ;;  %v13401_v18 = vld [vmem:[#allocation2 + $0x90] sm:$0xf]  ;;  %v13402_v5 = vld [vmem:[#allocation2 + $0x94] sm:$0xf] }
 0x1b0   : > { %v3649_v31 = vsel %vm3625_vm8, %v3616_v45, %v15510_v12  ;;  %v4165_v1 = vsel %vm15504_vm3, 0, %v4164_v8  ;;  %v4162_v12 = vsel %vm15504_vm3, 0, %v4161_v43  ;;  %v11938_v24 = vcombine.low %v13401_v18, %v13402_v5  ;;  %v13403_v8 = vld [vmem:[#allocation2 + $0x9c] sm:$0xf]  ;;  %s378_s16 = scalar_lea.vmem [#allocation5], %s377_s25  ;;  %s11805_s21 = scalar_lea.sflag [#allocation6], %s377_s25 }
 0x1b1   : > { %v3278_v9 = vpop.permute.xlu1 %3277  ;;  %v3452_v60 = vpop.permute.xlu0 %3451  ;;  %v4782_v46 = vrot.slane %v4780_v37, 4  ;;  %v4785_v20 = vrot.slane %v4783_v59, 5  ;;  %v3682_v6 = vsel %vm3658_vm9, %v3649_v31, %v3198_v11  ;;  %4166 = vst [vmem:[#allocation3 + $0x50] sm:$0x1] %v4165_v1  ;;  %4163 = vst [vmem:[#allocation3 + $0x44] sm:$0x1] %v4162_v12 }
 0x1b2   : > { %v4763_v23 = vld [vmem:[#allocation3 + $0x8] sm:$0x1]  ;;  %v3779_v17 = vsel %vm3757_vm5, %v3746_v51, %v3452_v60  ;;  %v3715_v22 = vsel %vm3691_vm13, %v3682_v6, %v3278_v9  ;;  %vm18998_vm11 = vcmask 257024   ;;  %s11817_s24 = sshll.u32 %s378_s16, 4  ;;  %s18887_s24 = int_to_ptr.vmem [resolvable:$true] %s11817_s24 }
 0x1b3   : > { %v4786_v52 = vor.u32 %v4785_v20, %v4782_v46  ;;  %v4799_v53 = vshll.u32 %v4763_v23, 16  ;;  %v5232_v13 = vrot.slane %v4763_v23, 5  ;;  %v15584_v60 = vld [vmem:[%s18929_s2] ss:$0 sm:$0xff]  ;;  %s13488_s15 = scalar_lea.vmem %s18887_s24, 16 }
 0x1b4   : > { %v13404_v31 = vld [vmem:[#allocation2 + $0xa0] sm:$0xf]  ;;  %p13489_p11 = scmp.ne.s32.totalorder %s18887_s24, %s13488_s15 }
 0x1b5   : > { %v3374_v38 = vpop.permute.xlu1 %3373  ;;  %v4787_v25 = vrot.slane %v4786_v52, 4  ;;  %v4801_v21 = vrot.slane %v4799_v53, 5  ;;  %v5233_v14 = vsel %vm13737_vm10, %v5231_v26, %v5232_v13 }
 0x1b6   : > { %v3532_v62 = vpop.permute.xlu0 %3531  ;;  %v3748_v30 = vsel %vm3724_vm4, %v3715_v22, %v3374_v38  ;;  %v12202_v11 = vcombine.low %v5230_v34, %v5233_v14  ;;  %p13490_p12 = pnand %p13489_p11, %p13665_p5 }
 0x1b7   : > { %v3812_v27 = vsel %vm3790_vm14, %v3779_v17, %v3532_v62  ;;  %v4792_v2 = vsel %vm13824_vm15, %v4787_v25, %v4791_v48  ;;  %v4802_v49 = vsel %vm13824_vm15, %v4797_v33, %v4801_v21  ;;  %v4115_v33 = vld [vmem:[#allocation3 + $0x60] sm:$0x1] }
 0x1b8   : > { %13080 = vmatprep.mubr.msk.bf16.mxu0 %vm3850_vm2, %v3812_v27  ;;  %v12186_v54 = vcombine.low %v4792_v2, %v4802_v49  ;;  %v4116_v45 = vsel %vm15487_vm6, 0, %v4115_v33  ;;  %p13491_p13 = pneg %p13490_p12 }
 0x1b9   : > { %v3454_v56 = vpop.permute.xlu1 %3453  ;;  %4117 = vst [vmem:[#allocation3 + $0x60] sm:$0x1] %v4116_v45  ;;  %v4112_v45 = vld [vmem:[#allocation3 + $0x54] sm:$0x1] }
 0x1ba   : > { %v3781_v48 = vsel %vm3757_vm5, %v3748_v30, %v3454_v56  ;;  %6668 = vrot.lane.b32.xlu1 %v12186_v54, %s13558_s29  ;;  %v11939_v56 = vcombine.low %v13403_v8, %v13404_v31  ;;  %v4167_v31 = vld [vmem:[#allocation3 + $0x5c] sm:$0x1] }
 0x1bd   : > { %v3534_v44 = vpop.permute.xlu1 %3533 }
 0x1be   : > { %v3814_v37 = vsel %vm3790_vm14, %v3781_v48, %v3534_v44  ;;  %6748 = vrot.lane.b32.xlu1 %v12202_v11, %s13561_s22  ;;  %v4626_v44 = vld [vmem:[#allocation3 + $0x18] sm:$0xf] }
 0x1bf   : > { %13081 = vmatmul.mubr.msk.bf16.gmra.mrb[20].mxu0 %vm3850_vm2, %v3814_v37 }
 0x1c1   : > { %v15577_v32 = vpop.permute.xlu1 %2945 }
 0x1c2   : > { %v2944_v59 = vpop.permute.xlu0 %2943 }
 0x1c3   : > { %v3582_v26 = vsel %vm3543_vm1, %v11938_v24, %v2944_v59 }
 0x1c5   : > { %v15579_v61 = vpop.permute.xlu1 %3025 }
 0x1c6   : > { %v3024_v35 = vpop.permute.xlu0 %3023 }
 0x1c7   : > { %v3618_v53 = vsel %vm18946_vm7, %v3582_v26, %v3024_v35  ;;  %vm15603_vm7 = vmand %vm18998_vm11, %vm18997_vm0 }
 0x1c8   : > { %vm19001_vm0 = vmmov %vm18998_vm11 }
 0x1c9   : > { %vm19002_vm11 = vmmov %vm19001_vm0 }
 0x1ca   : > { %v3120_v58 = vpop.permute.xlu0 %3119 }
 0x1cb   : > { %v3651_v2 = vsel %vm3625_vm8, %v3618_v53, %v3120_v58 }
 0x1d0   : > { %v3200_v57 = vpop.permute.xlu0 %3199 }
 0x1d1   : > { %v3684_v34 = vsel %vm3658_vm9, %v3651_v2, %v3200_v57  ;;  %v4619_v57 = vld [vmem:[#allocation3 + $0xc] sm:$0xf]  ;;  %v4113_v2 = vsel %vm15487_vm6, 0, %v4112_v45 }
 0x1d2   : > { %v15586_v46 = vpop.permute.xlu1 %3121  ;;  %4114 = vst [vmem:[#allocation3 + $0x54] sm:$0x1] %v4113_v2 }
 0x1d4   : > { %v3280_v9 = vpop.permute.xlu0 %3279 }
 0x1d5   : > { %v3717_v49 = vsel %vm3691_vm13, %v3684_v34, %v3280_v9  ;;  %v4168_v34 = vsel %vm15504_vm3, 0, %v4167_v31 }
 0x1d6   : > { %4169 = vst [vmem:[#allocation3 + $0x5c] sm:$0x1] %v4168_v34 }
 0x1d8   : > { %v13062_v20 = vpop.f32.mrb[0].mxu0  ;;  %v3376_v52 = vpop.permute.xlu0 %3375 }
 0x1d9   : > { %v3930_v50 = vadd.f32 %v13062_v20, %v15584_v60  ;;  %v3921_v19 = vpop.f32.mrb[1].mxu0  ;;  %v3750_v48 = vsel %vm3724_vm4, %v3717_v49, %v3376_v52 }
 0x1da   : > { %v3922_v4 = vadd.f32 %v15584_v60, %v3921_v19  ;;  %v13063_v40 = vpop.f32.mrb[2].mxu0 }
 0x1db   : > { %v4050_v38 = vmax.f32 %v3930_v50, 0.0  ;;  %v3933_v51 = vadd.f32 %v13063_v40, %v15584_v60  ;;  %v3924_v23 = vpop.f32.mrb[3].mxu0  ;;  %v4630_v50 = vld [vmem:[#allocation3 + $0x20] sm:$0x1] }
 0x1dc   : > { %v4048_v25 = vmax.f32 %v3922_v4, 0.0  ;;  %v3925_v42 = vadd.f32 %v15584_v60, %v3924_v23  ;;  %v4623_v23 = vld [vmem:[#allocation3 + $0x14] sm:$0x1] }
 0x1dd   : > { %v12701_v17 = vpack.c.bf16 %v4050_v38, %v4050_v38  ;;  %v4051_v62 = vmax.f32 %v3933_v51, 0.0 }
 0x1de   : > { %v15594_v13 = vpop.permute.xlu1 %3201  ;;  %v12699_v27 = vpack.c.bf16 %v4048_v25, %v4048_v25  ;;  %v4049_v3 = vmax.f32 %v3925_v42, 0.0 }
 0x1df   : > { %v4314_v21 = vshrl.u32 %v12701_v17, 16  ;;  %v12702_v10 = vpack.c.bf16 %v4051_v62, %v4051_v62  ;;  %v4317_v12 = vshll.u32 %v12701_v17, 16 }
 0x1e0   : > { %v4297_v43 = vshrl.u32 %v12699_v27, 16  ;;  %v12700_v6 = vpack.c.bf16 %v4049_v3, %v4049_v3  ;;  %v4300_v37 = vshll.u32 %v12699_v27, 16 }
 0x1e1   : > { %v3456_v1 = vpop.permute.xlu0 %3455  ;;  %v4316_v14 = vrot.slane %v4314_v21, 7  ;;  %v4322_v22 = vshrl.u32 %v12702_v10, 16  ;;  %v4325_v20 = vshll.u32 %v12702_v10, 16  ;;  %v4170_v21 = vld [vmem:[#allocation3 + $0x68] sm:$0x1]  ;;  %v3585_v10 = vsel %vm3543_vm1, %v11939_v56, %v15577_v32 }
 0x1e2   : > { %v3282_v30 = vpop.permute.xlu1 %3281  ;;  %v4299_v11 = vrot.slane %v4297_v43, 7  ;;  %v4305_v59 = vshrl.u32 %v12700_v6, 16  ;;  %v3783_v35 = vsel %vm3757_vm5, %v3750_v48, %v3456_v1  ;;  %v4308_v4 = vshll.u32 %v12700_v6, 16 }
 0x1e3   : > { %v4319_v58 = vor.u32 %v4317_v12, %v4316_v14  ;;  %v4324_v9 = vrot.slane %v4322_v22, 7  ;;  %v4320_v5 = vrot.slane %v4316_v14, 4  ;;  %v4171_v8 = vsel %vm15504_vm3, 0, %v4170_v21 }
 0x1e4   : > { %v4302_v24 = vor.u32 %v4300_v37, %v4299_v11  ;;  %v4307_v19 = vrot.slane %v4305_v59, 7  ;;  %v4303_v25 = vrot.slane %v4299_v11, 4  ;;  %4172 = vst [vmem:[#allocation3 + $0x68] sm:$0x1] %v4171_v8 }
 0x1e5   : > { %v3536_v18 = vpop.permute.xlu0 %3535  ;;  %v4627_v52 = vsel %vm15603_vm7, %v4319_v58, %v4626_v44  ;;  %v4327_v38 = vor.u32 %v4325_v20, %v4324_v9  ;;  %v4329_v51 = vrot.slane %v4324_v9, 4 }
 0x1e6   : > { %v3816_v40 = vsel %vm3790_vm14, %v3783_v35, %v3536_v18  ;;  %4628 = vst [vmem:[#allocation3 + $0x18] sm:$0xf] %v4627_v52  ;;  %v4620_v42 = vsel %vm15603_vm7, %v4302_v24, %v4619_v57  ;;  %v4310_v26 = vor.u32 %v4308_v4, %v4307_v19  ;;  %v4312_v17 = vrot.slane %v4307_v19, 4  ;;  %v3378_v53 = vpop.permute.xlu1 %3377 }
 0x1e7   : > { %13084 = vmatprep.mubr.msk.bf16.mxu0 %vm3850_vm2, %v3816_v40  ;;  %4621 = vst [vmem:[#allocation3 + $0xc] sm:$0xf] %v4620_v42  ;;  %v4328_v62 = vsel %vm13749_vm12, %v4320_v5, %v4327_v38  ;;  %v4631_v33 = vsel %vm15487_vm6, %v4329_v51, %v4630_v50 }
 0x1e8   : > { %4629 = vst.msk [vmem:[#allocation3 + $0x1c] sm:$0xf] %vm19001_vm0, %v4328_v62  ;;  %4632 = vst [vmem:[#allocation3 + $0x20] sm:$0x1] %v4631_v33  ;;  %v4311_v27 = vsel %vm13749_vm12, %v4303_v25, %v4310_v26  ;;  %v4624_v3 = vsel %vm15487_vm6, %v4312_v17, %v4623_v23  ;;  %vm19003_vm0 = vcmask 64512  }
 0x1e9   : > { %4622 = vst.msk [vmem:[#allocation3 + $0x10] sm:$0xf] %vm19002_vm11, %v4311_v27  ;;  %4625 = vst [vmem:[#allocation3 + $0x14] sm:$0x1] %v4624_v3  ;;  %v3620_v1 = vsel %vm19003_vm0, %v3585_v10, %v15579_v61 }
 0x1ea   : > { %v3653_v43 = vsel %vm3625_vm8, %v3620_v1, %v15586_v46  ;;  %vm19004_vm0 = vmmov %vm19002_vm11 }
 0x1eb   : > { %v3686_v32 = vsel %vm3658_vm9, %v3653_v43, %v15594_v13 }
 0x1ec   : > { %v3719_v12 = vsel %vm3691_vm13, %v3686_v32, %v3282_v30 }
 0x1ed   : > { %v15639_v56 = vld [vmem:[#allocation3 + $0x18] sm:$0xf]  ;;  %v3752_v61 = vsel %vm3724_vm4, %v3719_v12, %v3378_v53 }
 0x1ee   : > { %v15645_v48 = vld [vmem:[#allocation3 + $0x18] sm:$0xf]  ;;  %v15656_v58 = vld [vmem:[#allocation3 + $0xc] sm:$0xf] }
 0x1ef   : > { %v3458_v6 = vpop.permute.xlu1 %3457  ;;  %v5342_v49 = vld [vmem:[#allocation3 + $0x1c] sm:$0xf]  ;;  %v5772_v13 = vld [vmem:[#allocation3 + $0x18] sm:$0xe]  ;;  %v5372_v30 = vld [vmem:[#allocation3 + $0x20] sm:$0x1] }
 0x1f0   : > { %v15641_v14 = vld [vmem:[#allocation3 + $0x1c] sm:$0xf]  ;;  %v12219_v22 = vcombine.low %v15639_v56, %v5342_v49  ;;  %v5340_v11 = vld [vmem:[#allocation3 + $0x10] sm:$0xf]  ;;  %v3785_v37 = vsel %vm3757_vm5, %v3752_v61, %v3458_v6  ;;  %v5844_v57 = vrot.slane %v5342_v49, 5  ;;  %v12139_v18 = vrot.slane %v5772_v13, 9 }
 0x1f1   : > { %v15648_v44 = vpop.permute.xlu0 %2947  ;;  %v12266_v46 = vcombine.low %v15645_v48, %v15641_v14  ;;  %v15658_v9 = vld [vmem:[#allocation3 + $0x1c] sm:$0xf]  ;;  %v12218_v20 = vcombine.low %v15656_v58, %v5340_v11  ;;  %v15662_v5 = vld [vmem:[#allocation3 + $0x20] sm:$0x1]  ;;  %v5165_v24 = vld [vmem:[#allocation3 + $0x18] sm:$0xe] }
 0x1f2   : > { %6846 = vrot.lane.b32.xlu1 %v12219_v22, %s13562_s13  ;;  %v5846_v50 = vrot.slane %v5844_v57, 4  ;;  %v5847_v19 = vrot.slane %v5372_v30, 5  ;;  %v5243_v4 = vrot.slane %v15658_v9, 5  ;;  %v5845_v52 = vsel %vm13737_vm10, %v12139_v18, %v5844_v57  ;;  %v5771_v42 = vld [vmem:[#allocation3 + $0xc] sm:$0xe] }
 0x1f3   : > { %v3538_v59 = vpop.permute.xlu1 %3537  ;;  %7068 = vrot.lane.b32.xlu0 %v12266_v46, %s13561_s22  ;;  %v12124_v51 = vrot.slane %v5165_v24, 9  ;;  %v5246_v25 = vrot.slane %v15662_v5, 5  ;;  %v5371_v17 = vld [vmem:[#allocation3 + $0x14] sm:$0x1]  ;;  %v5837_v62 = vrot.slane %v5340_v11, 5  ;;  %v5997_v2 = vshrl.u32 %v15645_v48, 16 }
 0x1f4   : > { %v3818_v35 = vsel %vm3790_vm14, %v3785_v37, %v3538_v59  ;;  %v5848_v38 = vsel %vm13737_vm10, %v5846_v50, %v5847_v19  ;;  %v5245_v23 = vrot.slane %v5243_v4, 4  ;;  %v15673_v33 = vld [vmem:[#allocation3 + $0x10] sm:$0xf]  ;;  %v5164_v45 = vld [vmem:[#allocation3 + $0xc] sm:$0xe]  ;;  %v12138_v31 = vrot.slane %v5771_v42, 9 }
 0x1f5   : > { %13085 = vmatmul.mubr.msk.bf16.gmra.mrb[24].mxu0 %vm3850_vm2, %v3818_v35  ;;  %v15665_v40 = vpop.permute.xlu0 %3027  ;;  %v12251_v26 = vcombine.low %v5845_v52, %v5848_v38  ;;  %v5244_v27 = vsel %vm13737_vm10, %v12124_v51, %v5243_v4  ;;  %v15682_v34 = vld [vmem:[#allocation3 + $0x14] sm:$0x1]  ;;  %v5839_v6 = vrot.slane %v5837_v62, 4  ;;  %v5840_v32 = vrot.slane %v5371_v17, 5  ;;  %v4735_v37 = vld [vmem:[#allocation3 + $0x18] sm:$0xf] }
 0x1f6   : > { %6844 = vrot.lane.b32.xlu1 %v12218_v20, %s13562_s13  ;;  %v5247_v3 = vsel %vm13737_vm10, %v5245_v23, %v5246_v25  ;;  %v5236_v49 = vrot.slane %v15673_v33, 5  ;;  %v5838_v11 = vsel %vm13737_vm10, %v12138_v31, %v5837_v62  ;;  %v12123_v13 = vrot.slane %v5164_v45, 9 }
 0x1f7   : > { %6974 = vrot.lane.b32.xlu0 %v12251_v26, %s13558_s29  ;;  %v12204_v8 = vcombine.low %v5244_v27, %v5247_v3  ;;  %v15692_v59 = vpop.permute.xlu1 %2949  ;;  %v5841_v57 = vsel %vm13737_vm10, %v5839_v6, %v5840_v32  ;;  %v5239_v20 = vrot.slane %v15682_v34, 5  ;;  %v6000_v4 = vshll.u32 %v15645_v48, 16 }
 0x1f8   : > { %v12250_v50 = vcombine.low %v5838_v11, %v5841_v57  ;;  %v5238_v19 = vrot.slane %v5236_v49, 4  ;;  %v4828_v51 = vshrl.u32 %v4735_v37, 16  ;;  %v5237_v42 = vsel %vm13737_vm10, %v12123_v13, %v5236_v49 }
 0x1f9   : > { %v13066_v53 = vpop.f32.mrb[4].mxu0  ;;  %v15686_v12 = vpop.permute.xlu0 %3123  ;;  %v4831_v27 = vshll.u32 %v4735_v37, 16  ;;  %v6010_v45 = vshrl.u32 %v15641_v14, 16  ;;  %v4837_v13 = vshll.u32 %v15658_v9, 16  ;;  %v6006_v48 = vshll.u32 %v15641_v14, 16 }
 0x1fa   : > { %v3946_v21 = vadd.f32 %v13066_v53, %v15584_v60  ;;  %v3937_v10 = vpop.f32.mrb[5].mxu0  ;;  %6752 = vrot.lane.b32.xlu1 %v12204_v8, %s13561_s22  ;;  %v5240_v26 = vsel %vm13737_vm10, %v5238_v19, %v5239_v20  ;;  %v15710_v49 = vrot.slane %v4828_v51, 4  ;;  %v3591_v55 = vsel %vm3543_vm1, %v11941_v7, %v15692_v59 }
 0x1fb   : > { %v3938_v1 = vadd.f32 %v15584_v60, %v3937_v10  ;;  %v13067_v43 = vpop.f32.mrb[6].mxu0  ;;  %6972 = vrot.lane.b32.xlu0 %v12250_v50, %s13558_s29  ;;  %v12203_v53 = vcombine.low %v5237_v42, %v5240_v26  ;;  %v15707_v31 = vpop.permute.xlu1 %3029  ;;  %v4833_v20 = vrot.slane %v4831_v27, 5 }
 0x1fc   : > { %v4054_v22 = vmax.f32 %v3946_v21, 0.0  ;;  %v3949_v61 = vadd.f32 %v13067_v43, %v15584_v60  ;;  %v3940_v46 = vpop.f32.mrb[7].mxu0 }
 0x1fd   : > { %v4052_v30 = vmax.f32 %v3938_v1, 0.0  ;;  %v3941_v35 = vadd.f32 %v15584_v60, %v3940_v46  ;;  %v4640_v1 = vld [vmem:[#allocation3 + $0x30] sm:$0xf] }
 0x1fe   : > { %v12705_v18 = vpack.c.bf16 %v4054_v22, %v4054_v22  ;;  %v4055_v24 = vmax.f32 %v3949_v61, 0.0  ;;  %6750 = vrot.lane.b32.xlu1 %v12203_v53, %s13561_s22  ;;  %v4633_v61 = vld [vmem:[#allocation3 + $0x24] sm:$0xf]  ;;  %v4841_v53 = vshrl.u32 %v15658_v9, 16  ;;  %v6380_v9 = vld [vmem:[#allocation3 + $0x18] sm:$0xe] }
 0x1ff   : > { %v12703_v52 = vpack.c.bf16 %v4052_v30, %v4052_v30  ;;  %v4053_v38 = vmax.f32 %v3941_v35, 0.0  ;;  %v4644_v30 = vld [vmem:[#allocation3 + $0x38] sm:$0x1] }
 0x200   : > { %v4348_v23 = vshrl.u32 %v12705_v18, 16  ;;  %v12706_v25 = vpack.c.bf16 %v4055_v24, %v4055_v24  ;;  %v4351_v10 = vshll.u32 %v12705_v18, 16 }
 0x201   : > { %v4331_v17 = vshrl.u32 %v12703_v52, 16  ;;  %v12704_v62 = vpack.c.bf16 %v4053_v38, %v4053_v38  ;;  %v15704_v3 = vpop.permute.xlu0 %3203  ;;  %v4334_v6 = vshll.u32 %v12703_v52, 16  ;;  %v4637_v52 = vld [vmem:[#allocation3 + $0x2c] sm:$0x1] }
 0x202   : > { %v4350_v21 = vrot.slane %v4348_v23, 7  ;;  %v4356_v8 = vshrl.u32 %v12706_v25, 16  ;;  %v4359_v11 = vshll.u32 %v12706_v25, 16 }
 0x203   : > { %v4333_v43 = vrot.slane %v4331_v17, 7  ;;  %v4339_v32 = vshrl.u32 %v12704_v62, 16  ;;  %v4342_v57 = vshll.u32 %v12704_v62, 16  ;;  %v15721_v62 = vrot.slane %v4837_v13, 5 }
 0x204   : > { %v4353_v22 = vor.u32 %v4351_v10, %v4350_v21  ;;  %v4358_v46 = vrot.slane %v4356_v8, 7  ;;  %v4354_v18 = vrot.slane %v4350_v21, 4  ;;  %v15724_v27 = vpop.permute.xlu1 %3125  ;;  %v5999_v21 = vrot.slane %v5997_v2, 4 }
 0x205   : > { %v4336_v37 = vor.u32 %v4334_v6, %v4333_v43  ;;  %v4341_v35 = vrot.slane %v4339_v32, 7  ;;  %v4337_v38 = vrot.slane %v4333_v43, 4  ;;  %v3284_v42 = vpop.permute.xlu0 %3283  ;;  %v6002_v10 = vrot.slane %v6000_v4, 5  ;;  %v5980_v43 = vld [vmem:[#allocation3 + $0x20] sm:$0x1] }
 0x206   : > { %v4641_v24 = vsel %vm15603_vm7, %v4353_v22, %v4640_v1  ;;  %v4361_v50 = vor.u32 %v4359_v11, %v4358_v46  ;;  %v4363_v19 = vrot.slane %v4358_v46, 4  ;;  %v6446_v6 = vrot.slane %v15641_v14, 5 }
 0x207   : > { %4642 = vst [vmem:[#allocation3 + $0x30] sm:$0xf] %v4641_v24  ;;  %v4634_v51 = vsel %vm15603_vm7, %v4336_v37, %v4633_v61  ;;  %v4344_v23 = vor.u32 %v4342_v57, %v4341_v35  ;;  %v4346_v25 = vrot.slane %v4341_v35, 4  ;;  %v4843_v32 = vrot.slane %v4841_v53, 4  ;;  %v15747_v24 = vld [vmem:[#allocation3 + $0xc] sm:$0xf] }
 0x208   : > { %4635 = vst [vmem:[#allocation3 + $0x24] sm:$0xf] %v4634_v51  ;;  %v4362_v26 = vsel %vm13749_vm12, %v4354_v18, %v4361_v50  ;;  %v4645_v17 = vsel %vm15487_vm6, %v4363_v19, %v4644_v30  ;;  %v5412_v2 = vshrl.u32 %v15639_v56, 16  ;;  %v4834_v4 = vor.u32 %v4833_v20, %v15710_v49 }
 0x209   : > { %4643 = vst.msk [vmem:[#allocation3 + $0x34] sm:$0xf] %vm19002_vm11, %v4362_v26  ;;  %4646 = vst [vmem:[#allocation3 + $0x38] sm:$0x1] %v4645_v17  ;;  %v4345_v8 = vsel %vm13749_vm12, %v4337_v38, %v4344_v23  ;;  %v4638_v1 = vsel %vm15487_vm6, %v4346_v25, %v4637_v52  ;;  %v6012_v22 = vrot.slane %v6010_v45, 4  ;;  %v5415_v61 = vshll.u32 %v15639_v56, 16  ;;  %v3380_v49 = vpop.permute.xlu0 %3379 }
 0x20a   : > { %4636 = vst.msk [vmem:[#allocation3 + $0x28] sm:$0xf] %vm19004_vm0, %v4345_v8  ;;  %4639 = vst [vmem:[#allocation3 + $0x2c] sm:$0x1] %v4638_v1  ;;  %v4844_v46 = vor.u32 %v4843_v32, %v15721_v62  ;;  %v4847_v11 = vshll.u32 %v15662_v5, 16  ;;  %v6008_v13 = vrot.slane %v6006_v48, 5  ;;  %v6003_v35 = vor.u32 %v6002_v10, %v5999_v21 }
 0x20b   : > { %v5388_v37 = vshrl.u32 %v15656_v58, 16  ;;  %v12154_v30 = vrot.slane %v6380_v9, 9  ;;  %v6016_v57 = vshll.u32 %v5980_v43, 16  ;;  %v3588_v14 = vsel %vm3543_vm1, %v11940_v36, %v15648_v44  ;;  %v13283_v9 = vld [vmem:[%s18930_s3] sm:$0xff]  }
 0x20c   : > { %v6448_v45 = vrot.slane %v6446_v6, 4  ;;  %v4845_v20 = vrot.slane %v4844_v46, 4  ;;  %v6013_v18 = vor.u32 %v6012_v22, %v6008_v13  ;;  %vm19005_vm11 = vcmask 64512   ;;  %12823 = vmatpush3.bf16.msra.mxu1 %v13283_v9  ;;  %v13288_v9 = vld [vmem:[%s18930_s3 + $0x50] sm:$0xff]  }
 0x20d   : > { %v3622_v5 = vsel %vm19005_vm11, %v3588_v14, %v15665_v40  ;;  %v15755_v19 = vsel %vm13737_vm10, %v12154_v30, %v6446_v6  ;;  %v6449_v52 = vrot.slane %v5980_v43, 5  ;;  %v4835_v15 = vrot.slane %v4834_v4, 4  ;;  %vm19006_vm1 = vmmov %vm19005_vm11 }
 0x20e   : > { %v15757_v38 = vld [vmem:[#allocation3 + $0x30] sm:$0xf]  ;;  %v3655_v36 = vsel %vm3625_vm8, %v3622_v5, %v15686_v12  ;;  %v4849_v51 = vrot.slane %v4847_v11, 5  ;;  %v6014_v23 = vrot.slane %v6013_v18, 4  ;;  %v6004_v17 = vrot.slane %v6003_v35, 4 }
 0x20f   : > { %v15751_v50 = vpop.permute.xlu1 %3205  ;;  %v15772_v26 = vld [vmem:[#allocation3 + $0x30] sm:$0xf]  ;;  %v6018_v53 = vrot.slane %v6016_v57, 5  ;;  %v4804_v47 = vshrl.u32 %v15747_v24, 16  ;;  %v3688_v7 = vsel %vm3658_vm9, %v3655_v36, %v15704_v3  ;;  %v15782_v12 = vsel %vm13737_vm10, %v6448_v45, %v6449_v52  ;;  %v15809_v11 = vld [vmem:[#allocation3 + $0x24] sm:$0xe] }
 0x210   : > { %v15766_v44 = vld [vmem:[#allocation3 + $0x34] sm:$0xf]  ;;  %v4850_v21 = vsel %vm13824_vm15, %v4845_v20, %v4849_v51  ;;  %v3624_v10 = vsel %vm19006_vm1, %v3591_v55, %v15707_v31  ;;  %v3721_v1 = vsel %vm3691_vm13, %v3688_v7, %v3284_v42  ;;  %v5391_v43 = vshll.u32 %v15656_v58, 16  ;;  %v15831_v51 = vld [vmem:[#allocation3 + $0x24] sm:$0xf]  ;;  %vm19029_vm1 = vmmov %vm19004_vm0 }
 0x211   : > { %v15768_v40 = vld [vmem:[#allocation3 + $0x34] sm:$0xf]  ;;  %v12221_v25 = vcombine.low %v15757_v38, %v15766_v44  ;;  %v6019_v3 = vsel %vm13824_vm15, %v6014_v23, %v6018_v53  ;;  %v4840_v31 = vsel %vm13824_vm15, %v4835_v15, %v15721_v62  ;;  %v15802_v42 = vld [vmem:[#allocation3 + $0x28] sm:$0xf]  ;;  %v4807_v32 = vshll.u32 %v15747_v24, 16 }
 0x212   : > { %v12268_v59 = vcombine.low %v15772_v26, %v15768_v40  ;;  %v4813_v48 = vshll.u32 %v15673_v33, 16  ;;  %v4817_v4 = vshrl.u32 %v15673_v33, 16  ;;  %v12188_v22 = vcombine.low %v4840_v31, %v4850_v21  ;;  %v15815_v20 = vld [vmem:[#allocation3 + $0x2c] sm:$0x1]  ;;  %v15817_v33 = vld [vmem:[#allocation3 + $0x28] sm:$0xf] }
 0x213   : > { %v3286_v8 = vpop.permute.xlu1 %3285  ;;  %6850 = vrot.lane.b32.xlu1 %v12221_v25, %s13562_s13  ;;  %v6009_v46 = vsel %vm13824_vm15, %v6004_v17, %v6008_v13  ;;  %v4806_v30 = vrot.slane %v4804_v47, 4  ;;  %v4823_v35 = vshll.u32 %v15682_v34, 16  ;;  %v3754_v62 = vsel %vm3724_vm4, %v3721_v1, %v3380_v49  ;;  %v15833_v23 = vld [vmem:[#allocation3 + $0x24] sm:$0xf]  ;;  %v13284_v25 = vld [vmem:[%s18930_s3 + $0x48] sm:$0xff]  }
 0x214   : > { %v3460_v6 = vpop.permute.xlu0 %3459  ;;  %7072 = vrot.lane.b32.xlu0 %v12268_v59, %s13561_s22  ;;  %v5460_v57 = vshrl.u32 %v15757_v38, 16  ;;  %v5463_v14 = vshll.u32 %v15757_v38, 16  ;;  %v12282_v45 = vcombine.low %v6009_v46, %v6019_v3  ;;  %v6045_v13 = vshrl.u32 %v15772_v26, 16  ;;  %v5374_v41 = vld [vmem:[#allocation3 + $0x38] sm:$0x1]  ;;  %v13285_v59 = vld [vmem:[%s18930_s3 + $0x8] sm:$0xff]   ;;  %12824 = vmatprep.subr.bf16.mxu1 %v13284_v25 }
 0x215   : > { %v6048_v24 = vshll.u32 %v15772_v26, 16  ;;  %v6453_v34 = vrot.slane %v15802_v42, 5  ;;  %v6460_v49 = vrot.slane %v15768_v40, 5  ;;  %v3657_v5 = vsel %vm3625_vm8, %v3624_v10, %v15724_v27  ;;  %v5774_v7 = vld [vmem:[#allocation3 + $0x30] sm:$0xe]  ;;  %12825 = vmatpush3.bf16.msra.mxu1 %v13285_v59  ;;  %vm19012_vm8 = vmmov %vm19004_vm0 }
 0x216   : > { %v3787_v52 = vsel %vm3757_vm5, %v3754_v62, %v3460_v6  ;;  %v12298_v55 = vcombine.low %v15755_v19, %v15782_v12  ;;  %v12155_v36 = vrot.slane %v15809_v11, 9  ;;  %v3690_v27 = vsel %vm3658_vm9, %v3657_v5, %v15751_v50  ;;  %v15850_v3 = vld [vmem:[#allocation3 + $0x34] sm:$0xf]  ;;  %v5373_v5 = vld [vmem:[#allocation3 + $0x2c] sm:$0x1]  ;;  %12826 = vmatprep.subr.bf16.mxu1 %v13288_v9 }
 0x217   : > { %v3382_v18 = vpop.permute.xlu1 %3381  ;;  %6672 = vrot.lane.b32.xlu1 %v12188_v22, %s13558_s29  ;;  %v6456_v53 = vrot.slane %v15815_v20, 5  ;;  %v12220_v47 = vcombine.low %v15831_v51, %v15817_v33  ;;  %v12267_v21 = vcombine.low %v15833_v23, %v15802_v42  ;;  %v4809_v10 = vrot.slane %v4807_v32, 5  ;;  %v15892_v0 = vld [vmem:[#allocation3 + $0x2c] sm:$0x1] }
 0x218   : > { %v3540_v15 = vpop.permute.xlu0 %3539  ;;  %7148 = vrot.lane.b32.xlu0 %v12282_v45, %s13562_s13  ;;  %v4815_v50 = vrot.slane %v4813_v48, 5  ;;  %v4819_v1 = vrot.slane %v4817_v4, 4  ;;  %v3723_v6 = vsel %vm3691_vm13, %v3690_v27, %v3286_v8  ;;  %v6455_v22 = vrot.slane %v6453_v34, 4  ;;  %v15866_v45 = vld [vmem:[#allocation3 + $0x38] sm:$0x1]  ;;  %vm19018_vm13 = vmmov %vm19004_vm0 }
 0x219   : > { %v3820_v17 = vsel %vm3790_vm14, %v3787_v52, %v3540_v15  ;;  %v15860_v46 = vrot.slane %v6460_v49, 4  ;;  %v5858_v32 = vrot.slane %v15766_v44, 5  ;;  %v3756_v48 = vsel %vm3724_vm4, %v3723_v6, %v3382_v18  ;;  %v13289_v52 = vld [vmem:[%s18930_s3 + $0x10] sm:$0xff]   ;;  %v13290_v18 = vld [vmem:[%s18930_s3 + $0x58] sm:$0xff]   ;;  %v15882_v6 = vld [vmem:[#allocation3 + $0x28] sm:$0xf] }
 0x21a   : > { %13088 = vmatprep.mubr.msk.bf16.mxu0 %vm3850_vm2, %v3820_v17  ;;  %v4810_v4 = vor.u32 %v4809_v10, %v4806_v30  ;;  %v4820_v62 = vor.u32 %v4819_v1, %v4815_v50  ;;  %v4825_v8 = vrot.slane %v4823_v35, 5  ;;  %v12141_v15 = vrot.slane %v5774_v7, 9  ;;  %v5167_v7 = vld [vmem:[#allocation3 + $0x30] sm:$0xe]  ;;  %12827 = vmatpush3.bf16.msra.mxu1 %v13289_v52  ;;  %v13291_v52 = vld [vmem:[%s18930_s3 + $0x18] sm:$0xff]   ;;  %vm19008_vm4 = vmmov %vm19004_vm0 }
 0x21b   : > { %v3462_v31 = vpop.permute.xlu1 %3461  ;;  %6848 = vrot.lane.b32.xlu1 %v12220_v47, %s13562_s13  ;;  %v5860_v25 = vrot.slane %v5858_v32, 4  ;;  %v5861_v27 = vrot.slane %v5374_v41, 5  ;;  %v5257_v44 = vrot.slane %v15850_v3, 5  ;;  %v5773_v47 = vld [vmem:[#allocation3 + $0x24] sm:$0xe]  ;;  %v5851_v59 = vrot.slane %v15817_v33, 5  ;;  %12828 = vmatprep.subr.bf16.mxu1 %v13290_v18 }
 0x21c   : > { %7070 = vrot.lane.b32.xlu0 %v12267_v21, %s13561_s22  ;;  %v3789_v30 = vsel %vm3757_vm5, %v3756_v48, %v3462_v31  ;;  %v4811_v35 = vrot.slane %v4810_v4, 4  ;;  %v4821_v17 = vrot.slane %v4820_v62, 4  ;;  %v5859_v10 = vsel %vm13737_vm10, %v12141_v15, %v5858_v32  ;;  %v15885_v48 = vld [vmem:[#allocation3 + $0x38] sm:$0x1]  ;;  %vm19011_vm5 = vmmov %vm19004_vm0 }
 0x21d   : > { %v5862_v41 = vsel %vm13737_vm10, %v5860_v25, %v5861_v27  ;;  %v5259_v1 = vrot.slane %v5257_v44, 4  ;;  %v5260_v9 = vrot.slane %v15866_v45, 5  ;;  %v12140_v15 = vrot.slane %v5773_v47, 9 }
 0x21e   : > { %v4816_v33 = vsel %vm13824_vm15, %v4811_v35, %v4815_v50  ;;  %v4826_v32 = vsel %vm13824_vm15, %v4821_v17, %v4825_v8  ;;  %v12253_v4 = vcombine.low %v5859_v10, %v5862_v41  ;;  %v5853_v25 = vrot.slane %v5851_v59, 4  ;;  %v6382_v8 = vld [vmem:[#allocation3 + $0x30] sm:$0xe]  ;;  %12829 = vmatpush3.bf16.msra.mxu1 %v13291_v52 }
 0x21f   : > { %v3542_v21 = vpop.permute.xlu1 %3541  ;;  %v12187_v62 = vcombine.low %v4816_v33, %v4826_v32  ;;  %v5854_v27 = vrot.slane %v5373_v5, 5  ;;  %v6457_v50 = vsel %vm13737_vm10, %v6455_v22, %v6456_v53  ;;  %v12126_v18 = vrot.slane %v5167_v7, 9  ;;  %v5166_v22 = vld [vmem:[#allocation3 + $0x24] sm:$0xe] }
 0x220   : > { %v3822_v31 = vsel %vm3790_vm14, %v3789_v30, %v3542_v21  ;;  %6978 = vrot.lane.b32.xlu0 %v12253_v4, %s13558_s29  ;;  %v5261_v5 = vsel %vm13737_vm10, %v5259_v1, %v5260_v9  ;;  %v5250_v30 = vrot.slane %v15882_v6, 5  ;;  %v6454_v19 = vsel %vm13737_vm10, %v12155_v36, %v6453_v34  ;;  %v4739_v9 = vld [vmem:[#allocation3 + $0x30] sm:$0xf] }
 0x221   : > { %13089 = vmatmul.mubr.msk.bf16.gmra.mrb[28].mxu0 %vm3850_vm2, %v3822_v31  ;;  %v6463_v12 = vrot.slane %v15885_v48, 5  ;;  %6670 = vrot.lane.b32.xlu1 %v12187_v62, %s13558_s29  ;;  %v5855_v53 = vsel %vm13737_vm10, %v5853_v25, %v5854_v27  ;;  %v5258_v35 = vsel %vm13737_vm10, %v12126_v18, %v5257_v44  ;;  %v5253_v47 = vrot.slane %v15892_v0, 5  ;;  %v13294_v25 = vld [vmem:[%s18930_s3 + $0x60] sm:$0xff]   ;;  %vm19007_vm2 = vmmov %vm19004_vm0 }
 0x222   : > { %13096 = vmatprep.mubr.msk.bf16.mxu0 %vm3790_vm14, %v12298_v55  ;;  %v5852_v55 = vsel %vm13737_vm10, %v12140_v15, %v5851_v59  ;;  %v5252_v11 = vrot.slane %v5250_v30, 4  ;;  %v12299_v34 = vcombine.low %v6454_v19, %v6457_v50  ;;  %v12156_v36 = vrot.slane %v6382_v8, 9  ;;  %v13295_v27 = vld [vmem:[%s18930_s3 + $0x20] sm:$0xff]   ;;  %12830 = vmatprep.subr.bf16.mxu1 %v13294_v25 }
 0x223   : > { %v12252_v17 = vcombine.low %v5852_v55, %v5855_v53  ;;  %v6464_v21 = vsel %vm13737_vm10, %v15860_v46, %v6463_v12  ;;  %v12206_v10 = vcombine.low %v5258_v35, %v5261_v5  ;;  %v12125_v59 = vrot.slane %v5166_v22, 9  ;;  %12831 = vmatpush3.bf16.msra.mxu1 %v13295_v27 }
 0x224   : > { %v5254_v41 = vsel %vm13737_vm10, %v5252_v11, %v5253_v47  ;;  %v15930_v44 = vrot.slane %v5412_v2, 4  ;;  %v15934_v7 = vrot.slane %v5415_v61, 5  ;;  %v15938_v1 = vrot.slane %v5388_v37, 4 }
 0x225   : > { %6976 = vrot.lane.b32.xlu0 %v12252_v17, %s13558_s29  ;;  %v6461_v46 = vsel %vm13737_vm10, %v12156_v36, %v6460_v49  ;;  %6756 = vrot.lane.b32.xlu1 %v12206_v10, %s13561_s22  ;;  %v15947_v2 = vrot.slane %v5391_v43, 5  ;;  %v15951_v56 = vrot.slane %v5460_v57, 4  ;;  %v5251_v37 = vsel %vm13737_vm10, %v12125_v59, %v5250_v30 }
 0x226   : > { %v12300_v61 = vcombine.low %v6461_v46, %v6464_v21  ;;  %v15957_v31 = vrot.slane %v5463_v14, 5  ;;  %v15961_v49 = vrot.slane %v6045_v13, 4  ;;  %v15965_v58 = vrot.slane %v6048_v24, 5 }
 0x227   : > { %v12205_v57 = vcombine.low %v5251_v37, %v5254_v41  ;;  %v6058_v33 = vshrl.u32 %v15768_v40, 16  ;;  %v4876_v38 = vshrl.u32 %v4739_v9, 16  ;;  %v4879_v14 = vshll.u32 %v4739_v9, 16  ;;  %v13296_v9 = vld [vmem:[%s18930_s3 + $0x68] sm:$0xff]  }
 0x228   : > { %v5436_v62 = vshrl.u32 %v15831_v51, 16  ;;  %v5439_v26 = vshll.u32 %v15831_v51, 16  ;;  %v4885_v15 = vshll.u32 %v15850_v3, 16  ;;  %v6021_v50 = vshrl.u32 %v15833_v23, 16  ;;  %12832 = vmatprep.subr.bf16.mxu1 %v13296_v9 }
 0x229   : > { %13097 = vmatmul.mubr.msk.bf16.vlgmr.msra.gmra.mrb[32].mxu0 %vm3790_vm14, %v12299_v34  ;;  %6754 = vrot.lane.b32.xlu1 %v12205_v57, %s13561_s22  ;;  %v6054_v5 = vshll.u32 %v15768_v40, 16  ;;  %v6024_v19 = vshll.u32 %v15833_v23, 16  ;;  %v4889_v55 = vshrl.u32 %v15850_v3, 16  ;;  %v15988_v35 = vrot.slane %v4876_v38, 4 }
 0x22a   : > { %v13070_v43 = vpop.f32.mrb[8].mxu0  ;;  %13100 = vmatprep.mubr.msk.bf16.mxu0 %vm3790_vm14, %v12300_v61  ;;  %v15990_v17 = vrot.slane %v4879_v14, 5  ;;  %v15992_v34 = vrot.slane %v4885_v15, 5  ;;  %v4895_v40 = vshll.u32 %v15866_v45, 16  ;;  %v6051_v46 = vor.u32 %v15965_v58, %v15961_v49  ;;  %v13297_v61 = vld [vmem:[%s18930_s3 + $0x28] sm:$0xff]  }
 0x22b   : > { %v3962_v32 = vadd.f32 %v13070_v43, %v15584_v60  ;;  %v3953_v4 = vpop.f32.mrb[9].mxu0  ;;  %v15995_v10 = vrot.slane %v6054_v5, 5  ;;  %v15997_v41 = vrot.slane %v4889_v55, 4  ;;  %v4647_v15 = vld [vmem:[#allocation3 + $0x3c] sm:$0xf]  ;;  %12833 = vmatpush3.bf16.msra.mxu1 %v13297_v61  ;;  %v6023_v49 = vrot.slane %v6021_v50, 4 }
 0x22c   : > { %v3954_v13 = vadd.f32 %v15584_v60, %v3953_v4  ;;  %v13071_v24 = vpop.f32.mrb[10].mxu0  ;;  %v13298_v55 = vld [vmem:[%s18930_s3 + $0x70] sm:$0xff]   ;;  %v6026_v58 = vrot.slane %v6024_v19, 5  ;;  %v5418_v45 = vor.u32 %v15934_v7, %v15930_v44  ;;  %vm7276_vm9 = vcmask 523264  }
 0x22d   : > { %v4058_v52 = vmax.f32 %v3962_v32, 0.0  ;;  %v3965_v8 = vadd.f32 %v13071_v24, %v15584_v60  ;;  %v3956_v18 = vpop.f32.mrb[11].mxu0  ;;  %v4654_v32 = vld [vmem:[#allocation3 + $0x48] sm:$0xf]  ;;  %12834 = vmatprep.subr.bf16.mxu1 %v13298_v55  ;;  %vm7309_vm11 = vcmask 785408  }
 0x22e   : > { %v4056_v30 = vmax.f32 %v3954_v13, 0.0  ;;  %v3957_v12 = vadd.f32 %v15584_v60, %v3956_v18  ;;  %v6060_v60 = vrot.slane %v6058_v33, 4  ;;  %v4882_v33 = vor.u32 %v15990_v17, %v15988_v35 }
 0x22f   : > { %v12709_v53 = vpack.c.bf16 %v4058_v52, %v4058_v52  ;;  %v4059_v22 = vmax.f32 %v3965_v8, 0.0  ;;  %v4861_v13 = vshll.u32 %v15882_v6, 16  ;;  %v4658_v52 = vld [vmem:[#allocation3 + $0x50] sm:$0x1] }
 0x230   : > { %v12707_v11 = vpack.c.bf16 %v4056_v30, %v4056_v30  ;;  %v4057_v47 = vmax.f32 %v3957_v12, 0.0  ;;  %v6061_v8 = vor.u32 %v6060_v60, %v15995_v10  ;;  %v4865_v12 = vshrl.u32 %v15882_v6, 16 }
 0x231   : > { %v4382_v36 = vshrl.u32 %v12709_v53, 16  ;;  %v12710_v21 = vpack.c.bf16 %v4059_v22, %v4059_v22  ;;  %v4385_v43 = vshll.u32 %v12709_v53, 16  ;;  %v13299_v53 = vld [vmem:[%s18930_s3 + $0x30] sm:$0xff]  }
 0x232   : > { %v4365_v3 = vshrl.u32 %v12707_v11, 16  ;;  %v12708_v59 = vpack.c.bf16 %v4057_v47, %v4057_v47  ;;  %v4368_v38 = vshll.u32 %v12707_v11, 16  ;;  %v4651_v47 = vld [vmem:[#allocation3 + $0x44] sm:$0x1]  ;;  %12835 = vmatpush3.bf16.msra.mxu1 %v13299_v53 }
 0x233   : > { %v4384_v37 = vrot.slane %v4382_v36, 7  ;;  %v4390_v57 = vshrl.u32 %v12710_v21, 16  ;;  %v4393_v27 = vshll.u32 %v12710_v21, 16  ;;  %v4737_v36 = vld [vmem:[#allocation3 + $0x24] sm:$0xf] }
 0x234   : > { %v4367_v4 = vrot.slane %v4365_v3, 7  ;;  %v4373_v14 = vshrl.u32 %v12708_v59, 16  ;;  %v4376_v30 = vshll.u32 %v12708_v59, 16  ;;  %v4121_v59 = vld [vmem:[#allocation3 + $0x78] sm:$0x1] }
 0x235   : > { %v4387_v24 = vor.u32 %v4385_v43, %v4384_v37  ;;  %v4392_v25 = vrot.slane %v4390_v57, 7  ;;  %v4388_v22 = vrot.slane %v4384_v37, 4  ;;  %v4892_v37 = vor.u32 %v15997_v41, %v15992_v34  ;;  %v4118_v57 = vld [vmem:[#allocation3 + $0x6c] sm:$0x1]  ;;  %v13300_v41 = vld [vmem:[%s18930_s3 + $0x78] sm:$0xff]  }
 0x236   : > { %v4370_v18 = vor.u32 %v4368_v38, %v4367_v4  ;;  %v4375_v5 = vrot.slane %v4373_v14, 7  ;;  %v4371_v21 = vrot.slane %v4367_v4, 4  ;;  %v6064_v43 = vshll.u32 %v15885_v48, 16  ;;  %v13301_v48 = vld [vmem:[%s18930_s3 + $0x38] sm:$0xff]   ;;  %12836 = vmatprep.subr.bf16.mxu1 %v13300_v41 }
 0x237   : > { %v4655_v35 = vsel %vm15603_vm7, %v4387_v24, %v4654_v32  ;;  %v4395_v17 = vor.u32 %v4393_v27, %v4392_v25  ;;  %v4397_v11 = vrot.slane %v4392_v25, 4  ;;  %v4176_v32 = vld [vmem:[#allocation3 + $0x80] sm:$0x1]  ;;  %v4852_v14 = vshrl.u32 %v4737_v36, 16  ;;  %12837 = vmatpush3.bf16.msra.mxu1 %v13301_v48 }
 0x238   : > { %4656 = vst [vmem:[#allocation3 + $0x48] sm:$0xf] %v4655_v35  ;;  %v4648_v6 = vsel %vm15603_vm7, %v4370_v18, %v4647_v15  ;;  %v4378_v60 = vor.u32 %v4376_v30, %v4375_v5  ;;  %v4380_v3 = vrot.slane %v4375_v5, 4  ;;  %v4855_v24 = vshll.u32 %v4737_v36, 16  ;;  %v4173_v15 = vld [vmem:[#allocation3 + $0x74] sm:$0x1] }
 0x239   : > { %4649 = vst [vmem:[#allocation3 + $0x3c] sm:$0xf] %v4648_v6  ;;  %v4396_v9 = vsel %vm13749_vm12, %v4388_v22, %v4395_v17  ;;  %v4659_v61 = vsel %vm15487_vm6, %v4397_v11, %v4658_v52  ;;  %v6062_v25 = vrot.slane %v6061_v8, 4  ;;  %v16041_v27 = vrot.slane %v4861_v13, 5 }
 0x23a   : > { %4657 = vst.msk [vmem:[#allocation3 + $0x4c] sm:$0xf] %vm19007_vm2, %v4396_v9  ;;  %4660 = vst [vmem:[#allocation3 + $0x50] sm:$0x1] %v4659_v61  ;;  %v4379_v4 = vsel %vm13749_vm12, %v4371_v21, %v4378_v60  ;;  %v4652_v38 = vsel %vm15487_vm6, %v4380_v3, %v4651_v47  ;;  %v4867_v52 = vrot.slane %v4865_v12, 4  ;;  %v6030_v18 = vshll.u32 %v15802_v42, 16 }
 0x23b   : > { %4650 = vst.msk [vmem:[#allocation3 + $0x40] sm:$0xf] %vm19008_vm4, %v4379_v4  ;;  %4653 = vst [vmem:[#allocation3 + $0x44] sm:$0x1] %v4652_v38  ;;  %v6034_v5 = vshrl.u32 %v15802_v42, 16  ;;  %v4122_v30 = vsel %vm15487_vm6, 0, %v4121_v59 }
 0x23c   : > { %v4119_v55 = vsel %vm15487_vm6, 0, %v4118_v57  ;;  %v4177_v53 = vsel %vm15504_vm3, 0, %v4176_v32  ;;  %v16053_v8 = vrot.slane %v5436_v62, 4  ;;  %v4883_v13 = vrot.slane %v4882_v33, 4  ;;  %4123 = vst [vmem:[#allocation3 + $0x78] sm:$0x1] %v4122_v30  ;;  %vm19030_vm2 = vmmov %vm19004_vm0 }
 0x23d   : > { %v6052_v12 = vrot.slane %v6051_v46, 4  ;;  %4120 = vst [vmem:[#allocation3 + $0x6c] sm:$0x1] %v4119_v55  ;;  %4178 = vst [vmem:[#allocation3 + $0x80] sm:$0x1] %v4177_v53  ;;  %v4174_v42 = vsel %vm15504_vm3, 0, %v4173_v15  ;;  %v4868_v47 = vor.u32 %v4867_v52, %v16041_v27 }
 0x23e   : > { %v4893_v22 = vrot.slane %v4892_v37, 4  ;;  %v6066_v35 = vrot.slane %v6064_v43, 5  ;;  %v4854_v17 = vrot.slane %v4852_v14, 4  ;;  %v4857_v11 = vrot.slane %v4855_v24, 5  ;;  %4175 = vst [vmem:[#allocation3 + $0x74] sm:$0x1] %v4174_v42  ;;  %vm19048_vm4 = vmmov %vm19004_vm0 }
 0x23f   : > { %v16062_v62 = vrot.slane %v5439_v26, 5  ;;  %v4897_v46 = vrot.slane %v4895_v40, 5  ;;  %v16073_v36 = vrot.slane %v6030_v18, 5  ;;  %v6036_v21 = vrot.slane %v6034_v5, 4  ;;  %v16075_v51 = vld [vmem:[#allocation3 + $0x48] sm:$0xf] }
 0x240   : > { %v6067_v33 = vsel %vm13824_vm15, %v6062_v25, %v6066_v35  ;;  %v6057_v23 = vsel %vm13824_vm15, %v6052_v12, %v15995_v10  ;;  %v16088_v19 = vld [vmem:[#allocation3 + $0x48] sm:$0xf]  ;;  %v4888_v40 = vsel %vm13824_vm15, %v4883_v13, %v15992_v34  ;;  %v6383_v59 = vld [vmem:[#allocation3 + $0x3c] sm:$0xe]  ;;  %v4858_v9 = vor.u32 %v4857_v11, %v4854_v17 }
 0x241   : > { %v16077_v26 = vld [vmem:[#allocation3 + $0x4c] sm:$0xf]  ;;  %v4898_v60 = vsel %vm13824_vm15, %v4893_v22, %v4897_v46  ;;  %v12284_v61 = vcombine.low %v6057_v23, %v6067_v33  ;;  %v6384_v57 = vld [vmem:[#allocation3 + $0x48] sm:$0xe]  ;;  %v4871_v32 = vshll.u32 %v15892_v0, 16  ;;  %v4869_v38 = vrot.slane %v4868_v47, 4 }
 0x242   : > { %v16079_v6 = vld [vmem:[#allocation3 + $0x4c] sm:$0xf]  ;;  %v12270_v50 = vcombine.low %v16075_v51, %v16077_v26  ;;  %v16095_v3 = vld [vmem:[#allocation3 + $0x40] sm:$0xf]  ;;  %v16099_v37 = vld [vmem:[#allocation3 + $0x44] sm:$0x1]  ;;  %v6027_v14 = vor.u32 %v6026_v58, %v6023_v49  ;;  %v6037_v25 = vor.u32 %v6036_v21, %v16073_v36  ;;  %v12190_v30 = vcombine.low %v4888_v40, %v4898_v60 }
 0x243   : > { %v12223_v10 = vcombine.low %v16088_v19, %v16079_v6  ;;  %v6467_v43 = vrot.slane %v16095_v3, 5  ;;  %v16104_v34 = vld [vmem:[#allocation3 + $0x50] sm:$0x1]  ;;  %v6474_v4 = vrot.slane %v16077_v26, 5  ;;  %v6040_v24 = vshll.u32 %v15815_v20, 16 }
 0x244   : > { %7076 = vrot.lane.b32.xlu0 %v12270_v50, %s13561_s22  ;;  %v12157_v15 = vrot.slane %v6383_v59, 9  ;;  %v6470_v48 = vrot.slane %v16099_v37, 5  ;;  %v12158_v52 = vrot.slane %v6384_v57, 9  ;;  %v6477_v18 = vrot.slane %v16104_v34, 5  ;;  %v16116_v13 = vld [vmem:[#allocation3 + $0x4c] sm:$0xf] }
 0x245   : > { %6854 = vrot.lane.b32.xlu1 %v12223_v10, %s13562_s13  ;;  %v6469_v41 = vrot.slane %v6467_v43, 4  ;;  %v6476_v0 = vrot.slane %v6474_v4, 4  ;;  %v4859_v5 = vrot.slane %v4858_v9, 4  ;;  %v4873_v53 = vrot.slane %v4871_v32, 5  ;;  %v16123_v35 = vld [vmem:[#allocation3 + $0x40] sm:$0xf] }
 0x246   : > { %v6468_v55 = vsel %vm13737_vm10, %v12157_v15, %v6467_v43  ;;  %v6475_v42 = vsel %vm13737_vm10, %v12158_v52, %v6474_v4  ;;  %v6028_v17 = vrot.slane %v6027_v14, 4  ;;  %v16126_v49 = vld [vmem:[#allocation3 + $0x3c] sm:$0xf]  ;;  %v6038_v33 = vrot.slane %v6037_v25, 4  ;;  %v5376_v60 = vld [vmem:[#allocation3 + $0x50] sm:$0x1] }
 0x247   : > { %v6471_v20 = vsel %vm13737_vm10, %v6469_v41, %v6470_v48  ;;  %v6478_v22 = vsel %vm13737_vm10, %v6476_v0, %v6477_v18  ;;  %v16128_v58 = vld [vmem:[#allocation3 + $0x3c] sm:$0xf]  ;;  %v4874_v46 = vsel %vm13824_vm15, %v4869_v38, %v4873_v53  ;;  %v6042_v47 = vrot.slane %v6040_v24, 5  ;;  %v16140_v59 = vld [vmem:[#allocation3 + $0x40] sm:$0xf] }
 0x248   : > { %7152 = vrot.lane.b32.xlu0 %v12284_v61, %s13562_s13  ;;  %v12301_v12 = vcombine.low %v6468_v55, %v6471_v20  ;;  %v12302_v11 = vcombine.low %v6475_v42, %v6478_v22  ;;  %v6093_v21 = vshrl.u32 %v16075_v51, 16  ;;  %v12269_v23 = vcombine.low %v16128_v58, %v16095_v3  ;;  %v16148_v43 = vld [vmem:[#allocation3 + $0x50] sm:$0x1]  ;;  %v5776_v4 = vld [vmem:[#allocation3 + $0x48] sm:$0xe] }
 0x249   : > { %6676 = vrot.lane.b32.xlu1 %v12190_v30, %s13558_s29  ;;  %v4864_v50 = vsel %vm13824_vm15, %v4859_v5, %v16041_v27  ;;  %v5271_v40 = vrot.slane %v16116_v13, 5  ;;  %v6096_v9 = vshll.u32 %v16075_v51, 16  ;;  %v12222_v10 = vcombine.low %v16126_v49, %v16123_v35  ;;  %v13405_v38 = vld [vmem:[#allocation3 + $0x4] sm:$0xf]  ;;  %v13406_v14 = vld [vmem:[#allocation3] sm:$0xf] }
 0x24a   : > { %13101 = vmatmul.mubr.msk.bf16.gmra.mrb[36].mxu0 %vm3790_vm14, %v12301_v12  ;;  %v6043_v61 = vsel %vm13824_vm15, %v6038_v33, %v6042_v47  ;;  %v5872_v57 = vrot.slane %v16079_v6, 5  ;;  %v12189_v27 = vcombine.low %v4864_v50, %v4874_v46  ;;  %v6033_v32 = vsel %vm13824_vm15, %v6028_v17, %v16073_v36  ;;  %v5169_v15 = vld [vmem:[#allocation3 + $0x48] sm:$0xe]  ;;  %v5375_v0 = vld [vmem:[#allocation3 + $0x44] sm:$0x1] }
 0x24b   : > { %13104 = vmatprep.mubr.msk.bf16.mxu0 %vm3790_vm14, %v12302_v11  ;;  %v5273_v51 = vrot.slane %v5271_v40, 4  ;;  %v12170_v24 = vcombine.low %v13406_v14, %v13405_v38  ;;  %v5875_v48 = vrot.slane %v5376_v60, 5  ;;  %v5264_v25 = vrot.slane %v16140_v59, 5  ;;  %v16164_v5 = vld [vmem:[#allocation3 + $0x1c] sm:$0xf] }
 0x24c   : > { %7074 = vrot.lane.b32.xlu0 %v12269_v23, %s13561_s22  ;;  %v5874_v41 = vrot.slane %v5872_v57, 4  ;;  %v16160_v6 = vrot.slane %v5418_v45, 4  ;;  %v12283_v52 = vcombine.low %v6033_v32, %v6043_v61  ;;  %v5274_v36 = vrot.slane %v16148_v43, 5  ;;  %v16169_v42 = vld [vmem:[#allocation3 + $0x44] sm:$0x1] }
 0x24d   : > { %6852 = vrot.lane.b32.xlu1 %v12222_v10, %s13562_s13  ;;  %v5865_v18 = vrot.slane %v16123_v35, 5  ;;  %v5421_v30 = vshll.u32 %v16164_v5, 16  ;;  %v6095_v55 = vrot.slane %v6093_v21, 4  ;;  %v6098_v20 = vrot.slane %v6096_v9, 5  ;;  %v5775_v22 = vld [vmem:[#allocation3 + $0x3c] sm:$0xe] }
 0x24e   : > { %v12143_v53 = vrot.slane %v5776_v4, 9  ;;  %v5876_v12 = vsel %vm13737_vm10, %v5874_v41, %v5875_v48  ;;  %v12128_v44 = vrot.slane %v5169_v15, 9  ;;  %v5275_v7 = vsel %vm13737_vm10, %v5273_v51, %v5274_v36  ;;  %v5168_v33 = vld [vmem:[#allocation3 + $0x3c] sm:$0xe]  ;;  %v4743_v9 = vld [vmem:[#allocation3 + $0x48] sm:$0xf]  ;;  %v6669_v51 = vpop.permute.xlu1 %6668 }
 0x24f   : > { %v5266_v45 = vrot.slane %v5264_v25, 4  ;;  %v5867_v35 = vrot.slane %v5865_v18, 4  ;;  %v6106_v17 = vshrl.u32 %v16077_v26, 16  ;;  %v6069_v11 = vshrl.u32 %v16128_v58, 16 }
 0x250   : > { %7150 = vrot.lane.b32.xlu0 %v12283_v52, %s13562_s13  ;;  %v5873_v46 = vsel %vm13737_vm10, %v12143_v53, %v5872_v57  ;;  %v5868_v47 = vrot.slane %v5375_v0, 5  ;;  %v6072_v21 = vshll.u32 %v16128_v58, 16  ;;  %v5272_v23 = vsel %vm13737_vm10, %v12128_v44, %v5271_v40  ;;  %v4741_v44 = vld [vmem:[#allocation3 + $0x3c] sm:$0xf] }
 0x251   : > { %6674 = vrot.lane.b32.xlu1 %v12189_v27, %s13558_s29  ;;  %v12255_v50 = vcombine.low %v5873_v46, %v5876_v12  ;;  %v5267_v60 = vrot.slane %v16169_v42, 5  ;;  %v12208_v10 = vcombine.low %v5272_v23, %v5275_v7  ;;  %v12142_v61 = vrot.slane %v5775_v22, 9 }
 0x252   : > { %v5869_v32 = vsel %vm13737_vm10, %v5867_v35, %v5868_v47  ;;  %v6102_v27 = vshll.u32 %v16077_v26, 16  ;;  %v5508_v57 = vshrl.u32 %v16088_v19, 16  ;;  %v12127_v58 = vrot.slane %v5168_v33, 9 }
 0x253   : > { %v5268_v40 = vsel %vm13737_vm10, %v5266_v45, %v5267_v60  ;;  %v16191_v4 = vsel %vm3790_vm14, %v12170_v24, %v6669_v51  ;;  %v5511_v38 = vshll.u32 %v16088_v19, 16  ;;  %v5866_v14 = vsel %vm13737_vm10, %v12142_v61, %v5865_v18 }
 0x254   : > { %6982 = vrot.lane.b32.xlu0 %v12255_v50, %s13558_s29  ;;  %v4924_v26 = vshrl.u32 %v4743_v9, 16  ;;  %v4927_v15 = vshll.u32 %v4743_v9, 16  ;;  %v16197_v41 = vrot.slane %v6069_v11, 4  ;;  %v5265_v48 = vsel %vm13737_vm10, %v12127_v58, %v5264_v25 }
 0x255   : > { %6760 = vrot.lane.b32.xlu1 %v12208_v10, %s13561_s22  ;;  %v12254_v52 = vcombine.low %v5866_v14, %v5869_v32  ;;  %v6099_v36 = vor.u32 %v6098_v20, %v6095_v55  ;;  %v16201_v0 = vrot.slane %v6072_v21, 5  ;;  %v12207_v24 = vcombine.low %v5265_v48, %v5268_v40 }
 0x256   : > { %v16203_v53 = vrot.slane %v6102_v27, 5  ;;  %v6108_v19 = vrot.slane %v6106_v17, 4  ;;  %v16205_v12 = vrot.slane %v5508_v57, 4  ;;  %v6112_v18 = vshll.u32 %v16104_v34, 16  ;;  %v4672_v34 = vld [vmem:[#allocation3 + $0x68] sm:$0x1] }
 0x257   : > { %v4926_v55 = vrot.slane %v4924_v26, 4  ;;  %v4929_v20 = vrot.slane %v4927_v15, 5  ;;  %v4933_v45 = vshll.u32 %v16116_v13, 16  ;;  %v4937_v22 = vshrl.u32 %v16116_v13, 16  ;;  %v16229_v13 = vld [vmem:[%s18929_s2] ss:$0 sm:$0xff] }
 0x258   : > { %19009 = vst [vmem:[#allocation9_spill] sm:$0xff] %v16205_v12  ;;  %6980 = vrot.lane.b32.xlu0 %v12254_v52, %s13558_s29  ;;  %v16216_v35 = vrot.slane %v5511_v38, 5  ;;  %v5484_v17 = vshrl.u32 %v16126_v49, 16  ;;  %v4943_v11 = vshll.u32 %v16148_v43, 16  ;;  %v16221_v33 = vrot.slane %v6099_v36, 4 }
 0x259   : > { %6758 = vrot.lane.b32.xlu1 %v12207_v24, %s13561_s22  ;;  %v6109_v47 = vor.u32 %v6108_v19, %v16203_v53  ;;  %v4900_v21 = vshrl.u32 %v4741_v44, 16  ;;  %v16232_v9 = vrot.slane %v6112_v18, 5  ;;  %v4909_v43 = vshll.u32 %v16140_v59, 16 }
 0x25a   : > { %19010 = vst [vmem:[#allocation10_spill] sm:$0xff] %v16216_v35  ;;  %v13074_v46 = vpop.f32.mrb[12].mxu0  ;;  %v4913_v10 = vshrl.u32 %v16140_v59, 16  ;;  %v4930_v27 = vor.u32 %v4929_v20, %v4926_v55  ;;  %v16237_v51 = vrot.slane %v4933_v45, 5  ;;  %v4939_v57 = vrot.slane %v4937_v22, 4 }
 0x25b   : > { %v3978_v50 = vadd.f32 %v16229_v13, %v13074_v46  ;;  %v3969_v60 = vpop.f32.mrb[13].mxu0  ;;  %v16240_v14 = vrot.slane %v4943_v11, 5  ;;  %v4903_v26 = vshll.u32 %v4741_v44, 16  ;;  %v16243_v52 = vrot.slane %v6109_v47, 4 }
 0x25c   : > { %v3970_v61 = vadd.f32 %v16229_v13, %v3969_v60  ;;  %v13075_v32 = vpop.f32.mrb[14].mxu0  ;;  %v16245_v59 = vrot.slane %v4900_v21, 4  ;;  %v16247_v19 = vrot.slane %v4909_v43, 5  ;;  %v4915_v18 = vrot.slane %v4913_v10, 4 }
 0x25d   : > { %v4062_v58 = vmax.f32 %v3978_v50, 0.0  ;;  %v3981_v40 = vadd.f32 %v16229_v13, %v13075_v32  ;;  %v3972_v38 = vpop.f32.mrb[15].mxu0  ;;  %v16249_v45 = vrot.slane %v4930_v27, 4  ;;  %v6078_v22 = vshll.u32 %v16095_v3, 16  ;;  %v4668_v27 = vld [vmem:[#allocation3 + $0x60] sm:$0xf] }
 0x25e   : > { %v4060_v15 = vmax.f32 %v3970_v61, 0.0  ;;  %v3973_v48 = vadd.f32 %v16229_v13, %v3972_v38  ;;  %v4940_v46 = vor.u32 %v4939_v57, %v16237_v51  ;;  %v6082_v47 = vshrl.u32 %v16095_v3, 16  ;;  %v4661_v57 = vld [vmem:[#allocation3 + $0x54] sm:$0xf] }
 0x25f   : > { %v12713_v36 = vpack.c.bf16 %v4062_v58, %v4062_v58  ;;  %v4063_v24 = vmax.f32 %v3981_v40, 0.0  ;;  %v4905_v60 = vrot.slane %v4903_v26, 5  ;;  %v4919_v61 = vshll.u32 %v16169_v42, 16 }
 0x260   : > { %v12711_v55 = vpack.c.bf16 %v4060_v15, %v4060_v15  ;;  %v4061_v20 = vmax.f32 %v3973_v48, 0.0  ;;  %v4916_v58 = vor.u32 %v4915_v18, %v16247_v19  ;;  %v16256_v48 = vrot.slane %v6078_v22, 5 }
 0x261   : > { %v4416_v11 = vshrl.u32 %v12713_v36, 16  ;;  %v12714_v44 = vpack.c.bf16 %v4063_v24, %v4063_v24  ;;  %v4419_v32 = vshll.u32 %v12713_v36, 16  ;;  %v6084_v7 = vrot.slane %v6082_v47, 4 }
 0x262   : > { %v4399_v50 = vshrl.u32 %v12711_v55, 16  ;;  %v12712_v21 = vpack.c.bf16 %v4061_v20, %v4061_v20  ;;  %v4402_v38 = vshll.u32 %v12711_v55, 16  ;;  %v5425_v55 = vshrl.u32 %v16164_v5, 16 }
 0x263   : > { %v4418_v43 = vrot.slane %v4416_v11, 7  ;;  %v4424_v10 = vshrl.u32 %v12714_v44, 16  ;;  %v4427_v3 = vshll.u32 %v12714_v44, 16  ;;  %v16290_v5 = vrot.slane %v5484_v17, 4 }
 0x264   : > { %v4401_v40 = vrot.slane %v4399_v50, 7  ;;  %v4407_v15 = vshrl.u32 %v12712_v21, 16  ;;  %v4410_v11 = vshll.u32 %v12712_v21, 16  ;;  %v4665_v50 = vld [vmem:[#allocation3 + $0x5c] sm:$0x1]  ;;  %v6115_v17 = vsel %vm13824_vm15, %v16243_v52, %v16232_v9 }
 0x265   : > { %v4421_v24 = vor.u32 %v4419_v32, %v4418_v43  ;;  %v4426_v25 = vrot.slane %v4424_v10, 7  ;;  %v4422_v20 = vrot.slane %v4418_v43, 4  ;;  %v4127_v43 = vld [vmem:[#allocation3 + $0x90] sm:$0x1]  ;;  %v4124_v10 = vld [vmem:[#allocation3 + $0x84] sm:$0x1] }
 0x266   : > { %v4404_v26 = vor.u32 %v4402_v38, %v4401_v40  ;;  %v4409_v42 = vrot.slane %v4407_v15, 7  ;;  %v4405_v22 = vrot.slane %v4401_v40, 4  ;;  %v4906_v38 = vor.u32 %v4905_v60, %v16245_v59  ;;  %v4182_v15 = vld [vmem:[#allocation3 + $0x98] sm:$0x1]  ;;  %19013 = vst [vmem:[#allocation11_spill] sm:$0xff] %v16290_v5 }
 0x267   : > { %v4669_v36 = vsel %vm15603_vm7, %v4421_v24, %v4668_v27  ;;  %v4429_v18 = vor.u32 %v4427_v3, %v4426_v25  ;;  %v4431_v23 = vrot.slane %v4426_v25, 4  ;;  %v4941_v25 = vrot.slane %v4940_v46, 4  ;;  %v4179_v24 = vld [vmem:[#allocation3 + $0x8c] sm:$0x1]  ;;  %v13410_v9 = vld [vmem:[#allocation3 + $0x10] sm:$0xf] }
 0x268   : > { %4670 = vst [vmem:[#allocation3 + $0x60] sm:$0xf] %v4669_v36  ;;  %v4662_v32 = vsel %vm15603_vm7, %v4404_v26, %v4661_v57  ;;  %v4412_v44 = vor.u32 %v4410_v11, %v4409_v42  ;;  %v4414_v47 = vrot.slane %v4409_v42, 4  ;;  %v4917_v3 = vrot.slane %v4916_v58, 4  ;;  %v13409_v26 = vld [vmem:[#allocation3 + $0x20] sm:$0x1] }
 0x269   : > { %4663 = vst [vmem:[#allocation3 + $0x54] sm:$0xf] %v4662_v32  ;;  %v4430_v21 = vsel %vm13749_vm12, %v4422_v20, %v4429_v18  ;;  %v4673_v27 = vsel %vm15487_vm6, %v4431_v23, %v4672_v34  ;;  %v6088_v20 = vshll.u32 %v16099_v37, 16  ;;  %v6085_v34 = vor.u32 %v6084_v7, %v16256_v48 }
 0x26a   : > { %4671 = vst.msk [vmem:[#allocation3 + $0x64] sm:$0xf] %vm19011_vm5, %v4430_v21  ;;  %4674 = vst [vmem:[#allocation3 + $0x68] sm:$0x1] %v4673_v27  ;;  %v4413_v40 = vsel %vm13749_vm12, %v4405_v22, %v4412_v44  ;;  %v4666_v57 = vsel %vm15487_vm6, %v4414_v47, %v4665_v50  ;;  %v16278_v23 = vrot.slane %v5421_v30, 5  ;;  %v4128_v59 = vsel %vm15487_vm6, 0, %v4127_v43 }
 0x26b   : > { %4664 = vst.msk [vmem:[#allocation3 + $0x58] sm:$0xf] %vm19012_vm8, %v4413_v40  ;;  %4667 = vst [vmem:[#allocation3 + $0x5c] sm:$0x1] %v4666_v57  ;;  %v4125_v46 = vsel %vm15487_vm6, 0, %v4124_v10  ;;  %v5427_v60 = vrot.slane %v5425_v55, 4  ;;  %v19014_v11 = vor.u32 %v16201_v0, %v16197_v41  ;;  %v6105_v55 = vsel %vm13824_vm15, %v16221_v33, %v16203_v53 }
 0x26c   : > { %v5431_v58 = vshll.u32 %v13409_v26, 16  ;;  %4129 = vst [vmem:[#allocation3 + $0x90] sm:$0x1] %v4128_v59  ;;  %4126 = vst [vmem:[#allocation3 + $0x84] sm:$0x1] %v4125_v46  ;;  %v4183_v37 = vsel %vm15504_vm3, 0, %v4182_v15  ;;  %v4946_v41 = vsel %vm13824_vm15, %v4941_v25, %v16240_v14  ;;  %v12286_v10 = vcombine.low %v6105_v55, %v6115_v17 }
 0x26d   : > { %v4180_v7 = vsel %vm15504_vm3, 0, %v4179_v24  ;;  %v4907_v30 = vrot.slane %v4906_v38, 4  ;;  %v4921_v42 = vrot.slane %v4919_v61, 5  ;;  %v6076_v36 = vrot.slane %v19014_v11, 4  ;;  %4184 = vst [vmem:[#allocation3 + $0x98] sm:$0x1] %v4183_v37  ;;  %vm19049_vm5 = vmmov %vm19004_vm0 }
 0x26e   : > { %4181 = vst [vmem:[#allocation3 + $0x8c] sm:$0x1] %v4180_v7  ;;  %v19015_v18 = vshll.u32 %v16126_v49, 16  ;;  %v4936_v49 = vsel %vm13824_vm15, %v16249_v45, %v16237_v51  ;;  %v6086_v22 = vrot.slane %v6085_v34, 4  ;;  %v6090_v53 = vrot.slane %v6088_v20, 5  ;;  %vm19076_vm8 = vmmov %vm19004_vm0 }
 0x26f   : > { %v5960_v0 = vld [vmem:[#allocation3 + $0x60] sm:$0xf]  ;;  %v4922_v61 = vsel %vm13824_vm15, %v4917_v3, %v4921_v42  ;;  %v5428_v33 = vor.u32 %v5427_v60, %v16278_v23  ;;  %v16317_v32 = vrot.slane %v5431_v58, 5  ;;  %v5397_v52 = vshll.u32 %v13410_v9, 16  ;;  %v16356_v26 = vld [vmem:[#allocation3 + $0x14] sm:$0x1] }
 0x270   : > { %v16297_v50 = vrot.slane %v19015_v18, 5  ;;  %v5401_v44 = vshrl.u32 %v13410_v9, 16  ;;  %v16321_v14 = vld [vmem:[#allocation3 + $0x60] sm:$0xf]  ;;  %v12192_v51 = vcombine.low %v4936_v49, %v4946_v41  ;;  %v4912_v45 = vsel %vm13824_vm15, %v4907_v30, %v16247_v19  ;;  %v6385_v15 = vld [vmem:[#allocation3 + $0x54] sm:$0xe] }
 0x271   : > { %v16319_v47 = vld [vmem:[#allocation3 + $0x64] sm:$0xf]  ;;  %v6081_v21 = vsel %vm13824_vm15, %v6076_v36, %v16256_v48  ;;  %v6141_v27 = vshrl.u32 %v5960_v0, 16  ;;  %v16334_v24 = vcombine.low %v4912_v45, %v4922_v61  ;;  %v19017_v40 = vor.u32 %v15947_v2, %v15938_v1  ;;  %v6386_v34 = vld [vmem:[#allocation3 + $0x60] sm:$0xe] }
 0x272   : > { %19016 = vst [vmem:[#allocation12_spill] sm:$0xff] %v16297_v50  ;;  %v16323_v43 = vld [vmem:[#allocation3 + $0x64] sm:$0xf]  ;;  %v12272_v25 = vcombine.low %v5960_v0, %v16319_v47  ;;  %v16332_v38 = vld [vmem:[#allocation3 + $0x58] sm:$0xf]  ;;  %v6144_v3 = vshll.u32 %v5960_v0, 16  ;;  %v6091_v59 = vsel %vm13824_vm15, %v6086_v22, %v6090_v53 }
 0x273   : > { %v16339_v57 = vrot.slane %v19017_v40, 4  ;;  %v12225_v19 = vcombine.low %v16321_v14, %v16323_v43  ;;  %v16343_v20 = vld [vmem:[#allocation3 + $0x5c] sm:$0x1]  ;;  %v6481_v48 = vrot.slane %v16332_v38, 5  ;;  %v16349_v46 = vld [vmem:[#allocation3 + $0x68] sm:$0x1]  ;;  %v12285_v53 = vcombine.low %v6081_v21, %v6091_v59 }
 0x274   : > { %7080 = vrot.lane.b32.xlu0 %v12272_v25, %s13561_s22  ;;  %v6488_v1 = vrot.slane %v16319_v47, 5  ;;  %v16352_v2 = vrot.slane %v5428_v33, 4  ;;  %v16354_v60 = vrot.slane %v5397_v52, 5  ;;  %v12159_v37 = vrot.slane %v6385_v15, 9  ;;  %v16372_v61 = vld [vmem:[#allocation3 + $0x54] sm:$0xf] }
 0x275   : > { %6858 = vrot.lane.b32.xlu1 %v12225_v19, %s13562_s13  ;;  %v6483_v7 = vrot.slane %v6481_v48, 4  ;;  %v6484_v30 = vrot.slane %v16343_v20, 5  ;;  %v16361_v42 = vrot.slane %v5401_v44, 4  ;;  %v16363_v11 = vrot.slane %v6141_v27, 4  ;;  %v16374_v22 = vld [vmem:[#allocation3 + $0x58] sm:$0xf] }
 0x276   : > { %v12160_v36 = vrot.slane %v6386_v34, 9  ;;  %v6490_v18 = vrot.slane %v6488_v1, 4  ;;  %v6491_v55 = vrot.slane %v16349_v46, 5  ;;  %v16366_v17 = vrot.slane %v6144_v3, 5  ;;  %v16382_v27 = vld [vmem:[#allocation3 + $0x64] sm:$0xf] }
 0x277   : > { %v13078_v41 = vpop.f32.mrb[16].mxu0  ;;  %v6482_v0 = vsel %vm13737_vm10, %v12159_v37, %v6481_v48  ;;  %v6485_v49 = vsel %vm13737_vm10, %v6483_v7, %v6484_v30  ;;  %v5171_v25 = vld [vmem:[#allocation3 + $0x60] sm:$0xe]  ;;  %v16387_v40 = vld [vmem:[#allocation3 + $0x54] sm:$0xf]  ;;  %v12271_v59 = vcombine.low %v16372_v61, %v16332_v38 }
 0x278   : > { %7156 = vrot.lane.b32.xlu0 %v12286_v10, %s13562_s13  ;;  %v3994_v33 = vadd.f32 %v16229_v13, %v13078_v41  ;;  %v12303_v9 = vcombine.low %v6482_v0, %v6485_v49  ;;  %v3985_v52 = vpop.f32.mrb[17].mxu0  ;;  %v6489_v44 = vsel %vm13737_vm10, %v12160_v36, %v6488_v1  ;;  %v6492_v45 = vsel %vm13737_vm10, %v6490_v18, %v6491_v55  ;;  %v16389_v19 = vld [vmem:[#allocation3 + $0x68] sm:$0x1]  ;;  %v5778_v7 = vld [vmem:[#allocation3 + $0x60] sm:$0xe] }
 0x279   : > { %6680 = vrot.lane.b32.xlu1 %v12192_v51, %s13558_s29  ;;  %v3986_v21 = vadd.f32 %v16229_v13, %v3985_v52  ;;  %v12304_v10 = vcombine.low %v6489_v44, %v6492_v45  ;;  %v13079_v3 = vpop.f32.mrb[18].mxu0  ;;  %v12224_v51 = vcombine.low %v16387_v40, %v16374_v22  ;;  %v12130_v18 = vrot.slane %v5171_v25, 9 }
 0x27a   : > { %v4066_v34 = vmax.f32 %v3994_v33, 0.0  ;;  %13105 = vmatmul.mubr.msk.bf16.gmra.mrb[40].mxu0 %vm3790_vm14, %v12303_v9  ;;  %v3997_v1 = vadd.f32 %v16229_v13, %v13079_v3  ;;  %v3988_v37 = vpop.f32.mrb[19].mxu0  ;;  %v5285_v55 = vrot.slane %v16382_v27, 5  ;;  %v5288_v49 = vrot.slane %v16389_v19, 5 }
 0x27b   : > { %v4064_v30 = vmax.f32 %v3986_v21, 0.0  ;;  %13108 = vmatprep.mubr.msk.bf16.mxu0 %vm3790_vm14, %v12304_v10  ;;  %v3989_v36 = vadd.f32 %v16229_v13, %v3988_v37  ;;  %v5886_v33 = vrot.slane %v16323_v43, 5  ;;  %v12145_v45 = vrot.slane %v5778_v7, 9 }
 0x27c   : > { %v12717_v41 = vpack.c.bf16 %v4066_v34, %v4066_v34  ;;  %7078 = vrot.lane.b32.xlu0 %v12271_v59, %s13561_s22  ;;  %v4067_v0 = vmax.f32 %v3997_v1, 0.0  ;;  %v5287_v44 = vrot.slane %v5285_v55, 4  ;;  %v5286_v25 = vsel %vm13737_vm10, %v12130_v18, %v5285_v55  ;;  %v5378_v1 = vld [vmem:[#allocation3 + $0x68] sm:$0x1] }
 0x27d   : > { %v12715_v9 = vpack.c.bf16 %v4064_v30, %v4064_v30  ;;  %6856 = vrot.lane.b32.xlu1 %v12224_v51, %s13562_s13  ;;  %v4065_v52 = vmax.f32 %v3989_v36, 0.0  ;;  %v5887_v43 = vsel %vm13737_vm10, %v12145_v45, %v5886_v33  ;;  %v4682_v51 = vld [vmem:[#allocation3 + $0x78] sm:$0xf]  ;;  %v5888_v55 = vrot.slane %v5886_v33, 4 }
 0x27e   : > { %v4450_v21 = vshrl.u32 %v12717_v41, 16  ;;  %v4453_v10 = vshll.u32 %v12717_v41, 16  ;;  %v12718_v3 = vpack.c.bf16 %v4067_v0, %v4067_v0  ;;  %v5289_v59 = vsel %vm13737_vm10, %v5287_v44, %v5288_v49  ;;  %v4675_v0 = vld [vmem:[#allocation3 + $0x6c] sm:$0xf]  ;;  %v4686_v44 = vld [vmem:[#allocation3 + $0x80] sm:$0x1] }
 0x27f   : > { %v4433_v34 = vshrl.u32 %v12715_v9, 16  ;;  %v12716_v37 = vpack.c.bf16 %v4065_v52, %v4065_v52  ;;  %v4436_v36 = vshll.u32 %v12715_v9, 16  ;;  %v12210_v18 = vcombine.low %v5286_v25, %v5289_v59  ;;  %v5170_v59 = vld [vmem:[#allocation3 + $0x54] sm:$0xe] }
 0x280   : > { %v4452_v30 = vrot.slane %v4450_v21, 7  ;;  %v4458_v48 = vshrl.u32 %v12718_v3, 16  ;;  %v4461_v7 = vshll.u32 %v12718_v3, 16  ;;  %7154 = vrot.lane.b32.xlu0 %v12285_v53, %s13562_s13  ;;  %v5889_v45 = vrot.slane %v5378_v1, 5  ;;  %v16415_v3 = vld [vmem:[#allocation3 + $0x58] sm:$0xf] }
 0x281   : > { %v4435_v41 = vrot.slane %v4433_v34, 7  ;;  %v4441_v15 = vshrl.u32 %v12716_v37, 16  ;;  %6678 = vrot.lane.b32.xlu1 %v16334_v24, %s13558_s29  ;;  %v4444_v58 = vshll.u32 %v12716_v37, 16  ;;  %v4679_v24 = vld [vmem:[#allocation3 + $0x74] sm:$0x1] }
 0x282   : > { %v4455_v49 = vor.u32 %v4453_v10, %v4452_v30  ;;  %v4460_v52 = vrot.slane %v4458_v48, 7  ;;  %v4456_v21 = vrot.slane %v4452_v30, 4  ;;  %v5890_v33 = vsel %vm13737_vm10, %v5888_v55, %v5889_v45  ;;  %v16424_v37 = vld [vmem:[#allocation3 + $0x5c] sm:$0x1] }
 0x283   : > { %v4438_v16 = vor.u32 %v4436_v36, %v4435_v41  ;;  %v4439_v9 = vrot.slane %v4435_v41, 4  ;;  %v4443_v50 = vrot.slane %v4441_v15, 7  ;;  %v12257_v15 = vcombine.low %v5887_v43, %v5890_v33  ;;  %v5377_v36 = vld [vmem:[#allocation3 + $0x5c] sm:$0x1] }
 0x284   : > { %v4683_v53 = vsel %vm15603_vm7, %v4455_v49, %v4682_v51  ;;  %v4463_v34 = vor.u32 %v4461_v7, %v4460_v52  ;;  %v4465_v5 = vrot.slane %v4460_v52, 4  ;;  %v5278_v51 = vrot.slane %v16415_v3, 5  ;;  %v5777_v7 = vld [vmem:[#allocation3 + $0x54] sm:$0xe] }
 0x285   : > { %4684 = vst [vmem:[#allocation3 + $0x78] sm:$0xf] %v4683_v53  ;;  %v4676_v48 = vsel %vm15603_vm7, %v4438_v16, %v4675_v0  ;;  %v4446_v10 = vor.u32 %v4444_v58, %v4443_v50  ;;  %v4448_v25 = vrot.slane %v4443_v50, 4  ;;  %6764 = vrot.lane.b32.xlu1 %v12210_v18, %s13561_s22  ;;  %v6147_v16 = vor.u32 %v16366_v17, %v16363_v11 }
 0x286   : > { %4677 = vst [vmem:[#allocation3 + $0x6c] sm:$0xf] %v4676_v48  ;;  %v4464_v1 = vsel %vm13749_vm12, %v4456_v21, %v4463_v34  ;;  %v4687_v30 = vsel %vm15487_vm6, %v4465_v5, %v4686_v44  ;;  %v6117_v50 = vshrl.u32 %v16372_v61, 16  ;;  %6986 = vrot.lane.b32.xlu0 %v12257_v15, %s13558_s29  ;;  %v5879_v5 = vrot.slane %v16374_v22, 5  ;;  %v4747_v44 = vld [vmem:[#allocation3 + $0x60] sm:$0xf]  ;;  %v6749_v34 = vpop.permute.xlu1 %6748 }
 0x287   : > { %4685 = vst.msk [vmem:[#allocation3 + $0x7c] sm:$0xf] %vm19018_vm13, %v4464_v1  ;;  %4688 = vst [vmem:[#allocation3 + $0x80] sm:$0x1] %v4687_v30  ;;  %v4447_v58 = vsel %vm13749_vm12, %v4439_v9, %v4446_v10  ;;  %v4680_v43 = vsel %vm15487_vm6, %v4448_v25, %v4679_v24  ;;  %v6120_v41 = vshll.u32 %v16372_v61, 16  ;;  %v12129_v11 = vrot.slane %v5170_v59, 9 }
 0x288   : > { %4678 = vst.msk [vmem:[#allocation3 + $0x70] sm:$0xf] %vm19004_vm0, %v4447_v58  ;;  %4681 = vst [vmem:[#allocation3 + $0x74] sm:$0x1] %v4680_v43  ;;  %v5280_v17 = vrot.slane %v5278_v51, 4  ;;  %v5281_v0 = vrot.slane %v16424_v37, 5 }
 0x289   : > { %v12144_v18 = vrot.slane %v5777_v7, 9  ;;  %v5881_v55 = vrot.slane %v5879_v5, 4  ;;  %v5882_v49 = vrot.slane %v5377_v36, 5  ;;  %v6150_v52 = vshll.u32 %v16319_v47, 16  ;;  %v16486_v43 = vld [vmem:[#allocation3 + $0x1c] sm:$0xf] }
 0x28a   : > { %v5279_v45 = vsel %vm13737_vm10, %v12129_v11, %v5278_v51  ;;  %v5282_v22 = vsel %vm13737_vm10, %v5280_v17, %v5281_v0  ;;  %v19019_v61 = vshll.u32 %v16356_v26, 16  ;;  %v19020_v9 = vshrl.u32 %v16319_v47, 16 }
 0x28b   : > { %v12209_v24 = vcombine.low %v5279_v45, %v5282_v22  ;;  %v5880_v33 = vsel %vm13737_vm10, %v12144_v18, %v5879_v5  ;;  %v5883_v48 = vsel %vm13737_vm10, %v5881_v55, %v5882_v49  ;;  %v6152_v10 = vrot.slane %v6150_v52, 5  ;;  %v16488_v5 = vld [vmem:[#allocation3 + $0x18] sm:$0xf] }
 0x28c   : > { %v16451_v21 = vrot.slane %v19019_v61, 5  ;;  %v6156_v53 = vrot.slane %v19020_v9, 4  ;;  %v12256_v25 = vcombine.low %v5880_v33, %v5883_v48  ;;  %v6160_v15 = vshll.u32 %v16349_v46, 16  ;;  %v16508_v18 = vld [vmem:[#allocation3 + $0x78] sm:$0xf] }
 0x28d   : > { %v4972_v59 = vshrl.u32 %v4747_v44, 16  ;;  %v19021_v26 = vor.u32 %v15957_v31, %v15951_v56  ;;  %v16465_v47 = vrot.slane %v6117_v50, 4  ;;  %v16467_v30 = vrot.slane %v6120_v41, 5  ;;  %6762 = vrot.lane.b32.xlu1 %v12209_v24, %s13561_s22  ;;  %v16480_v56 = vld [vmem:[#allocation3 + $0x78] sm:$0xf] }
 0x28e   : > { %v19022_v51 = vor.u32 %v16361_v42, %v16354_v60  ;;  %v6148_v7 = vrot.slane %v6147_v16, 4  ;;  %v16477_v46 = vsel %vm7276_vm9, %v16191_v4, %v6749_v34  ;;  %6984 = vrot.lane.b32.xlu0 %v12256_v25, %s13558_s29  ;;  %v16482_v31 = vld [vmem:[#allocation3 + $0x7c] sm:$0xf]  ;;  %v6157_v58 = vor.u32 %v6156_v53, %v6152_v10  ;;  %v16492_v16 = vld [vmem:[#allocation3 + $0x10] sm:$0xf] }
 0x28f   : > { %v16463_v1 = vrot.slane %v19021_v26, 4  ;;  %v16484_v50 = vld [vmem:[#allocation3 + $0x7c] sm:$0xf]  ;;  %v16494_v4 = vld [vmem:[#allocation3 + $0xc] sm:$0xf]  ;;  %v5424_v11 = vsel %vm13824_vm15, %v16160_v6, %v16278_v23  ;;  %v5434_v17 = vsel %vm13824_vm15, %v16352_v2, %v16317_v32  ;;  %v12274_v0 = vcombine.low %v16480_v56, %v16482_v31  ;;  %v16518_v32 = vpop.permute.xlu1 %6846 }
 0x290   : > { %v16473_v36 = vrot.slane %v19022_v51, 4  ;;  %v16510_v55 = vld [vmem:[#allocation3 + $0x70] sm:$0xf]  ;;  %v6387_v49 = vld [vmem:[#allocation3 + $0x6c] sm:$0xe]  ;;  %v12227_v45 = vcombine.low %v16508_v18, %v16484_v50  ;;  %v6158_v6 = vrot.slane %v6157_v58, 4 }
 0x291   : > { %v6162_v23 = vrot.slane %v6160_v15, 5  ;;  %v4974_v22 = vrot.slane %v4972_v59, 4  ;;  %v16516_v61 = vld [vmem:[#allocation3 + $0x74] sm:$0x1]  ;;  %v4975_v2 = vshll.u32 %v4747_v44, 16  ;;  %v4981_v9 = vshll.u32 %v16382_v27, 16 }
 0x292   : > { %v4985_v53 = vshrl.u32 %v16382_v27, 16  ;;  %v4991_v34 = vshll.u32 %v16389_v19, 16  ;;  %7084 = vrot.lane.b32.xlu0 %v12274_v0, %s13561_s22  ;;  %6862 = vrot.lane.b32.xlu1 %v12227_v45, %s13562_s13  ;;  %v13082_v33 = vpop.f32.mrb[20].mxu0  ;;  %v12161_v48 = vrot.slane %v6387_v49, 9  ;;  %v6495_v25 = vrot.slane %v16510_v55, 5 }
 0x293   : > { %v6163_v24 = vsel %vm13824_vm15, %v6158_v6, %v6162_v23  ;;  %v6498_v15 = vrot.slane %v16516_v61, 5  ;;  %v6153_v44 = vsel %vm13824_vm15, %v6148_v7, %v6152_v10  ;;  %v4977_v59 = vrot.slane %v4975_v2, 5  ;;  %v4001_v19 = vpop.f32.mrb[21].mxu0  ;;  %v6388_v51 = vld [vmem:[#allocation3 + $0x78] sm:$0xe] }
 0x294   : > { %v4983_v27 = vrot.slane %v4981_v9, 5  ;;  %v4987_v26 = vrot.slane %v4985_v53, 4  ;;  %v12288_v58 = vcombine.low %v6153_v44, %v6163_v24  ;;  %v4993_v0 = vrot.slane %v4991_v34, 5  ;;  %v16535_v41 = vld [vmem:[#allocation3 + $0x80] sm:$0x1]  ;;  %v13083_v10 = vpop.f32.mrb[22].mxu0 }
 0x295   : > { %v4010_v45 = vadd.f32 %v16229_v13, %v13082_v33  ;;  %v6497_v42 = vrot.slane %v6495_v25, 4  ;;  %v4978_v6 = vor.u32 %v4977_v59, %v4974_v22  ;;  %v6496_v49 = vsel %vm13737_vm10, %v12161_v48, %v6495_v25  ;;  %v4004_v34 = vpop.f32.mrb[23].mxu0  ;;  %v6845_v22 = vpop.permute.xlu1 %6844  ;;  %v16541_v25 = vld [vmem:[#allocation3 + $0x6c] sm:$0xf] }
 0x296   : > { %v4988_v23 = vor.u32 %v4987_v26, %v4983_v27  ;;  %v4002_v52 = vadd.f32 %v16229_v13, %v4001_v19  ;;  %7160 = vrot.lane.b32.xlu0 %v12288_v58, %s13562_s13  ;;  %v12162_v9 = vrot.slane %v6388_v51, 9  ;;  %v6502_v53 = vrot.slane %v16482_v31, 5  ;;  %v16553_v51 = vpop.permute.xlu0 %7068 }
 0x297   : > { %v4070_v7 = vmax.f32 %v4010_v45, 0.0  ;;  %v6499_v2 = vsel %vm13737_vm10, %v6497_v42, %v6498_v15  ;;  %v4979_v24 = vrot.slane %v4978_v6, 4  ;;  %v6505_v19 = vrot.slane %v16535_v41, 5 }
 0x298   : > { %v4989_v33 = vrot.slane %v4988_v23, 4  ;;  %v12305_v44 = vcombine.low %v6496_v49, %v6499_v2  ;;  %v4068_v48 = vmax.f32 %v4002_v52, 0.0  ;;  %v6504_v26 = vrot.slane %v6502_v53, 4 }
 0x299   : > { %v12721_v59 = vpack.c.bf16 %v4070_v7, %v4070_v7  ;;  %v12273_v58 = vcombine.low %v16541_v25, %v16510_v55  ;;  %v16546_v45 = vcombine.low %v5424_v11, %v5434_v17  ;;  %v4984_v42 = vsel %vm13824_vm15, %v4979_v24, %v4983_v27  ;;  %v16564_v7 = vld [vmem:[#allocation3 + $0x70] sm:$0xf] }
 0x29a   : > { %v4994_v15 = vsel %vm13824_vm15, %v4989_v33, %v4993_v0  ;;  %13109 = vmatmul.mubr.msk.bf16.gmra.mrb[44].mxu0 %vm3790_vm14, %v12305_v44  ;;  %v12719_v52 = vpack.c.bf16 %v4068_v48, %v4068_v48  ;;  %v6503_v49 = vsel %vm13737_vm10, %v12162_v9, %v6502_v53  ;;  %v6506_v11 = vsel %vm13737_vm10, %v6504_v26, %v6505_v19  ;;  %v4696_v33 = vld [vmem:[#allocation3 + $0x90] sm:$0xf] }
 0x29b   : > { %v12194_v6 = vcombine.low %v4984_v42, %v4994_v15  ;;  %v4484_v23 = vshrl.u32 %v12721_v59, 16  ;;  %7082 = vrot.lane.b32.xlu0 %v12273_v58, %s13561_s22  ;;  %v5400_v17 = vsel %vm13824_vm15, %v16339_v57, %v16354_v60  ;;  %v12306_v0 = vcombine.low %v6503_v49, %v6506_v11  ;;  %v16579_v60 = vpop.permute.xlu1 %6752  ;;  %v16593_v26 = vld [vmem:[#allocation3 + $0x30] sm:$0xf]  ;;  %v16597_v58 = vld [vmem:[#allocation3 + $0x28] sm:$0xf] }
 0x29c   : > { %v4467_v27 = vshrl.u32 %v12719_v52, 16  ;;  %v16568_v2 = vsel %vm7309_vm11, %v16477_v46, %v6845_v22  ;;  %v5410_v9 = vsel %vm13824_vm15, %v16473_v36, %v16451_v21  ;;  %v4487_v24 = vshll.u32 %v12721_v59, 16  ;;  %19023 = vst [vmem:[#allocation13_spill] sm:$0xff] %v16579_v60  ;;  %v16584_v22 = vld [vmem:[#allocation3 + $0x6c] sm:$0xf]  ;;  %19025 = vst [vmem:[#allocation15_spill] sm:$0xff] %v16593_v26 }
 0x29d   : > { %6684 = vrot.lane.b32.xlu1 %v12194_v6, %s13558_s29  ;;  %v16575_v53 = vrot.slane %v4484_v23, 7  ;;  %v6123_v57 = vor.u32 %v16467_v30, %v16465_v47  ;;  %v4470_v46 = vshll.u32 %v12719_v52, 16  ;;  %13112 = vmatprep.mubr.msk.bf16.mxu0 %vm3790_vm14, %v12306_v0  ;;  %v4013_v21 = vadd.f32 %v16229_v13, %v13083_v10  ;;  %v4689_v59 = vld [vmem:[#allocation3 + $0x84] sm:$0xf]  ;;  %v16591_v30 = vld [vmem:[#allocation3 + $0x34] sm:$0xf]  ;;  %v16607_v23 = vpop.permute.xlu0 %6974 }
 0x29e   : > { %v16581_v44 = vrot.slane %v4467_v27, 7  ;;  %v4005_v36 = vadd.f32 %v16229_v13, %v4004_v34  ;;  %v12226_v47 = vcombine.low %v16584_v22, %v16564_v7  ;;  %19024 = vst [vmem:[#allocation14_spill] sm:$0xff] %v16591_v30  ;;  %19026 = vst [vmem:[#allocation16_spill] sm:$0xff] %v16597_v58  ;;  %v16599_v42 = vld [vmem:[#allocation3 + $0x24] sm:$0xf]  ;;  %v16603_v10 = vcombine.low %v5400_v17, %v5410_v9 }
 0x29f   : > { %v4489_v48 = vor.u32 %v4487_v24, %v16575_v53  ;;  %19027 = vst [vmem:[#allocation17_spill] sm:$0xff] %v16599_v42  ;;  %v4490_v34 = vrot.slane %v16575_v53, 4  ;;  %v4071_v52 = vmax.f32 %v4013_v21, 0.0  ;;  %v4745_v6 = vld [vmem:[#allocation3 + $0x54] sm:$0xf]  ;;  %v6124_v27 = vrot.slane %v6123_v57, 4 }
 0x2a0   : > { %v4472_v15 = vor.u32 %v4470_v46, %v16581_v44  ;;  %v4069_v11 = vmax.f32 %v4005_v36, 0.0  ;;  %v6126_v0 = vshll.u32 %v16332_v38, 16  ;;  %v6130_v53 = vshrl.u32 %v16332_v38, 16 }
 0x2a1   : > { %v4697_v49 = vsel %vm15603_vm7, %v4489_v48, %v4696_v33  ;;  %6860 = vrot.lane.b32.xlu1 %v12226_v47, %s13562_s13  ;;  %v12722_v9 = vpack.c.bf16 %v4071_v52, %v4071_v52  ;;  %v6136_v24 = vshll.u32 %v16343_v20, 16  ;;  %v4948_v19 = vshrl.u32 %v4745_v6, 16  ;;  %v16617_v48 = vpop.permute.xlu1 %6750 }
 0x2a2   : > { %4698 = vst [vmem:[#allocation3 + $0x90] sm:$0xf] %v4697_v49  ;;  %v4690_v17 = vsel %vm15603_vm7, %v4472_v15, %v4689_v59  ;;  %v12720_v46 = vpack.c.bf16 %v4069_v11, %v4069_v11  ;;  %v6128_v21 = vrot.slane %v6126_v0, 5  ;;  %v4951_v33 = vshll.u32 %v4745_v6, 16  ;;  %v6973_v11 = vpop.permute.xlu0 %6972  ;;  %v4700_v0 = vld [vmem:[#allocation3 + $0x98] sm:$0x1] }
 0x2a3   : > { %4691 = vst [vmem:[#allocation3 + $0x84] sm:$0xf] %v4690_v17  ;;  %v4473_v57 = vrot.slane %v16581_v44, 4  ;;  %v4492_v36 = vshrl.u32 %v12722_v9, 16  ;;  %v4495_v47 = vshll.u32 %v12722_v9, 16  ;;  %v6132_v49 = vrot.slane %v6130_v53, 4 }
 0x2a4   : > { %v4475_v13 = vshrl.u32 %v12720_v46, 16  ;;  %v4478_v30 = vshll.u32 %v12720_v46, 16  ;;  %v6138_v59 = vrot.slane %v6136_v24, 5  ;;  %v4950_v15 = vrot.slane %v4948_v19, 4  ;;  %v4693_v46 = vld [vmem:[#allocation3 + $0x8c] sm:$0x1] }
 0x2a5   : > { %v4494_v52 = vrot.slane %v4492_v36, 7  ;;  %v6133_v38 = vor.u32 %v6132_v49, %v6128_v21  ;;  %v4953_v26 = vrot.slane %v4951_v33, 5  ;;  %v4957_v20 = vshll.u32 %v16415_v3, 16  ;;  %v16625_v36 = vpop.permute.xlu1 %6850 }
 0x2a6   : > { %v4477_v17 = vrot.slane %v4475_v13, 7  ;;  %v6129_v6 = vsel %vm13824_vm15, %v6124_v27, %v6128_v21  ;;  %v4961_v44 = vshrl.u32 %v16415_v3, 16  ;;  %v4967_v9 = vshll.u32 %v16424_v37, 16  ;;  %19028 = vst [vmem:[#allocation18_spill] sm:$0xff] %v16625_v36  ;;  %v16633_v21 = vld [vmem:[#allocation3 + $0x7c] sm:$0xf] }
 0x2a7   : > { %v4497_v53 = vor.u32 %v4495_v47, %v4494_v52  ;;  %v4499_v60 = vrot.slane %v4494_v52, 4  ;;  %v6134_v24 = vrot.slane %v6133_v38, 4  ;;  %v4954_v19 = vor.u32 %v4953_v26, %v4950_v15  ;;  %v5380_v15 = vld [vmem:[#allocation3 + $0x80] sm:$0x1]  ;;  %v5780_v52 = vld [vmem:[#allocation3 + $0x78] sm:$0xe] }
 0x2a8   : > { %v4480_v33 = vor.u32 %v4478_v30, %v4477_v17  ;;  %v4482_v49 = vrot.slane %v4477_v17, 4  ;;  %v4959_v58 = vrot.slane %v4957_v20, 5  ;;  %v4963_v42 = vrot.slane %v4961_v44, 4  ;;  %v16642_v38 = vld [vmem:[#allocation3 + $0x70] sm:$0xf] }
 0x2a9   : > { %v4498_v13 = vsel %vm13749_vm12, %v4490_v34, %v4497_v53  ;;  %v4701_v27 = vsel %vm15487_vm6, %v4499_v60, %v4700_v0  ;;  %v6139_v3 = vsel %vm13824_vm15, %v6134_v24, %v6138_v59  ;;  %v4955_v37 = vrot.slane %v4954_v19, 4  ;;  %v16640_v60 = vpop.permute.xlu0 %7072  ;;  %v16648_v0 = vld [vmem:[#allocation3 + $0x80] sm:$0x1]  ;;  %v5173_v53 = vld [vmem:[#allocation3 + $0x78] sm:$0xe] }
 0x2aa   : > { %4699 = vst.msk [vmem:[#allocation3 + $0x94] sm:$0xf] %vm19029_vm1, %v4498_v13  ;;  %4702 = vst [vmem:[#allocation3 + $0x98] sm:$0x1] %v4701_v27  ;;  %v4481_v30 = vsel %vm13749_vm12, %v4473_v57, %v4480_v33  ;;  %v4694_v26 = vsel %vm15487_vm6, %v4482_v49, %v4693_v46  ;;  %v12287_v47 = vcombine.low %v6129_v6, %v6139_v3  ;;  %v5556_v59 = vshrl.u32 %v16321_v14, 16  ;;  %v16657_v49 = vpop.permute.xlu1 %6672 }
 0x2ab   : > { %v4964_v34 = vor.u32 %v4963_v42, %v4959_v58  ;;  %v5559_v20 = vshll.u32 %v16321_v14, 16  ;;  %4692 = vst.msk [vmem:[#allocation3 + $0x88] sm:$0xf] %vm19030_vm2, %v4481_v30  ;;  %4695 = vst [vmem:[#allocation3 + $0x8c] sm:$0x1] %v4694_v26  ;;  %v5900_v57 = vrot.slane %v16484_v50, 5  ;;  %v7360_v17 = vsel %vm3790_vm14, %v16603_v10, %v6973_v11 }
 0x2ac   : > { %7158 = vrot.lane.b32.xlu0 %v12287_v47, %s13562_s13  ;;  %v4969_v44 = vrot.slane %v4967_v9, 5  ;;  %v5299_v46 = vrot.slane %v16633_v21, 5  ;;  %v12147_v24 = vrot.slane %v5780_v52, 9  ;;  %v5903_v33 = vrot.slane %v5380_v15, 5  ;;  %v16664_v9 = vld [vmem:[#allocation3 + $0x74] sm:$0x1] }
 0x2ad   : > { %v4965_v6 = vrot.slane %v4964_v34, 4  ;;  %v5902_v19 = vrot.slane %v5900_v57, 4  ;;  %v5292_v50 = vrot.slane %v16642_v38, 5  ;;  %v4960_v13 = vsel %vm13824_vm15, %v4955_v37, %v4959_v58  ;;  %v5379_v34 = vld [vmem:[#allocation3 + $0x74] sm:$0x1] }
 0x2ae   : > { %v5301_v11 = vrot.slane %v5299_v46, 4  ;;  %v5302_v27 = vrot.slane %v16648_v0, 5  ;;  %v5901_v30 = vsel %vm13737_vm10, %v12147_v24, %v5900_v57  ;;  %v12132_v47 = vrot.slane %v5173_v53, 9  ;;  %v5779_v15 = vld [vmem:[#allocation3 + $0x6c] sm:$0xe] }
 0x2af   : > { %v4970_v10 = vsel %vm13824_vm15, %v4965_v6, %v4969_v44  ;;  %v5904_v26 = vsel %vm13737_vm10, %v5902_v19, %v5903_v33  ;;  %v5294_v37 = vrot.slane %v5292_v50, 4  ;;  %v5893_v6 = vrot.slane %v16564_v7, 5  ;;  %v7149_v44 = vpop.permute.xlu0 %7148  ;;  %v5172_v53 = vld [vmem:[#allocation3 + $0x6c] sm:$0xe] }
 0x2b0   : > { %v12193_v3 = vcombine.low %v4960_v13, %v4970_v10  ;;  %v12259_v52 = vcombine.low %v5901_v30, %v5904_v26  ;;  %v5303_v58 = vsel %vm13737_vm10, %v5301_v11, %v5302_v27  ;;  %v6189_v42 = vshrl.u32 %v16480_v56, 16  ;;  %v16685_v30 = vpop.permute.xlu1 %6848 }
 0x2b1   : > { %v6192_v13 = vshll.u32 %v16480_v56, 16  ;;  %v5300_v57 = vsel %vm13737_vm10, %v12132_v47, %v5299_v46  ;;  %v5295_v24 = vrot.slane %v16664_v9, 5  ;;  %v12146_v19 = vrot.slane %v5779_v15, 9  ;;  %19031 = vst [vmem:[#allocation19_spill] sm:$0xff] %v16685_v30 }
 0x2b2   : > { %6682 = vrot.lane.b32.xlu1 %v12193_v3, %s13558_s29  ;;  %6990 = vrot.lane.b32.xlu0 %v12259_v52, %s13558_s29  ;;  %v5895_v33 = vrot.slane %v5893_v6, 4  ;;  %v5896_v10 = vrot.slane %v5379_v34, 5  ;;  %v7407_v7 = vsel %vm7276_vm9, %v7360_v17, %v16553_v51  ;;  %v5532_v11 = vshrl.u32 %v16387_v40, 16  ;;  %v16693_v51 = vld [vmem:[#allocation3 + $0x94] sm:$0xf] }
 0x2b3   : > { %v5535_v56 = vshll.u32 %v16387_v40, 16  ;;  %v12212_v27 = vcombine.low %v5300_v57, %v5303_v58  ;;  %v7439_v3 = vsel %vm7309_vm11, %v7407_v7, %v7149_v44  ;;  %v12131_v46 = vrot.slane %v5172_v53, 9  ;;  %v16707_v57 = vld [vmem:[#allocation3 + $0x94] sm:$0xf] }
 0x2b4   : > { %v5296_v26 = vsel %vm13737_vm10, %v5294_v37, %v5295_v24  ;;  %v5894_v47 = vsel %vm13737_vm10, %v12146_v19, %v5893_v6  ;;  %v5897_v34 = vsel %vm13737_vm10, %v5895_v33, %v5896_v10  ;;  %7717 = vmatprep.mubr.bf16.mxu1 %v7439_v3  ;;  %v6191_v17 = vrot.slane %v6189_v42, 4  ;;  %v16705_v42 = vld [vmem:[#allocation3 + $0x90] sm:$0xf]  ;;  %v6671_v3 = vpop.permute.xlu1 %6670 }
 0x2b5   : > { %v5604_v40 = vshrl.u32 %v16508_v18, 16  ;;  %v5607_v15 = vshll.u32 %v16508_v18, 16  ;;  %v12258_v52 = vcombine.low %v5894_v47, %v5897_v34  ;;  %7718 = vmatmul.mubr.bf16.vlgmr.msra.gmra.mrb[0].mxu1 %v16568_v2  ;;  %v7363_v58 = vsel %vm3790_vm14, %v16546_v45, %v16607_v23  ;;  %v4751_v34 = vld [vmem:[#allocation3 + $0x78] sm:$0xf] }
 0x2b6   : > { %6768 = vrot.lane.b32.xlu1 %v12212_v27, %s13561_s22  ;;  %v6194_v37 = vrot.slane %v6192_v13, 5  ;;  %v6165_v6 = vshrl.u32 %v16541_v25, 16  ;;  %v5293_v44 = vsel %vm13737_vm10, %v12131_v46, %v5292_v50  ;;  %v6202_v18 = vshrl.u32 %v16482_v31, 16  ;;  %v5361_v13 = vld [vmem:[#allocation3 + $0x90] sm:$0xf]  ;;  %v7071_v27 = vpop.permute.xlu0 %7070 }
 0x2b7   : > { %v6168_v53 = vshll.u32 %v16541_v25, 16  ;;  %v12211_v24 = vcombine.low %v5293_v44, %v5296_v26  ;;  %6988 = vrot.lane.b32.xlu0 %v12258_v52, %s13558_s29  ;;  %v12276_v45 = vcombine.low %v16705_v42, %v16693_v51  ;;  %v16716_v2 = vrot.slane %v5556_v59, 4  ;;  %v13420_v59 = vld [vmem:[#allocation3 + $0x34] sm:$0xf] }
 0x2b8   : > { %v16720_v23 = vrot.slane %v5559_v20, 5  ;;  %v16722_v50 = vrot.slane %v5532_v11, 4  ;;  %v16726_v10 = vrot.slane %v5535_v56, 5  ;;  %v16728_v7 = vrot.slane %v5604_v40, 4 }
 0x2b9   : > { %19032 = vst [vmem:[#allocation20_spill] sm:$0xff] %v16716_v2  ;;  %v5469_v46 = vshll.u32 %v13420_v59, 16  ;;  %v12229_v14 = vcombine.low %v5361_v13, %v16707_v57  ;;  %v16732_v20 = vrot.slane %v5607_v15, 5  ;;  %v16734_v11 = vrot.slane %v6165_v6, 4 }
 0x2ba   : > { %19033 = vst [vmem:[#allocation21_spill] sm:$0xff] %v16720_v23  ;;  %19034 = vst [vmem:[#allocation22_spill] sm:$0xff] %v16722_v50  ;;  %6766 = vrot.lane.b32.xlu1 %v12211_v24, %s13561_s22  ;;  %v6195_v26 = vor.u32 %v6194_v37, %v6191_v17  ;;  %v6198_v47 = vshll.u32 %v16482_v31, 16  ;;  %v16737_v56 = vrot.slane %v6168_v53, 5  ;;  %v5473_v40 = vshrl.u32 %v13420_v59, 16 }
 0x2bb   : > { %19037 = vst [vmem:[#allocation23_spill] sm:$0xff] %v16726_v10  ;;  %19038 = vst [vmem:[#allocation24_spill] sm:$0xff] %v16728_v7  ;;  %7088 = vrot.lane.b32.xlu0 %v12276_v45, %s13561_s22  ;;  %v6204_v52 = vrot.slane %v6202_v18, 4  ;;  %v6208_v44 = vshll.u32 %v16535_v41, 16  ;;  %v16742_v24 = vsel %vm7276_vm9, %v7363_v58, %v7071_v27  ;;  %v19040_v15 = vcombine.low %v16494_v4, %v16492_v16  ;;  %v13421_v17 = vld [vmem:[#allocation3 + $0x38] sm:$0x1] }
 0x2bc   : > { %19039 = vst [vmem:[#allocation25_spill] sm:$0xff] %v16732_v20  ;;  %v5479_v31 = vshll.u32 %v13421_v17, 16  ;;  %v6200_v37 = vrot.slane %v6198_v47, 5  ;;  %v16750_v53 = vrot.slane %v5469_v46, 5  ;;  %v6237_v13 = vshrl.u32 %v16705_v42, 16 }
 0x2bd   : > { %v16748_v6 = vsel %vm3790_vm14, %v19040_v15, %v6671_v3  ;;  %v5020_v41 = vshrl.u32 %v4751_v34, 16  ;;  %v6196_v58 = vrot.slane %v6195_v26, 4  ;;  %v5023_v27 = vshll.u32 %v4751_v34, 16  ;;  %v4133_v4 = vld [vmem:[#allocation3 + $0xa8] sm:$0x1] }
 0x2be   : > { %6866 = vrot.lane.b32.xlu1 %v12229_v14, %s13562_s13  ;;  %v6205_v45 = vor.u32 %v6204_v52, %v6200_v37  ;;  %v5029_v16 = vshll.u32 %v16633_v21, 16  ;;  %v16756_v3 = vrot.slane %v5473_v40, 4  ;;  %v6210_v59 = vrot.slane %v6208_v44, 5  ;;  %v4130_v47 = vld [vmem:[#allocation3 + $0x9c] sm:$0x1] }
 0x2bf   : > { %v5022_v15 = vrot.slane %v5020_v41, 4  ;;  %v5033_v46 = vshrl.u32 %v16633_v21, 16  ;;  %v5025_v25 = vrot.slane %v5023_v27, 5  ;;  %v5039_v18 = vshll.u32 %v16648_v0, 16  ;;  %v16760_v14 = vld [vmem:[#allocation3 + $0x88] sm:$0xf] }
 0x2c0   : > { %v6206_v17 = vrot.slane %v6205_v45, 4  ;;  %v5031_v20 = vrot.slane %v5029_v16, 5  ;;  %19041 = vst [vmem:[#allocation26_spill] sm:$0xff] %v16760_v14  ;;  %v16762_v26 = vrot.slane %v5479_v31, 5  ;;  %v16764_v34 = vrot.slane %v6237_v13, 4 }
 0x2c1   : > { %v5035_v52 = vrot.slane %v5033_v46, 4  ;;  %v4134_v40 = vsel %vm15487_vm6, 0, %v4133_v4  ;;  %v6389_v44 = vld [vmem:[#allocation3 + $0x84] sm:$0xe]  ;;  %v13422_v41 = vld [vmem:[#allocation3 + $0x28] sm:$0xf]  ;;  %v6201_v21 = vsel %vm13824_vm15, %v6196_v58, %v6200_v37  ;;  %v5026_v0 = vor.u32 %v5025_v25, %v5022_v15 }
 0x2c2   : > { %v5445_v7 = vshll.u32 %v13422_v41, 16  ;;  %v6211_v45 = vsel %vm13824_vm15, %v6206_v17, %v6210_v59  ;;  %4135 = vst [vmem:[#allocation3 + $0xa8] sm:$0x1] %v4134_v40  ;;  %v16772_v27 = vld [vmem:[#allocation3 + $0x8c] sm:$0x1]  ;;  %v5449_v31 = vshrl.u32 %v13422_v41, 16 }
 0x2c3   : > { %19042 = vst [vmem:[#allocation27_spill] sm:$0xff] %v16772_v27  ;;  %v12290_v13 = vcombine.low %v6201_v21, %v6211_v45  ;;  %v5036_v16 = vor.u32 %v5035_v52, %v5031_v20  ;;  %v6509_v46 = vrot.slane %v16760_v14, 5  ;;  %v16775_v10 = vld [vmem:[#allocation3 + $0x98] sm:$0x1]  ;;  %v6390_v4 = vld [vmem:[#allocation3 + $0x90] sm:$0xe] }
 0x2c4   : > { %v5027_v50 = vrot.slane %v5026_v0, 4  ;;  %v5041_v23 = vrot.slane %v5039_v18, 5  ;;  %v12163_v2 = vrot.slane %v6389_v44, 9  ;;  %v4131_v37 = vsel %vm15487_vm6, 0, %v4130_v47  ;;  %v16787_v44 = vld [vmem:[#allocation3 + $0x84] sm:$0xf] }
 0x2c5   : > { %7164 = vrot.lane.b32.xlu0 %v12290_v13, %s13562_s13  ;;  %v5037_v25 = vrot.slane %v5036_v16, 4  ;;  %v6511_v58 = vrot.slane %v6509_v46, 4  ;;  %v6512_v59 = vrot.slane %v16772_v27, 5  ;;  %4132 = vst [vmem:[#allocation3 + $0x9c] sm:$0x1] %v4131_v37  ;;  %v6516_v15 = vrot.slane %v16693_v51, 5  ;;  %v16806_v37 = vpop.permute.xlu0 %6978 }
 0x2c6   : > { %v5032_v17 = vsel %vm13824_vm15, %v5027_v50, %v5031_v20  ;;  %v6510_v52 = vsel %vm13737_vm10, %v12163_v2, %v6509_v46  ;;  %v12164_v18 = vrot.slane %v6390_v4, 9  ;;  %v6519_v40 = vrot.slane %v16775_v10, 5  ;;  %v16799_v2 = vld [vmem:[%s18929_s2] ss:$0 sm:$0xff]  ;;  %v4188_v46 = vld [vmem:[#allocation3 + $0xb0] sm:$0x1] }
 0x2c7   : > { %v5042_v47 = vsel %vm13824_vm15, %v5037_v25, %v5041_v23  ;;  %v6513_v21 = vsel %vm13737_vm10, %v6511_v58, %v6512_v59  ;;  %v6518_v45 = vrot.slane %v6516_v15, 4  ;;  %v12275_v0 = vcombine.low %v16787_v44, %v16760_v14 }
 0x2c8   : > { %v13086_v41 = vpop.f32.mrb[24].mxu0  ;;  %v12196_v20 = vcombine.low %v5032_v17, %v5042_v47  ;;  %v12307_v16 = vcombine.low %v6510_v52, %v6513_v21  ;;  %v6517_v58 = vsel %vm13737_vm10, %v12164_v18, %v6516_v15  ;;  %v16814_v17 = vld [vmem:[#allocation3 + $0x88] sm:$0xf]  ;;  %v16816_v47 = vrot.slane %v5445_v7, 5  ;;  %v4185_v15 = vld [vmem:[#allocation3 + $0xa4] sm:$0x1] }
 0x2c9   : > { %v4026_v13 = vadd.f32 %v16799_v2, %v13086_v41  ;;  %v4017_v23 = vpop.f32.mrb[25].mxu0  ;;  %v6520_v59 = vsel %vm13737_vm10, %v6518_v45, %v6519_v40  ;;  %7086 = vrot.lane.b32.xlu0 %v12275_v0, %s13561_s22  ;;  %v16818_v41 = vrot.slane %v5449_v31, 4  ;;  %v19043_v18 = vshll.u32 %v16705_v42, 16  ;;  %v16826_v0 = vld [vmem:[#allocation3 + $0x84] sm:$0xf] }
 0x2ca   : > { %v4018_v25 = vadd.f32 %v16799_v2, %v4017_v23  ;;  %v13087_v52 = vpop.f32.mrb[26].mxu0  ;;  %6688 = vrot.lane.b32.xlu1 %v12196_v20, %s13558_s29  ;;  %13113 = vmatmul.mubr.msk.bf16.gmra.mrb[48].mxu0 %vm3790_vm14, %v12307_v16  ;;  %v12308_v23 = vcombine.low %v6517_v58, %v6520_v59  ;;  %19044 = vst [vmem:[#allocation28_spill] sm:$0xff] %v16826_v0  ;;  %v4189_v31 = vsel %vm15504_vm3, 0, %v4188_v46  ;;  %v4186_v59 = vsel %vm15504_vm3, 0, %v4185_v15 }
 0x2cb   : > { %v4074_v21 = vmax.f32 %v4026_v13, 0.0  ;;  %v4020_v50 = vpop.f32.mrb[27].mxu0  ;;  %v16824_v40 = vrot.slane %v19043_v18, 5  ;;  %v4029_v7 = vadd.f32 %v16799_v2, %v13087_v52  ;;  %v12228_v16 = vcombine.low %v16826_v0, %v16814_v17  ;;  %4190 = vst [vmem:[#allocation3 + $0xb0] sm:$0x1] %v4189_v31  ;;  %v16845_v31 = vpop.permute.xlu0 %6976 }
 0x2cc   : > { %v4072_v45 = vmax.f32 %v4018_v25, 0.0  ;;  %13116 = vmatprep.mubr.msk.bf16.mxu0 %vm3790_vm14, %v12308_v23  ;;  %v4021_v42 = vadd.f32 %v16799_v2, %v4020_v50  ;;  %v6171_v46 = vor.u32 %v16737_v56, %v16734_v11  ;;  %4187 = vst [vmem:[#allocation3 + $0xa4] sm:$0x1] %v4186_v59  ;;  %v6174_v18 = vshll.u32 %v16510_v55, 16  ;;  %v4749_v56 = vld [vmem:[#allocation3 + $0x6c] sm:$0xf]  ;;  %v16850_v52 = vpop.permute.xlu1 %6756 }
 0x2cd   : > { %v12725_v13 = vpack.c.bf16 %v4074_v21, %v4074_v21  ;;  %v4075_v58 = vmax.f32 %v4029_v7, 0.0  ;;  %v6178_v11 = vshrl.u32 %v16510_v55, 16  ;;  %19046 = vst [vmem:[#allocation29_spill] sm:$0xff] %v16850_v52  ;;  %v6184_v14 = vshll.u32 %v16516_v61, 16  ;;  %v4703_v19 = vld [vmem:[#allocation3 + $0x9c] sm:$0xf] }
 0x2ce   : > { %v12723_v25 = vpack.c.bf16 %v4072_v45, %v4072_v45  ;;  %6864 = vrot.lane.b32.xlu1 %v12228_v16, %s13562_s13  ;;  %v4073_v23 = vmax.f32 %v4021_v42, 0.0  ;;  %v16847_v0 = vrot.slane %v6171_v46, 4  ;;  %v4710_v16 = vld [vmem:[#allocation3 + $0xa8] sm:$0xf]  ;;  %v6176_v27 = vrot.slane %v6174_v18, 5 }
 0x2cf   : > { %v4518_v21 = vshrl.u32 %v12725_v13, 16  ;;  %v4521_v50 = vshll.u32 %v12725_v13, 16  ;;  %v12726_v20 = vpack.c.bf16 %v4075_v58, %v4075_v58  ;;  %v16853_v4 = vpop.permute.xlu0 %7076  ;;  %v6180_v12 = vrot.slane %v6178_v11, 4 }
 0x2d0   : > { %v4501_v45 = vshrl.u32 %v12723_v25, 16  ;;  %v4504_v7 = vshll.u32 %v12723_v25, 16  ;;  %v12724_v36 = vpack.c.bf16 %v4073_v23, %v4073_v23  ;;  %19047 = vst [vmem:[#allocation30_spill] sm:$0xff] %v16853_v4  ;;  %v6186_v18 = vrot.slane %v6184_v14, 5  ;;  %v16859_v35 = vpop.permute.xlu1 %6754 }
 0x2d1   : > { %v4520_v15 = vrot.slane %v4518_v21, 7  ;;  %v4526_v59 = vshrl.u32 %v12726_v20, 16  ;;  %v4529_v25 = vshll.u32 %v12726_v20, 16  ;;  %v4999_v4 = vshll.u32 %v4749_v56, 16 }
 0x2d2   : > { %v4503_v42 = vrot.slane %v4501_v45, 7  ;;  %v4509_v58 = vshrl.u32 %v12724_v36, 16  ;;  %v4512_v33 = vshll.u32 %v12724_v36, 16  ;;  %v4714_v52 = vld [vmem:[#allocation3 + $0xb0] sm:$0x1]  ;;  %vm9714_vm2 = vcmask 1043459  }
 0x2d3   : > { %v4523_v30 = vor.u32 %v4521_v50, %v4520_v15  ;;  %v4524_v13 = vrot.slane %v4520_v15, 4  ;;  %v4528_v46 = vrot.slane %v4526_v59, 7  ;;  %v4707_v15 = vld [vmem:[#allocation3 + $0xa4] sm:$0x1]  ;;  %v6181_v59 = vor.u32 %v6180_v12, %v6176_v27 }
 0x2d4   : > { %v4506_v21 = vor.u32 %v4504_v7, %v4503_v42  ;;  %v4507_v23 = vrot.slane %v4503_v42, 4  ;;  %v4511_v45 = vrot.slane %v4509_v58, 7  ;;  %v4996_v7 = vshrl.u32 %v4749_v56, 16  ;;  %v5782_v58 = vld [vmem:[#allocation3 + $0x90] sm:$0xe] }
 0x2d5   : > { %v4711_v55 = vsel %vm15603_vm7, %v4523_v30, %v4710_v16  ;;  %v4531_v50 = vor.u32 %v4529_v25, %v4528_v46  ;;  %v4533_v20 = vrot.slane %v4528_v46, 4  ;;  %v6182_v56 = vrot.slane %v6181_v59, 4  ;;  %v5382_v25 = vld [vmem:[#allocation3 + $0x98] sm:$0x1] }
 0x2d6   : > { %4712 = vst [vmem:[#allocation3 + $0xa8] sm:$0xf] %v4711_v55  ;;  %v4704_v61 = vsel %vm15603_vm7, %v4506_v21, %v4703_v19  ;;  %v4514_v42 = vor.u32 %v4512_v33, %v4511_v45  ;;  %v4516_v36 = vrot.slane %v4511_v45, 4  ;;  %v4998_v11 = vrot.slane %v4996_v7, 4  ;;  %v16878_v45 = vpop.permute.xlu0 %7152  ;;  %v16890_v59 = vld [vmem:[#allocation3 + $0x98] sm:$0x1] }
 0x2d7   : > { %4705 = vst [vmem:[#allocation3 + $0x9c] sm:$0xf] %v4704_v61  ;;  %v4532_v30 = vsel %vm13749_vm12, %v4524_v13, %v4531_v50  ;;  %v4715_v14 = vsel %vm15487_vm6, %v4533_v20, %v4714_v52  ;;  %v5005_v19 = vshll.u32 %v16642_v38, 16  ;;  %v5001_v16 = vrot.slane %v4999_v4, 5  ;;  %v13424_v13 = vld [vmem:[#allocation3 + $0x2c] sm:$0x1] }
 0x2d8   : > { %4713 = vst.msk [vmem:[#allocation3 + $0xac] sm:$0xf] %vm19048_vm4, %v4532_v30  ;;  %4716 = vst [vmem:[#allocation3 + $0xb0] sm:$0x1] %v4715_v14  ;;  %v4515_v33 = vsel %vm13749_vm12, %v4507_v23, %v4514_v42  ;;  %v4708_v12 = vsel %vm15487_vm6, %v4516_v36, %v4707_v15  ;;  %v5455_v21 = vshll.u32 %v13424_v13, 16  ;;  %v6177_v52 = vsel %vm13824_vm15, %v16847_v0, %v6176_v27  ;;  %v16892_v30 = vpop.permute.xlu1 %6854 }
 0x2d9   : > { %4706 = vst.msk [vmem:[#allocation3 + $0xa0] sm:$0xf] %vm19049_vm5, %v4515_v33  ;;  %4709 = vst [vmem:[#allocation3 + $0xa4] sm:$0x1] %v4708_v12  ;;  %v5007_v46 = vrot.slane %v5005_v19, 5  ;;  %v5009_v55 = vshrl.u32 %v16642_v38, 16  ;;  %v6187_v4 = vsel %vm13824_vm15, %v6182_v56, %v6186_v18  ;;  %v5002_v61 = vor.u32 %v5001_v16, %v4998_v11 }
 0x2da   : > { %v16876_v23 = vld [vmem:[#allocation3 + $0x94] sm:$0xf]  ;;  %v5015_v50 = vshll.u32 %v16664_v9, 16  ;;  %v5914_v20 = vrot.slane %v16707_v57, 5  ;;  %v5781_v15 = vld [vmem:[#allocation3 + $0x84] sm:$0xe]  ;;  %v19050_v7 = vor.u32 %v16062_v62, %v16053_v8  ;;  %v19051_v38 = vor.u32 %v16818_v41, %v16816_v47 }
 0x2db   : > { %v12289_v42 = vcombine.low %v6177_v52, %v6187_v4  ;;  %v5011_v36 = vrot.slane %v5009_v55, 4  ;;  %v12149_v18 = vrot.slane %v5782_v58, 9  ;;  %v5917_v9 = vrot.slane %v5382_v25, 5  ;;  %v5381_v11 = vld [vmem:[#allocation3 + $0x8c] sm:$0x1]  ;;  %v16903_v4 = vpop.permute.xlu0 %7074 }
 0x2dc   : > { %v5443_v27 = vrot.slane %v19050_v7, 4  ;;  %v5453_v0 = vrot.slane %v19051_v38, 4  ;;  %v5916_v14 = vrot.slane %v5914_v20, 4  ;;  %v5313_v57 = vrot.slane %v16876_v23, 5  ;;  %v16897_v33 = vld [vmem:[#allocation3 + $0x88] sm:$0xf] }
 0x2dd   : > { %v5457_v19 = vrot.slane %v5455_v21, 5  ;;  %7162 = vrot.lane.b32.xlu0 %v12289_v42, %s13562_s13  ;;  %v5003_v8 = vrot.slane %v5002_v61, 4  ;;  %v5012_v62 = vor.u32 %v5011_v36, %v5007_v46  ;;  %v5907_v41 = vrot.slane %v16814_v17, 5  ;;  %v5175_v25 = vld [vmem:[#allocation3 + $0x90] sm:$0xe] }
 0x2de   : > { %v5017_v12 = vrot.slane %v5015_v50, 5  ;;  %v5915_v56 = vsel %vm13737_vm10, %v12149_v18, %v5914_v20  ;;  %v5918_v16 = vsel %vm13737_vm10, %v5916_v14, %v5917_v9  ;;  %v5315_v58 = vrot.slane %v5313_v57, 4  ;;  %v4755_v20 = vld [vmem:[#allocation3 + $0x90] sm:$0xf]  ;;  %v16916_v18 = vpop.permute.xlu1 %6676  ;;  %v4757_v39 = vld [vmem:[#allocation3 + $0x9c] sm:$0xf] }
 0x2df   : > { %v5013_v13 = vrot.slane %v5012_v62, 4  ;;  %v12261_v52 = vcombine.low %v5915_v56, %v5918_v16  ;;  %v12148_v21 = vrot.slane %v5781_v15, 9  ;;  %v5909_v55 = vrot.slane %v5907_v41, 4 }
 0x2e0   : > { %v5458_v17 = vsel %vm13824_vm15, %v5453_v0, %v5457_v19  ;;  %v5316_v61 = vrot.slane %v16890_v59, 5  ;;  %v5910_v50 = vrot.slane %v5381_v11, 5  ;;  %v5306_v7 = vrot.slane %v16897_v33, 5  ;;  %v16922_v11 = vld [vmem:[#allocation3 + $0x8c] sm:$0x1] }
 0x2e1   : > { %v5008_v38 = vsel %vm13824_vm15, %v5003_v8, %v5007_v46  ;;  %v5018_v42 = vsel %vm13824_vm15, %v5013_v13, %v5017_v12  ;;  %6994 = vrot.lane.b32.xlu0 %v12261_v52, %s13558_s29  ;;  %v12134_v15 = vrot.slane %v5175_v25, 9  ;;  %v5908_v36 = vsel %vm13737_vm10, %v12148_v21, %v5907_v41  ;;  %v16935_v52 = vld [vmem:[#allocation3 + $0xac] sm:$0xf] }
 0x2e2   : > { %v12195_v0 = vcombine.low %v5008_v38, %v5018_v42  ;;  %v5317_v14 = vsel %vm13737_vm10, %v5315_v58, %v5316_v61  ;;  %v5911_v9 = vsel %vm13737_vm10, %v5909_v55, %v5910_v50  ;;  %v5308_v46 = vrot.slane %v5306_v7, 4  ;;  %v5174_v58 = vld [vmem:[#allocation3 + $0x84] sm:$0xe]  ;;  %v7151_v50 = vpop.permute.xlu0 %7150  ;;  %v16940_v42 = vld [vmem:[#allocation3 + $0xa8] sm:$0xf] }
 0x2e3   : > { %v12260_v19 = vcombine.low %v5908_v36, %v5911_v9  ;;  %v5068_v8 = vshrl.u32 %v4755_v20, 16  ;;  %v5071_v62 = vshll.u32 %v4755_v20, 16  ;;  %v5077_v12 = vshll.u32 %v16876_v23, 16  ;;  %v16944_v36 = vpop.permute.xlu1 %6852 }
 0x2e4   : > { %v19052_v41 = vor.u32 %v16756_v3, %v16750_v53  ;;  %v5448_v16 = vsel %vm13824_vm15, %v5443_v27, %v16816_v47  ;;  %6686 = vrot.lane.b32.xlu1 %v12195_v0, %s13558_s29  ;;  %v5314_v25 = vsel %vm13737_vm10, %v12134_v15, %v5313_v57  ;;  %v5081_v13 = vshrl.u32 %v16876_v23, 16 }
 0x2e5   : > { %6992 = vrot.lane.b32.xlu0 %v12260_v19, %s13558_s29  ;;  %v5309_v21 = vrot.slane %v16922_v11, 5  ;;  %v5070_v3 = vrot.slane %v5068_v8, 4  ;;  %v5073_v55 = vrot.slane %v5071_v62, 5  ;;  %v5079_v61 = vrot.slane %v5077_v12, 5 }
 0x2e6   : > { %v5477_v56 = vrot.slane %v19052_v41, 4  ;;  %v12236_v20 = vcombine.low %v5448_v16, %v5458_v17  ;;  %v12214_v47 = vcombine.low %v5314_v25, %v5317_v14  ;;  %v5083_v27 = vrot.slane %v5081_v13, 4 }
 0x2e7   : > { %v5087_v38 = vshll.u32 %v16890_v59, 16  ;;  %v12133_v57 = vrot.slane %v5174_v58, 9  ;;  %v5310_v23 = vsel %vm13737_vm10, %v5308_v46, %v5309_v21  ;;  %v5074_v15 = vor.u32 %v5073_v55, %v5070_v3 }
 0x2e8   : > { %v12278_v0 = vcombine.low %v16940_v42, %v16935_v52  ;;  %v5482_v17 = vsel %vm13824_vm15, %v5477_v56, %v16762_v26  ;;  %v7366_v14 = vsel %vm3790_vm14, %v12236_v20, %v16845_v31  ;;  %6772 = vrot.lane.b32.xlu1 %v12214_v47, %s13561_s22  ;;  %v5084_v59 = vor.u32 %v5083_v27, %v5079_v61 }
 0x2e9   : > { %v7442_v9 = vsel %vm7309_vm11, %v16742_v24, %v7151_v50  ;;  %v6213_v46 = vshrl.u32 %v16787_v44, 16  ;;  %v6216_v19 = vshll.u32 %v16787_v44, 16  ;;  %v5307_v8 = vsel %vm13737_vm10, %v12133_v57, %v5306_v7  ;;  %v5363_v50 = vld [vmem:[#allocation3 + $0x9c] sm:$0xf] }
 0x2ea   : > { %v5075_v62 = vrot.slane %v5074_v15, 4  ;;  %7092 = vrot.lane.b32.xlu0 %v12278_v0, %s13561_s22  ;;  %7725 = vmatprep.mubr.bf16.mxu1 %v7442_v9  ;;  %v12213_v26 = vcombine.low %v5307_v8, %v5310_v23  ;;  %v5085_v12 = vrot.slane %v5084_v59, 4  ;;  %v5089_v31 = vrot.slane %v5087_v38, 5  ;;  %v17016_v15 = vpop.permute.xlu0 %6982  ;;  %v4139_v0 = vld [vmem:[#allocation3 + $0xc0] sm:$0x1] }
 0x2eb   : > { %v7280_v41 = vsel %vm7276_vm9, %v16748_v6, %v16617_v48  ;;  %v19053_v44 = vsel %vm13824_vm15, %v16463_v1, %v16750_v53  ;;  %v7411_v16 = vsel %vm7276_vm9, %v7366_v14, %v16640_v60  ;;  %v19054_v48 = vcombine.low %v16488_v5, %v16486_v43  ;;  %v4753_v53 = vld [vmem:[#allocation3 + $0x84] sm:$0xf]  ;;  %v6675_v43 = vpop.permute.xlu1 %6674  ;;  %v16991_v5 = vld [vmem:[#allocation3 + $0xa0] sm:$0xf] }
 0x2ec   : > { %v12237_v56 = vcombine.low %v19053_v44, %v5482_v17  ;;  %v7314_v7 = vsel %vm7309_vm11, %v7280_v41, %v16518_v32  ;;  %6770 = vrot.lane.b32.xlu1 %v12213_v26, %s13561_s22  ;;  %v5090_v1 = vsel %vm13824_vm15, %v5085_v12, %v5089_v31  ;;  %v7445_v32 = vsel %vm7309_vm11, %v7411_v16, %v16878_v45  ;;  %v17021_v26 = vld [vmem:[#allocation3 + $0xa0] sm:$0xf] }
 0x2ed   : > { %v16980_v6 = vsel %vm3790_vm14, %v19054_v48, %v16657_v49  ;;  %7726 = vmatmul.mubr.bf16.gmra.mrb[4].mxu1 %v7314_v7  ;;  %v5080_v58 = vsel %vm13824_vm15, %v5075_v62, %v5079_v61  ;;  %v6243_v49 = vor.u32 %v16824_v40, %v16764_v34  ;;  %v6246_v13 = vshll.u32 %v16693_v51, 16  ;;  %v19056_v34 = vld [vmem:[#allocation17_spill] sm:$0xff]  ;;  %v19057_v40 = vld [vmem:[#allocation16_spill] sm:$0xff] }
 0x2ee   : > { %v7369_v60 = vsel %vm3790_vm14, %v12237_v56, %v16806_v37  ;;  %7733 = vmatprep.mubr.bf16.mxu1 %v7445_v32  ;;  %v16996_v21 = vrot.slane %v6213_v46, 4  ;;  %v16998_v3 = vrot.slane %v6216_v19, 5  ;;  %v12198_v45 = vcombine.low %v5080_v58, %v5090_v1  ;;  %v13425_v46 = vld [vmem:[#allocation3 + $0x4c] sm:$0xf]  ;;  %v6391_v56 = vld [vmem:[#allocation3 + $0x9c] sm:$0xe] }
 0x2ef   : > { %v19055_v55 = vshrl.u32 %v16693_v51, 16  ;;  %v17004_v61 = vsel %vm7276_vm9, %v7369_v60, %v16903_v4  ;;  %v6248_v20 = vrot.slane %v6246_v13, 5  ;;  %v6256_v47 = vshll.u32 %v16775_v10, 16  ;;  %v17027_v32 = vld [vmem:[#allocation3 + $0xa4] sm:$0x1] }
 0x2f0   : > { %v5044_v27 = vshrl.u32 %v4753_v53, 16  ;;  %6692 = vrot.lane.b32.xlu1 %v12198_v45, %s13558_s29  ;;  %v19058_v38 = vcombine.low %v19056_v34, %v19057_v40  ;;  %v6285_v51 = vshrl.u32 %v16940_v42, 16  ;;  %v12230_v23 = vcombine.low %v5363_v50, %v16991_v5 }
 0x2f1   : > { %v6252_v37 = vrot.slane %v19055_v55, 4  ;;  %v5047_v4 = vshll.u32 %v4753_v53, 16  ;;  %v6244_v17 = vrot.slane %v6243_v49, 4  ;;  %v5053_v59 = vshll.u32 %v16897_v33, 16  ;;  %v17036_v55 = vpop.permute.xlu0 %6980 }
 0x2f2   : > { %v17012_v57 = vsel %vm3790_vm14, %v19058_v38, %v6675_v43  ;;  %v5046_v10 = vrot.slane %v5044_v27, 4  ;;  %v6288_v9 = vshll.u32 %v16940_v42, 16  ;;  %v5517_v19 = vshll.u32 %v13425_v46, 16  ;;  %v13426_v38 = vld [vmem:[#allocation3 + $0x50] sm:$0x1] }
 0x2f3   : > { %v6253_v14 = vor.u32 %v6252_v37, %v6248_v20  ;;  %v5049_v8 = vrot.slane %v5047_v4, 5  ;;  %v5057_v62 = vshrl.u32 %v16897_v33, 16  ;;  %v6258_v31 = vrot.slane %v6256_v47, 5 }
 0x2f4   : > { %v5055_v41 = vrot.slane %v5053_v59, 5  ;;  %v4140_v44 = vsel %vm15487_vm6, 0, %v4139_v0  ;;  %6868 = vrot.lane.b32.xlu1 %v12230_v23, %s13562_s13  ;;  %v5521_v7 = vshrl.u32 %v13425_v46, 16  ;;  %v5063_v42 = vshll.u32 %v16922_v11, 16  ;;  %v13090_v1 = vpop.f32.mrb[28].mxu0 }
 0x2f5   : > { %v6254_v12 = vrot.slane %v6253_v14, 4  ;;  %v5050_v16 = vor.u32 %v5049_v8, %v5046_v10  ;;  %v5059_v48 = vrot.slane %v5057_v62, 4  ;;  %4141 = vst [vmem:[#allocation3 + $0xc0] sm:$0x1] %v4140_v44  ;;  %v6249_v33 = vsel %vm13824_vm15, %v6244_v17, %v6248_v20  ;;  %v4033_v43 = vpop.f32.mrb[29].mxu0  ;;  %v17055_v44 = vpop.permute.xlu0 %7080 }
 0x2f6   : > { %v4042_v60 = vadd.f32 %v16799_v2, %v13090_v1  ;;  %v6523_v58 = vrot.slane %v17021_v26, 5  ;;  %v17038_v37 = vpop.f32.mrb[30].mxu0  ;;  %v12165_v47 = vrot.slane %v6391_v56, 9  ;;  %v6526_v27 = vrot.slane %v17027_v32, 5  ;;  %v4136_v46 = vld [vmem:[#allocation3 + $0xb4] sm:$0x1] }
 0x2f7   : > { %v6259_v53 = vsel %vm13824_vm15, %v6254_v12, %v6258_v31  ;;  %v5051_v45 = vrot.slane %v5050_v16, 4  ;;  %v5060_v11 = vor.u32 %v5059_v48, %v5055_v41  ;;  %v17041_v34 = vpop.f32.mrb[31].mxu0  ;;  %v17043_v40 = vrot.slane %v5517_v19, 5  ;;  %v6392_v31 = vld [vmem:[#allocation3 + $0xa8] sm:$0xe] }
 0x2f8   : > { %v12292_v13 = vcombine.low %v6249_v33, %v6259_v53  ;;  %v4078_v50 = vmax.f32 %v4042_v60, 0.0  ;;  %v6525_v20 = vrot.slane %v6523_v58, 4  ;;  %v5527_v23 = vshll.u32 %v13426_v38, 16  ;;  %v13427_v48 = vld [vmem:[#allocation3 + $0x40] sm:$0xf] }
 0x2f9   : > { %v5061_v4 = vrot.slane %v5060_v11, 4  ;;  %v5065_v0 = vrot.slane %v5063_v42, 5  ;;  %v5523_v17 = vrot.slane %v5521_v7, 4  ;;  %v6524_v10 = vsel %vm13737_vm10, %v12165_v47, %v6523_v58  ;;  %v17059_v1 = vld [vmem:[#allocation3 + $0xb0] sm:$0x1]  ;;  %v19062_v47 = vld [vmem:[#allocation9_spill] sm:$0xff] }
 0x2fa   : > { %7168 = vrot.lane.b32.xlu0 %v12292_v13, %s13562_s13  ;;  %v12729_v14 = vpack.c.bf16 %v4078_v50, %v4078_v50  ;;  %v6527_v59 = vsel %vm13737_vm10, %v6525_v20, %v6526_v27  ;;  %v5056_v8 = vsel %vm13824_vm15, %v5051_v45, %v5055_v41  ;;  %v4034_v12 = vadd.f32 %v16799_v2, %v4033_v43  ;;  %v17073_v45 = vld [vmem:[#allocation3 + $0x9c] sm:$0xf] }
 0x2fb   : > { %v5066_v19 = vsel %vm13824_vm15, %v5061_v4, %v5065_v0  ;;  %v12309_v62 = vcombine.low %v6524_v10, %v6527_v59  ;;  %v17057_v56 = vrot.slane %v6285_v51, 4  ;;  %v5493_v42 = vshll.u32 %v13427_v48, 16  ;;  %v19061_v50 = vld [vmem:[#allocation10_spill] sm:$0xff] }
 0x2fc   : > { %v12197_v7 = vcombine.low %v5056_v8, %v5066_v19  ;;  %v4552_v16 = vshrl.u32 %v12729_v14, 16  ;;  %v17061_v33 = vrot.slane %v6288_v9, 5  ;;  %v5497_v41 = vshrl.u32 %v13427_v48, 16  ;;  %v17066_v58 = vpop.f32.mrb[32].mxu0  ;;  %v4724_v4 = vld [vmem:[#allocation3 + $0xc0] sm:$0xf] }
 0x2fd   : > { %13117 = vmatmul.mubr.msk.bf16.gmra.mrb[52].mxu0 %vm3790_vm14, %v12309_v62  ;;  %v4076_v53 = vmax.f32 %v4034_v12, 0.0  ;;  %v4137_v60 = vsel %vm15487_vm6, 0, %v4136_v46  ;;  %19059 = vst [vmem:[#allocation17_spill] sm:$0xff] %v17066_v58  ;;  %v5524_v51 = vor.u32 %v5523_v17, %v17043_v40  ;;  %v4555_v13 = vshll.u32 %v12729_v14, 16  ;;  %v17075_v11 = vpop.f32.mrb[33].mxu0 }
 0x2fe   : > { %6690 = vrot.lane.b32.xlu1 %v12197_v7, %s13558_s29  ;;  %v17070_v43 = vrot.slane %v4552_v16, 7  ;;  %4138 = vst [vmem:[#allocation3 + $0xb4] sm:$0x1] %v4137_v60  ;;  %v6530_v9 = vrot.slane %v16935_v52, 5  ;;  %19060 = vst [vmem:[#allocation16_spill] sm:$0xff] %v17075_v11  ;;  %v19063_v20 = vor.u32 %v19061_v50, %v19062_v47  ;;  %v17082_v38 = vrot.slane %v5527_v23, 5  ;;  %v17097_v60 = vpop.permute.xlu0 %7156 }
 0x2ff   : > { %v12727_v0 = vpack.c.bf16 %v4076_v53, %v4076_v53  ;;  %v12277_v17 = vcombine.low %v17073_v45, %v17021_v26  ;;  %v17086_v14 = vpop.f32.mrb[34].mxu0  ;;  %v17089_v59 = vrot.slane %v5493_v42, 5  ;;  %v13428_v46 = vld [vmem:[#allocation3 + $0x44] sm:$0x1]  ;;  %v12166_v19 = vrot.slane %v6392_v31, 9 }
 0x300   : > { %v17080_v27 = vrot.slane %v19063_v20, 4  ;;  %19064 = vst [vmem:[#allocation10_spill] sm:$0xff] %v17086_v14  ;;  %v4557_v10 = vor.u32 %v4555_v13, %v17070_v43  ;;  %v5503_v8 = vshll.u32 %v13428_v46, 16  ;;  %v4194_v62 = vld [vmem:[#allocation3 + $0xc8] sm:$0x1]  ;;  %v17091_v12 = vpop.f32.mrb[35].mxu0 }
 0x301   : > { %19065 = vst [vmem:[#allocation9_spill] sm:$0xff] %v17091_v12  ;;  %v17093_v7 = vrot.slane %v5497_v41, 4  ;;  %v4535_v23 = vshrl.u32 %v12727_v0, 16  ;;  %v6532_v16 = vrot.slane %v6530_v9, 4  ;;  %v6533_v48 = vrot.slane %v17059_v1, 5  ;;  %7090 = vrot.lane.b32.xlu0 %v12277_v17, %s13561_s22 }
 0x302   : > { %v4191_v53 = vld [vmem:[#allocation3 + $0xbc] sm:$0x1]  ;;  %v17099_v13 = vrot.slane %v5524_v51, 4  ;;  %v4725_v42 = vsel %vm15603_vm7, %v4557_v10, %v4724_v4  ;;  %v6531_v31 = vsel %vm13737_vm10, %v12166_v19, %v6530_v9  ;;  %v4045_v41 = vadd.f32 %v16799_v2, %v17038_v37  ;;  %v17107_v50 = vld [vmem:[#allocation3 + $0xa0] sm:$0xf]  ;;  %v19067_v10 = vld [vmem:[#allocation12_spill] sm:$0xff] }
 0x303   : > { %v5176_v47 = vld [vmem:[#allocation3 + $0x9c] sm:$0xe]  ;;  %4726 = vst [vmem:[#allocation3 + $0xc0] sm:$0xf] %v4725_v42  ;;  %v17109_v20 = vrot.slane %v4535_v23, 7  ;;  %v4538_v17 = vshll.u32 %v12727_v0, 16  ;;  %v6534_v51 = vsel %vm13737_vm10, %v6532_v16, %v6533_v48  ;;  %v5500_v0 = vor.u32 %v17093_v7, %v17089_v59 }
 0x304   : > { %v4195_v25 = vsel %vm15504_vm3, 0, %v4194_v62  ;;  %v17115_v4 = vld [vmem:[#allocation3 + $0xa4] sm:$0x1]  ;;  %v17122_v37 = vrot.slane %v5503_v8, 5  ;;  %v12310_v49 = vcombine.low %v6531_v31, %v6534_v51  ;;  %v4079_v42 = vmax.f32 %v4045_v41, 0.0 }
 0x305   : > { %v19068_v9 = vld [vmem:[#allocation11_spill] sm:$0xff]  ;;  %4196 = vst [vmem:[#allocation3 + $0xc8] sm:$0x1] %v4195_v25  ;;  %v4540_v23 = vor.u32 %v4538_v17, %v17109_v20  ;;  %v4717_v16 = vld [vmem:[#allocation3 + $0xb4] sm:$0xf]  ;;  %v12135_v48 = vrot.slane %v5176_v47, 9  ;;  %v4037_v8 = vadd.f32 %v16799_v2, %v17041_v34  ;;  %v17141_v17 = vpop.permute.xlu0 %7078 }
 0x306   : > { %v19069_v19 = vor.u32 %v19067_v10, %v19068_v9  ;;  %v5320_v62 = vrot.slane %v17107_v50, 5  ;;  %13120 = vmatprep.mubr.msk.bf16.mxu0 %vm3790_vm14, %v12310_v49  ;;  %v12730_v14 = vpack.c.bf16 %v4079_v42, %v4079_v42  ;;  %v5323_v10 = vrot.slane %v17115_v4, 5  ;;  %v19070_v47 = vld [vmem:[#allocation13_spill] sm:$0xff]  ;;  %v19071_v9 = vld [vmem:[#allocation19_spill] sm:$0xff]  ;;  %v19072_v42 = vld [vmem:[#allocation26_spill] sm:$0xff] }
 0x307   : > { %v4192_v25 = vsel %vm15504_vm3, 0, %v4191_v53  ;;  %v4718_v7 = vsel %vm15603_vm7, %v4540_v23, %v4717_v16  ;;  %v7282_v49 = vsel %vm7276_vm9, %v16980_v6, %v19070_v47  ;;  %v4077_v34 = vmax.f32 %v4037_v8, 0.0  ;;  %v5366_v8 = vld [vmem:[#allocation3 + $0xac] sm:$0xf]  ;;  %v17160_v47 = vpop.permute.xlu1 %6760  ;;  %vm19075_vm7 = vmmov %vm19004_vm0 }
 0x308   : > { %v17120_v24 = vrot.slane %v19069_v19, 4  ;;  %v5321_v31 = vsel %vm13737_vm10, %v12135_v48, %v5320_v62  ;;  %v5322_v41 = vrot.slane %v5320_v62, 4  ;;  %4193 = vst [vmem:[#allocation3 + $0xbc] sm:$0x1] %v4192_v25  ;;  %4719 = vst [vmem:[#allocation3 + $0xb4] sm:$0xf] %v4718_v7  ;;  %v7317_v53 = vsel %vm7309_vm11, %v7282_v49, %v19071_v9 }
 0x309   : > { %v4560_v51 = vshrl.u32 %v12730_v14, 16  ;;  %v4563_v2 = vshll.u32 %v12730_v14, 16  ;;  %7734 = vmatmul.mubr.bf16.gmra.mrb[8].mxu1 %v7317_v53  ;;  %v6219_v19 = vor.u32 %v16998_v3, %v16996_v21  ;;  %v6222_v23 = vshll.u32 %v19072_v42, 16  ;;  %v19073_v25 = vld [vmem:[#allocation27_spill] sm:$0xff]  ;;  %19074 = vst [vmem:[#allocation8_spill] sm:$0xff] %v17160_v47 }
 0x30a   : > { %v5324_v54 = vsel %vm13737_vm10, %v5322_v41, %v5323_v10  ;;  %v6226_v6 = vshrl.u32 %v19072_v42, 16  ;;  %v12728_v62 = vpack.c.bf16 %v4077_v34, %v4077_v34  ;;  %v6232_v14 = vshll.u32 %v19073_v25, 16  ;;  %v5784_v42 = vld [vmem:[#allocation3 + $0xa8] sm:$0xe]  ;;  %v5384_v25 = vld [vmem:[#allocation3 + $0xb0] sm:$0x1] }
 0x30b   : > { %v4562_v16 = vrot.slane %v4560_v51, 7  ;;  %v12215_v48 = vcombine.low %v5321_v31, %v5324_v54  ;;  %v4558_v7 = vrot.slane %v17070_v43, 4  ;;  %v6224_v10 = vrot.slane %v6222_v23, 5  ;;  %v17158_v43 = vpop.permute.xlu0 %7154  ;;  %v17169_v47 = vld [vmem:[#allocation3 + $0xac] sm:$0xf] }
 0x30c   : > { %v4728_v49 = vld [vmem:[#allocation3 + $0xc8] sm:$0x1]  ;;  %v6228_v41 = vrot.slane %v6226_v6, 4  ;;  %v4543_v21 = vshrl.u32 %v12728_v62, 16  ;;  %v6220_v3 = vrot.slane %v6219_v19, 4  ;;  %v17155_v51 = vrot.slane %v5500_v0, 4 }
 0x30d   : > { %v4565_v9 = vor.u32 %v4563_v2, %v4562_v16  ;;  %v4567_v53 = vrot.slane %v4562_v16, 4  ;;  %6774 = vrot.lane.b32.xlu1 %v12215_v48, %s13561_s22  ;;  %v4541_v31 = vrot.slane %v17109_v20, 4  ;;  %v4546_v34 = vshll.u32 %v12728_v62, 16  ;;  %v5365_v16 = vld [vmem:[#allocation3 + $0xa8] sm:$0xf] }
 0x30e   : > { %v6229_v54 = vor.u32 %v6228_v41, %v6224_v10  ;;  %v4545_v6 = vrot.slane %v4543_v21, 7  ;;  %v6234_v19 = vrot.slane %v6232_v14, 5  ;;  %v4759_v0 = vld [vmem:[#allocation3 + $0xa8] sm:$0xf]  ;;  %v12231_v62 = vcombine.low %v5365_v16, %v5366_v8  ;;  %v17176_v21 = vld [vmem:[#allocation3 + $0xb0] sm:$0x1] }
 0x30f   : > { %v4566_v2 = vsel %vm13749_vm12, %v4558_v7, %v4565_v9  ;;  %v4729_v23 = vsel %vm15487_vm6, %v4567_v53, %v4728_v49  ;;  %v4721_v20 = vld [vmem:[#allocation3 + $0xbc] sm:$0x1]  ;;  %v12151_v41 = vrot.slane %v5784_v42, 9  ;;  %v5928_v58 = vrot.slane %v5366_v8, 5 }
 0x310   : > { %4727 = vst.msk [vmem:[#allocation3 + $0xc4] sm:$0xf] %vm19075_vm7, %v4566_v2  ;;  %4730 = vst [vmem:[#allocation3 + $0xc8] sm:$0x1] %v4729_v23  ;;  %v6230_v48 = vrot.slane %v6229_v54, 4  ;;  %v4548_v12 = vor.u32 %v4546_v34, %v4545_v6  ;;  %v4550_v11 = vrot.slane %v4545_v6, 4  ;;  %v6225_v7 = vsel %vm13824_vm15, %v6220_v3, %v6224_v10 }
 0x311   : > { %v5931_v9 = vrot.slane %v5384_v25, 5  ;;  %6870 = vrot.lane.b32.xlu1 %v12231_v62, %s13562_s13  ;;  %v5929_v49 = vsel %vm13737_vm10, %v12151_v41, %v5928_v58  ;;  %v5930_v53 = vrot.slane %v5928_v58, 4  ;;  %v5116_v8 = vshrl.u32 %v4759_v0, 16  ;;  %v5383_v54 = vld [vmem:[#allocation3 + $0xa4] sm:$0x1] }
 0x312   : > { %v6235_v14 = vsel %vm13824_vm15, %v6230_v48, %v6234_v19  ;;  %v4549_v42 = vsel %vm13749_vm12, %v4541_v31, %v4548_v12  ;;  %v4722_v10 = vsel %vm15487_vm6, %v4550_v11, %v4721_v20  ;;  %v5119_v34 = vshll.u32 %v4759_v0, 16  ;;  %v5783_v25 = vld [vmem:[#allocation3 + $0x9c] sm:$0xe]  ;;  %v17187_v12 = vpop.permute.xlu0 %6986  ;;  %v17189_v31 = vpop.permute.xlu1 %6758 }
 0x313   : > { %v12291_v3 = vcombine.low %v6225_v7, %v6235_v14  ;;  %4720 = vst.msk [vmem:[#allocation3 + $0xb8] sm:$0xf] %vm19076_vm8, %v4549_v42  ;;  %4723 = vst [vmem:[#allocation3 + $0xbc] sm:$0x1] %v4722_v10  ;;  %v5932_v2 = vsel %vm13737_vm10, %v5930_v53, %v5931_v9  ;;  %v5118_v58 = vrot.slane %v5116_v8, 4  ;;  %v5125_v23 = vshll.u32 %v17169_v47, 16 }
 0x314   : > { %v5129_v6 = vshrl.u32 %v17169_v47, 16  ;;  %19077 = vst [vmem:[#allocation12_spill] sm:$0xff] %v17187_v12  ;;  %v6264_v11 = vshll.u32 %v17073_v45, 16  ;;  %v12263_v19 = vcombine.low %v5929_v49, %v5932_v2  ;;  %v5121_v16 = vrot.slane %v5119_v34, 5 }
 0x315   : > { %7166 = vrot.lane.b32.xlu0 %v12291_v3, %s13562_s13  ;;  %v5135_v0 = vshll.u32 %v17176_v21, 16  ;;  %v5127_v20 = vrot.slane %v5125_v23, 5  ;;  %v12150_v62 = vrot.slane %v5783_v25, 9  ;;  %v5921_v41 = vrot.slane %v16991_v5, 5 }
 0x316   : > { %v5131_v48 = vrot.slane %v5129_v6, 4  ;;  %v5122_v7 = vor.u32 %v5121_v16, %v5118_v58  ;;  %v5924_v9 = vrot.slane %v5383_v54, 5  ;;  %v5092_v14 = vshrl.u32 %v4757_v39, 16  ;;  %v17197_v3 = vpop.permute.xlu1 %6858  ;;  %v17204_v6 = vpop.permute.xlu0 %6984 }
 0x317   : > { %v5095_v53 = vshll.u32 %v4757_v39, 16  ;;  %v5137_v42 = vrot.slane %v5135_v0, 5  ;;  %v5923_v10 = vrot.slane %v5921_v41, 4  ;;  %v5101_v12 = vshll.u32 %v17107_v50, 16 }
 0x318   : > { %v5132_v8 = vor.u32 %v5131_v48, %v5127_v20  ;;  %v5123_v49 = vrot.slane %v5122_v7, 4  ;;  %v5094_v34 = vrot.slane %v5092_v14, 4  ;;  %v5105_v25 = vshrl.u32 %v17107_v50, 16 }
 0x319   : > { %6998 = vrot.lane.b32.xlu0 %v12263_v19, %s13558_s29  ;;  %v5097_v2 = vrot.slane %v5095_v53, 5  ;;  %v5922_v5 = vsel %vm13737_vm10, %v12150_v62, %v5921_v41  ;;  %v5925_v54 = vsel %vm13737_vm10, %v5923_v10, %v5924_v9  ;;  %v5103_v58 = vrot.slane %v5101_v12, 5 }
 0x31a   : > { %v5133_v23 = vrot.slane %v5132_v8, 4  ;;  %v12262_v39 = vcombine.low %v5922_v5, %v5925_v54  ;;  %v5107_v19 = vrot.slane %v5105_v25, 4  ;;  %v5111_v0 = vshll.u32 %v17115_v4, 16 }
 0x31b   : > { %v5098_v16 = vor.u32 %v5097_v2, %v5094_v34  ;;  %v5506_v50 = vsel %vm13824_vm15, %v17155_v51, %v17122_v37  ;;  %v5128_v48 = vsel %vm13824_vm15, %v5123_v49, %v5127_v20  ;;  %v6291_v12 = vor.u32 %v17061_v33, %v17057_v56  ;;  %v17227_v56 = vpop.permute.xlu0 %7084  ;;  %v17232_v49 = vpop.permute.xlu1 %6680  ;;  %v5177_v2 = vld [vmem:[#allocation3 + $0xa8] sm:$0xe] }
 0x31c   : > { %v5138_v62 = vsel %vm13824_vm15, %v5133_v23, %v5137_v42  ;;  %v5108_v9 = vor.u32 %v5107_v19, %v5103_v58  ;;  %v6294_v4 = vshll.u32 %v16935_v52, 16  ;;  %v5496_v37 = vsel %vm13824_vm15, %v17120_v24, %v17089_v59 }
 0x31d   : > { %v12200_v41 = vcombine.low %v5128_v48, %v5138_v62  ;;  %6996 = vrot.lane.b32.xlu0 %v12262_v39, %s13558_s29  ;;  %v5099_v7 = vrot.slane %v5098_v16, 4  ;;  %v19078_v51 = vshrl.u32 %v17073_v45, 16  ;;  %v6266_v14 = vrot.slane %v6264_v11, 5  ;;  %v17229_v33 = vpop.f32.mrb[36].mxu0 }
 0x31e   : > { %v19079_v53 = vshrl.u32 %v16935_v52, 16  ;;  %19080 = vst [vmem:[#allocation11_spill] sm:$0xff] %v17229_v33  ;;  %v5109_v42 = vrot.slane %v5108_v9, 4  ;;  %v5113_v10 = vrot.slane %v5111_v0, 5  ;;  %v6296_v34 = vrot.slane %v6294_v4, 5  ;;  %v17235_v59 = vpop.f32.mrb[37].mxu0 }
 0x31f   : > { %v6263_v20 = vrot.slane %v19078_v51, 4  ;;  %6696 = vrot.lane.b32.xlu1 %v12200_v41, %s13558_s29  ;;  %v6304_v24 = vshll.u32 %v17059_v1, 16  ;;  %19081 = vst [vmem:[#allocation13_spill] sm:$0xff] %v17235_v59  ;;  %v5530_v52 = vsel %vm13824_vm15, %v17099_v13, %v17082_v38  ;;  %v12238_v45 = vcombine.low %v5496_v37, %v5506_v50  ;;  %v17242_v23 = vpop.f32.mrb[38].mxu0  ;;  %v17267_v4 = vpop.permute.xlu1 %6856 }
 0x320   : > { %v6300_v8 = vrot.slane %v19079_v53, 4  ;;  %v6292_v11 = vrot.slane %v6291_v12, 4  ;;  %v5327_v25 = vrot.slane %v17169_v47, 5  ;;  %19082 = vst [vmem:[#allocation19_spill] sm:$0xff] %v17242_v23  ;;  %v5104_v5 = vsel %vm13824_vm15, %v5099_v7, %v5103_v58  ;;  %v17249_v16 = vpop.f32.mrb[39].mxu0  ;;  %v17261_v7 = vpop.permute.xlu0 %7160 }
 0x321   : > { %v5114_v1 = vsel %vm13824_vm15, %v5109_v42, %v5113_v10  ;;  %v5330_v39 = vrot.slane %v17176_v21, 5  ;;  %19083 = vst [vmem:[#allocation26_spill] sm:$0xff] %v17249_v16  ;;  %v6267_v13 = vor.u32 %v6266_v14, %v6263_v20  ;;  %v6270_v0 = vshll.u32 %v17021_v26, 16  ;;  %v17270_v20 = vld [vmem:[#allocation3 + $0xb8] sm:$0xf] }
 0x322   : > { %v6301_v54 = vor.u32 %v6300_v8, %v6296_v34  ;;  %v12199_v19 = vcombine.low %v5104_v5, %v5114_v1  ;;  %v5329_v38 = vrot.slane %v5327_v25, 4  ;;  %v6306_v47 = vrot.slane %v6304_v24, 5  ;;  %v17282_v24 = vld [vmem:[#allocation3 + $0xb4] sm:$0xf]  ;;  %v19087_v1 = vld [vmem:[#allocation18_spill] sm:$0xff] }
 0x323   : > { %v12136_v48 = vrot.slane %v5177_v2, 9  ;;  %v6274_v62 = vshrl.u32 %v17021_v26, 16  ;;  %v6297_v58 = vsel %vm13824_vm15, %v6292_v11, %v6296_v34  ;;  %v6272_v12 = vrot.slane %v6270_v0, 5  ;;  %v17284_v11 = vld [vmem:[#allocation3 + $0xb4] sm:$0xf] }
 0x324   : > { %v6302_v50 = vrot.slane %v6301_v54, 4  ;;  %6694 = vrot.lane.b32.xlu1 %v12199_v19, %s13558_s29  ;;  %v5331_v21 = vsel %vm13737_vm10, %v5329_v38, %v5330_v39  ;;  %v7448_v41 = vsel %vm7309_vm11, %v17004_v61, %v17158_v43  ;;  %v6280_v51 = vshll.u32 %v17027_v32, 16  ;;  %v13429_v39 = vld [vmem:[#allocation3 + $0x4c] sm:$0xf]  ;;  %v13430_v19 = vld [vmem:[#allocation3 + $0x48] sm:$0xf] }
 0x325   : > { %v5328_v26 = vsel %vm13737_vm10, %v12136_v48, %v5327_v25  ;;  %v6276_v37 = vrot.slane %v6274_v62, 4  ;;  %7741 = vmatprep.mubr.bf16.mxu1 %v7448_v41  ;;  %v5520_v61 = vsel %vm13824_vm15, %v17080_v27, %v17043_v40  ;;  %v6268_v53 = vrot.slane %v6267_v13, 4  ;;  %v19086_v40 = vld [vmem:[#allocation28_spill] sm:$0xff]  ;;  %v17311_v48 = vld [vmem:[#allocation3 + $0xb8] sm:$0xf] }
 0x326   : > { %v6307_v9 = vsel %vm13824_vm15, %v6302_v50, %v6306_v47  ;;  %v12216_v14 = vcombine.low %v5328_v26, %v5331_v21  ;;  %v19084_v8 = vshrl.u32 %v16584_v22, 16  ;;  %v12239_v10 = vcombine.low %v5520_v61, %v5530_v52  ;;  %v19088_v50 = vld [vmem:[#allocation30_spill] sm:$0xff]  ;;  %v6679_v47 = vpop.permute.xlu1 %6678  ;;  %v19089_v21 = vld [vmem:[#allocation20_spill] sm:$0xff]  ;;  %v13433_v61 = vld [vmem:[#allocation3 + $0x64] sm:$0xf] }
 0x327   : > { %v12294_v43 = vcombine.low %v6297_v58, %v6307_v9  ;;  %v7372_v34 = vsel %vm3790_vm14, %v12238_v45, %v17036_v55  ;;  %v6277_v32 = vor.u32 %v6276_v37, %v6272_v12  ;;  %v19085_v2 = vshll.u32 %v16584_v22, 16  ;;  %v13431_v26 = vld [vmem:[#allocation3 + $0x40] sm:$0xf]  ;;  %v13432_v37 = vld [vmem:[#allocation3 + $0x3c] sm:$0xf] }
 0x328   : > { %v17278_v42 = vrot.slane %v19084_v8, 4  ;;  %6776 = vrot.lane.b32.xlu1 %v12216_v14, %s13561_s22  ;;  %v12232_v52 = vcombine.low %v17284_v11, %v17270_v20  ;;  %v7284_v55 = vsel %vm7276_vm9, %v17012_v57, %v16859_v35  ;;  %v7375_v45 = vsel %vm3790_vm14, %v12239_v10, %v17016_v15  ;;  %v17307_v57 = vpop.permute.xlu0 %7082  ;;  %v17319_v8 = vld [vmem:[#allocation3 + $0x84] sm:$0xf]  ;;  %v17383_v10 = vld [vmem:[#allocation3 + $0xc8] sm:$0x1] }
 0x329   : > { %v17288_v25 = vrot.slane %v19085_v2, 5  ;;  %7172 = vrot.lane.b32.xlu0 %v12294_v43, %s13562_s13  ;;  %v6278_v5 = vrot.slane %v6277_v32, 4  ;;  %v6282_v22 = vrot.slane %v6280_v51, 5  ;;  %v7320_v54 = vsel %vm7309_vm11, %v7284_v55, %v19087_v1  ;;  %v6394_v27 = vld [vmem:[#allocation3 + $0xc0] sm:$0xe] }
 0x32a   : > { %v12176_v38 = vcombine.low %v13430_v19, %v13429_v39  ;;  %v6273_v13 = vsel %vm13824_vm15, %v6268_v53, %v6272_v12  ;;  %v6309_v0 = vshrl.u32 %v17282_v24, 16  ;;  %7742 = vmatmul.mubr.bf16.gmra.mrb[12].mxu1 %v7320_v54  ;;  %v7415_v35 = vsel %vm7276_vm9, %v7372_v34, %v19088_v50  ;;  %v19090_v12 = vld [vmem:[#allocation21_spill] sm:$0xff]  ;;  %v5976_v53 = vld [vmem:[#allocation3 + $0xc0] sm:$0xf]  ;;  %v17355_v50 = vld [vmem:[#allocation3 + $0xbc] sm:$0x1] }
 0x32b   : > { %v6283_v15 = vsel %vm13824_vm15, %v6278_v5, %v6282_v22  ;;  %v6312_v62 = vshll.u32 %v17282_v24, 16  ;;  %v7451_v58 = vsel %vm7309_vm11, %v7415_v35, %v17097_v60  ;;  %v5562_v41 = vor.u32 %v19090_v12, %v19089_v21  ;;  %v19091_v60 = vld [vmem:[#allocation15_spill] sm:$0xff]  ;;  %v19092_v34 = vld [vmem:[#allocation14_spill] sm:$0xff]  ;;  %v6393_v5 = vld [vmem:[#allocation3 + $0xb4] sm:$0xe] }
 0x32c   : > { %v12293_v9 = vcombine.low %v6273_v13, %v6283_v15  ;;  %v12175_v51 = vcombine.low %v13432_v37, %v13431_v26  ;;  %6872 = vrot.lane.b32.xlu1 %v12232_v52, %s13562_s13  ;;  %7749 = vmatprep.mubr.bf16.mxu1 %v7451_v58  ;;  %v5565_v43 = vshll.u32 %v13433_v61, 16  ;;  %v5569_v14 = vshrl.u32 %v13433_v61, 16  ;;  %v17337_v22 = vld [vmem:[#allocation3 + $0xb8] sm:$0xf]  ;;  %v5178_v19 = vld [vmem:[#allocation3 + $0xb4] sm:$0xe]  ;;  %v17364_v58 = vpop.permute.xlu0 %7158 }
 0x32d   : > { %v19093_v32 = vcombine.low %v19091_v60, %v19092_v34  ;;  %v17331_v55 = vsel %vm3790_vm14, %v12176_v38, %v17232_v49  ;;  %v17335_v52 = vsel %vm7276_vm9, %v7375_v45, %v17141_v17  ;;  %v17346_v39 = vrot.slane %v6309_v0, 4  ;;  %v17348_v49 = vld [vmem:[#allocation3 + $0xbc] sm:$0x1]  ;;  %v13435_v37 = vld [vmem:[#allocation3 + $0x58] sm:$0xf] }
 0x32e   : > { %7170 = vrot.lane.b32.xlu0 %v12293_v9, %s13562_s13  ;;  %v17341_v1 = vsel %vm3790_vm14, %v12175_v51, %v6679_v47  ;;  %v17350_v17 = vrot.slane %v6312_v62, 5  ;;  %v17352_v45 = vrot.slane %v5562_v41, 4  ;;  %v6333_v38 = vshrl.u32 %v5976_v53, 16  ;;  %v17361_v47 = vld [vmem:[#allocation3 + $0xc4] sm:$0xf] }
 0x32f   : > { %v17327_v2 = vsel %vm3790_vm14, %v19093_v32, %v16916_v18  ;;  %v12279_v18 = vcombine.low %v17282_v24, %v17311_v48  ;;  %v6537_v13 = vrot.slane %v17311_v48, 5  ;;  %v17357_v35 = vrot.slane %v5565_v43, 5  ;;  %v17369_v43 = vld [vmem:[#allocation3 + $0x68] sm:$0x1] }
 0x330   : > { %v17359_v15 = vrot.slane %v5569_v14, 4  ;;  %v6336_v24 = vshll.u32 %v5976_v53, 16  ;;  %v5334_v0 = vrot.slane %v17337_v22, 5  ;;  %v12167_v62 = vrot.slane %v6393_v5, 9  ;;  %v17385_v14 = vpop.permute.xlu1 %6764 }
 0x331   : > { %v6539_v21 = vrot.slane %v6537_v13, 4  ;;  %v6540_v12 = vrot.slane %v17348_v49, 5  ;;  %v12137_v41 = vrot.slane %v5178_v19, 9  ;;  %v5337_v26 = vrot.slane %v17355_v50, 5 }
 0x332   : > { %7094 = vrot.lane.b32.xlu0 %v12279_v18, %s13561_s22  ;;  %v5336_v9 = vrot.slane %v5334_v0, 4  ;;  %v5541_v51 = vshll.u32 %v13435_v37, 16  ;;  %v5545_v61 = vshrl.u32 %v13435_v37, 16  ;;  %v12280_v60 = vcombine.low %v5976_v53, %v17361_v47 }
 0x333   : > { %v6538_v34 = vsel %vm13737_vm10, %v12167_v62, %v6537_v13  ;;  %v6541_v32 = vsel %vm13737_vm10, %v6539_v21, %v6540_v12  ;;  %v5335_v18 = vsel %vm13737_vm10, %v12137_v41, %v5334_v0  ;;  %v5572_v53 = vor.u32 %v17359_v15, %v17357_v35  ;;  %v5785_v12 = vld [vmem:[#allocation3 + $0xb4] sm:$0xe]  ;;  %v19095_v41 = vld [vmem:[#allocation22_spill] sm:$0xff] }
 0x334   : > { %v12311_v5 = vcombine.low %v6538_v34, %v6541_v32  ;;  %v5338_v19 = vsel %vm13737_vm10, %v5336_v9, %v5337_v26  ;;  %v17381_v37 = vrot.slane %v5541_v51, 5  ;;  %v17389_v13 = vrot.slane %v6333_v38, 4  ;;  %v17391_v34 = vld [vmem:[#allocation3 + $0xb4] sm:$0xf]  ;;  %v19096_v9 = vld [vmem:[#allocation23_spill] sm:$0xff] }
 0x335   : > { %v12217_v62 = vcombine.low %v5335_v18, %v5338_v19  ;;  %v5547_v21 = vrot.slane %v5545_v61, 4  ;;  %19094 = vst [vmem:[#allocation27_spill] sm:$0xff] %v17391_v34  ;;  %v17393_v0 = vrot.slane %v6336_v24, 5  ;;  %v5538_v26 = vor.u32 %v19096_v9, %v19095_v41  ;;  %v13437_v51 = vld [vmem:[#allocation3 + $0x5c] sm:$0x1]  ;;  %v17402_v18 = vpop.permute.xlu0 %6990  ;;  %v19098_v41 = vld [vmem:[#allocation29_spill] sm:$0xff] }
 0x336   : > { %7096 = vrot.lane.b32.xlu0 %v12280_v60, %s13561_s22  ;;  %13121 = vmatmul.mubr.msk.bf16.gmra.mrb[56].mxu0 %vm3790_vm14, %v12311_v5  ;;  %v5551_v32 = vshll.u32 %v13437_v51, 16  ;;  %v6544_v15 = vrot.slane %v17361_v47, 5  ;;  %v17400_v38 = vld [vmem:[#allocation3 + $0xbc] sm:$0x1]  ;;  %v12168_v61 = vrot.slane %v6394_v27, 9  ;;  %v6547_v60 = vrot.slane %v17383_v10, 5 }
 0x337   : > { %19097 = vst [vmem:[#allocation28_spill] sm:$0xff] %v17400_v38  ;;  %6778 = vrot.lane.b32.xlu1 %v12217_v62, %s13561_s22  ;;  %v5548_v24 = vor.u32 %v5547_v21, %v17381_v37  ;;  %v5935_v5 = vrot.slane %v17270_v20, 5  ;;  %v12152_v54 = vrot.slane %v5785_v12, 9  ;;  %v7286_v9 = vsel %vm7276_vm9, %v17327_v2, %v19098_v41  ;;  %v17421_v41 = vpop.permute.xlu1 %6762 }
 0x338   : > { %v6546_v19 = vrot.slane %v6544_v15, 4  ;;  %v5140_v51 = vshrl.u32 %v17391_v34, 16  ;;  %v6545_v23 = vsel %vm13737_vm10, %v12168_v61, %v6544_v15  ;;  %v5938_v62 = vrot.slane %v17400_v38, 5 }
 0x339   : > { %v5937_v33 = vrot.slane %v5935_v5, 4  ;;  %v7323_v27 = vsel %vm7309_vm11, %v7286_v9, %v16944_v36  ;;  %v5143_v16 = vshll.u32 %v17391_v34, 16  ;;  %v5149_v2 = vshll.u32 %v17337_v22, 16 }
 0x33a   : > { %v6548_v21 = vsel %vm13737_vm10, %v6546_v19, %v6547_v60  ;;  %7750 = vmatmul.mubr.bf16.gmra.mrb[16].mxu1 %v7323_v27  ;;  %v5142_v12 = vrot.slane %v5140_v51, 4  ;;  %v5936_v15 = vsel %vm13737_vm10, %v12152_v54, %v5935_v5  ;;  %v5153_v36 = vshrl.u32 %v17337_v22, 16  ;;  %v17428_v51 = vpop.permute.xlu0 %6988 }
 0x33b   : > { %v12312_v59 = vcombine.low %v6545_v23, %v6548_v21  ;;  %v5939_v61 = vsel %vm13737_vm10, %v5937_v33, %v5938_v62  ;;  %v5549_v9 = vrot.slane %v5548_v24, 4  ;;  %v5145_v60 = vrot.slane %v5143_v16, 5 }
 0x33c   : > { %v12264_v38 = vcombine.low %v5936_v15, %v5939_v61  ;;  %v5151_v19 = vrot.slane %v5149_v2, 5  ;;  %v5155_v27 = vrot.slane %v5153_v36, 4  ;;  %v5159_v34 = vshll.u32 %v17355_v50, 16  ;;  %v17440_v50 = vpop.permute.xlu1 %6862 }
 0x33d   : > { %13124 = vmatprep.mubr.msk.bf16.mxu0 %vm3790_vm14, %v12312_v59  ;;  %v6315_v23 = vor.u32 %v17350_v17, %v17346_v39  ;;  %v6318_v54 = vshll.u32 %v17311_v48, 16  ;;  %v5539_v5 = vrot.slane %v5538_v26, 4  ;;  %v5146_v33 = vor.u32 %v5145_v60, %v5142_v12 }
 0x33e   : > { %7000 = vrot.lane.b32.xlu0 %v12264_v38, %s13558_s29  ;;  %v19099_v24 = vshrl.u32 %v17311_v48, 16  ;;  %v6328_v62 = vshll.u32 %v17348_v49, 16  ;;  %v6346_v21 = vshrl.u32 %v17361_v47, 16  ;;  %v5553_v59 = vrot.slane %v5551_v32, 5  ;;  %v17444_v38 = vpop.permute.xlu0 %7088 }
 0x33f   : > { %v5156_v2 = vor.u32 %v5155_v27, %v5151_v19  ;;  %v6320_v15 = vrot.slane %v6318_v54, 5  ;;  %v5573_v61 = vrot.slane %v5572_v53, 4  ;;  %v19100_v39 = vshll.u32 %v17369_v43, 16  ;;  %v17453_v43 = vld [vmem:[#allocation3 + $0xc4] sm:$0xf] }
 0x340   : > { %v6324_v16 = vrot.slane %v19099_v24, 4  ;;  %v5147_v26 = vrot.slane %v5146_v33, 4  ;;  %v6316_v36 = vrot.slane %v6315_v23, 4  ;;  %v5554_v48 = vsel %vm13824_vm15, %v5549_v9, %v5553_v59  ;;  %v4142_v24 = vld [vmem:[#allocation3 + $0xcc] sm:$0x1] }
 0x341   : > { %v5577_v17 = vrot.slane %v19100_v39, 5  ;;  %v5157_v12 = vrot.slane %v5156_v2, 4  ;;  %v5161_v49 = vrot.slane %v5159_v34, 5  ;;  %v5544_v32 = vsel %vm13824_vm15, %v5539_v5, %v17381_v37  ;;  %v4197_v59 = vld [vmem:[#allocation3 + $0xd4] sm:$0x1]  ;;  %v17470_v39 = vpop.permute.xlu1 %6684 }
 0x342   : > { %v6325_v60 = vor.u32 %v6324_v16, %v6320_v15  ;;  %v5152_v53 = vsel %vm13824_vm15, %v5147_v26, %v5151_v19  ;;  %v6330_v27 = vrot.slane %v6328_v62, 5  ;;  %v6339_v23 = vor.u32 %v17393_v0, %v17389_v13  ;;  %v17464_v62 = vld [vmem:[#allocation3 + $0xd0] sm:$0xf]  ;;  %v17477_v26 = vld [vmem:[#allocation3 + $0xc8] sm:$0x1] }
 0x343   : > { %v5162_v54 = vsel %vm13824_vm15, %v5157_v12, %v5161_v49  ;;  %v6342_v34 = vshll.u32 %v17361_v47, 16  ;;  %v6348_v33 = vrot.slane %v6346_v21, 4  ;;  %v5578_v37 = vsel %vm13824_vm15, %v5573_v61, %v5577_v17  ;;  %v5786_v47 = vld [vmem:[#allocation3 + $0xc0] sm:$0xe] }
 0x344   : > { %v6326_v9 = vrot.slane %v6325_v60, 4  ;;  %v12240_v5 = vcombine.low %v5544_v32, %v5554_v48  ;;  %v12201_v16 = vcombine.low %v5152_v53, %v5162_v54  ;;  %v6321_v19 = vsel %vm13824_vm15, %v6316_v36, %v6320_v15  ;;  %v17485_v49 = vld [vmem:[#allocation3 + $0xc0] sm:$0xf] }
 0x345   : > { %v6344_v0 = vrot.slane %v6342_v34, 5  ;;  %v6352_v2 = vshll.u32 %v17383_v10, 16  ;;  %v5942_v21 = vrot.slane %v17453_v43, 5  ;;  %v5568_v61 = vsel %vm13824_vm15, %v17352_v45, %v17357_v35  ;;  %v17481_v10 = vpop.permute.xlu0 %7164 }
 0x346   : > { %v6331_v13 = vsel %vm13824_vm15, %v6326_v9, %v6330_v27  ;;  %6698 = vrot.lane.b32.xlu1 %v12201_v16, %s13558_s29  ;;  %v6340_v17 = vrot.slane %v6339_v23, 4  ;;  %v4143_v36 = vsel %vm15487_vm6, 0, %v4142_v24  ;;  %v12241_v48 = vcombine.low %v5568_v61, %v5578_v37 }
 0x347   : > { %v12295_v15 = vcombine.low %v6321_v19, %v6331_v13  ;;  %v7378_v12 = vsel %vm3790_vm14, %v12240_v5, %v17204_v6  ;;  %v6349_v60 = vor.u32 %v6348_v33, %v6344_v0  ;;  %v5944_v32 = vrot.slane %v5942_v21, 4  ;;  %4144 = vst [vmem:[#allocation3 + $0xcc] sm:$0x1] %v4143_v36  ;;  %v17508_v5 = vpop.permute.xlu1 %6860  ;;  %v13438_v13 = vld [vmem:[#allocation3 + $0x7c] sm:$0xf] }
 0x348   : > { %v12233_v45 = vcombine.low %v17485_v49, %v17453_v43  ;;  %v12153_v35 = vrot.slane %v5786_v47, 9  ;;  %v6370_v28 = vshrl.u32 %v17464_v62, 16  ;;  %v4198_v53 = vsel %vm15504_vm3, 0, %v4197_v59  ;;  %v19103_v47 = vld [vmem:[#allocation12_spill] sm:$0xff] }
 0x349   : > { %7174 = vrot.lane.b32.xlu0 %v12295_v15, %s13562_s13  ;;  %v6350_v27 = vrot.slane %v6349_v60, 4  ;;  %v6354_v23 = vrot.slane %v6352_v2, 5  ;;  %v5945_v6 = vrot.slane %v17477_v26, 5  ;;  %4199 = vst [vmem:[#allocation3 + $0xd4] sm:$0x1] %v4198_v53  ;;  %v6366_v54 = vshll.u32 %v17464_v62, 16  ;;  %v17518_v2 = vpop.permute.xlu0 %7086 }
 0x34a   : > { %6874 = vrot.lane.b32.xlu1 %v12233_v45, %s13562_s13  ;;  %v6345_v9 = vsel %vm13824_vm15, %v6340_v17, %v6344_v0  ;;  %v6372_v34 = vrot.slane %v6370_v28, 4  ;;  %v7454_v33 = vsel %vm7309_vm11, %v17335_v52, %v17364_v58  ;;  %v7288_v46 = vsel %vm7276_vm9, %v17341_v1, %v17189_v31  ;;  %v19101_v31 = vld [vmem:[#allocation24_spill] sm:$0xff]  ;;  %v19102_v1 = vld [vmem:[#allocation25_spill] sm:$0xff] }
 0x34b   : > { %v6355_v24 = vsel %vm13824_vm15, %v6350_v27, %v6354_v23  ;;  %v5946_v37 = vsel %vm13737_vm10, %v5944_v32, %v5945_v6  ;;  %v17510_v16 = vrot.slane %v6366_v54, 5  ;;  %7757 = vmatprep.mubr.bf16.mxu1 %v7454_v33  ;;  %v7326_v19 = vsel %vm7309_vm11, %v7288_v46, %v16892_v30  ;;  %v13439_v32 = vld [vmem:[#allocation3 + $0x70] sm:$0xf]  ;;  %v13440_v27 = vld [vmem:[#allocation3 + $0x80] sm:$0x1] }
 0x34c   : > { %v12296_v59 = vcombine.low %v6345_v9, %v6355_v24  ;;  %7758 = vmatmul.mubr.bf16.gmra.mrb[20].mxu1 %v7326_v19  ;;  %v7419_v52 = vsel %vm7276_vm9, %v7378_v12, %v17055_v44  ;;  %v5610_v58 = vor.u32 %v19102_v1, %v19101_v31  ;;  %v5613_v0 = vshll.u32 %v13438_v13, 16  ;;  %v19104_v1 = vld [vmem:[#allocation8_spill] sm:$0xff] }
 0x34d   : > { %v7381_v61 = vsel %vm3790_vm14, %v12241_v48, %v19103_v47  ;;  %v6373_v15 = vor.u32 %v6372_v34, %v17510_v16  ;;  %v7457_v30 = vsel %vm7309_vm11, %v7419_v52, %v17261_v7  ;;  %v5617_v17 = vshrl.u32 %v13438_v13, 16  ;;  %v17530_v7 = vpop.f32.mrb[40].mxu0  ;;  %v13441_v47 = vld [vmem:[#allocation3 + $0x58] sm:$0xf] }
 0x34e   : > { %7176 = vrot.lane.b32.xlu0 %v12296_v59, %s13562_s13  ;;  %v5943_v44 = vsel %vm13737_vm10, %v12153_v35, %v5942_v21  ;;  %v5978_v36 = vld [vmem:[#allocation3 + $0xcc] sm:$0xf]  ;;  %v7421_v12 = vsel %vm7276_vm9, %v7381_v61, %v17307_v57  ;;  %7765 = vmatprep.mubr.bf16.mxu1 %v7457_v30  ;;  %v5615_v60 = vrot.slane %v5613_v0, 5  ;;  %v5589_v45 = vshll.u32 %v13439_v32, 16  ;;  %v17537_v9 = vpop.f32.mrb[41].mxu0 }
 0x34f   : > { %v12265_v48 = vcombine.low %v5943_v44, %v5946_v37  ;;  %v6357_v28 = vshrl.u32 %v5978_v36, 16  ;;  %v6360_v53 = vshll.u32 %v5978_v36, 16  ;;  %v5623_v23 = vshll.u32 %v13440_v27, 16  ;;  %v6683_v37 = vpop.permute.xlu1 %6682  ;;  %v17540_v19 = vpop.f32.mrb[42].mxu0  ;;  %v13442_v61 = vld [vmem:[#allocation3 + $0x54] sm:$0xf] }
 0x350   : > { %v12281_v6 = vcombine.low %v5978_v36, %v17464_v62  ;;  %v17533_v54 = vld [vmem:[#allocation3 + $0xd4] sm:$0x1]  ;;  %v5611_v21 = vrot.slane %v5610_v58, 4  ;;  %v5619_v35 = vrot.slane %v5617_v17, 4  ;;  %v5586_v57 = vor.u32 %v17288_v25, %v17278_v42  ;;  %v7163_v42 = vpop.permute.xlu0 %7162  ;;  %v17546_v25 = vpop.f32.mrb[43].mxu0 }
 0x351   : > { %v6359_v34 = vrot.slane %v6357_v28, 4  ;;  %v6362_v33 = vrot.slane %v6360_v53, 5  ;;  %v6374_v46 = vrot.slane %v6373_v15, 4  ;;  %v6376_v24 = vshll.u32 %v17533_v54, 16 }
 0x352   : > { %7002 = vrot.lane.b32.xlu0 %v12265_v48, %s13558_s29  ;;  %v5620_v59 = vor.u32 %v5619_v35, %v5615_v60  ;;  %v5591_v52 = vrot.slane %v5589_v45, 5  ;;  %v5593_v31 = vshrl.u32 %v13439_v32, 16  ;;  %v7290_v58 = vsel %vm7276_vm9, %v17331_v55, %v19104_v1  ;;  %v13443_v45 = vld [vmem:[#allocation3 + $0x74] sm:$0x1]  ;;  %v13444_v1 = vld [vmem:[#allocation3 + $0x88] sm:$0xf] }
 0x353   : > { %v6363_v13 = vor.u32 %v6362_v33, %v6359_v34  ;;  %v6378_v0 = vrot.slane %v6376_v24, 5  ;;  %v12177_v15 = vcombine.low %v13442_v61, %v13441_v47  ;;  %v7329_v30 = vsel %vm7309_vm11, %v7290_v58, %v17267_v4 }
 0x354   : > { %v5621_v17 = vrot.slane %v5620_v59, 4  ;;  %v5625_v44 = vrot.slane %v5623_v23, 5  ;;  %v5595_v36 = vrot.slane %v5593_v31, 4  ;;  %v5599_v32 = vshll.u32 %v13443_v45, 16  ;;  %7766 = vmatmul.mubr.bf16.gmra.mrb[24].mxu1 %v7329_v30 }
 0x355   : > { %v6364_v48 = vrot.slane %v6363_v13, 4  ;;  %v6379_v55 = vsel %vm13824_vm15, %v6374_v46, %v6378_v0  ;;  %v7251_v28 = vsel %vm3790_vm14, %v12177_v15, %v6683_v37  ;;  %v7460_v53 = vsel %vm7309_vm11, %v7421_v12, %v7163_v42  ;;  %v13445_v13 = vld [vmem:[#allocation3 + $0x64] sm:$0xf]  ;;  %v17583_v15 = vpop.permute.xlu0 %6994 }
 0x356   : > { %7098 = vrot.lane.b32.xlu0 %v12281_v6, %s13561_s22  ;;  %v5616_v27 = vsel %vm13824_vm15, %v5611_v21, %v5615_v60  ;;  %v5626_v4 = vsel %vm13824_vm15, %v5621_v17, %v5625_v44  ;;  %v5587_v23 = vrot.slane %v5586_v57, 4  ;;  %v5596_v35 = vor.u32 %v5595_v36, %v5591_v52  ;;  %7773 = vmatprep.mubr.bf16.mxu1 %v7460_v53  ;;  %v13447_v17 = vld [vmem:[#allocation3 + $0x8c] sm:$0x1]  ;;  %v17587_v36 = vpop.permute.xlu1 %6768 }
 0x357   : > { %v19105_v34 = vshrl.u32 %v19086_v40, 16  ;;  %v19106_v46 = vshll.u32 %v17319_v8, 16  ;;  %v6369_v12 = vsel %vm13824_vm15, %v6364_v48, %v17510_v16  ;;  %v12243_v6 = vcombine.low %v5616_v27, %v5626_v4 }
 0x358   : > { %v12297_v37 = vcombine.low %v6369_v12, %v6379_v55  ;;  %v5597_v59 = vrot.slane %v5596_v35, 4  ;;  %v5601_v60 = vrot.slane %v5599_v32, 5  ;;  %v7292_v21 = vsel %vm7276_vm9, %v7251_v28, %v17421_v41 }
 0x359   : > { %v5630_v33 = vrot.slane %v19105_v34, 4  ;;  %v5633_v24 = vrot.slane %v19106_v46, 5  ;;  %v17570_v57 = vsel %vm3790_vm14, %v12243_v6, %v17402_v18  ;;  %v5592_v40 = vsel %vm13824_vm15, %v5587_v23, %v5591_v52  ;;  %v13446_v18 = vld [vmem:[#allocation3 + $0x60] sm:$0xf]  ;;  %v6993_v35 = vpop.permute.xlu0 %6992 }
 0x35a   : > { %7178 = vrot.lane.b32.xlu0 %v12297_v37, %s13562_s13  ;;  %v5602_v8 = vsel %vm13824_vm15, %v5597_v59, %v5601_v60  ;;  %v7332_v31 = vsel %vm7309_vm11, %v7292_v21, %v17197_v3  ;;  %v5637_v58 = vshll.u32 %v13444_v1, 16  ;;  %v5641_v42 = vshrl.u32 %v13444_v1, 16  ;;  %v19107_v60 = vld [vmem:[#allocation27_spill] sm:$0xff]  ;;  %v19108_v1 = vld [vmem:[#allocation28_spill] sm:$0xff] }
 0x35b   : > { %v12242_v16 = vcombine.low %v5592_v40, %v5602_v8  ;;  %v5634_v41 = vor.u32 %v5633_v24, %v5630_v33  ;;  %v12178_v0 = vcombine.low %v13446_v18, %v13445_v13  ;;  %v5647_v3 = vshll.u32 %v13447_v17, 16 }
 0x35c   : > { %7774 = vmatmul.mubr.bf16.gmra.mrb[28].mxu1 %v7332_v31  ;;  %v5639_v61 = vrot.slane %v5637_v58, 5  ;;  %v5643_v30 = vrot.slane %v5641_v42, 4  ;;  %v5724_v28 = vshrl.u32 %v17284_v11, 16  ;;  %v5727_v53 = vshll.u32 %v17284_v11, 16 }
 0x35d   : > { %v7384_v47 = vsel %vm3790_vm14, %v12242_v16, %v17428_v51  ;;  %v7254_v44 = vsel %vm3790_vm14, %v12178_v0, %v17470_v39  ;;  %v5635_v32 = vrot.slane %v5634_v41, 4  ;;  %v5649_v55 = vrot.slane %v5647_v3, 5  ;;  %v6395_v41 = vld [vmem:[#allocation3 + $0xcc] sm:$0xe] }
 0x35e   : > { %v7423_v52 = vsel %vm7276_vm9, %v7384_v47, %v17227_v56  ;;  %v5644_v51 = vor.u32 %v5643_v30, %v5639_v61  ;;  %v7294_v56 = vsel %vm7276_vm9, %v7254_v44, %v17385_v14  ;;  %v5748_v27 = vshrl.u32 %v17485_v49, 16  ;;  %v17603_v14 = vpop.permute.xlu1 %6766 }
 0x35f   : > { %v7463_v45 = vsel %vm7309_vm11, %v7423_v52, %v17481_v10  ;;  %v7335_v39 = vsel %vm7309_vm11, %v7294_v56, %v17508_v5  ;;  %v5751_v4 = vshll.u32 %v17485_v49, 16  ;;  %v5640_v10 = vsel %vm13824_vm15, %v5635_v32, %v5639_v61 }
 0x360   : > { %7781 = vmatprep.mubr.bf16.mxu1 %v7463_v45  ;;  %v5645_v48 = vrot.slane %v5644_v51, 4  ;;  %v5726_v33 = vrot.slane %v5724_v28, 4  ;;  %v5729_v11 = vrot.slane %v5727_v53, 5  ;;  %v5750_v5 = vrot.slane %v5748_v27, 4 }
 0x361   : > { %v5753_v24 = vrot.slane %v5751_v4, 5  ;;  %v5733_v6 = vshll.u32 %v17270_v20, 16  ;;  %v5737_v59 = vshrl.u32 %v17270_v20, 16  ;;  %v12185_v21 = vcombine.low %v19107_v60, %v17337_v22 }
 0x362   : > { %v5650_v23 = vsel %vm13824_vm15, %v5645_v48, %v5649_v55  ;;  %v17610_v12 = vpop.permute.xlu1 %6866  ;;  %v5730_v37 = vor.u32 %v5729_v11, %v5726_v33  ;;  %v5757_v16 = vshll.u32 %v17453_v43, 16  ;;  %v5743_v58 = vshll.u32 %v19108_v1, 16 }
 0x363   : > { %v12244_v34 = vcombine.low %v5640_v10, %v5650_v23  ;;  %v5735_v40 = vrot.slane %v5733_v6, 5  ;;  %v5754_v8 = vor.u32 %v5753_v24, %v5750_v5  ;;  %v5739_v31 = vrot.slane %v5737_v59, 4  ;;  %v17644_v23 = vpop.permute.xlu0 %7092 }
 0x364   : > { %7782 = vmatmul.mubr.bf16.gmra.mrb[32].mxu1 %v7335_v39  ;;  %v5759_v18 = vrot.slane %v5757_v16, 5  ;;  %v5731_v47 = vrot.slane %v5730_v37, 4  ;;  %v5767_v30 = vshll.u32 %v17477_v26, 16  ;;  %v5745_v45 = vrot.slane %v5743_v58, 5  ;;  %v13449_v16 = vld [vmem:[#allocation3 + $0x6c] sm:$0xf] }
 0x365   : > { %v7390_v46 = vsel %vm3790_vm14, %v12244_v34, %v6993_v35  ;;  %v5755_v13 = vrot.slane %v5754_v8, 4  ;;  %v5740_v61 = vor.u32 %v5739_v31, %v5735_v40  ;;  %v6551_v48 = vrot.slane %v17464_v62, 5  ;;  %v9331_v34 = vld [vmem:[#allocation4 + $0x8] sm:$0x1]  ;;  %v13448_v8 = vld [vmem:[#allocation3 + $0x70] sm:$0xf] }
 0x366   : > { %v17608_v49 = vsel %vm7276_vm9, %v7390_v46, %v17444_v38  ;;  %v5761_v38 = vshrl.u32 %v17453_v43, 16  ;;  %v17621_v0 = vpop.permute.xlu1 %6688  ;;  %v12169_v43 = vrot.slane %v6395_v41, 9  ;;  %v6554_v55 = vrot.slane %v17533_v54, 5  ;;  %v9362_v46 = vld [vmem:[#allocation4 + $0xc] sm:$0x1] }
 0x367   : > { %v5760_v3 = vsel %vm13824_vm15, %v5755_v13, %v5759_v18  ;;  %v5741_v44 = vrot.slane %v5740_v61, 4  ;;  %v5736_v56 = vsel %vm13824_vm15, %v5731_v47, %v5735_v40  ;;  %v5769_v53 = vrot.slane %v5767_v30, 5 }
 0x368   : > { %v5763_v52 = vrot.slane %v5761_v38, 4  ;;  %v6552_v27 = vsel %vm13737_vm10, %v12169_v43, %v6551_v48  ;;  %v6553_v4 = vrot.slane %v6551_v48, 4  ;;  %vm9319_vm12 = vcmask 519168  }
 0x369   : > { %v5746_v26 = vsel %vm13824_vm15, %v5741_v44, %v5745_v45  ;;  %v19109_v11 = vmov 0   ;;  %vm9321_vm6 = vcmask 516096   ;;  %vm19110_vm3 = vsmask.f32 256  ;;  %v13451_v44 = vld [vmem:[#allocation3 + $0xa0] sm:$0xf] }
 0x36a   : > { %v5764_v51 = vor.u32 %v5763_v52, %v5759_v18  ;;  %v17638_v39 = vcombine.low %v5736_v56, %v5746_v26  ;;  %v17642_v10 = vpop.permute.xlu1 %6864  ;;  %v6555_v35 = vsel %vm13737_vm10, %v6553_v4, %v6554_v55  ;;  %9320 = vst.msk [vmem:[#allocation4] sm:$0xf] %vm9319_vm12, %v19109_v11  ;;  %9324 = vst.msk [vmem:[#allocation4 + $0x48] sm:$0xf] %vm9319_vm12, %v19109_v11  ;;  %vm19113_vm0 = vsmask.f32 7938 }
 0x36b   : > { %v12313_v33 = vcombine.low %v6552_v27, %v6555_v35  ;;  %vm17657_vm13 = vmand %vm9321_vm6, %vm19110_vm3  ;;  %9322 = vst.msk [vmem:[#allocation4 + $0x4] sm:$0x1] %vm9321_vm6, %v19109_v11  ;;  %v19114_v6 = vmov 0  ;;  %v12179_v31 = vcombine.low %v13449_v16, %v13448_v8  ;;  %v7425_v13 = vsel %vm7276_vm9, %v17570_v57, %v17518_v2  ;;  %v13450_v52 = vld [vmem:[#allocation3 + $0x94] sm:$0xf] }
 0x36c   : > { %v5765_v28 = vrot.slane %v5764_v51, 4  ;;  %9325 = vst.msk [vmem:[#allocation4 + $0x4c] sm:$0x1] %vm9321_vm6, %v19109_v11  ;;  %v9332_v24 = vsel %vm17657_vm13, 0, %v9331_v34  ;;  %vm17667_vm1 = vmand %vm9321_vm6, %vm19113_vm0  ;;  %v7169_v40 = vpop.permute.xlu0 %7168  ;;  %v5661_v30 = vshll.u32 %v13450_v52, 16  ;;  %v5685_v45 = vshll.u32 %v13451_v44, 16 }
 0x36d   : > { %v17619_v42 = vpop.f32.mrb[44].mxu0  ;;  %13125 = vmatmul.mubr.msk.bf16.gmra.mrb[60].mxu0 %vm3790_vm14, %v12313_v33  ;;  %v19115_v6 = vsel %vm17667_vm1, 4294967295, %v19114_v6  ;;  %9333 = vst [vmem:[#allocation4 + $0x8] sm:$0x1] %v9332_v24  ;;  %v9363_v37 = vsel %vm17667_vm1, 0, %v9362_v46  ;;  %v5689_v51 = vshrl.u32 %v13451_v44, 16  ;;  %vm19125_vm8 = vmmov %vm19113_vm0 }
 0x36e   : > { %v17623_v20 = vpop.f32.mrb[45].mxu0  ;;  %v5770_v62 = vsel %vm13824_vm15, %v5765_v28, %v5769_v53  ;;  %19116 = vst [vmem:[#allocation18_spill] sm:$0xff] %v19115_v6  ;;  %v6687_v59 = vpop.permute.xlu1 %6686  ;;  %9364 = vst [vmem:[#allocation4 + $0xc] sm:$0x1] %v9363_v37  ;;  %v13452_v57 = vld [vmem:[#allocation3 + $0x90] sm:$0xf] }
 0x36f   : > { %v17626_v17 = vpop.f32.mrb[46].mxu0  ;;  %v17648_v54 = vcombine.low %v5760_v3, %v5770_v62  ;;  %v7257_v38 = vsel %vm3790_vm14, %v12179_v31, %v6687_v59  ;;  %v5665_v3 = vshrl.u32 %v13450_v52, 16  ;;  %v5652_v48 = vshrl.u32 %v13452_v57, 16  ;;  %v13453_v56 = vld [vmem:[#allocation3 + $0x9c] sm:$0xf]  ;;  %v19118_v44 = vld [vmem:[#allocation9_spill] sm:$0xff]  ;;  %vm17841_vm6 = vmand %vm9319_vm12, %vm19125_vm8 }
 0x370   : > { %v17630_v32 = vpop.f32.mrb[47].mxu0  ;;  %v7296_v41 = vsel %vm7276_vm9, %v7257_v38, %v17603_v14  ;;  %v7469_v14 = vsel %vm7309_vm11, %v17608_v49, %v7169_v40  ;;  %v5655_v55 = vshll.u32 %v13452_v57, 16  ;;  %v5676_v26 = vshrl.u32 %v13453_v56, 16  ;;  %v13454_v28 = vld [vmem:[#allocation3 + $0x7c] sm:$0xf] }
 0x371   : > { %v7338_v43 = vsel %vm7309_vm11, %v7296_v41, %v17440_v50  ;;  %v13455_v53 = vld [vmem:[#allocation3 + $0x78] sm:$0xf]  ;;  %v17693_v50 = vld [vmem:[%s18931_s4] ss:$0 sm:$0xff]  ;;  %v5679_v49 = vshll.u32 %v13453_v56, 16  ;;  %v5663_v33 = vrot.slane %v5661_v30, 5 }
 0x372   : > { %v17673_v1 = vpop.permute.xlu1 %6772  ;;  %v12180_v27 = vcombine.low %v13455_v53, %v13454_v28  ;;  %v5667_v11 = vrot.slane %v5665_v3, 4  ;;  %v5687_v59 = vrot.slane %v5685_v45, 5  ;;  %v5691_v40 = vrot.slane %v5689_v51, 4 }
 0x373   : > { %v17675_v58 = vpop.permute.xlu0 %7090  ;;  %v5654_v31 = vrot.slane %v5652_v48, 4  ;;  %v5657_v38 = vrot.slane %v5655_v55, 5  ;;  %v5678_v41 = vrot.slane %v5676_v26, 4  ;;  %v13457_v48 = vld [vmem:[#allocation3 + $0xa4] sm:$0x1]  ;;  %vm9720_vm4 = vcmask 1045509  }
 0x374   : > { %v7260_v34 = vsel %vm3790_vm14, %v12180_v27, %v17621_v0  ;;  %v19117_v0 = vld [vmem:[#allocation16_spill] sm:$0xff]  ;;  %v5695_v55 = vshll.u32 %v13457_v48, 16  ;;  %vm9723_vm5 = vcmask 1046534   ;;  %vm9726_vm7 = vcmask 1047559  }
 0x375   : > { %v5658_v51 = vor.u32 %v5657_v38, %v5654_v31  ;;  %vm11802_vm12 = vcmask 8192  }
 0x376   : > { %v17683_v18 = vpop.permute.xlu1 %6770 }
 0x377   : > { %v5659_v27 = vrot.slane %v5658_v51, 4 }
 0x379   : > { %v5664_v31 = vsel %vm13824_vm15, %v5659_v27, %v5663_v33 }
 0x37a   : > { %v17697_v46 = vpop.permute.xlu1 %6692 }
 0x37e   : > { %v17708_v30 = vpop.permute.xlu1 %6868 }
 0x382   : > { %v6691_v53 = vpop.permute.xlu1 %6690 }
 0x387   : > { %v7167_v47 = vpop.permute.xlu0 %7166 }
 0x388   : > { %v7466_v61 = vsel %vm7309_vm11, %v7425_v13, %v7167_v47  ;;  %v12838_v2 = vpop.f32.mrb[0].mxu1  ;;  %v5681_v13 = vrot.slane %v5679_v49, 5  ;;  %v7298_v47 = vsel %vm7276_vm9, %v7260_v34, %v17587_v36  ;;  %v13458_v34 = vld [vmem:[#allocation3 + $0x88] sm:$0xf] }
 0x389   : > { %7789 = vmatprep.mubr.bf16.mxu1 %v7466_v61  ;;  %v12839_v4 = vpop.f32.mrb[1].mxu1  ;;  %v7341_v3 = vsel %vm7309_vm11, %v7298_v47, %v17642_v10  ;;  %v5697_v10 = vrot.slane %v5695_v55, 5 }
 0x38a   : > { %7790 = vmatmul.mubr.bf16.gmra.mrb[36].mxu1 %v7338_v43  ;;  %v12840_v62 = vadd.f32 %v12839_v4, %v12838_v2  ;;  %v12841_v35 = vpop.f32.mrb[2].mxu1  ;;  %v5668_v43 = vor.u32 %v5667_v11, %v5663_v33  ;;  %v13456_v2 = vld [vmem:[#allocation3 + $0x98] sm:$0x1]  ;;  %v5682_v36 = vor.u32 %v5681_v13, %v5678_v41  ;;  %v13459_v11 = vld [vmem:[#allocation3 + $0x84] sm:$0xf] }
 0x38b   : > { %7797 = vmatprep.mubr.bf16.mxu1 %v7469_v14  ;;  %v12842_v24 = vpop.f32.mrb[3].mxu1  ;;  %v17699_v37 = vpop.permute.xlu0 %6998  ;;  %v5692_v14 = vor.u32 %v5691_v40, %v5687_v59  ;;  %v5671_v57 = vshll.u32 %v13456_v2, 16 }
 0x38c   : > { %v7720_v8 = vadd.f32 %v12840_v62, %v17693_v50  ;;  %v12843_v16 = vadd.f32 %v12842_v24, %v12841_v35  ;;  %v5669_v26 = vrot.slane %v5668_v43, 4  ;;  %v5683_v49 = vrot.slane %v5682_v36, 4  ;;  %v9334_v62 = vld [vmem:[#allocation4 + $0x10] sm:$0x1] }
 0x38d   : > { %v5693_v28 = vrot.slane %v5692_v14, 4  ;;  %v5673_v4 = vrot.slane %v5671_v57, 5  ;;  %v12181_v24 = vcombine.low %v13459_v11, %v13458_v34  ;;  %v9335_v13 = vsel %vm17657_vm13, 0, %v9334_v62  ;;  %v9328_v11 = vld [vmem:[#allocation4] sm:$0x1] }
 0x38e   : > { %v17705_v61 = vadd.f32 %v19117_v0, %v7720_v8  ;;  %v7723_v52 = vadd.f32 %v12843_v16, %v17693_v50  ;;  %v9365_v16 = vld [vmem:[#allocation4 + $0x14] sm:$0x1]  ;;  %v5688_v41 = vsel %vm13824_vm15, %v5683_v49, %v5687_v59  ;;  %v17726_v0 = vpop.permute.xlu1 %6774  ;;  %9336 = vst [vmem:[#allocation4 + $0x10] sm:$0x1] %v9335_v13  ;;  %v13463_v49 = vld [vmem:[#allocation3 + $0xa8] sm:$0xf] }
 0x38f   : > { %v6997_v56 = vpop.permute.xlu0 %6996  ;;  %v5674_v35 = vsel %vm13824_vm15, %v5669_v26, %v5673_v4  ;;  %v5698_v40 = vsel %vm13824_vm15, %v5693_v28, %v5697_v10  ;;  %v7263_v38 = vsel %vm3790_vm14, %v12181_v24, %v6691_v53  ;;  %v13461_v26 = vld [vmem:[#allocation3 + $0x90] sm:$0xf]  ;;  %v13462_v53 = vld [vmem:[#allocation3 + $0xac] sm:$0xf]  ;;  %v5700_v10 = vshrl.u32 %v13463_v49, 16 }
 0x390   : > { %v17713_v45 = vadd.f32 %v19118_v44, %v7723_v52  ;;  %v12245_v47 = vcombine.low %v5664_v31, %v5674_v35  ;;  %v12246_v52 = vcombine.low %v5688_v41, %v5698_v40  ;;  %v7300_v59 = vsel %vm7276_vm9, %v7263_v38, %v17683_v18  ;;  %v9359_v24 = vld [vmem:[#allocation4 + $0x4] sm:$0x1] }
 0x391   : > { %v5709_v27 = vshll.u32 %v13462_v53, 16  ;;  %v5713_v4 = vshrl.u32 %v13462_v53, 16  ;;  %v9360_v31 = vsel %vm17667_vm1, 0, %v9359_v24  ;;  %v5702_v38 = vrot.slane %v5700_v10, 4 }
 0x392   : > { %7798 = vmatmul.mubr.bf16.gmra.mrb[40].mxu1 %v7341_v3  ;;  %v9366_v3 = vsel %vm17667_vm1, 0, %v9365_v16  ;;  %v7393_v33 = vsel %vm3790_vm14, %v12245_v47, %v17583_v15  ;;  %v7396_v43 = vsel %vm3790_vm14, %v12246_v52, %v6997_v56  ;;  %v7344_v15 = vsel %vm7309_vm11, %v7300_v59, %v17610_v12  ;;  %v17750_v55 = vpop.permute.xlu1 %6870  ;;  %v13460_v56 = vld [vmem:[#allocation3 + $0x94] sm:$0xf]  ;;  %9361 = vst [vmem:[#allocation4 + $0x4] sm:$0x1] %v9360_v31 }
 0x393   : > { %9367 = vst [vmem:[#allocation4 + $0x14] sm:$0x1] %v9366_v3  ;;  %v7429_v44 = vsel %vm7276_vm9, %v7393_v33, %v17675_v58  ;;  %v7431_v48 = vsel %vm7276_vm9, %v7396_v43, %v17644_v23  ;;  %v12182_v28 = vcombine.low %v13461_v26, %v13460_v56  ;;  %v5703_v12 = vshll.u32 %v13463_v49, 16  ;;  %v13464_v52 = vld [vmem:[#allocation3 + $0xb0] sm:$0x1] }
 0x394   : > { %v5711_v62 = vrot.slane %v5709_v27, 5  ;;  %v5715_v35 = vrot.slane %v5713_v4, 4  ;;  %v9329_v16 = vsel %vm17657_vm13, 0, %v9328_v11  ;;  %v5719_v3 = vshll.u32 %v13464_v52, 16  ;;  %v13468_v52 = vld [vmem:[#allocation3 + $0xac] sm:$0xf] }
 0x395   : > { %v7266_v23 = vsel %vm3790_vm14, %v12182_v28, %v17697_v46  ;;  %v5705_v41 = vrot.slane %v5703_v12, 5  ;;  %9330 = vst [vmem:[#allocation4] sm:$0x1] %v9329_v16  ;;  %v13563_v59 = vmov 1983009808   ;;  %v8007_v10 = vmax.f32 %v17705_v61, 0.0 }
 0x396   : > { %v17755_v40 = vpop.permute.xlu1 %6696  ;;  %v5716_v13 = vor.u32 %v5715_v35, %v5711_v62 }
 0x397   : > { %v5706_v47 = vor.u32 %v5705_v41, %v5702_v38  ;;  %v8071_v31 = vcombine.high %v8007_v10, %v8007_v10  ;;  %v8008_v38 = vmax.f32 %v17713_v45, 0.0  ;;  %v9368_v41 = vld [vmem:[#allocation4 + $0x1c] sm:$0x1]  ;;  %v13467_v45 = vld [vmem:[#allocation3 + $0xa8] sm:$0xf] }
 0x398   : > { %v5717_v43 = vrot.slane %v5716_v13, 4  ;;  %v9369_v13 = vsel %vm17667_vm1, 0, %v9368_v41 }
 0x399   : > { %9370 = vst [vmem:[#allocation4 + $0x1c] sm:$0x1] %v9369_v13 }
 0x39b   : > { %v7173_v8 = vpop.permute.xlu0 %7172 }
 0x39c   : > { %v7475_v58 = vsel %vm7309_vm11, %v7431_v48, %v7173_v8  ;;  %v7302_v8 = vsel %vm7276_vm9, %v7266_v23, %v17673_v1  ;;  %v6695_v1 = vpop.permute.xlu1 %6694 }
 0x39d   : > { %v17735_v14 = vpop.f32.mrb[48].mxu0  ;;  %v7347_v46 = vsel %vm7309_vm11, %v7302_v8, %v17708_v30  ;;  %v13466_v30 = vld [vmem:[#allocation3 + $0x9c] sm:$0xf] }
 0x39e   : > { %v17739_v2 = vpop.f32.mrb[49].mxu0 }
 0x39f   : > { %v17742_v36 = vpop.f32.mrb[50].mxu0 }
 0x3a0   : > { %v7171_v51 = vpop.permute.xlu0 %7170  ;;  %v17748_v18 = vpop.f32.mrb[51].mxu0 }
 0x3a1   : > { %v7472_v57 = vsel %vm7309_vm11, %v7429_v44, %v7171_v51  ;;  %v8073_v44 = vunpack.c.l.s4 %v13563_v59  ;;  %v8075_v51 = vlaneseq  ;;  %v6777_v28 = vpop.permute.xlu1 %6776 }
 0x3a2   : > { %7805 = vmatprep.mubr.bf16.mxu1 %v7472_v57  ;;  %v5707_v57 = vrot.slane %v5706_v47, 4 }
 0x3a3   : > { %7806 = vmatmul.mubr.bf16.gmra.mrb[44].mxu1 %v7344_v15  ;;  %v5721_v15 = vrot.slane %v5719_v3, 5  ;;  %v8074_v53 = vunpack.c.0.s8 %v8073_v44  ;;  %v17767_v27 = vshrl.u32 %v8075_v51, 7  ;;  %v12184_v3 = vcombine.low %v13467_v45, %v13468_v52  ;;  %v19122_v52 = vld [vmem:[#allocation10_spill] sm:$0xff] }
 0x3a4   : > { %7813 = vmatprep.mubr.bf16.mxu1 %v7475_v58  ;;  %v7095_v34 = vpop.permute.xlu0 %7094  ;;  %v13465_v58 = vld [vmem:[#allocation3 + $0xa0] sm:$0xf]  ;;  %v5712_v4 = vsel %vm13824_vm15, %v5707_v57, %v5711_v62 }
 0x3a5   : > { %v5722_v48 = vsel %vm13824_vm15, %v5717_v43, %v5721_v15  ;;  %v12183_v56 = vcombine.low %v13466_v30, %v13465_v58  ;;  %19119 = vst [vmem:[#allocation30_spill] sm:$0xff] %v17767_v27  ;;  %v6873_v35 = vpop.permute.xlu1 %6872  ;;  %v17778_v24 = vsub.s32 %v8074_v53, %v17767_v27  ;;  %v8088_v43 = vcombine.high %v8008_v38, %v8008_v38 }
 0x3a6   : > { %v12247_v12 = vcombine.low %v5712_v4, %v5722_v48  ;;  %v7272_v15 = vsel %vm3790_vm14, %v12184_v3, %v17755_v40 }
 0x3a7   : > { %v7269_v49 = vsel %vm3790_vm14, %v12183_v56, %v6695_v1  ;;  %19120 = vst [vmem:[#allocation20_spill] sm:$0xff] %v17778_v24  ;;  %v8085_v47 = vrot.slane %v8071_v31, %v17778_v24  ;;  %v8095_v59 = vrot.slane %v8008_v38, %v17778_v24  ;;  %v7306_v30 = vsel %vm7276_vm9, %v7272_v15, %v6777_v28  ;;  %v19121_v28 = vld [vmem:[#allocation17_spill] sm:$0xff] }
 0x3a8   : > { %v7097_v33 = vpop.permute.xlu0 %7096  ;;  %v7399_v23 = vsel %vm3790_vm14, %v12247_v12, %v17699_v37  ;;  %v7304_v11 = vsel %vm7276_vm9, %v7269_v49, %v17726_v0  ;;  %v9337_v37 = vld [vmem:[#allocation4 + $0x18] sm:$0x1]  ;;  %v8102_v49 = vrot.slane %v8088_v43, %v17778_v24 }
 0x3a9   : > { %v7433_v8 = vsel %vm7276_vm9, %v7399_v23, %v7095_v34  ;;  %v7350_v61 = vsel %vm7309_vm11, %v7304_v11, %v17750_v55  ;;  %v9338_v34 = vsel %vm17657_vm13, 0, %v9337_v37  ;;  %v6779_v55 = vpop.permute.xlu1 %6778  ;;  %v8087_v48 = vcombine.high %v8085_v47, %v8085_v47 }
 0x3aa   : > { %9339 = vst [vmem:[#allocation4 + $0x18] sm:$0x1] %v9338_v34  ;;  %v8104_v41 = vcombine.high %v8102_v49, %v8102_v49  ;;  %v12355_v43 = vrot.slane %v8102_v49, 9 }
 0x3ab   : > { %7814 = vmatmul.mubr.bf16.gmra.mrb[48].mxu1 %v7347_v46  ;;  %v8078_v46 = vrot.slane %v8007_v10, %v17778_v24  ;;  %v8103_v10 = vcombine.high %v8095_v59, %v8095_v59  ;;  %v12352_v31 = vrot.slane %v8087_v48, 9 }
 0x3ac   : > { %v12356_v60 = vrot.slane %v8104_v41, 9 }
 0x3ad   : > { %v8086_v51 = vcombine.high %v8078_v46, %v8078_v46  ;;  %v12349_v4 = vrot.slane %v8078_v46, 9 }
 0x3af   : > { %v12350_v11 = vrot.slane %v8086_v51, 9 }
 0x3b0   : > { %v7001_v26 = vpop.permute.xlu0 %7000 }
 0x3b1   : > { %v7402_v0 = vsel %vm3790_vm14, %v17638_v39, %v7001_v26  ;;  %v9128_v13 = vmax.f32 %v8086_v51, %v12350_v11 }
 0x3b2   : > { %v7435_v39 = vsel %vm7276_vm9, %v7402_v0, %v7097_v33  ;;  %v7353_v33 = vsel %vm7309_vm11, %v7306_v30, %v6873_v35  ;;  %v9127_v35 = vmax.f32 %v8078_v46, %v12349_v4  ;;  %v12354_v0 = vrot.slane %v8103_v10, 9 }
 0x3b8   : > { %v6699_v23 = vpop.permute.xlu1 %6698 }
 0x3b9   : > { %v7275_v34 = vsel %vm3790_vm14, %v12185_v21, %v6699_v23  ;;  %v9132_v21 = vmax.f32 %v8103_v10, %v12354_v0 }
 0x3bb   : > { %v7175_v16 = vpop.permute.xlu0 %7174 }
 0x3bc   : > { %v7478_v62 = vsel %vm7309_vm11, %v7433_v8, %v7175_v16  ;;  %v12351_v16 = vrot.slane %v8085_v47, 9 }
 0x3bd   : > { %7821 = vmatprep.mubr.bf16.mxu1 %v7478_v62  ;;  %v12353_v62 = vrot.slane %v8095_v59, 9 }
 0x3be   : > { %7822 = vmatmul.mubr.bf16.gmra.mrb[52].mxu1 %v7350_v61 }
 0x3c0   : > { %v7177_v1 = vpop.permute.xlu0 %7176  ;;  %v12844_v57 = vpop.f32.mrb[4].mxu1 }
 0x3c1   : > { %v7481_v44 = vsel %vm7309_vm11, %v7435_v39, %v7177_v1  ;;  %v12845_v58 = vpop.f32.mrb[5].mxu1  ;;  %v9129_v1 = vmax.f32 %v8085_v47, %v12351_v16  ;;  %v9130_v39 = vmax.f32 %v8087_v48, %v12352_v31 }
 0x3c2   : > { %7829 = vmatprep.mubr.bf16.mxu1 %v7481_v44  ;;  %v12846_v56 = vadd.f32 %v12845_v58, %v12844_v57  ;;  %v12847_v26 = vpop.f32.mrb[6].mxu1  ;;  %v9131_v44 = vmax.f32 %v8095_v59, %v12353_v62  ;;  %v6875_v57 = vpop.permute.xlu1 %6874 }
 0x3c3   : > { %v12848_v12 = vpop.f32.mrb[7].mxu1 }
 0x3c4   : > { %v7003_v53 = vpop.permute.xlu0 %7002  ;;  %v7728_v40 = vadd.f32 %v12846_v56, %v17693_v50  ;;  %v12849_v8 = vadd.f32 %v12848_v12, %v12847_v26  ;;  %v7308_v56 = vsel %vm7276_vm9, %v7275_v34, %v6779_v55 }
 0x3c5   : > { %v7405_v15 = vsel %vm3790_vm14, %v17648_v54, %v7003_v53  ;;  %v7356_v54 = vsel %vm7309_vm11, %v7308_v56, %v6875_v57  ;;  %vm9711_vm14 = vcmask 1042434  }
 0x3c6   : > { %7830 = vmatmul.mubr.bf16.gmra.mrb[56].mxu1 %v7353_v33  ;;  %v7889_v61 = vadd.f32 %v19121_v28, %v7728_v40  ;;  %v7731_v38 = vadd.f32 %v12849_v8, %v17693_v50  ;;  %v9133_v33 = vmax.f32 %v8102_v49, %v12355_v43  ;;  %v9134_v40 = vmax.f32 %v8104_v41, %v12356_v60 }
 0x3c8   : > { %v7099_v37 = vpop.permute.xlu0 %7098  ;;  %v8009_v45 = vmax.f32 %v7889_v61, 0.0  ;;  %v7892_v3 = vadd.f32 %v19122_v52, %v7731_v38 }
 0x3c9   : > { %v7437_v22 = vsel %vm7276_vm9, %v7405_v15, %v7099_v37 }
 0x3ca   : > { %v8105_v46 = vcombine.high %v8009_v45, %v8009_v45  ;;  %v8112_v58 = vrot.slane %v8009_v45, %v17778_v24  ;;  %v8010_v30 = vmax.f32 %v7892_v3, 0.0 }
 0x3cc   : > { %v7179_v51 = vpop.permute.xlu0 %7178  ;;  %v8119_v48 = vrot.slane %v8105_v46, %v17778_v24  ;;  %v8120_v59 = vcombine.high %v8112_v58, %v8112_v58  ;;  %v12357_v26 = vrot.slane %v8112_v58, 9  ;;  %v8122_v53 = vcombine.high %v8010_v30, %v8010_v30 }
 0x3cd   : > { %v7484_v47 = vsel %vm7309_vm11, %v7437_v22, %v7179_v51  ;;  %v8129_v4 = vrot.slane %v8010_v30, %v17778_v24  ;;  %vm9717_vm11 = vcmask 1044484  }
 0x3ce   : > { %7837 = vmatprep.mubr.bf16.mxu1 %v7484_v47  ;;  %v8121_v12 = vcombine.high %v8119_v48, %v8119_v48  ;;  %v12358_v23 = vrot.slane %v8120_v59, 9  ;;  %v12359_v10 = vrot.slane %v8119_v48, 9  ;;  %v9135_v11 = vmax.f32 %v8112_v58, %v12357_v26 }
 0x3cf   : > { %7838 = vmatmul.mubr.bf16.gmra.mrb[60].mxu1 %v7356_v54  ;;  %v8136_v55 = vrot.slane %v8122_v53, %v17778_v24  ;;  %v8137_v8 = vcombine.high %v8129_v4, %v8129_v4  ;;  %v12361_v16 = vrot.slane %v8129_v4, 9 }
 0x3d0   : > { %v12360_v31 = vrot.slane %v8121_v12, 9  ;;  %v9136_v62 = vmax.f32 %v8120_v59, %v12358_v23  ;;  %v9137_v49 = vmax.f32 %v8119_v48, %v12359_v10  ;;  %v9255_v28 = vmax.f32 %v9127_v35, %v9135_v11  ;;  %v17819_v61 = vpop.f32.mrb[52].mxu0  ;;  %v9340_v11 = vld [vmem:[#allocation4 + $0x20] sm:$0x1] }
 0x3d1   : > { %19123 = vst [vmem:[#allocation21_spill] sm:$0xff] %v17819_v61  ;;  %v8138_v38 = vcombine.high %v8136_v55, %v8136_v55  ;;  %v12362_v37 = vrot.slane %v8137_v8, 9  ;;  %v12363_v0 = vrot.slane %v8136_v55, 9  ;;  %v9139_v34 = vmax.f32 %v8129_v4, %v12361_v16  ;;  %v17821_v45 = vpop.f32.mrb[53].mxu0  ;;  %v9857_v16 = vld [vmem:[#allocation4 + $0xc] sm:$0x1] }
 0x3d2   : > { %v9138_v52 = vmax.f32 %v8121_v12, %v12360_v31  ;;  %v9256_v41 = vmax.f32 %v9128_v13, %v9136_v62  ;;  %v9257_v3 = vmax.f32 %v9129_v1, %v9137_v49  ;;  %v12731_v43 = vpack.c.bf16 %v9255_v28, %v9255_v28  ;;  %v17823_v57 = vpop.f32.mrb[54].mxu0 }
 0x3d3   : > { %19124 = vst [vmem:[#allocation15_spill] sm:$0xff] %v17823_v57  ;;  %v12364_v15 = vrot.slane %v8138_v38, 9  ;;  %v9140_v46 = vmax.f32 %v8137_v8, %v12362_v37  ;;  %v9141_v58 = vmax.f32 %v8136_v55, %v12363_v0  ;;  %v9259_v30 = vmax.f32 %v9131_v44, %v9139_v34  ;;  %v17825_v35 = vpop.f32.mrb[55].mxu0  ;;  %v9371_v44 = vld [vmem:[#allocation4 + $0x24] sm:$0x1] }
 0x3d4   : > { %v9258_v22 = vmax.f32 %v9130_v39, %v9138_v52  ;;  %v12732_v60 = vpack.c.bf16 %v9256_v41, %v9256_v41  ;;  %v12733_v51 = vpack.c.bf16 %v9257_v3, %v9257_v3  ;;  %v9645_v56 = vunpack.c.l.b16 %v12731_v43 }
 0x3d5   : > { %v9142_v47 = vmax.f32 %v8138_v38, %v12364_v15  ;;  %v9260_v48 = vmax.f32 %v9132_v21, %v9140_v46  ;;  %v9261_v59 = vmax.f32 %v9133_v33, %v9141_v58  ;;  %v12735_v26 = vpack.c.bf16 %v9259_v30, %v9259_v30 }
 0x3d6   : > { %v12734_v54 = vpack.c.bf16 %v9258_v22, %v9258_v22  ;;  %v9646_v13 = vunpack.c.l.b16 %v12732_v60  ;;  %v9647_v1 = vunpack.c.l.b16 %v12733_v51  ;;  %v9709_v53 = vrot.slane %v9645_v56, 7  ;;  %v9902_v22 = vld [vmem:[#allocation4] sm:$0xf]  ;;  %v9854_v56 = vld [vmem:[#allocation4 + $0x8] sm:$0xf] }
 0x3d7   : > { %v9262_v4 = vmax.f32 %v9134_v40, %v9142_v47  ;;  %v12736_v12 = vpack.c.bf16 %v9260_v48, %v9260_v48  ;;  %v12737_v23 = vpack.c.bf16 %v9261_v59, %v9261_v59  ;;  %v9649_v10 = vunpack.c.l.b16 %v12735_v26 }
 0x3d8   : > { %v9648_v55 = vunpack.c.l.b16 %v12734_v54  ;;  %v9710_v8 = vrot.slane %v9646_v13, 6  ;;  %v9713_v39 = vrot.slane %v9647_v1, 5  ;;  %v9341_v31 = vsel %vm17657_vm13, 0, %v9340_v11  ;;  %v19128_v1 = vld [vmem:[#allocation13_spill] sm:$0xff] }
 0x3d9   : > { %v9650_v21 = vunpack.c.l.b16 %v12736_v12  ;;  %v9651_v33 = vunpack.c.l.b16 %v12737_v23  ;;  %v12795_v62 = vpack.c.bf16 %v9262_v4, %v9262_v4  ;;  %9342 = vst [vmem:[#allocation4 + $0x20] sm:$0x1] %v9341_v31  ;;  %v9372_v28 = vsel %vm17667_vm1, 0, %v9371_v44  ;;  %v19129_v23 = vld [vmem:[#allocation26_spill] sm:$0xff] }
 0x3da   : > { %v9712_v49 = vsel %vm9711_vm14, %v9710_v8, %v9709_v53  ;;  %v9716_v40 = vrot.slane %v9648_v55, 4  ;;  %v9719_v37 = vrot.slane %v9649_v10, 3  ;;  %9373 = vst [vmem:[#allocation4 + $0x24] sm:$0x1] %v9372_v28  ;;  %v9919_v54 = vshrl.u32 %v9902_v22, 16 }
 0x3db   : > { %v9715_v38 = vsel %vm9714_vm2, %v9713_v39, %v9712_v49  ;;  %v9858_v0 = vsel %vm17657_vm13, %v12795_v62, %v9857_v16  ;;  %v9722_v52 = vrot.slane %v9650_v21, 2  ;;  %v9725_v43 = vrot.slane %v9651_v33, 1  ;;  %v9910_v55 = vld [vmem:[#allocation4 + $0x4] sm:$0x1] }
 0x3dc   : > { %v9718_v34 = vsel %vm9717_vm11, %v9716_v40, %v9715_v38  ;;  %9859 = vst [vmem:[#allocation4 + $0xc] sm:$0x1] %v9858_v0  ;;  %v12850_v41 = vpop.f32.mrb[8].mxu1  ;;  %v9922_v12 = vshll.u32 %v9902_v22, 16  ;;  %v9921_v11 = vrot.slane %v9919_v54, 4  ;;  %v9928_v8 = vshll.u32 %v9910_v55, 16 }
 0x3dd   : > { %v9721_v3 = vsel %vm9720_vm4, %v9719_v37, %v9718_v34  ;;  %v12851_v15 = vpop.f32.mrb[9].mxu1 }
 0x3de   : > { %v9724_v46 = vsel %vm9723_vm5, %v9722_v52, %v9721_v3  ;;  %v12852_v58 = vadd.f32 %v12851_v15, %v12850_v41  ;;  %v12853_v30 = vpop.f32.mrb[10].mxu1  ;;  %v9924_v44 = vrot.slane %v9922_v12, 5  ;;  %v9930_v62 = vrot.slane %v9928_v8, 5  ;;  %v19130_v8 = vld [vmem:[#allocation11_spill] sm:$0xff] }
 0x3df   : > { %v9727_v60 = vsel %vm9726_vm7, %v9725_v43, %v9724_v46  ;;  %v12854_v47 = vpop.f32.mrb[11].mxu1 }
 0x3e0   : > { %v9819_v48 = vpack.c.b16 %v9727_v60, %v9727_v60  ;;  %v7736_v59 = vadd.f32 %v12852_v58, %v17693_v50  ;;  %v12855_v26 = vadd.f32 %v12854_v47, %v12853_v30  ;;  %v9925_v16 = vor.u32 %v9924_v44, %v9921_v11  ;;  %v9343_v60 = vld [vmem:[#allocation4 + $0x28] sm:$0x1] }
 0x3e2   : > { %v9855_v13 = vsel %vm17841_vm6, %v9819_v48, %v9854_v56  ;;  %v7897_v53 = vadd.f32 %v19128_v1, %v7736_v59  ;;  %v7739_v4 = vadd.f32 %v12855_v26, %v17693_v50  ;;  %v9926_v49 = vrot.slane %v9925_v16, 4  ;;  %v9374_v56 = vld [vmem:[#allocation4 + $0x2c] sm:$0x1] }
 0x3e3   : > { %9856 = vst [vmem:[#allocation4 + $0x8] sm:$0xf] %v9855_v13  ;;  %v9911_v31 = vld [vmem:[#allocation4 + $0xc] sm:$0x1]  ;;  %v9344_v26 = vsel %vm17657_vm13, 0, %v9343_v60  ;;  %v9375_v54 = vsel %vm17667_vm1, 0, %v9374_v56 }
 0x3e4   : > { %v7900_v10 = vadd.f32 %v19129_v23, %v7739_v4  ;;  %v9942_v38 = vshll.u32 %v9911_v31, 16  ;;  %v9931_v0 = vsel %vm13824_vm15, %v9926_v49, %v9930_v62  ;;  %v8011_v3 = vmax.f32 %v7897_v53, 0.0  ;;  %9345 = vst [vmem:[#allocation4 + $0x28] sm:$0x1] %v9344_v26  ;;  %9376 = vst [vmem:[#allocation4 + $0x2c] sm:$0x1] %v9375_v54 }
 0x3e6   : > { %v9944_v52 = vrot.slane %v9942_v38, 5  ;;  %v8012_v15 = vmax.f32 %v7900_v10, 0.0  ;;  %v8139_v46 = vcombine.high %v8011_v3, %v8011_v3  ;;  %v8146_v58 = vrot.slane %v8011_v3, %v17778_v24 }
 0x3e8   : > { %v8156_v30 = vcombine.high %v8012_v15, %v8012_v15  ;;  %v8153_v47 = vrot.slane %v8139_v46, %v17778_v24  ;;  %v8163_v48 = vrot.slane %v8012_v15, %v17778_v24  ;;  %v8154_v53 = vcombine.high %v8146_v58, %v8146_v58 }
 0x3e9   : > { %v12365_v55 = vrot.slane %v8146_v58, 9 }
 0x3ea   : > { %v9903_v39 = vld [vmem:[#allocation4 + $0x8] sm:$0xf]  ;;  %v8170_v4 = vrot.slane %v8156_v30, %v17778_v24  ;;  %v8155_v11 = vcombine.high %v8153_v47, %v8153_v47  ;;  %v8171_v44 = vcombine.high %v8163_v48, %v8163_v48  ;;  %v12366_v31 = vrot.slane %v8154_v53, 9 }
 0x3eb   : > { %v9933_v21 = vshrl.u32 %v9903_v39, 16  ;;  %v9936_v33 = vshll.u32 %v9903_v39, 16  ;;  %v12369_v62 = vrot.slane %v8163_v48, 9 }
 0x3ec   : > { %v12368_v38 = vrot.slane %v8155_v11, 9 }
 0x3ed   : > { %v9935_v40 = vrot.slane %v9933_v21, 4  ;;  %v9938_v28 = vrot.slane %v9936_v33, 5  ;;  %v12367_v21 = vrot.slane %v8153_v47, 9  ;;  %v8172_v33 = vcombine.high %v8170_v4, %v8170_v4 }
 0x3ee   : > { %v9147_v30 = vmax.f32 %v8163_v48, %v12369_v62  ;;  %v9146_v54 = vmax.f32 %v8155_v11, %v12368_v38 }
 0x3ef   : > { %v9939_v37 = vor.u32 %v9938_v28, %v9935_v40  ;;  %v19131_v40 = vld [vmem:[#allocation19_spill] sm:$0xff]  ;;  %v9145_v15 = vmax.f32 %v8153_v47, %v12367_v21  ;;  %v12372_v46 = vrot.slane %v8172_v33, 9 }
 0x3f1   : > { %v9940_v34 = vrot.slane %v9939_v37, 4  ;;  %v12370_v37 = vrot.slane %v8171_v44, 9  ;;  %v9150_v48 = vmax.f32 %v8172_v33, %v12372_v46 }
 0x3f3   : > { %v9945_v41 = vsel %vm13824_vm15, %v9940_v34, %v9944_v52  ;;  %v9143_v34 = vmax.f32 %v8146_v58, %v12365_v55 }
 0x3f4   : > { %v12577_v43 = vcombine.low %v9931_v0, %v9945_v41  ;;  %v12371_v0 = vrot.slane %v8170_v4, 9 }
 0x3f6   : > { %10487 = vrot.lane.b32.xlu1 %v12577_v43, %s13561_s22  ;;  %v9144_v43 = vmax.f32 %v8154_v53, %v12366_v31 }
 0x3fd   : > { %v12856_v22 = vpop.f32.mrb[12].mxu1 }
 0x3fe   : > { %v12857_v59 = vpop.f32.mrb[13].mxu1 }
 0x3ff   : > { %v12858_v13 = vadd.f32 %v12857_v59, %v12856_v22  ;;  %v12859_v1 = vpop.f32.mrb[14].mxu1 }
 0x400   : > { %v12860_v12 = vpop.f32.mrb[15].mxu1 }
 0x401   : > { %v7744_v23 = vadd.f32 %v12858_v13, %v17693_v50  ;;  %v12861_v10 = vadd.f32 %v12860_v12, %v12859_v1  ;;  %v9148_v13 = vmax.f32 %v8171_v44, %v12370_v37  ;;  %v9149_v1 = vmax.f32 %v8170_v4, %v12371_v0 }
 0x403   : > { %v7905_v39 = vadd.f32 %v19130_v8, %v7744_v23  ;;  %v7747_v16 = vadd.f32 %v12861_v10, %v17693_v50 }
 0x405   : > { %v8013_v49 = vmax.f32 %v7905_v39, 0.0  ;;  %v7908_v28 = vadd.f32 %v19131_v40, %v7747_v16 }
 0x407   : > { %v8173_v52 = vcombine.high %v8013_v49, %v8013_v49  ;;  %v8180_v41 = vrot.slane %v8013_v49, %v17778_v24  ;;  %v8014_v3 = vmax.f32 %v7908_v28, 0.0 }
 0x409   : > { %v8187_v22 = vrot.slane %v8173_v52, %v17778_v24  ;;  %v8188_v60 = vcombine.high %v8180_v41, %v8180_v41  ;;  %v12373_v56 = vrot.slane %v8180_v41, 9  ;;  %v8190_v59 = vcombine.high %v8014_v3, %v8014_v3  ;;  %v17870_v26 = vpop.f32.mrb[56].mxu0 }
 0x40a   : > { %19132 = vst [vmem:[#allocation14_spill] sm:$0xff] %v17870_v26  ;;  %v8197_v58 = vrot.slane %v8014_v3, %v17778_v24  ;;  %v17873_v12 = vpop.f32.mrb[57].mxu0 }
 0x40b   : > { %19133 = vst [vmem:[#allocation22_spill] sm:$0xff] %v17873_v12  ;;  %v8189_v23 = vcombine.high %v8187_v22, %v8187_v22  ;;  %v12374_v10 = vrot.slane %v8188_v60, 9  ;;  %v12375_v53 = vrot.slane %v8187_v22, 9  ;;  %v9151_v47 = vmax.f32 %v8180_v41, %v12373_v56  ;;  %v17875_v55 = vpop.f32.mrb[58].mxu0 }
 0x40c   : > { %19134 = vst [vmem:[#allocation23_spill] sm:$0xff] %v17875_v55  ;;  %v8204_v8 = vrot.slane %v8190_v59, %v17778_v24  ;;  %v8205_v39 = vcombine.high %v8197_v58, %v8197_v58  ;;  %v12377_v16 = vrot.slane %v8197_v58, 9  ;;  %v17878_v31 = vpop.f32.mrb[59].mxu0 }
 0x40d   : > { %19135 = vst [vmem:[#allocation29_spill] sm:$0xff] %v17878_v31  ;;  %v12376_v11 = vrot.slane %v8189_v23, 9  ;;  %v9152_v44 = vmax.f32 %v8188_v60, %v12374_v10  ;;  %v9153_v4 = vmax.f32 %v8187_v22, %v12375_v53  ;;  %v9263_v21 = vmax.f32 %v9143_v34, %v9151_v47  ;;  %v12862_v62 = vpop.f32.mrb[16].mxu1 }
 0x40e   : > { %v8206_v49 = vcombine.high %v8204_v8, %v8204_v8  ;;  %v12378_v40 = vrot.slane %v8205_v39, 9  ;;  %v12379_v28 = vrot.slane %v8204_v8, 9  ;;  %v9155_v38 = vmax.f32 %v8197_v58, %v12377_v16  ;;  %v12863_v37 = vpop.f32.mrb[17].mxu1 }
 0x40f   : > { %v9154_v0 = vmax.f32 %v8189_v23, %v12376_v11  ;;  %v9264_v52 = vmax.f32 %v9144_v43, %v9152_v44  ;;  %v9265_v41 = vmax.f32 %v9145_v15, %v9153_v4  ;;  %v12739_v33 = vpack.c.bf16 %v9263_v21, %v9263_v21  ;;  %v12865_v3 = vpop.f32.mrb[18].mxu1  ;;  %v9863_v21 = vld [vmem:[#allocation4 + $0x14] sm:$0x1] }
 0x410   : > { %v12380_v46 = vrot.slane %v8206_v49, 9  ;;  %v9156_v56 = vmax.f32 %v8205_v39, %v12378_v40  ;;  %v9157_v59 = vmax.f32 %v8204_v8, %v12379_v28  ;;  %v9267_v27 = vmax.f32 %v9147_v30, %v9155_v38  ;;  %v12866_v55 = vpop.f32.mrb[19].mxu1 }
 0x411   : > { %v9266_v26 = vmax.f32 %v9146_v54, %v9154_v0  ;;  %v12740_v60 = vpack.c.bf16 %v9264_v52, %v9264_v52  ;;  %v12741_v22 = vpack.c.bf16 %v9265_v41, %v9265_v41  ;;  %v9653_v34 = vunpack.c.l.b16 %v12739_v33  ;;  %v17888_v41 = vld [vmem:[#allocation4 + $0x8] sm:$0xf] }
 0x412   : > { %v9158_v10 = vmax.f32 %v8206_v49, %v12380_v46  ;;  %v9268_v53 = vmax.f32 %v9148_v13, %v9156_v56  ;;  %v9269_v47 = vmax.f32 %v9149_v1, %v9157_v59  ;;  %v12743_v31 = vpack.c.bf16 %v9267_v27, %v9267_v27 }
 0x413   : > { %v12742_v58 = vpack.c.bf16 %v9266_v26, %v9266_v26  ;;  %v9654_v16 = vunpack.c.l.b16 %v12740_v60  ;;  %v9655_v23 = vunpack.c.l.b16 %v12741_v22  ;;  %v9728_v43 = vrot.slane %v9653_v34, 7  ;;  %v9346_v34 = vld [vmem:[#allocation4 + $0x30] sm:$0x1] }
 0x414   : > { %v9270_v15 = vmax.f32 %v9150_v48, %v9158_v10  ;;  %v12744_v11 = vpack.c.bf16 %v9268_v53, %v9268_v53  ;;  %v12745_v44 = vpack.c.bf16 %v9269_v47, %v9269_v47  ;;  %v9657_v4 = vunpack.c.l.b16 %v12743_v31  ;;  %v9377_v10 = vld [vmem:[#allocation4 + $0x34] sm:$0x1] }
 0x415   : > { %v9656_v39 = vunpack.c.l.b16 %v12742_v58  ;;  %v9729_v8 = vrot.slane %v9654_v16, 6  ;;  %v9731_v30 = vrot.slane %v9655_v23, 5  ;;  %v12864_v54 = vadd.f32 %v12863_v37, %v12862_v62 }
 0x416   : > { %v9658_v40 = vunpack.c.l.b16 %v12744_v11  ;;  %v9659_v28 = vunpack.c.l.b16 %v12745_v44  ;;  %v12796_v38 = vpack.c.bf16 %v9270_v15, %v9270_v15  ;;  %v12867_v26 = vadd.f32 %v12866_v55, %v12865_v3  ;;  %v9860_v3 = vld [vmem:[#allocation4 + $0x10] sm:$0xf]  ;;  %v10214_v44 = vld [vmem:[#allocation4 + $0x8] sm:$0xe] }
 0x417   : > { %v9730_v13 = vsel %vm9711_vm14, %v9729_v8, %v9728_v43  ;;  %v9733_v1 = vrot.slane %v9656_v39, 4  ;;  %v7752_v27 = vadd.f32 %v12864_v54, %v17693_v50  ;;  %v9735_v48 = vrot.slane %v9657_v4, 3 }
 0x418   : > { %v9732_v49 = vsel %vm9714_vm2, %v9731_v30, %v9730_v13  ;;  %v9864_v31 = vsel %vm17657_vm13, %v12796_v38, %v9863_v21  ;;  %v9737_v52 = vrot.slane %v9658_v40, 2  ;;  %v7755_v37 = vadd.f32 %v12867_v26, %v17693_v50  ;;  %v10094_v30 = vld [vmem:[#allocation4 + $0xc] sm:$0x1] }
 0x419   : > { %v9734_v0 = vsel %vm9717_vm11, %v9733_v1, %v9732_v49  ;;  %9865 = vst [vmem:[#allocation4 + $0x14] sm:$0x1] %v9864_v31  ;;  %v7913_v62 = vadd.f32 %v17537_v9, %v7752_v27  ;;  %v9739_v46 = vrot.slane %v9659_v28, 1  ;;  %v10103_v22 = vshrl.u32 %v17888_v41, 16 }
 0x41a   : > { %v9736_v33 = vsel %vm9720_vm4, %v9735_v48, %v9734_v0  ;;  %v7916_v59 = vadd.f32 %v17546_v25, %v7755_v37  ;;  %v9347_v16 = vsel %vm17657_vm13, 0, %v9346_v34  ;;  %v9378_v23 = vsel %vm17667_vm1, 0, %v9377_v10 }
 0x41b   : > { %v9738_v55 = vsel %vm9723_vm5, %v9737_v52, %v9736_v33  ;;  %v8015_v56 = vmax.f32 %v7913_v62, 0.0  ;;  %9348 = vst [vmem:[#allocation4 + $0x30] sm:$0x1] %v9347_v16  ;;  %9379 = vst [vmem:[#allocation4 + $0x34] sm:$0x1] %v9378_v23  ;;  %v17904_v40 = vrot.slane %v10103_v22, 4 }
 0x41c   : > { %v9740_v60 = vsel %vm9726_vm7, %v9739_v46, %v9738_v55  ;;  %v8016_v58 = vmax.f32 %v7916_v59, 0.0  ;;  %v10106_v28 = vshll.u32 %v17888_v41, 16  ;;  %v12557_v26 = vrot.slane %v10214_v44, 9 }
 0x41d   : > { %v9821_v9 = vpack.c.b16 %v9740_v60, %v9740_v60  ;;  %v8207_v53 = vcombine.high %v8015_v56, %v8015_v56  ;;  %v8214_v47 = vrot.slane %v8015_v56, %v17778_v24  ;;  %19136 = vst [vmem:[#allocation24_spill] sm:$0xff] %v17904_v40  ;;  %v10240_v52 = vrot.slane %v10094_v30, 5 }
 0x41e   : > { %v8224_v4 = vcombine.high %v8016_v58, %v8016_v58  ;;  %v8231_v39 = vrot.slane %v8016_v58, %v17778_v24  ;;  %v17910_v59 = vrot.slane %v10106_v28, 5 }
 0x41f   : > { %v9861_v25 = vsel %vm17841_vm6, %v9821_v9, %v9860_v3  ;;  %v8221_v43 = vrot.slane %v8207_v53, %v17778_v24  ;;  %v8222_v15 = vcombine.high %v8214_v47, %v8214_v47  ;;  %v12868_v11 = vpop.f32.mrb[20].mxu1  ;;  %v12381_v49 = vrot.slane %v8214_v47, 9 }
 0x420   : > { %9862 = vst [vmem:[#allocation4 + $0x10] sm:$0xf] %v9861_v25  ;;  %v12869_v8 = vpop.f32.mrb[21].mxu1  ;;  %v8238_v38 = vrot.slane %v8224_v4, %v17778_v24  ;;  %v8239_v13 = vcombine.high %v8231_v39, %v8231_v39  ;;  %v9912_v0 = vld [vmem:[#allocation4 + $0x14] sm:$0x1]  ;;  %v12385_v46 = vrot.slane %v8231_v39, 9  ;;  %v17914_v10 = vsel %vm13737_vm10, %v12557_v26, %v10240_v52 }
 0x421   : > { %v8223_v21 = vcombine.high %v8221_v43, %v8221_v43  ;;  %v12871_v54 = vpop.f32.mrb[22].mxu1  ;;  %v12870_v1 = vadd.f32 %v12869_v8, %v12868_v11  ;;  %v12382_v48 = vrot.slane %v8222_v15, 9  ;;  %v12383_v62 = vrot.slane %v8221_v43, 9  ;;  %19137 = vst [vmem:[#allocation25_spill] sm:$0xff] %v17910_v59  ;;  %v17920_v11 = vld [vmem:[#allocation4 + $0x14] sm:$0x1] }
 0x422   : > { %v12872_v27 = vpop.f32.mrb[23].mxu1  ;;  %v8240_v33 = vcombine.high %v8238_v38, %v8238_v38  ;;  %v12386_v55 = vrot.slane %v8239_v13, 9  ;;  %v12387_v60 = vrot.slane %v8238_v38, 9  ;;  %v9956_v34 = vshll.u32 %v9912_v0, 16 }
 0x423   : > { %v12873_v31 = vadd.f32 %v12872_v27, %v12871_v54  ;;  %v12384_v37 = vrot.slane %v8223_v21, 9  ;;  %v7760_v3 = vadd.f32 %v12870_v1, %v17693_v50  ;;  %v9159_v9 = vmax.f32 %v8214_v47, %v12381_v49 }
 0x424   : > { %v12388_v22 = vrot.slane %v8240_v33, 9  ;;  %v9160_v53 = vmax.f32 %v8222_v15, %v12382_v48  ;;  %v9163_v4 = vmax.f32 %v8231_v39, %v12385_v46  ;;  %v9164_v54 = vmax.f32 %v8239_v13, %v12386_v55  ;;  %v17933_v13 = vld [vmem:[%s18931_s4] ss:$0 sm:$0xff] }
 0x425   : > { %v7763_v56 = vadd.f32 %v12873_v31, %v17693_v50  ;;  %v7921_v58 = vadd.f32 %v17530_v7, %v7760_v3  ;;  %v9161_v50 = vmax.f32 %v8221_v43, %v12383_v62  ;;  %v9162_v44 = vmax.f32 %v8223_v21, %v12384_v37 }
 0x426   : > { %v9165_v7 = vmax.f32 %v8238_v38, %v12387_v60  ;;  %v9166_v27 = vmax.f32 %v8240_v33, %v12388_v22  ;;  %v17925_v26 = vrot.slane %v9956_v34, 5 }
 0x427   : > { %v7924_v16 = vadd.f32 %v17540_v19, %v7763_v56  ;;  %v12874_v23 = vpop.f32.mrb[24].mxu1  ;;  %v17918_v25 = vld [vmem:[#allocation4 + $0x10] sm:$0xf]  ;;  %v8017_v28 = vmax.f32 %v7921_v58, 0.0 }
 0x428   : > { %v12875_v8 = vpop.f32.mrb[25].mxu1  ;;  %v12585_v30 = vcombine.low %v17888_v41, %v17918_v25  ;;  %v10117_v31 = vshrl.u32 %v17918_v25, 16 }
 0x429   : > { %v8018_v47 = vmax.f32 %v7924_v16, 0.0  ;;  %v12876_v15 = vadd.f32 %v12875_v8, %v12874_v23  ;;  %v12877_v1 = vpop.f32.mrb[26].mxu1  ;;  %v8241_v21 = vcombine.high %v8017_v28, %v8017_v28  ;;  %v8248_v39 = vrot.slane %v8017_v28, %v17778_v24 }
 0x42a   : > { %v12878_v19 = vpop.f32.mrb[27].mxu1  ;;  %10527 = vrot.lane.b32.xlu0 %v12585_v30, %s13561_s22 }
 0x42b   : > { %v8258_v49 = vcombine.high %v8018_v47, %v8018_v47  ;;  %v8265_v41 = vrot.slane %v8018_v47, %v17778_v24  ;;  %v7768_v38 = vadd.f32 %v17933_v13, %v12876_v15  ;;  %v12879_v48 = vadd.f32 %v12878_v19, %v12877_v1 }
 0x42c   : > { %v8255_v52 = vrot.slane %v8241_v21, %v17778_v24  ;;  %v8256_v62 = vcombine.high %v8248_v39, %v8248_v39  ;;  %v12389_v37 = vrot.slane %v8248_v39, 9 }
 0x42d   : > { %v8272_v33 = vrot.slane %v8258_v49, %v17778_v24  ;;  %v8273_v46 = vcombine.high %v8265_v41, %v8265_v41  ;;  %v12393_v55 = vrot.slane %v8265_v41, 9  ;;  %v7929_v3 = vadd.f32 %v17623_v20, %v7768_v38 }
 0x42e   : > { %v7771_v56 = vadd.f32 %v17933_v13, %v12879_v48  ;;  %v8257_v60 = vcombine.high %v8255_v52, %v8255_v52  ;;  %v12390_v22 = vrot.slane %v8256_v62, 9  ;;  %v12391_v34 = vrot.slane %v8255_v52, 9 }
 0x42f   : > { %v9167_v58 = vmax.f32 %v8248_v39, %v12389_v37  ;;  %v17942_v16 = vpop.f32.mrb[28].mxu1  ;;  %v8274_v23 = vcombine.high %v8272_v33, %v8272_v33  ;;  %v12394_v8 = vrot.slane %v8273_v46, 9  ;;  %v12395_v30 = vrot.slane %v8272_v33, 9 }
 0x430   : > { %v9171_v28 = vmax.f32 %v8265_v41, %v12393_v55  ;;  %v12881_v47 = vpop.f32.mrb[29].mxu1  ;;  %v12392_v15 = vrot.slane %v8257_v60, 9  ;;  %v9168_v1 = vmax.f32 %v8256_v62, %v12390_v22  ;;  %v9169_v19 = vmax.f32 %v8255_v52, %v12391_v34  ;;  %v17944_v41 = vld [vmem:[#allocation4 + $0x10] sm:$0xf] }
 0x431   : > { %v9271_v21 = vmax.f32 %v9159_v9, %v9167_v58  ;;  %v12883_v49 = vpop.f32.mrb[30].mxu1  ;;  %v12396_v0 = vrot.slane %v8274_v23, 9  ;;  %v9172_v20 = vmax.f32 %v8273_v46, %v12394_v8  ;;  %v9173_v38 = vmax.f32 %v8272_v33, %v12395_v30 }
 0x432   : > { %v9275_v48 = vmax.f32 %v9163_v4, %v9171_v28  ;;  %v12884_v43 = vpop.f32.mrb[31].mxu1  ;;  %v9170_v59 = vmax.f32 %v8257_v60, %v12392_v15  ;;  %v9272_v40 = vmax.f32 %v9160_v53, %v9168_v1  ;;  %v9273_v39 = vmax.f32 %v9161_v50, %v9169_v19  ;;  %v9869_v53 = vld [vmem:[#allocation4 + $0x1c] sm:$0x1] }
 0x433   : > { %v12747_v37 = vpack.c.bf16 %v9271_v21, %v9271_v21  ;;  %v9174_v12 = vmax.f32 %v8274_v23, %v12396_v0  ;;  %v9276_v57 = vmax.f32 %v9164_v54, %v9172_v20  ;;  %v9277_v61 = vmax.f32 %v9165_v7, %v9173_v38 }
 0x434   : > { %v12751_v6 = vpack.c.bf16 %v9275_v48, %v9275_v48  ;;  %v9274_v55 = vmax.f32 %v9162_v44, %v9170_v59  ;;  %v12748_v62 = vpack.c.bf16 %v9272_v40, %v9272_v40  ;;  %v12749_v52 = vpack.c.bf16 %v9273_v39, %v9273_v39  ;;  %v13319_v44 = vld [vmem:[%s18932_s5 + $0x40] sm:$0xff]  }
 0x435   : > { %v9661_v9 = vunpack.c.l.b16 %v12747_v37  ;;  %v9278_v22 = vmax.f32 %v9166_v27, %v9174_v12  ;;  %v12752_v34 = vpack.c.bf16 %v9276_v57, %v9276_v57  ;;  %v12753_v46 = vpack.c.bf16 %v9277_v61, %v9277_v61  ;;  %v13320_v27 = vld [vmem:[%s18932_s5] sm:$0xff]   ;;  %12952 = vmatprep.subr.bf16.mxu0 %v13319_v44 }
 0x436   : > { %v9665_v33 = vunpack.c.l.b16 %v12751_v6  ;;  %v12750_v4 = vpack.c.bf16 %v9274_v55, %v9274_v55  ;;  %v9662_v58 = vunpack.c.l.b16 %v12748_v62  ;;  %v9663_v60 = vunpack.c.l.b16 %v12749_v52  ;;  %12953 = vmatpush3.bf16.msra.mxu0 %v13320_v27 }
 0x437   : > { %v17946_v50 = vpop.f32.mrb[32].mxu1  ;;  %v9947_v54 = vshrl.u32 %v17944_v41, 16  ;;  %v9741_v7 = vrot.slane %v9661_v9, 7  ;;  %v9666_v0 = vunpack.c.l.b16 %v12752_v34  ;;  %v12797_v23 = vpack.c.bf16 %v9278_v22, %v9278_v22 }
 0x438   : > { %v17949_v8 = vrot.slane %v10117_v31, 4  ;;  %v17951_v40 = vpop.f32.mrb[33].mxu1  ;;  %v9664_v59 = vunpack.c.l.b16 %v12750_v4  ;;  %v9742_v12 = vrot.slane %v9662_v58, 6  ;;  %v9744_v57 = vrot.slane %v9663_v60, 5 }
 0x439   : > { %v8019_v61 = vmax.f32 %v7929_v3, 0.0  ;;  %v17953_v6 = vpop.f32.mrb[34].mxu1  ;;  %v9667_v30 = vunpack.c.l.b16 %v12753_v46  ;;  %v9748_v28 = vrot.slane %v9665_v33, 3  ;;  %v9870_v31 = vsel %vm17657_vm13, %v12797_v23, %v9869_v53  ;;  %v17972_v46 = vld [vmem:[#allocation4 + $0x10] sm:$0xf] }
 0x43a   : > { %v7932_v15 = vadd.f32 %v17630_v32, %v7771_v56  ;;  %v12890_v1 = vpop.f32.mrb[35].mxu1  ;;  %v9743_v3 = vsel %vm9711_vm14, %v9742_v12, %v9741_v7  ;;  %v9746_v19 = vrot.slane %v9664_v59, 4  ;;  %9871 = vst [vmem:[#allocation4 + $0x1c] sm:$0x1] %v9870_v31  ;;  %v12882_v39 = vadd.f32 %v12881_v47, %v17942_v16  ;;  %v13321_v12 = vld [vmem:[%s18932_s5 + $0x48] sm:$0xff]  }
 0x43b   : > { %v8275_v21 = vcombine.high %v8019_v61, %v8019_v61  ;;  %v8282_v20 = vrot.slane %v8019_v61, %v17778_v24  ;;  %v9745_v38 = vsel %vm9714_vm2, %v9744_v57, %v9743_v3  ;;  %v12885_v37 = vadd.f32 %v12884_v43, %v12883_v49  ;;  %v9866_v49 = vld [vmem:[#allocation4 + $0x18] sm:$0xf]  ;;  %v13324_v57 = vld [vmem:[%s18932_s5 + $0x50] sm:$0xff]   ;;  %12954 = vmatprep.subr.bf16.mxu0 %v13321_v12 }
 0x43c   : > { %v8020_v48 = vmax.f32 %v7932_v15, 0.0  ;;  %v9747_v55 = vsel %vm9717_vm11, %v9746_v19, %v9745_v38  ;;  %v9750_v62 = vrot.slane %v9666_v0, 2  ;;  %v9752_v9 = vrot.slane %v9667_v30, 1 }
 0x43d   : > { %v8289_v32 = vrot.slane %v8275_v21, %v17778_v24  ;;  %v8290_v56 = vcombine.high %v8282_v20, %v8282_v20  ;;  %v9749_v52 = vsel %vm9720_vm4, %v9748_v28, %v9747_v55  ;;  %v7776_v43 = vadd.f32 %v17933_v13, %v12882_v39 }
 0x43e   : > { %v8292_v22 = vcombine.high %v8020_v48, %v8020_v48  ;;  %v8299_v34 = vrot.slane %v8020_v48, %v17778_v24  ;;  %v9751_v33 = vsel %vm9723_vm5, %v9750_v62, %v9749_v52  ;;  %v9950_v16 = vshll.u32 %v17944_v41, 16  ;;  %v13322_v41 = vld [vmem:[%s18932_s5 + $0x8] sm:$0xff]   ;;  %v13325_v48 = vld [vmem:[%s18932_s5 + $0x10] sm:$0xff]  }
 0x43f   : > { %v8291_v4 = vcombine.high %v8289_v32, %v8289_v32  ;;  %v9753_v47 = vsel %vm9726_vm7, %v9752_v9, %v9751_v33  ;;  %v12397_v58 = vrot.slane %v8282_v20, 9  ;;  %v12398_v0 = vrot.slane %v8290_v56, 9  ;;  %12955 = vmatpush3.bf16.msra.mxu0 %v13322_v41 }
 0x440   : > { %v8306_v60 = vrot.slane %v8292_v22, %v17778_v24  ;;  %v8307_v53 = vcombine.high %v8299_v34, %v8299_v34  ;;  %v9823_v7 = vpack.c.b16 %v9753_v47, %v9753_v47  ;;  %v17979_v23 = vrot.slane %v9947_v54, 4  ;;  %12956 = vmatprep.subr.bf16.mxu0 %v13324_v57 }
 0x441   : > { %v10288_v59 = vshrl.u32 %v17972_v46, 16  ;;  %v12399_v61 = vrot.slane %v8289_v32, 9  ;;  %v12400_v44 = vrot.slane %v8291_v4, 9  ;;  %v12401_v30 = vrot.slane %v8299_v34, 9 }
 0x442   : > { %v8308_v27 = vcombine.high %v8306_v60, %v8306_v60  ;;  %v9867_v54 = vsel %vm17841_vm6, %v9823_v7, %v9866_v49  ;;  %v7937_v28 = vadd.f32 %v17619_v42, %v7776_v43  ;;  %v7779_v31 = vadd.f32 %v17933_v13, %v12885_v37 }
 0x443   : > { %v17995_v15 = vrot.slane %v9950_v16, 5  ;;  %9868 = vst [vmem:[#allocation4 + $0x18] sm:$0xf] %v9867_v54  ;;  %v9175_v3 = vmax.f32 %v8282_v20, %v12397_v58  ;;  %v12402_v19 = vrot.slane %v8307_v53, 9  ;;  %v12403_v21 = vrot.slane %v8306_v60, 9  ;;  %v13326_v20 = vld [vmem:[%s18932_s5 + $0x58] sm:$0xff]   ;;  %12957 = vmatpush3.bf16.msra.mxu0 %v13325_v48 }
 0x444   : > { %v12404_v38 = vrot.slane %v8308_v27, 9  ;;  %v8021_v39 = vmax.f32 %v7937_v28, 0.0  ;;  %v7940_v55 = vadd.f32 %v17626_v17, %v7779_v31  ;;  %v12888_v42 = vadd.f32 %v17951_v40, %v17946_v50  ;;  %12958 = vmatprep.subr.bf16.mxu0 %v13326_v20 }
 0x445   : > { %v12891_v37 = vadd.f32 %v12890_v1, %v17953_v6  ;;  %v9176_v62 = vmax.f32 %v8290_v56, %v12398_v0  ;;  %v9177_v52 = vmax.f32 %v8289_v32, %v12399_v61  ;;  %v9178_v9 = vmax.f32 %v8291_v4, %v12400_v44  ;;  %v13327_v6 = vld [vmem:[%s18932_s5 + $0x18] sm:$0xff]  }
 0x446   : > { %v9179_v22 = vmax.f32 %v8299_v34, %v12401_v30  ;;  %v8309_v33 = vcombine.high %v8021_v39, %v8021_v39  ;;  %v8316_v43 = vrot.slane %v8021_v39, %v17778_v24  ;;  %v8022_v16 = vmax.f32 %v7940_v55, 0.0  ;;  %v18022_v30 = vpop.f32.mrb[60].mxu0 }
 0x447   : > { %v7784_v17 = vadd.f32 %v17933_v13, %v12888_v42  ;;  %v9180_v47 = vmax.f32 %v8307_v53, %v12402_v19  ;;  %v9181_v49 = vmax.f32 %v8306_v60, %v12403_v21  ;;  %v9182_v50 = vmax.f32 %v8308_v27, %v12404_v38  ;;  %12959 = vmatpush3.bf16.msra.mxu0 %v13327_v6  ;;  %v18024_v31 = vpop.f32.mrb[61].mxu0  ;;  %v13329_v6 = vld [vmem:[%s18932_s5 + $0x20] sm:$0xff]  }
 0x448   : > { %v7787_v40 = vadd.f32 %v17933_v13, %v12891_v37  ;;  %v8323_v1 = vrot.slane %v8309_v33, %v17778_v24  ;;  %v8324_v32 = vcombine.high %v8316_v43, %v8316_v43  ;;  %v12405_v56 = vrot.slane %v8316_v43, 9  ;;  %v18026_v39 = vpop.f32.mrb[62].mxu0 }
 0x449   : > { %v8326_v34 = vcombine.high %v8022_v16, %v8022_v16  ;;  %v8333_v4 = vrot.slane %v8022_v16, %v17778_v24  ;;  %v7945_v58 = vadd.f32 %v17739_v2, %v7784_v17  ;;  %v9953_v53 = vor.u32 %v17995_v15, %v17979_v23  ;;  %v18028_v33 = vpop.f32.mrb[63].mxu0  ;;  %v13333_v23 = vld [vmem:[%s18932_s5 + $0x30] sm:$0xff]  }
 0x44a   : > { %v18017_v60 = vadd.f32 %v17748_v18, %v7787_v40  ;;  %v8325_v7 = vcombine.high %v8323_v1, %v8323_v1  ;;  %v12406_v0 = vrot.slane %v8324_v32, 9  ;;  %v12407_v12 = vrot.slane %v8323_v1, 9 }
 0x44b   : > { %v9183_v41 = vmax.f32 %v8316_v43, %v12405_v56  ;;  %v8340_v57 = vrot.slane %v8326_v34, %v17778_v24  ;;  %v8341_v61 = vcombine.high %v8333_v4, %v8333_v4  ;;  %v12409_v44 = vrot.slane %v8333_v4, 9 }
 0x44c   : > { %v8023_v27 = vmax.f32 %v7945_v58, 0.0  ;;  %v12408_v54 = vrot.slane %v8325_v7, 9  ;;  %v9184_v2 = vmax.f32 %v8324_v32, %v12406_v0  ;;  %v9185_v28 = vmax.f32 %v8323_v1, %v12407_v12 }
 0x44d   : > { %v9279_v18 = vmax.f32 %v9175_v3, %v9183_v41  ;;  %v8342_v19 = vcombine.high %v8340_v57, %v8340_v57  ;;  %v12410_v21 = vrot.slane %v8341_v61, 9  ;;  %v12411_v38 = vrot.slane %v8340_v57, 9  ;;  %v13328_v3 = vld [vmem:[%s18932_s5 + $0x60] sm:$0xff]   ;;  %v9913_v41 = vld [vmem:[#allocation4 + $0x1c] sm:$0x1] }
 0x44e   : > { %v9187_v48 = vmax.f32 %v8333_v4, %v12409_v44  ;;  %v9186_v55 = vmax.f32 %v8325_v7, %v12408_v54  ;;  %v9280_v42 = vmax.f32 %v9176_v62, %v9184_v2  ;;  %v9281_v37 = vmax.f32 %v9177_v52, %v9185_v28  ;;  %12960 = vmatprep.subr.bf16.mxu0 %v13328_v3  ;;  %v13332_v3 = vld [vmem:[%s18932_s5 + $0x70] sm:$0xff]  }
 0x44f   : > { %v12755_v20 = vpack.c.bf16 %v9279_v18, %v9279_v18  ;;  %v12412_v43 = vrot.slane %v8342_v19, 9  ;;  %v9188_v16 = vmax.f32 %v8341_v61, %v12410_v21  ;;  %v9189_v17 = vmax.f32 %v8340_v57, %v12411_v38  ;;  %12961 = vmatpush3.bf16.msra.mxu0 %v13329_v6  ;;  %v9875_v18 = vld [vmem:[#allocation4 + $0x24] sm:$0x1] }
 0x450   : > { %v9283_v40 = vmax.f32 %v9179_v22, %v9187_v48  ;;  %v9282_v1 = vmax.f32 %v9178_v9, %v9186_v55  ;;  %v12756_v32 = vpack.c.bf16 %v9280_v42, %v9280_v42  ;;  %v12757_v56 = vpack.c.bf16 %v9281_v37, %v9281_v37 }
 0x451   : > { %v9669_v62 = vunpack.c.l.b16 %v12755_v20  ;;  %v9190_v52 = vmax.f32 %v8342_v19, %v12412_v43  ;;  %v9284_v34 = vmax.f32 %v9180_v47, %v9188_v16  ;;  %v9285_v4 = vmax.f32 %v9181_v49, %v9189_v17 }
 0x452   : > { %v12759_v58 = vpack.c.bf16 %v9283_v40, %v9283_v40  ;;  %v12758_v7 = vpack.c.bf16 %v9282_v1, %v9282_v1  ;;  %v9670_v0 = vunpack.c.l.b16 %v12756_v32  ;;  %v9671_v22 = vunpack.c.l.b16 %v12757_v56  ;;  %v13330_v40 = vld [vmem:[%s18932_s5 + $0x68] sm:$0xff]  }
 0x453   : > { %v9754_v12 = vrot.slane %v9669_v62, 7  ;;  %v9286_v57 = vmax.f32 %v9182_v50, %v9190_v52  ;;  %v12760_v61 = vpack.c.bf16 %v9284_v34, %v9284_v34  ;;  %v12761_v44 = vpack.c.bf16 %v9285_v4, %v9285_v4  ;;  %v9905_v50 = vld [vmem:[#allocation4 + $0x18] sm:$0xf]  ;;  %12962 = vmatprep.subr.bf16.mxu0 %v13330_v40 }
 0x454   : > { %v9673_v54 = vunpack.c.l.b16 %v12759_v58  ;;  %v9672_v2 = vunpack.c.l.b16 %v12758_v7  ;;  %v9755_v9 = vrot.slane %v9670_v0, 6  ;;  %v9757_v28 = vrot.slane %v9671_v22, 5 }
 0x455   : > { %v8343_v21 = vcombine.high %v8023_v27, %v8023_v27  ;;  %v9674_v19 = vunpack.c.l.b16 %v12760_v61  ;;  %v9675_v47 = vunpack.c.l.b16 %v12761_v44  ;;  %v12798_v49 = vpack.c.bf16 %v9286_v57, %v9286_v57  ;;  %v13335_v57 = vld [vmem:[%s18932_s5 + $0x78] sm:$0xff]  }
 0x456   : > { %v9970_v38 = vshll.u32 %v9913_v41, 16  ;;  %v9756_v48 = vsel %vm9711_vm14, %v9755_v9, %v9754_v12  ;;  %v9759_v55 = vrot.slane %v9672_v2, 4  ;;  %v8350_v42 = vrot.slane %v8023_v27, %v17778_v24  ;;  %v13331_v27 = vld [vmem:[%s18932_s5 + $0x28] sm:$0xff]  }
 0x457   : > { %v18039_v37 = vrot.slane %v8343_v21, %v17778_v24  ;;  %v9758_v20 = vsel %vm9714_vm2, %v9757_v28, %v9756_v48  ;;  %v9761_v43 = vrot.slane %v9673_v54, 3  ;;  %v9876_v16 = vsel %vm17657_vm13, %v12798_v49, %v9875_v18  ;;  %12963 = vmatpush3.bf16.msra.mxu0 %v13331_v27  ;;  %v10272_v41 = vld [vmem:[#allocation4 + $0x18] sm:$0xf] }
 0x458   : > { %v18046_v17 = vrot.slane %v10288_v59, 4  ;;  %v9760_v6 = vsel %vm9717_vm11, %v9759_v55, %v9758_v20  ;;  %v9763_v1 = vrot.slane %v9674_v19, 2  ;;  %9877 = vst [vmem:[#allocation4 + $0x24] sm:$0x1] %v9876_v16  ;;  %v8358_v32 = vcombine.high %v8350_v42, %v8350_v42  ;;  %12964 = vmatprep.subr.bf16.mxu0 %v13332_v3  ;;  %v13336_v20 = vld [vmem:[%s18932_s5 + $0x38] sm:$0xff]  }
 0x459   : > { %v18061_v59 = vrot.slane %v9953_v53, 4  ;;  %v9762_v56 = vsel %vm9720_vm4, %v9761_v43, %v9760_v6  ;;  %v9765_v62 = vrot.slane %v9675_v47, 1  ;;  %v8359_v52 = vcombine.high %v18039_v37, %v18039_v37  ;;  %v9872_v53 = vld [vmem:[#allocation4 + $0x20] sm:$0xf] }
 0x45a   : > { %v8024_v34 = vmax.f32 %v18017_v60, 0.0  ;;  %v9764_v4 = vsel %vm9723_vm5, %v9763_v1, %v9762_v56  ;;  %v9961_v58 = vshrl.u32 %v9905_v50, 16  ;;  %v18068_v7 = vrot.slane %v9970_v38, 5 }
 0x45b   : > { %v10291_v0 = vshll.u32 %v17972_v46, 16  ;;  %v9766_v15 = vsel %vm9726_vm7, %v9765_v62, %v9764_v4  ;;  %v12413_v22 = vrot.slane %v8350_v42, 9  ;;  %v12414_v46 = vrot.slane %v8358_v32, 9  ;;  %12965 = vmatpush3.bf16.msra.mxu0 %v13333_v23 }
 0x45c   : > { %v8360_v12 = vcombine.high %v8024_v34, %v8024_v34  ;;  %v8367_v60 = vrot.slane %v8024_v34, %v17778_v24  ;;  %v9825_v61 = vpack.c.b16 %v9766_v15, %v9766_v15  ;;  %v12415_v44 = vrot.slane %v18039_v37, 9  ;;  %12966 = vmatprep.subr.bf16.mxu0 %v13335_v57 }
 0x45d   : > { %v9959_v54 = vsel %vm13824_vm15, %v18061_v59, %v17925_v26  ;;  %v12892_v2 = vpop.f32.mrb[36].mxu1  ;;  %v12416_v9 = vrot.slane %v8359_v52, 9  ;;  %v9964_v21 = vshll.u32 %v9905_v50, 16  ;;  %v9963_v49 = vrot.slane %v9961_v58, 4  ;;  %v10280_v50 = vld [vmem:[#allocation4 + $0x1c] sm:$0x1] }
 0x45e   : > { %v8374_v28 = vrot.slane %v8360_v12, %v17778_v24  ;;  %v8375_v18 = vcombine.high %v8367_v60, %v8367_v60  ;;  %v12893_v19 = vpop.f32.mrb[37].mxu1  ;;  %v9873_v47 = vsel %vm17841_vm6, %v9825_v61, %v9872_v53  ;;  %v10293_v38 = vrot.slane %v10291_v0, 5  ;;  %v13339_v61 = vld [vmem:[%s18932_s5 + $0xc8] sm:$0xff]  }
 0x45f   : > { %v10302_v48 = vshrl.u32 %v10272_v41, 16  ;;  %v12895_v55 = vpop.f32.mrb[38].mxu1  ;;  %9874 = vst [vmem:[#allocation4 + $0x20] sm:$0xf] %v9873_v47  ;;  %v18090_v43 = vmax.f32 %v8350_v42, %v12413_v22  ;;  %v12417_v40 = vrot.slane %v8367_v60, 9  ;;  %v9966_v6 = vrot.slane %v9964_v21, 5  ;;  %12967 = vmatpush3.bf16.msra.mxu0 %v13336_v20 }
 0x460   : > { %v8376_v16 = vcombine.high %v8374_v28, %v8374_v28  ;;  %v12418_v27 = vrot.slane %v8375_v18, 9  ;;  %v12896_v3 = vpop.f32.mrb[39].mxu1  ;;  %v10294_v1 = vor.u32 %v10293_v38, %v18046_v17  ;;  %v10305_v62 = vshll.u32 %v10272_v41, 16  ;;  %v10215_v22 = vld [vmem:[#allocation4 + $0x10] sm:$0xe] }
 0x461   : > { %v10304_v56 = vrot.slane %v10302_v48, 4  ;;  %v18093_v34 = vmax.f32 %v8358_v32, %v12414_v46  ;;  %v18096_v4 = vmax.f32 %v18039_v37, %v12415_v44  ;;  %v12419_v58 = vrot.slane %v8374_v28, 9  ;;  %v13337_v37 = vld [vmem:[%s18932_s5 + $0xc0] sm:$0xff]  }
 0x462   : > { %v12420_v0 = vrot.slane %v8376_v16, 9  ;;  %v18098_v42 = vmax.f32 %v8359_v52, %v12416_v9  ;;  %v9967_v23 = vor.u32 %v9966_v6, %v9963_v49  ;;  %v10307_v15 = vrot.slane %v10305_v62, 5  ;;  %v13338_v52 = vld [vmem:[%s18932_s5 + $0x80] sm:$0xff]   ;;  %12992 = vmatprep.subr.bf16.mxu1 %v13337_v37 }
 0x463   : > { %v10311_v53 = vshll.u32 %v10280_v50, 16  ;;  %v18100_v12 = vmax.f32 %v8367_v60, %v12417_v40  ;;  %v18102_v57 = vmax.f32 %v8375_v18, %v12418_v27  ;;  %v19138_v17 = vshll.u32 %v17920_v11, 16  ;;  %v10095_v9 = vld [vmem:[#allocation4 + $0x14] sm:$0x1]  ;;  %12993 = vmatpush3.bf16.msra.mxu1 %v13338_v52 }
 0x464   : > { %v12894_v41 = vadd.f32 %v12893_v19, %v12892_v2  ;;  %v9968_v60 = vrot.slane %v9967_v23, 4  ;;  %v10295_v46 = vrot.slane %v10294_v1, 4  ;;  %v10308_v44 = vor.u32 %v10307_v15, %v10304_v56  ;;  %v18135_v1 = vld [vmem:[#allocation4 + $0x18] sm:$0xf]  ;;  %12994 = vmatprep.subr.bf16.mxu1 %v13339_v61  ;;  %v13341_v56 = vld [vmem:[%s18932_s5 + $0xd0] sm:$0xff]  }
 0x465   : > { %v10299_v32 = vrot.slane %v19138_v17, 5  ;;  %v12897_v18 = vadd.f32 %v12896_v3, %v12895_v55  ;;  %v12898_v11 = vpop.f32.mrb[40].mxu1  ;;  %v18115_v21 = vmax.f32 %v8374_v28, %v12419_v58  ;;  %v18117_v2 = vmax.f32 %v8376_v16, %v12420_v0  ;;  %v13340_v28 = vld [vmem:[%s18932_s5 + $0x88] sm:$0xff]  }
 0x466   : > { %v12558_v19 = vrot.slane %v10215_v22, 9  ;;  %v7792_v47 = vadd.f32 %v17933_v13, %v12894_v41  ;;  %v12899_v49 = vpop.f32.mrb[41].mxu1  ;;  %v9973_v38 = vsel %vm13824_vm15, %v9968_v60, %v18068_v7  ;;  %v10309_v48 = vrot.slane %v10308_v44, 4  ;;  %v18124_v55 = vld [vmem:[#allocation4 + $0x20] sm:$0xf]  ;;  %v13343_v60 = vld [vmem:[%s18932_s5 + $0xd8] sm:$0xff]  }
 0x467   : > { %v10313_v20 = vrot.slane %v10311_v53, 5  ;;  %v7795_v40 = vadd.f32 %v17933_v13, %v12897_v18  ;;  %v12901_v27 = vpop.f32.mrb[42].mxu1  ;;  %v12578_v16 = vcombine.low %v9959_v54, %v9973_v38  ;;  %v10244_v50 = vrot.slane %v10095_v9, 5  ;;  %v9349_v54 = vld [vmem:[#allocation4 + $0x38] sm:$0x1]  ;;  %12995 = vmatpush3.bf16.msra.mxu1 %v13340_v28 }
 0x468   : > { %v7953_v7 = vadd.f32 %v17735_v14, %v7792_v47  ;;  %v12900_v3 = vadd.f32 %v12899_v49, %v12898_v11  ;;  %v12902_v6 = vpop.f32.mrb[43].mxu1  ;;  %v10300_v62 = vsel %vm13824_vm15, %v10295_v46, %v10299_v32  ;;  %v12586_v15 = vcombine.low %v18135_v1, %v18124_v55  ;;  %12996 = vmatprep.subr.bf16.mxu1 %v13341_v56 }
 0x469   : > { %v10314_v58 = vsel %vm13824_vm15, %v10309_v48, %v10313_v20  ;;  %v7956_v26 = vadd.f32 %v17742_v36, %v7795_v40  ;;  %v12903_v59 = vadd.f32 %v12902_v6, %v12901_v27  ;;  %10489 = vrot.lane.b32.xlu1 %v12578_v16, %s13561_s22  ;;  %v10245_v14 = vsel %vm13737_vm10, %v12558_v19, %v10244_v50  ;;  %v13342_v36 = vld [vmem:[%s18932_s5 + $0x90] sm:$0xff]  }
 0x46a   : > { %v8025_v0 = vmax.f32 %v7953_v7, 0.0  ;;  %v7800_v23 = vadd.f32 %v17933_v13, %v12900_v3  ;;  %v12601_v53 = vcombine.low %v10300_v62, %v10314_v58  ;;  %v10131_v32 = vshrl.u32 %v18135_v1, 16  ;;  %10529 = vrot.lane.b32.xlu0 %v12586_v15, %s13561_s22 }
 0x46b   : > { %v8026_v22 = vmax.f32 %v7956_v26, 0.0  ;;  %v7803_v17 = vadd.f32 %v17933_v13, %v12903_v59  ;;  %v9350_v61 = vsel %vm17657_vm13, 0, %v9349_v54  ;;  %v10134_v18 = vshll.u32 %v18135_v1, 16  ;;  %12997 = vmatpush3.bf16.msra.mxu1 %v13342_v36 }
 0x46c   : > { %v8377_v41 = vcombine.high %v8025_v0, %v8025_v0  ;;  %v8384_v37 = vrot.slane %v8025_v0, %v17778_v24  ;;  %v7961_v52 = vadd.f32 %v17821_v45, %v7800_v23  ;;  %9351 = vst [vmem:[#allocation4 + $0x38] sm:$0x1] %v9350_v61  ;;  %v12593_v45 = vcombine.low %v17914_v10, %v10245_v14  ;;  %v13346_v10 = vld [vmem:[%s18932_s5 + $0xe0] sm:$0xff]  }
 0x46d   : > { %v8394_v46 = vcombine.high %v8026_v22, %v8026_v22  ;;  %v8401_v44 = vrot.slane %v8026_v22, %v17778_v24  ;;  %v7964_v9 = vadd.f32 %v17825_v35, %v7803_v17  ;;  %10599 = vrot.lane.b32.xlu1 %v12601_v53, %s13561_s22  ;;  %v13345_v35 = vld [vmem:[%s18932_s5 + $0x98] sm:$0xff]   ;;  %12998 = vmatprep.subr.bf16.mxu1 %v13343_v60  ;;  %v13347_v23 = vld [vmem:[%s18932_s5 + $0xa0] sm:$0xff]  }
 0x46e   : > { %v8391_v11 = vrot.slane %v8377_v41, %v17778_v24  ;;  %v8392_v19 = vcombine.high %v8384_v37, %v8384_v37  ;;  %v12421_v47 = vrot.slane %v8384_v37, 9  ;;  %v18171_v20 = vmax.f32 %v7961_v52, 0.0 }
 0x46f   : > { %v8408_v49 = vrot.slane %v8394_v46, %v17778_v24  ;;  %v8409_v38 = vcombine.high %v8401_v44, %v8401_v44  ;;  %v12425_v48 = vrot.slane %v8401_v44, 9  ;;  %12999 = vmatpush3.bf16.msra.mxu1 %v13345_v35 }
 0x470   : > { %v8393_v40 = vcombine.high %v8391_v11, %v8391_v11  ;;  %v12422_v27 = vrot.slane %v8392_v19, 9  ;;  %v12423_v28 = vrot.slane %v8391_v11, 9  ;;  %v9199_v16 = vmax.f32 %v8384_v37, %v12421_v47  ;;  %13000 = vmatprep.subr.bf16.mxu1 %v13346_v10 }
 0x471   : > { %v8410_v50 = vcombine.high %v8408_v49, %v8408_v49  ;;  %v12426_v7 = vrot.slane %v8409_v38, 9  ;;  %v12427_v3 = vrot.slane %v8408_v49, 9  ;;  %v9203_v6 = vmax.f32 %v8401_v44, %v12425_v48  ;;  %10559 = vrot.lane.b32.xlu1 %v12593_v45, %s13561_s22 }
 0x472   : > { %v12424_v56 = vrot.slane %v8393_v40, 9  ;;  %v9200_v62 = vmax.f32 %v8392_v19, %v12422_v27  ;;  %v9201_v58 = vmax.f32 %v8391_v11, %v12423_v28  ;;  %v9287_v26 = vmax.f32 %v18090_v43, %v9199_v16  ;;  %v13348_v43 = vld [vmem:[%s18932_s5 + $0xe8] sm:$0xff]  }
 0x473   : > { %v12428_v59 = vrot.slane %v8410_v50, 9  ;;  %v9204_v54 = vmax.f32 %v8409_v38, %v12426_v7  ;;  %v9205_v14 = vmax.f32 %v8408_v49, %v12427_v3  ;;  %v9291_v0 = vmax.f32 %v18100_v12, %v9203_v6  ;;  %13001 = vmatpush3.bf16.msra.mxu1 %v13347_v23  ;;  %v9881_v49 = vld [vmem:[#allocation4 + $0x2c] sm:$0x1] }
 0x474   : > { %v9202_v15 = vmax.f32 %v8393_v40, %v12424_v56  ;;  %v9288_v53 = vmax.f32 %v18093_v34, %v9200_v62  ;;  %v9289_v22 = vmax.f32 %v18096_v4, %v9201_v58  ;;  %v12763_v17 = vpack.c.bf16 %v9287_v26, %v9287_v26  ;;  %13002 = vmatprep.subr.bf16.mxu1 %v13348_v43 }
 0x475   : > { %v9206_v36 = vmax.f32 %v8410_v50, %v12428_v59  ;;  %v9292_v41 = vmax.f32 %v18102_v57, %v9204_v54  ;;  %v9293_v12 = vmax.f32 %v18115_v21, %v9205_v14  ;;  %v12767_v37 = vpack.c.bf16 %v9291_v0, %v9291_v0  ;;  %v13349_v57 = vld [vmem:[%s18932_s5 + $0xa8] sm:$0xff]   ;;  %v13351_v14 = vld [vmem:[%s18932_s5 + $0xb0] sm:$0xff]   ;;  %v13352_v0 = vld [vmem:[%s18932_s5 + $0xf8] sm:$0xff]  }
 0x476   : > { %v9290_v52 = vmax.f32 %v18098_v42, %v9202_v15  ;;  %v12764_v61 = vpack.c.bf16 %v9288_v53, %v9288_v53  ;;  %v12765_v60 = vpack.c.bf16 %v9289_v22, %v9289_v22  ;;  %v9677_v46 = vunpack.c.l.b16 %v12763_v17  ;;  %v18193_v34 = vpop.f32.mrb[44].mxu1 }
 0x477   : > { %v9294_v4 = vmax.f32 %v18117_v2, %v9206_v36  ;;  %v12768_v44 = vpack.c.bf16 %v9292_v41, %v9292_v41  ;;  %v12769_v45 = vpack.c.bf16 %v9293_v12, %v9293_v12  ;;  %v9681_v11 = vunpack.c.l.b16 %v12767_v37  ;;  %v18196_v19 = vpop.f32.mrb[45].mxu1  ;;  %v13350_v2 = vld [vmem:[%s18932_s5 + $0xf0] sm:$0xff]   ;;  %13003 = vmatpush3.bf16.msra.mxu1 %v13349_v57 }
 0x478   : > { %v12766_v21 = vpack.c.bf16 %v9290_v52, %v9290_v52  ;;  %v9678_v47 = vunpack.c.l.b16 %v12764_v61  ;;  %v9679_v42 = vunpack.c.l.b16 %v12765_v60  ;;  %v8028_v38 = vmax.f32 %v7964_v9, 0.0  ;;  %v18201_v48 = vpop.f32.mrb[46].mxu1  ;;  %13004 = vmatprep.subr.bf16.mxu1 %v13350_v2 }
 0x479   : > { %v9767_v35 = vrot.slane %v9677_v46, 7  ;;  %v9682_v40 = vunpack.c.l.b16 %v12768_v44  ;;  %v9683_v27 = vunpack.c.l.b16 %v12769_v45  ;;  %v12799_v28 = vpack.c.bf16 %v9294_v4, %v9294_v4  ;;  %v12908_v16 = vpop.f32.mrb[47].mxu1  ;;  %v13354_v46 = vld [vmem:[%s18932_s5 + $0xb8] sm:$0xff]  }
 0x47a   : > { %v9680_v10 = vunpack.c.l.b16 %v12766_v21  ;;  %v9768_v50 = vrot.slane %v9678_v47, 6  ;;  %v9770_v7 = vrot.slane %v9679_v42, 5  ;;  %v8411_v3 = vcombine.high %v18171_v20, %v18171_v20  ;;  %v9878_v42 = vld [vmem:[#allocation4 + $0x28] sm:$0xf] }
 0x47b   : > { %v9774_v6 = vrot.slane %v9681_v11, 3  ;;  %v9776_v9 = vrot.slane %v9682_v40, 2  ;;  %v9882_v56 = vsel %vm17657_vm13, %v12799_v28, %v9881_v49  ;;  %v8418_v62 = vrot.slane %v18171_v20, %v17778_v24  ;;  %13005 = vmatpush3.bf16.msra.mxu1 %v13351_v14 }
 0x47c   : > { %v9769_v58 = vsel %vm9711_vm14, %v9768_v50, %v9767_v35  ;;  %v9772_v26 = vrot.slane %v9680_v10, 4  ;;  %9883 = vst [vmem:[#allocation4 + $0x2c] sm:$0x1] %v9882_v56  ;;  %v8425_v59 = vrot.slane %v8411_v3, %v17778_v24  ;;  %v8428_v54 = vcombine.high %v8028_v38, %v8028_v38  ;;  %13006 = vmatprep.subr.bf16.mxu1 %v13352_v0  ;;  %v9380_v10 = vld [vmem:[#allocation4 + $0x3c] sm:$0x1] }
 0x47d   : > { %v9771_v23 = vsel %vm9714_vm2, %v9770_v7, %v9769_v58  ;;  %v8426_v20 = vcombine.high %v8418_v62, %v8418_v62  ;;  %v12429_v15 = vrot.slane %v8418_v62, 9  ;;  %v8435_v53 = vrot.slane %v8028_v38, %v17778_v24  ;;  %v9383_v3 = vld [vmem:[#allocation4 + $0x44] sm:$0x1]  ;;  %v10273_v58 = vld [vmem:[#allocation4 + $0x20] sm:$0xf] }
 0x47e   : > { %v9773_v22 = vsel %vm9717_vm11, %v9772_v26, %v9771_v23  ;;  %v8427_v17 = vcombine.high %v8425_v59, %v8425_v59  ;;  %v12431_v43 = vrot.slane %v8425_v59, 9  ;;  %v8442_v36 = vrot.slane %v8428_v54, %v17778_v24  ;;  %v12910_v41 = vpop.f32.mrb[48].mxu1 }
 0x47f   : > { %v9775_v12 = vsel %vm9720_vm4, %v9774_v6, %v9773_v22  ;;  %v9778_v37 = vrot.slane %v9683_v27, 1  ;;  %v12430_v52 = vrot.slane %v8426_v20, 9  ;;  %v8443_v61 = vcombine.high %v8435_v53, %v8435_v53  ;;  %v12911_v60 = vpop.f32.mrb[49].mxu1  ;;  %13007 = vmatpush3.bf16.msra.mxu1 %v13354_v46 }
 0x480   : > { %v19139_v4 = vshll.u32 %v17918_v25, 16  ;;  %v9777_v45 = vsel %vm9723_vm5, %v9776_v9, %v9775_v12  ;;  %v12432_v11 = vrot.slane %v8427_v17, 9  ;;  %v8444_v57 = vcombine.high %v8442_v36, %v8442_v36  ;;  %v12913_v21 = vpop.f32.mrb[50].mxu1 }
 0x481   : > { %v9779_v47 = vsel %vm9726_vm7, %v9778_v37, %v9777_v45  ;;  %v18236_v49 = vrot.slane %v10131_v32, 4  ;;  %v18240_v38 = vrot.slane %v10134_v18, 5  ;;  %v10145_v25 = vshrl.u32 %v18124_v55, 16  ;;  %v12914_v2 = vpop.f32.mrb[51].mxu1  ;;  %v9352_v18 = vld [vmem:[#allocation4 + $0x40] sm:$0x1] }
 0x482   : > { %v18230_v44 = vrot.slane %v19139_v4, 5  ;;  %v9827_v35 = vpack.c.b16 %v9779_v47, %v9779_v47  ;;  %v18243_v40 = vmax.f32 %v8418_v62, %v12429_v15  ;;  %v18245_v27 = vmax.f32 %v8425_v59, %v12431_v43  ;;  %v19143_v4 = vld [vmem:[#allocation22_spill] sm:$0xff] }
 0x483   : > { %v12433_v28 = vrot.slane %v8435_v53, 9  ;;  %v18247_v50 = vmax.f32 %v8426_v20, %v12430_v52  ;;  %v18249_v7 = vmax.f32 %v8427_v17, %v12432_v11  ;;  %v12434_v32 = vrot.slane %v8443_v61, 9  ;;  %v19144_v11 = vld [vmem:[#allocation29_spill] sm:$0xff]  ;;  %v18270_v47 = vld [vmem:[#allocation4 + $0x2c] sm:$0x1] }
 0x484   : > { %v12906_v1 = vadd.f32 %v18196_v19, %v18193_v34  ;;  %v9879_v6 = vsel %vm17841_vm6, %v9827_v35, %v9878_v42  ;;  %v12435_v9 = vrot.slane %v8442_v36, 9  ;;  %v12436_v56 = vrot.slane %v8444_v57, 9  ;;  %v10281_v34 = vld [vmem:[#allocation4 + $0x24] sm:$0x1] }
 0x485   : > { %v12909_v62 = vadd.f32 %v12908_v16, %v18201_v48  ;;  %9880 = vst [vmem:[#allocation4 + $0x28] sm:$0xf] %v9879_v6  ;;  %v12912_v59 = vadd.f32 %v12911_v60, %v12910_v41  ;;  %v12915_v54 = vadd.f32 %v12914_v2, %v12913_v21  ;;  %v9381_v0 = vsel %vm17667_vm1, 0, %v9380_v10  ;;  %v19141_v16 = vld [vmem:[#allocation21_spill] sm:$0xff] }
 0x486   : > { %v7808_v26 = vadd.f32 %v17933_v13, %v12906_v1  ;;  %v9211_v19 = vmax.f32 %v8435_v53, %v12433_v28  ;;  %9382 = vst [vmem:[#allocation4 + $0x3c] sm:$0x1] %v9381_v0  ;;  %v9353_v20 = vsel %vm17657_vm13, 0, %v9352_v18  ;;  %v9384_v48 = vsel %vm17667_vm1, 0, %v9383_v3  ;;  %v19142_v53 = vld [vmem:[#allocation15_spill] sm:$0xff] }
 0x487   : > { %v7811_v23 = vadd.f32 %v17933_v13, %v12909_v62  ;;  %v7816_v22 = vadd.f32 %v17933_v13, %v12912_v59  ;;  %v7819_v17 = vadd.f32 %v17933_v13, %v12915_v54  ;;  %9354 = vst [vmem:[#allocation4 + $0x40] sm:$0x1] %v9353_v20  ;;  %9385 = vst [vmem:[#allocation4 + $0x44] sm:$0x1] %v9384_v48  ;;  %v10316_v43 = vshrl.u32 %v10273_v58, 16 }
 0x488   : > { %v7969_v15 = vadd.f32 %v19141_v16, %v7808_v26  ;;  %v9212_v41 = vmax.f32 %v8443_v61, %v12434_v32  ;;  %v10319_v37 = vshll.u32 %v10273_v58, 16  ;;  %v10325_v52 = vshll.u32 %v10281_v34, 16 }
 0x489   : > { %v7972_v12 = vadd.f32 %v19142_v53, %v7811_v23  ;;  %v9213_v60 = vmax.f32 %v8442_v36, %v12435_v9  ;;  %v7977_v45 = vadd.f32 %v19143_v4, %v7816_v22  ;;  %v7980_v21 = vadd.f32 %v19144_v11, %v7819_v17 }
 0x48a   : > { %v8029_v46 = vmax.f32 %v7969_v15, 0.0  ;;  %v9214_v42 = vmax.f32 %v8444_v57, %v12436_v56  ;;  %v18272_v35 = vrot.slane %v10316_v43, 4  ;;  %v18274_v13 = vrot.slane %v10319_v37, 5 }
 0x48b   : > { %v8030_v2 = vmax.f32 %v7972_v12, 0.0  ;;  %v18277_v10 = vmax.f32 %v7977_v45, 0.0  ;;  %v18279_v32 = vrot.slane %v10325_v52, 5  ;;  %v18282_v18 = vmax.f32 %v7980_v21, 0.0 }
 0x48c   : > { %v8445_v28 = vcombine.high %v8029_v46, %v8029_v46  ;;  %v8452_v61 = vrot.slane %v8029_v46, %v17778_v24  ;;  %v10339_v3 = vshll.u32 %v18270_v47, 16 }
 0x48d   : > { %v8462_v36 = vcombine.high %v8030_v2, %v8030_v2  ;;  %v8469_v1 = vrot.slane %v8030_v2, %v17778_v24  ;;  %v8479_v56 = vcombine.high %v18277_v10, %v18277_v10  ;;  %v18291_v59 = vrot.slane %v18277_v10, %v17778_v24 }
 0x48e   : > { %v8459_v57 = vrot.slane %v8445_v28, %v17778_v24  ;;  %v8460_v6 = vcombine.high %v8452_v61, %v8452_v61  ;;  %v12437_v9 = vrot.slane %v8452_v61, 9 }
 0x48f   : > { %v8476_v62 = vrot.slane %v8462_v36, %v17778_v24  ;;  %v8477_v58 = vcombine.high %v8469_v1, %v8469_v1  ;;  %v12441_v26 = vrot.slane %v8469_v1, 9 }
 0x490   : > { %v8461_v54 = vcombine.high %v8459_v57, %v8459_v57  ;;  %v12438_v0 = vrot.slane %v8460_v6, 9  ;;  %v12439_v34 = vrot.slane %v8459_v57, 9  ;;  %v9215_v23 = vmax.f32 %v8452_v61, %v12437_v9 }
 0x491   : > { %v8478_v20 = vcombine.high %v8476_v62, %v8476_v62  ;;  %v12442_v48 = vrot.slane %v8477_v58, 9  ;;  %v12443_v16 = vrot.slane %v8476_v62, 9  ;;  %v9219_v15 = vmax.f32 %v8469_v1, %v12441_v26  ;;  %v18293_v22 = vpop.f32.mrb[52].mxu1 }
 0x492   : > { %v12440_v17 = vrot.slane %v8461_v54, 9  ;;  %v9216_v43 = vmax.f32 %v8460_v6, %v12438_v0  ;;  %v9217_v53 = vmax.f32 %v8459_v57, %v12439_v34  ;;  %v9295_v12 = vmax.f32 %v18243_v40, %v9215_v23  ;;  %v18296_v37 = vpop.f32.mrb[53].mxu1 }
 0x493   : > { %v12444_v52 = vrot.slane %v8478_v20, 9  ;;  %v9220_v46 = vmax.f32 %v8477_v58, %v12442_v48  ;;  %v9221_v4 = vmax.f32 %v8476_v62, %v12443_v16  ;;  %v9299_v45 = vmax.f32 %v9211_v19, %v9219_v15  ;;  %v18298_v11 = vpop.f32.mrb[54].mxu1 }
 0x494   : > { %v9218_v21 = vmax.f32 %v8461_v54, %v12440_v17  ;;  %v9296_v2 = vmax.f32 %v18247_v50, %v9216_v43  ;;  %v9297_v28 = vmax.f32 %v18245_v27, %v9217_v53  ;;  %v12771_v61 = vpack.c.bf16 %v9295_v12, %v9295_v12  ;;  %v18302_v10 = vpop.f32.mrb[55].mxu1  ;;  %v9887_v27 = vld [vmem:[#allocation4 + $0x34] sm:$0x1] }
 0x495   : > { %v9222_v36 = vmax.f32 %v8478_v20, %v12444_v52  ;;  %v9300_v1 = vmax.f32 %v9212_v41, %v9220_v46  ;;  %v9301_v57 = vmax.f32 %v9213_v60, %v9221_v4  ;;  %v12775_v40 = vpack.c.bf16 %v9299_v45, %v9299_v45 }
 0x496   : > { %v9298_v6 = vmax.f32 %v18249_v7, %v9218_v21  ;;  %v12772_v9 = vpack.c.bf16 %v9296_v2, %v9296_v2  ;;  %v12773_v58 = vpack.c.bf16 %v9297_v28, %v9297_v28  ;;  %v9685_v62 = vunpack.c.l.b16 %v12771_v61 }
 0x497   : > { %v9302_v19 = vmax.f32 %v9214_v42, %v9222_v36  ;;  %v12776_v26 = vpack.c.bf16 %v9300_v1, %v9300_v1  ;;  %v12777_v0 = vpack.c.bf16 %v9301_v57, %v9301_v57  ;;  %v9689_v54 = vunpack.c.l.b16 %v12775_v40 }
 0x498   : > { %v12774_v34 = vpack.c.bf16 %v9298_v6, %v9298_v6  ;;  %v9686_v50 = vunpack.c.l.b16 %v12772_v9  ;;  %v9687_v23 = vunpack.c.l.b16 %v12773_v58  ;;  %v10322_v48 = vor.u32 %v18274_v13, %v18272_v35 }
 0x499   : > { %v9780_v20 = vrot.slane %v9685_v62, 7  ;;  %v9690_v41 = vunpack.c.l.b16 %v12776_v26  ;;  %v9691_v60 = vunpack.c.l.b16 %v12777_v0  ;;  %v12800_v16 = vpack.c.bf16 %v9302_v19, %v9302_v19  ;;  %v12922_v15 = vpop.f32.mrb[56].mxu1 }
 0x49a   : > { %v9688_v7 = vunpack.c.l.b16 %v12774_v34  ;;  %v9781_v17 = vrot.slane %v9686_v50, 6  ;;  %v9783_v43 = vrot.slane %v9687_v23, 5  ;;  %v8493_v42 = vrot.slane %v8479_v56, %v17778_v24  ;;  %v12923_v53 = vpop.f32.mrb[57].mxu1 }
 0x49b   : > { %v9787_v12 = vrot.slane %v9689_v54, 3  ;;  %v9888_v52 = vsel %vm17657_vm13, %v12800_v16, %v9887_v27  ;;  %v8494_v46 = vcombine.high %v18291_v59, %v18291_v59  ;;  %v12925_v4 = vpop.f32.mrb[58].mxu1  ;;  %v18314_v45 = vrot.slane %v10339_v3, 5  ;;  %v9884_v27 = vld [vmem:[#allocation4 + $0x30] sm:$0xf] }
 0x49c   : > { %v9782_v21 = vsel %vm9711_vm14, %v9781_v17, %v9780_v20  ;;  %v9785_v2 = vrot.slane %v9688_v7, 4  ;;  %9889 = vst [vmem:[#allocation4 + $0x34] sm:$0x1] %v9888_v52  ;;  %v8495_v28 = vcombine.high %v8493_v42, %v8493_v42  ;;  %v12445_v56 = vrot.slane %v18291_v59, 9  ;;  %v12926_v61 = vpop.f32.mrb[59].mxu1 }
 0x49d   : > { %v9784_v36 = vsel %vm9714_vm2, %v9783_v43, %v9782_v21  ;;  %v9789_v1 = vrot.slane %v9690_v41, 2  ;;  %v12446_v57 = vrot.slane %v8494_v46, 9  ;;  %v8496_v40 = vcombine.high %v18282_v18, %v18282_v18 }
 0x49e   : > { %v9786_v6 = vsel %vm9717_vm11, %v9785_v2, %v9784_v36  ;;  %v9791_v47 = vrot.slane %v9691_v60, 1  ;;  %v12447_v3 = vrot.slane %v8493_v42, 9  ;;  %v8503_v9 = vrot.slane %v18282_v18, %v17778_v24 }
 0x49f   : > { %v9788_v58 = vsel %vm9720_vm4, %v9787_v12, %v9786_v6  ;;  %v12448_v62 = vrot.slane %v8495_v28, 9  ;;  %v18326_v19 = vmax.f32 %v18291_v59, %v12445_v56  ;;  %v8510_v26 = vrot.slane %v8496_v40, %v17778_v24  ;;  %v18344_v12 = vld [vmem:[%s18931_s4] ss:$0 sm:$0xff]  ;;  %v19146_v56 = vld [vmem:[#allocation14_spill] sm:$0xff] }
 0x4a0   : > { %v9790_v0 = vsel %vm9723_vm5, %v9789_v1, %v9788_v58  ;;  %v18330_v54 = vmax.f32 %v8494_v46, %v12446_v57  ;;  %v8511_v34 = vcombine.high %v8503_v9, %v8503_v9  ;;  %v12449_v50 = vrot.slane %v8503_v9, 9 }
 0x4a1   : > { %v9792_v23 = vsel %vm9726_vm7, %v9791_v47, %v9790_v0  ;;  %v8512_v20 = vcombine.high %v8510_v26, %v8510_v26  ;;  %v12451_v41 = vrot.slane %v8510_v26, 9  ;;  %v12918_v18 = vadd.f32 %v18296_v37, %v18293_v22  ;;  %v18347_v22 = vld [vmem:[#allocation4 + $0x28] sm:$0xf] }
 0x4a2   : > { %v9829_v60 = vpack.c.b16 %v9792_v23, %v9792_v23  ;;  %v18335_v16 = vmax.f32 %v8493_v42, %v12447_v3  ;;  %v12450_v59 = vrot.slane %v8511_v34, 9  ;;  %v12921_v7 = vadd.f32 %v18302_v10, %v18298_v11  ;;  %v12928_v21 = vpop.f32.mrb[60].mxu1  ;;  %19145 = vst [vmem:[#allocation12_spill] sm:$0xff] %v18347_v22 }
 0x4a3   : > { %v18339_v17 = vmax.f32 %v8495_v28, %v12448_v62  ;;  %v9227_v43 = vmax.f32 %v8503_v9, %v12449_v50  ;;  %v7824_v52 = vadd.f32 %v18344_v12, %v12918_v18  ;;  %v12924_v46 = vadd.f32 %v12923_v53, %v12922_v15  ;;  %v12929_v2 = vpop.f32.mrb[61].mxu1  ;;  %v19147_v53 = vld [vmem:[#allocation23_spill] sm:$0xff] }
 0x4a4   : > { %v9885_v37 = vsel %vm17841_vm6, %v9829_v60, %v9884_v27  ;;  %v12452_v42 = vrot.slane %v8512_v20, 9  ;;  %v7827_v11 = vadd.f32 %v18344_v12, %v12921_v7  ;;  %v12927_v10 = vadd.f32 %v12926_v61, %v12925_v4  ;;  %v12931_v40 = vpop.f32.mrb[62].mxu1 }
 0x4a5   : > { %9886 = vst [vmem:[#allocation4 + $0x30] sm:$0xf] %v9885_v37  ;;  %v9229_v28 = vmax.f32 %v8510_v26, %v12451_v41  ;;  %v7985_v36 = vadd.f32 %v19146_v56, %v7824_v52  ;;  %v7832_v1 = vadd.f32 %v18344_v12, %v12924_v46  ;;  %v12930_v57 = vadd.f32 %v12929_v2, %v12928_v21  ;;  %v12932_v3 = vpop.f32.mrb[63].mxu1 }
 0x4a6   : > { %v9228_v15 = vmax.f32 %v8511_v34, %v12450_v59  ;;  %v7988_v6 = vadd.f32 %v19147_v53, %v7827_v11  ;;  %v7835_v47 = vadd.f32 %v18344_v12, %v12927_v10  ;;  %v10330_v9 = vshrl.u32 %v18347_v22, 16 }
 0x4a7   : > { %v8033_v58 = vmax.f32 %v7985_v36, 0.0  ;;  %v7993_v4 = vadd.f32 %v18024_v31, %v7832_v1  ;;  %v7840_v61 = vadd.f32 %v18344_v12, %v12930_v57  ;;  %v12933_v62 = vadd.f32 %v12932_v3, %v12931_v40 }
 0x4a8   : > { %v9230_v26 = vmax.f32 %v8512_v20, %v12452_v42  ;;  %v8034_v0 = vmax.f32 %v7988_v6, 0.0  ;;  %v7996_v50 = vadd.f32 %v18028_v33, %v7835_v47  ;;  %v18363_v34 = vrot.slane %v10322_v48, 4 }
 0x4a9   : > { %v8513_v23 = vcombine.high %v8033_v58, %v8033_v58  ;;  %v8520_v27 = vrot.slane %v8033_v58, %v17778_v24  ;;  %v8035_v41 = vmax.f32 %v7993_v4, 0.0  ;;  %v18367_v18 = vadd.f32 %v18022_v30, %v7840_v61 }
 0x4aa   : > { %v8530_v31 = vcombine.high %v8034_v0, %v8034_v0  ;;  %v8537_v60 = vrot.slane %v8034_v0, %v17778_v24  ;;  %v18370_v59 = vmax.f32 %v7996_v50, 0.0  ;;  %v18372_v20 = vrot.slane %v10330_v9, 4 }
 0x4ab   : > { %v8527_v33 = vrot.slane %v8513_v23, %v17778_v24  ;;  %v8528_v7 = vcombine.high %v8520_v27, %v8520_v27  ;;  %v12453_v35 = vrot.slane %v8520_v27, 9  ;;  %v8547_v13 = vcombine.high %v8035_v41, %v8035_v41 }
 0x4ac   : > { %v8544_v48 = vrot.slane %v8530_v31, %v17778_v24  ;;  %v8545_v52 = vcombine.high %v8537_v60, %v8537_v60  ;;  %v12457_v46 = vrot.slane %v8537_v60, 9  ;;  %v18377_v21 = vrot.slane %v8035_v41, %v17778_v24 }
 0x4ad   : > { %v8529_v30 = vcombine.high %v8527_v33, %v8527_v33  ;;  %v12454_v37 = vrot.slane %v8528_v7, 9  ;;  %v12455_v42 = vrot.slane %v8527_v33, 9  ;;  %v9231_v11 = vmax.f32 %v8520_v27, %v12453_v35 }
 0x4ae   : > { %v8546_v10 = vcombine.high %v8544_v48, %v8544_v48  ;;  %v12458_v2 = vrot.slane %v8545_v52, 9  ;;  %v12459_v56 = vrot.slane %v8544_v48, 9  ;;  %v9235_v36 = vmax.f32 %v8537_v60, %v12457_v46 }
 0x4af   : > { %v12456_v1 = vrot.slane %v8529_v30, 9  ;;  %v9232_v57 = vmax.f32 %v8528_v7, %v12454_v37  ;;  %v9233_v40 = vmax.f32 %v8527_v33, %v12455_v42  ;;  %v9303_v53 = vmax.f32 %v18326_v19, %v9231_v11 }
 0x4b0   : > { %v12460_v6 = vrot.slane %v8546_v10, 9  ;;  %v9236_v47 = vmax.f32 %v8545_v52, %v12458_v2  ;;  %v9237_v3 = vmax.f32 %v8544_v48, %v12459_v56  ;;  %v9307_v9 = vmax.f32 %v9227_v43, %v9235_v36 }
 0x4b1   : > { %v9234_v58 = vmax.f32 %v8529_v30, %v12456_v1  ;;  %v9304_v4 = vmax.f32 %v18330_v54, %v9232_v57  ;;  %v9305_v61 = vmax.f32 %v18335_v16, %v9233_v40  ;;  %v12779_v0 = vpack.c.bf16 %v9303_v53, %v9303_v53  ;;  %v9893_v54 = vld [vmem:[#allocation4 + $0x3c] sm:$0x1] }
 0x4b2   : > { %v9238_v50 = vmax.f32 %v8546_v10, %v12460_v6  ;;  %v9308_v23 = vmax.f32 %v9228_v15, %v9236_v47  ;;  %v9309_v27 = vmax.f32 %v9229_v28, %v9237_v3  ;;  %v12783_v41 = vpack.c.bf16 %v9307_v9, %v9307_v9 }
 0x4b3   : > { %v9306_v31 = vmax.f32 %v18339_v17, %v9234_v58  ;;  %v12780_v60 = vpack.c.bf16 %v9304_v4, %v9304_v4  ;;  %v12781_v33 = vpack.c.bf16 %v9305_v61, %v9305_v61  ;;  %v9693_v7 = vunpack.c.l.b16 %v12779_v0 }
 0x4b4   : > { %v9310_v19 = vmax.f32 %v9230_v26, %v9238_v50  ;;  %v12784_v35 = vpack.c.bf16 %v9308_v23, %v9308_v23  ;;  %v12785_v52 = vpack.c.bf16 %v9309_v27, %v9309_v27  ;;  %v9697_v48 = vunpack.c.l.b16 %v12783_v41 }
 0x4b5   : > { %v12782_v43 = vpack.c.bf16 %v9306_v31, %v9306_v31  ;;  %v9694_v46 = vunpack.c.l.b16 %v12780_v60  ;;  %v9695_v30 = vunpack.c.l.b16 %v12781_v33  ;;  %v7843_v16 = vadd.f32 %v18344_v12, %v12933_v62 }
 0x4b6   : > { %v9793_v37 = vrot.slane %v9693_v7, 7  ;;  %v9698_v42 = vunpack.c.l.b16 %v12784_v35  ;;  %v9699_v15 = vunpack.c.l.b16 %v12785_v52  ;;  %v12801_v28 = vpack.c.bf16 %v9310_v19, %v9310_v19  ;;  %v9890_v7 = vld [vmem:[#allocation4 + $0x38] sm:$0xf] }
 0x4b7   : > { %v9696_v11 = vunpack.c.l.b16 %v12782_v43  ;;  %v9794_v10 = vrot.slane %v9694_v46, 6  ;;  %v9796_v17 = vrot.slane %v9695_v30, 5  ;;  %v8561_v2 = vrot.slane %v8547_v13, %v17778_v24 }
 0x4b8   : > { %v9800_v56 = vrot.slane %v9697_v48, 3  ;;  %v9802_v26 = vrot.slane %v9698_v42, 2  ;;  %v9894_v36 = vsel %vm17657_vm13, %v12801_v28, %v9893_v54  ;;  %v8562_v1 = vcombine.high %v18377_v21, %v18377_v21 }
 0x4b9   : > { %v9795_v57 = vsel %vm9711_vm14, %v9794_v10, %v9793_v37  ;;  %v9798_v12 = vrot.slane %v9696_v11, 4  ;;  %9895 = vst [vmem:[#allocation4 + $0x3c] sm:$0x1] %v9894_v36  ;;  %v8563_v62 = vcombine.high %v8561_v2, %v8561_v2  ;;  %v12461_v40 = vrot.slane %v18377_v21, 9 }
 0x4ba   : > { %v9797_v53 = vsel %vm9714_vm2, %v9796_v17, %v9795_v57  ;;  %v12462_v6 = vrot.slane %v8562_v1, 9  ;;  %v12463_v47 = vrot.slane %v8561_v2, 9  ;;  %v8564_v13 = vcombine.high %v18370_v59, %v18370_v59 }
 0x4bb   : > { %v9799_v3 = vsel %vm9717_vm11, %v9798_v12, %v9797_v53  ;;  %v9804_v9 = vrot.slane %v9699_v15, 1  ;;  %v12464_v58 = vrot.slane %v8563_v62, 9  ;;  %v8571_v4 = vrot.slane %v18370_v59, %v17778_v24 }
 0x4bc   : > { %v9801_v61 = vsel %vm9720_vm4, %v9800_v56, %v9799_v3  ;;  %v9239_v0 = vmax.f32 %v18377_v21, %v12461_v40  ;;  %v9240_v50 = vmax.f32 %v8562_v1, %v12462_v6  ;;  %v8578_v23 = vrot.slane %v8564_v13, %v17778_v24 }
 0x4bd   : > { %v9803_v27 = vsel %vm9723_vm5, %v9802_v26, %v9801_v61  ;;  %v9241_v41 = vmax.f32 %v8561_v2, %v12463_v47  ;;  %v8579_v31 = vcombine.high %v8571_v4, %v8571_v4  ;;  %v12465_v60 = vrot.slane %v8571_v4, 9 }
 0x4be   : > { %v9805_v33 = vsel %vm9726_vm7, %v9804_v9, %v9803_v27  ;;  %v8580_v19 = vcombine.high %v8578_v23, %v8578_v23  ;;  %v12467_v35 = vrot.slane %v8578_v23, 9  ;;  %v8037_v52 = vmax.f32 %v18367_v18, 0.0 }
 0x4bf   : > { %v9831_v59 = vpack.c.b16 %v9805_v33, %v9805_v33  ;;  %v9242_v48 = vmax.f32 %v8563_v62, %v12464_v58  ;;  %v12466_v43 = vrot.slane %v8579_v31, 9  ;;  %v8004_v21 = vadd.f32 %v18026_v39, %v7843_v16 }
 0x4c0   : > { %v12468_v46 = vrot.slane %v8580_v19, 9  ;;  %v9243_v30 = vmax.f32 %v8571_v4, %v12465_v60  ;;  %v8581_v54 = vcombine.high %v8037_v52, %v8037_v52  ;;  %v8588_v37 = vrot.slane %v8037_v52, %v17778_v24 }
 0x4c1   : > { %v9891_v42 = vsel %vm17841_vm6, %v9831_v59, %v9890_v7  ;;  %v9245_v15 = vmax.f32 %v8578_v23, %v12467_v35  ;;  %v8038_v28 = vmax.f32 %v8004_v21, 0.0  ;;  %v10333_v11 = vshll.u32 %v18347_v22, 16 }
 0x4c2   : > { %9892 = vst [vmem:[#allocation4 + $0x38] sm:$0xf] %v9891_v42  ;;  %v9244_v10 = vmax.f32 %v8579_v31, %v12466_v43  ;;  %v8595_v18 = vrot.slane %v8581_v54, %v17778_v24  ;;  %v8596_v17 = vcombine.high %v8588_v37, %v8588_v37  ;;  %v12469_v2 = vrot.slane %v8588_v37, 9 }
 0x4c3   : > { %v9246_v56 = vmax.f32 %v8580_v19, %v12468_v46  ;;  %v8598_v39 = vcombine.high %v8038_v28, %v8038_v28  ;;  %v8605_v16 = vrot.slane %v8038_v28, %v17778_v24  ;;  %v10335_v26 = vrot.slane %v10333_v11, 5 }
 0x4c4   : > { %v8597_v36 = vcombine.high %v8595_v18, %v8595_v18  ;;  %v12470_v1 = vrot.slane %v8596_v17, 9  ;;  %v12471_v57 = vrot.slane %v8595_v18, 9  ;;  %v9247_v12 = vmax.f32 %v8588_v37, %v12469_v2 }
 0x4c5   : > { %v8612_v62 = vrot.slane %v8598_v39, %v17778_v24  ;;  %v8613_v40 = vcombine.high %v8605_v16, %v8605_v16  ;;  %v12473_v53 = vrot.slane %v8605_v16, 9  ;;  %v10336_v6 = vor.u32 %v10335_v26, %v18372_v20  ;;  %v13477_v24 = vld [vmem:[#allocation4 + $0xc] sm:$0x1] }
 0x4c6   : > { %v12472_v47 = vrot.slane %v8597_v36, 9  ;;  %v9248_v13 = vmax.f32 %v8596_v17, %v12470_v1  ;;  %v9249_v3 = vmax.f32 %v8595_v18, %v12471_v57  ;;  %v9311_v9 = vmax.f32 %v9239_v0, %v9247_v12  ;;  %v10216_v12 = vld [vmem:[#allocation4 + $0x18] sm:$0xe] }
 0x4c7   : > { %v8614_v58 = vcombine.high %v8612_v62, %v8612_v62  ;;  %v12474_v4 = vrot.slane %v8613_v40, 9  ;;  %v12475_v61 = vrot.slane %v8612_v62, 9  ;;  %v9251_v23 = vmax.f32 %v8605_v16, %v12473_v53 }
 0x4c8   : > { %v9250_v27 = vmax.f32 %v8597_v36, %v12472_v47  ;;  %v9312_v31 = vmax.f32 %v9240_v50, %v9248_v13  ;;  %v9313_v60 = vmax.f32 %v9241_v41, %v9249_v3  ;;  %v12787_v33 = vpack.c.bf16 %v9311_v9, %v9311_v9  ;;  %v10217_v47 = vld [vmem:[#allocation4 + $0x20] sm:$0xe] }
 0x4c9   : > { %v12476_v7 = vrot.slane %v8614_v58, 9  ;;  %v9252_v19 = vmax.f32 %v8613_v40, %v12474_v4  ;;  %v9253_v35 = vmax.f32 %v8612_v62, %v12475_v61  ;;  %v9315_v52 = vmax.f32 %v9243_v30, %v9251_v23  ;;  %v9899_v30 = vld [vmem:[#allocation4 + $0x44] sm:$0x1]  ;;  %v18428_v4 = vld [vmem:[#allocation4 + $0x30] sm:$0xf] }
 0x4ca   : > { %v9314_v59 = vmax.f32 %v9242_v48, %v9250_v27  ;;  %v12788_v43 = vpack.c.bf16 %v9312_v31, %v9312_v31  ;;  %v12789_v21 = vpack.c.bf16 %v9313_v60, %v9313_v60  ;;  %v9701_v20 = vunpack.c.l.b16 %v12787_v33  ;;  %v18431_v27 = vld [vmem:[#allocation4 + $0x28] sm:$0xf] }
 0x4cb   : > { %v9254_v46 = vmax.f32 %v8614_v58, %v12476_v7  ;;  %v9316_v54 = vmax.f32 %v9244_v10, %v9252_v19  ;;  %v9317_v37 = vmax.f32 %v9245_v15, %v9253_v35  ;;  %v12791_v0 = vpack.c.bf16 %v9315_v52, %v9315_v52  ;;  %v18413_v15 = vld [vmem:[#allocation4 + $0x1c] sm:$0x1]  ;;  %v18436_v7 = vld [vmem:[#allocation4 + $0x20] sm:$0xf]  ;;  %v18442_v52 = vld [vmem:[#allocation4 + $0x2c] sm:$0x1] }
 0x4cc   : > { %v12790_v42 = vpack.c.bf16 %v9314_v59, %v9314_v59  ;;  %v9702_v28 = vunpack.c.l.b16 %v12788_v43  ;;  %v9703_v11 = vunpack.c.l.b16 %v12789_v21  ;;  %v9806_v18 = vrot.slane %v9701_v20, 7  ;;  %v10218_v59 = vld [vmem:[#allocation4 + $0x28] sm:$0xe]  ;;  %v10219_v43 = vld [vmem:[#allocation4 + $0x30] sm:$0xe] }
 0x4cd   : > { %v9318_v17 = vmax.f32 %v9246_v56, %v9254_v46  ;;  %v12792_v50 = vpack.c.bf16 %v9316_v54, %v9316_v54  ;;  %v12793_v41 = vpack.c.bf16 %v9317_v37, %v9317_v37  ;;  %v9705_v2 = vunpack.c.l.b16 %v12791_v0  ;;  %v9896_v20 = vld [vmem:[#allocation4 + $0x40] sm:$0xf]  ;;  %v18450_v0 = vld [vmem:[#allocation4 + $0x34] sm:$0x1] }
 0x4ce   : > { %v9704_v39 = vunpack.c.l.b16 %v12790_v42  ;;  %v9807_v16 = vrot.slane %v9702_v28, 6  ;;  %v9809_v26 = vrot.slane %v9703_v11, 5  ;;  %v10337_v48 = vrot.slane %v10336_v6, 4  ;;  %v18423_v6 = vld [vmem:[#allocation4 + $0x24] sm:$0x1] }
 0x4cf   : > { %v10148_v36 = vshll.u32 %v18124_v55, 16  ;;  %v9706_v1 = vunpack.c.l.b16 %v12792_v50  ;;  %v9707_v57 = vunpack.c.l.b16 %v12793_v41  ;;  %v12802_v10 = vpack.c.bf16 %v9318_v17, %v9318_v17  ;;  %v18459_v17 = vld [vmem:[#allocation4 + $0x28] sm:$0xf]  ;;  %v13471_v50 = vld [vmem:[#allocation4] sm:$0xf] }
 0x4d0   : > { %v9808_v62 = vsel %vm9711_vm14, %v9807_v16, %v9806_v18  ;;  %v9811_v40 = vrot.slane %v9704_v39, 4  ;;  %v10328_v56 = vsel %vm13824_vm15, %v18363_v34, %v18279_v32  ;;  %v10342_v53 = vsel %vm13824_vm15, %v10337_v48, %v18314_v45  ;;  %v13472_v41 = vld [vmem:[#allocation4 + $0x8] sm:$0xf]  ;;  %v10030_v55 = vld [vmem:[#allocation4] sm:$0xe] }
 0x4d1   : > { %v9810_v13 = vsel %vm9714_vm2, %v9809_v26, %v9808_v62  ;;  %v9813_v3 = vrot.slane %v9705_v2, 3  ;;  %v9815_v9 = vrot.slane %v9706_v1, 2  ;;  %v9900_v58 = vsel %vm17657_vm13, %v12802_v10, %v9899_v30  ;;  %v18462_v30 = vld [vmem:[#allocation4 + $0x24] sm:$0x1]  ;;  %v18469_v1 = vld [vmem:[#allocation4 + $0x2c] sm:$0x1] }
 0x4d2   : > { %v9812_v61 = vsel %vm9717_vm11, %v9811_v40, %v9810_v13  ;;  %v9817_v23 = vrot.slane %v9707_v57, 1  ;;  %9901 = vst [vmem:[#allocation4 + $0x44] sm:$0x1] %v9900_v58  ;;  %v12602_v32 = vcombine.low %v10328_v56, %v10342_v53  ;;  %v12559_v34 = vrot.slane %v10216_v12, 9  ;;  %v18480_v40 = vld [vmem:[%s18932_s5 + $0x100] sm:$0xff]  }
 0x4d3   : > { %v9814_v45 = vsel %vm9720_vm4, %v9813_v3, %v9812_v61  ;;  %v10248_v31 = vrot.slane %v18413_v15, 5  ;;  %v12560_v60 = vrot.slane %v10217_v47, 9  ;;  %v10252_v33 = vrot.slane %v18423_v6, 5  ;;  %v10031_v3 = vld [vmem:[#allocation4 + $0x8] sm:$0xe]  ;;  %13128 = vmatprep.subr.bf16.mxu0 %v18480_v40 }
 0x4d4   : > { %v9816_v19 = vsel %vm9723_vm5, %v9815_v9, %v9814_v45  ;;  %10601 = vrot.lane.b32.xlu1 %v12602_v32, %s13561_s22  ;;  %v12587_v35 = vcombine.low %v18431_v27, %v18428_v4  ;;  %v10159_v37 = vshrl.u32 %v18431_v27, 16  ;;  %v18454_v42 = vrot.slane %v10145_v25, 4  ;;  %v13473_v45 = vld [vmem:[#allocation4 + $0x4] sm:$0x1] }
 0x4d5   : > { %v9818_v21 = vsel %vm9726_vm7, %v9817_v23, %v9816_v19  ;;  %v10249_v46 = vsel %vm13737_vm10, %v12559_v34, %v10248_v31  ;;  %v10253_v54 = vsel %vm13737_vm10, %v12560_v60, %v10252_v33  ;;  %v18456_v28 = vrot.slane %v10148_v36, 5  ;;  %v10220_v60 = vld [vmem:[#allocation4 + $0x38] sm:$0xe]  ;;  %v10488_v33 = vpop.permute.xlu1 %10487 }
 0x4d6   : > { %v9833_v11 = vpack.c.b16 %v9818_v21, %v9818_v21  ;;  %v12594_v18 = vcombine.low %v10249_v46, %v10253_v54  ;;  %10531 = vrot.lane.b32.xlu0 %v12587_v35, %s13561_s22  ;;  %v12573_v2 = vcombine.low %v13471_v50, %v13472_v41  ;;  %v10162_v39 = vshll.u32 %v18431_v27, 16  ;;  %v10528_v50 = vpop.permute.xlu0 %10527 }
 0x4d7   : > { %v12561_v16 = vrot.slane %v10218_v59, 9  ;;  %v12562_v26 = vrot.slane %v10219_v43, 9  ;;  %v10256_v48 = vrot.slane %v18442_v52, 5  ;;  %v10260_v36 = vrot.slane %v18450_v0, 5  ;;  %v13474_v43 = vld [vmem:[#allocation4 + $0xc] sm:$0x1] }
 0x4d8   : > { %v9897_v25 = vsel %vm17841_vm6, %v9833_v11, %v9896_v20  ;;  %10561 = vrot.lane.b32.xlu1 %v12594_v18, %s13561_s22  ;;  %v9975_v57 = vshrl.u32 %v18436_v7, 16  ;;  %v18472_v10 = vrot.slane %v10159_v37, 4  ;;  %v10173_v12 = vshrl.u32 %v18428_v4, 16  ;;  %v18498_v11 = vld [vmem:[#allocation4 + $0x38] sm:$0xf] }
 0x4d9   : > { %9898 = vst [vmem:[#allocation4 + $0x40] sm:$0xf] %v9897_v25  ;;  %v9978_v62 = vshll.u32 %v18436_v7, 16  ;;  %v9989_v51 = vshrl.u32 %v18459_v17, 16  ;;  %v10257_v56 = vsel %vm13737_vm10, %v12561_v16, %v10256_v48  ;;  %v10261_v53 = vsel %vm13737_vm10, %v12562_v26, %v10260_v36  ;;  %v18500_v18 = vld [vmem:[#allocation4 + $0x3c] sm:$0x1] }
 0x4da   : > { %v9977_v47 = vrot.slane %v9975_v57, 4  ;;  %v9992_v13 = vshll.u32 %v18459_v17, 16  ;;  %v12595_v9 = vcombine.low %v10257_v56, %v10261_v53  ;;  %v9984_v61 = vshll.u32 %v18462_v30, 16  ;;  %v18504_v26 = vld [vmem:[#allocation4 + $0x44] sm:$0x1] }
 0x4db   : > { %v9980_v58 = vrot.slane %v9978_v62, 5  ;;  %v9991_v23 = vrot.slane %v9989_v51, 4  ;;  %v9998_v34 = vshll.u32 %v18469_v1, 16  ;;  %v12549_v27 = vrot.slane %v10030_v55, 9  ;;  %v18506_v55 = vld [vmem:[#allocation4 + $0x30] sm:$0xf] }
 0x4dc   : > { %v9994_v32 = vrot.slane %v9992_v13, 5  ;;  %v10056_v31 = vrot.slane %v13473_v45, 5  ;;  %v10176_v19 = vshll.u32 %v18428_v4, 16  ;;  %10563 = vrot.lane.b32.xlu1 %v12595_v9, %s13561_s22  ;;  %v12550_v59 = vrot.slane %v10031_v3, 9  ;;  %v18508_v25 = vld [vmem:[#allocation4 + $0x34] sm:$0x1] }
 0x4dd   : > { %v9981_v35 = vor.u32 %v9980_v58, %v9977_v47  ;;  %v10060_v21 = vrot.slane %v13474_v43, 5  ;;  %v18492_v20 = vrot.slane %v10162_v39, 5  ;;  %v18494_v46 = vrot.slane %v10173_v12, 4  ;;  %v18518_v3 = vld [vmem:[#allocation4 + $0x38] sm:$0xf] }
 0x4de   : > { %v9995_v54 = vor.u32 %v9994_v32, %v9991_v23  ;;  %v10057_v37 = vsel %vm13737_vm10, %v12549_v27, %v10056_v31  ;;  %v9986_v41 = vrot.slane %v9984_v61, 5  ;;  %v12563_v39 = vrot.slane %v10220_v60, 9  ;;  %v18525_v23 = vld [vmem:[#allocation4 + $0x3c] sm:$0x1]  ;;  %v18527_v32 = vld [vmem:[#allocation4 + $0x30] sm:$0xf] }
 0x4df   : > { %v9982_v4 = vrot.slane %v9981_v35, 4  ;;  %v10061_v16 = vsel %vm13737_vm10, %v12550_v59, %v10060_v21  ;;  %v10621_v48 = vsel %vm7276_vm9, %v12573_v2, %v10488_v33  ;;  %v10000_v57 = vrot.slane %v9998_v34, 5  ;;  %v13359_v34 = vld [vmem:[%s18932_s5 + $0x108] sm:$0xff]   ;;  %v18541_v43 = vld [vmem:[#allocation4 + $0x34] sm:$0x1]  ;;  %v18543_v21 = vpop.permute.xlu1 %10489 }
 0x4e0   : > { %v9996_v36 = vrot.slane %v9995_v54, 4  ;;  %v12581_v12 = vcombine.low %v10057_v37, %v10061_v16  ;;  %v18511_v62 = vld [vmem:[#allocation4 + $0x40] sm:$0xf]  ;;  %v18513_v56 = vrot.slane %v10176_v19, 5  ;;  %v10264_v13 = vrot.slane %v18500_v18, 5 }
 0x4e1   : > { %v10221_v51 = vld [vmem:[#allocation4 + $0x40] sm:$0xe]  ;;  %v9987_v9 = vsel %vm13824_vm15, %v9982_v4, %v9986_v41  ;;  %v12588_v45 = vcombine.low %v18498_v11, %v18511_v62  ;;  %v10268_v60 = vrot.slane %v18504_v26, 5  ;;  %v10003_v33 = vshrl.u32 %v18506_v55, 16  ;;  %v9355_v54 = vld [vmem:[#allocation4 + $0x48] sm:$0x1] }
 0x4e2   : > { %v10001_v2 = vsel %vm13824_vm15, %v9996_v36, %v10000_v57  ;;  %v10637_v58 = vsel %vm7276_vm9, %v12581_v12, %v10528_v50  ;;  %v12564_v61 = vrot.slane %v10221_v51, 9  ;;  %v10265_v31 = vsel %vm13737_vm10, %v12563_v39, %v10264_v13  ;;  %v18550_v41 = vld [vmem:[#allocation4 + $0x38] sm:$0xf]  ;;  %v9386_v57 = vld [vmem:[#allocation4 + $0x4c] sm:$0x1] }
 0x4e3   : > { %v12579_v27 = vcombine.low %v9987_v9, %v10001_v2  ;;  %11022 = vmatprep.mubr.bf16.mxu0 %v10637_v58  ;;  %v10006_v19 = vshll.u32 %v18506_v55, 16  ;;  %v10012_v35 = vshll.u32 %v18508_v25, 16  ;;  %v10017_v59 = vshrl.u32 %v18518_v3, 16  ;;  %v13475_v12 = vld [vmem:[#allocation4 + $0x10] sm:$0xf]  ;;  %v13360_v9 = vld [vmem:[%s18932_s5 + $0x110] sm:$0xff]   ;;  %v10600_v47 = vpop.permute.xlu1 %10599 }
 0x4e4   : > { %11023 = vmatmul.mubr.bf16.vlgmr.msra.gmra.mrb[64].mxu0 %v10621_v48  ;;  %v10269_v37 = vsel %vm13737_vm10, %v12564_v61, %v10268_v60  ;;  %v10020_v50 = vshll.u32 %v18518_v3, 16  ;;  %v10026_v4 = vshll.u32 %v18525_v23, 16  ;;  %v10344_v16 = vshrl.u32 %v18527_v32, 16  ;;  %v13476_v51 = vld [vmem:[#allocation4 + $0x18] sm:$0xf] }
 0x4e5   : > { %10491 = vrot.lane.b32.xlu0 %v12579_v27, %s13561_s22  ;;  %13129 = vmatpush3.bf16.msra.mxu0 %v18480_v40  ;;  %v12596_v39 = vcombine.low %v10265_v31, %v10269_v37  ;;  %v10005_v48 = vrot.slane %v10003_v33, 4  ;;  %v10008_v36 = vrot.slane %v10006_v19, 5  ;;  %v12597_v13 = vcombine.low %v13475_v12, %v13476_v51  ;;  %v18557_v27 = vld [vmem:[#allocation4 + $0x3c] sm:$0x1]  ;;  %v18563_v37 = vld [vmem:[#allocation4 + $0x44] sm:$0x1] }
 0x4e6   : > { %13130 = vmatprep.subr.bf16.mxu0 %v13359_v34  ;;  %v10014_v2 = vrot.slane %v10012_v35, 5  ;;  %v10019_v58 = vrot.slane %v10017_v59, 4  ;;  %v10022_v61 = vrot.slane %v10020_v50, 5  ;;  %v10346_v60 = vrot.slane %v10344_v16, 4  ;;  %v18569_v16 = vld [vmem:[#allocation4 + $0x40] sm:$0xf] }
 0x4e7   : > { %10565 = vrot.lane.b32.xlu1 %v12596_v39, %s13561_s22  ;;  %v10009_v40 = vor.u32 %v10008_v36, %v10005_v48  ;;  %v10347_v31 = vshll.u32 %v18527_v32, 16  ;;  %v10353_v33 = vshll.u32 %v18541_v43, 16  ;;  %v10358_v19 = vshrl.u32 %v18550_v41, 16 }
 0x4e8   : > { %v10023_v12 = vor.u32 %v10022_v61, %v10019_v58  ;;  %v10028_v35 = vrot.slane %v10026_v4, 5  ;;  %v10361_v59 = vshll.u32 %v18550_v41, 16  ;;  %v9356_v50 = vsel %vm17657_vm13, 0, %v9355_v54 }
 0x4e9   : > { %10533 = vrot.lane.b32.xlu0 %v12588_v45, %s13561_s22  ;;  %13131 = vmatpush3.bf16.msra.mxu0 %v13359_v34  ;;  %v10010_v39 = vrot.slane %v10009_v40, 4  ;;  %v10349_v48 = vrot.slane %v10347_v31, 5  ;;  %v10360_v36 = vrot.slane %v10358_v19, 4  ;;  %v10367_v51 = vshll.u32 %v18557_v27, 16  ;;  %9357 = vst [vmem:[#allocation4 + $0x48] sm:$0x1] %v9356_v50 }
 0x4ea   : > { %13132 = vmatprep.subr.bf16.mxu0 %v13360_v9  ;;  %v13361_v45 = vld [vmem:[%s18932_s5 + $0x118] sm:$0xff]   ;;  %v10024_v4 = vrot.slane %v10023_v12, 4  ;;  %v10355_v58 = vrot.slane %v10353_v33, 5  ;;  %v10363_v61 = vrot.slane %v10361_v59, 5  ;;  %v9387_v5 = vsel %vm17667_vm1, 0, %v9386_v57 }
 0x4eb   : > { %v10015_v34 = vsel %vm13824_vm15, %v10010_v39, %v10014_v2  ;;  %v10350_v54 = vor.u32 %v10349_v48, %v10346_v60  ;;  %9388 = vst [vmem:[#allocation4 + $0x4c] sm:$0x1] %v9387_v5  ;;  %v10372_v40 = vshrl.u32 %v18569_v16, 16  ;;  %v10375_v31 = vshll.u32 %v18569_v16, 16  ;;  %v19148_v39 = vld [vmem:[#allocation24_spill] sm:$0xff]  ;;  %v19149_v48 = vld [vmem:[#allocation25_spill] sm:$0xff] }
 0x4ec   : > { %v10029_v19 = vsel %vm13824_vm15, %v10024_v4, %v10028_v35  ;;  %v10364_v50 = vor.u32 %v10363_v61, %v10360_v36  ;;  %v10381_v12 = vshll.u32 %v18563_v37, 16  ;;  %v10669_v33 = vsel %vm7276_vm9, %v12597_v13, %v10600_v47  ;;  %v13478_v13 = vld [vmem:[#allocation4 + $0x14] sm:$0x1]  ;;  %v10032_v4 = vld [vmem:[#allocation4 + $0x10] sm:$0xe] }
 0x4ed   : > { %13133 = vmatpush3.bf16.msra.mxu0 %v13360_v9  ;;  %v12580_v14 = vcombine.low %v10015_v34, %v10029_v19  ;;  %v10351_v57 = vrot.slane %v10350_v54, 4  ;;  %v10374_v59 = vrot.slane %v10372_v40, 4  ;;  %v10377_v53 = vrot.slane %v10375_v31, 5  ;;  %11087 = vmatprep.mubr.bf16.mxu1 %v10669_v33 }
 0x4ee   : > { %13134 = vmatprep.subr.bf16.mxu0 %v13361_v45  ;;  %v10365_v2 = vrot.slane %v10364_v50, 4  ;;  %v10369_v60 = vrot.slane %v10367_v51, 5  ;;  %v10109_v5 = vor.u32 %v19149_v48, %v19148_v39  ;;  %v10112_v22 = vshll.u32 %v13477_v24, 16  ;;  %v10560_v39 = vpop.permute.xlu1 %10559 }
 0x4ef   : > { %10493 = vrot.lane.b32.xlu0 %v12580_v14, %s13561_s22  ;;  %v10378_v35 = vor.u32 %v10377_v53, %v10374_v59  ;;  %v10383_v36 = vrot.slane %v10381_v12, 5  ;;  %v10123_v47 = vor.u32 %v18230_v44, %v17949_v8  ;;  %v10126_v9 = vshll.u32 %v13478_v13, 16  ;;  %v10033_v44 = vld [vmem:[#allocation4 + $0x18] sm:$0xe] }
 0x4f0   : > { %v10356_v61 = vsel %vm13824_vm15, %v10351_v57, %v10355_v58  ;;  %v10370_v51 = vsel %vm13824_vm15, %v10365_v2, %v10369_v60  ;;  %v18594_v34 = vld [vmem:[#allocation4 + $0x48] sm:$0xf]  ;;  %v10110_v54 = vrot.slane %v10109_v5, 4  ;;  %v10114_v24 = vrot.slane %v10112_v22, 5  ;;  %v13479_v57 = vld [vmem:[#allocation4 + $0x14] sm:$0x1] }
 0x4f1   : > { %13135 = vmatpush3.bf16.msra.mxu0 %v13361_v45  ;;  %v12603_v40 = vcombine.low %v10356_v61, %v10370_v51  ;;  %v10379_v53 = vrot.slane %v10378_v35, 4  ;;  %v10386_v31 = vshrl.u32 %v18594_v34, 16  ;;  %v10389_v8 = vshll.u32 %v18594_v34, 16  ;;  %v13480_v5 = vld [vmem:[#allocation4 + $0x1c] sm:$0x1] }
 0x4f2   : > { %v18598_v19 = vld [vmem:[#allocation4 + $0x4c] sm:$0x1]  ;;  %v10115_v58 = vsel %vm13824_vm15, %v10110_v54, %v10114_v24  ;;  %v10124_v50 = vrot.slane %v10123_v47, 4  ;;  %v10128_v12 = vrot.slane %v10126_v9, 5  ;;  %v12551_v33 = vrot.slane %v10032_v4, 9  ;;  %v10530_v54 = vpop.permute.xlu0 %10529 }
 0x4f3   : > { %10603 = vrot.lane.b32.xlu0 %v12603_v40, %s13561_s22  ;;  %v10388_v14 = vrot.slane %v10386_v31, 4  ;;  %v10391_v22 = vrot.slane %v10389_v8, 5  ;;  %v10395_v45 = vshll.u32 %v18598_v19, 16  ;;  %v10064_v59 = vrot.slane %v13479_v57, 5  ;;  %v13481_v4 = vld [vmem:[#allocation4 + $0x10] sm:$0xf] }
 0x4f4   : > { %v10384_v2 = vsel %vm13824_vm15, %v10379_v53, %v10383_v36  ;;  %v10129_v60 = vsel %vm13824_vm15, %v10124_v50, %v10128_v12  ;;  %v12552_v48 = vrot.slane %v10033_v44, 9  ;;  %v10068_v35 = vrot.slane %v13480_v5, 5  ;;  %v13482_v61 = vld [vmem:[#allocation4 + $0x18] sm:$0xf]  ;;  %v10034_v31 = vld [vmem:[#allocation4 + $0x20] sm:$0xe] }
 0x4f5   : > { %v10392_v47 = vor.u32 %v10391_v22, %v10388_v14  ;;  %v10397_v13 = vrot.slane %v10395_v45, 5  ;;  %v12589_v9 = vcombine.low %v10115_v58, %v10129_v60  ;;  %v12574_v51 = vcombine.low %v13481_v4, %v13482_v61  ;;  %v10035_v45 = vld [vmem:[#allocation4 + $0x28] sm:$0xe]  ;;  %v10037_v60 = vld [vmem:[#allocation4 + $0x38] sm:$0xe] }
 0x4f6   : > { %v10065_v24 = vsel %vm13737_vm10, %v12551_v33, %v10064_v59  ;;  %v10069_v36 = vsel %vm13737_vm10, %v12552_v48, %v10068_v35  ;;  %v10137_v40 = vor.u32 %v18240_v38, %v18236_v49  ;;  %v10140_v53 = vshll.u32 %v18413_v15, 16  ;;  %v10036_v59 = vld [vmem:[#allocation4 + $0x30] sm:$0xe] }
 0x4f7   : > { %v10393_v8 = vrot.slane %v10392_v47, 4  ;;  %v10653_v44 = vsel %vm7276_vm9, %v12589_v9, %v10560_v39  ;;  %v12582_v58 = vcombine.low %v10065_v24, %v10069_v36  ;;  %v10625_v50 = vsel %vm7276_vm9, %v12574_v51, %v18543_v21 }
 0x4f8   : > { %11088 = vmatmul.mubr.bf16.vlgmr.msra.gmra.mrb[64].mxu1 %v10653_v44  ;;  %v10138_v12 = vrot.slane %v10137_v40, 4  ;;  %v10142_v14 = vrot.slane %v10140_v53, 5  ;;  %v10151_v33 = vor.u32 %v18456_v28, %v18454_v42  ;;  %v10154_v22 = vshll.u32 %v18423_v6, 16  ;;  %v10403_v44 = vld [vmem:[#allocation4 + $0x30] sm:$0xe] }
 0x4f9   : > { %v10398_v49 = vsel %vm13824_vm15, %v10393_v8, %v10397_v13  ;;  %v10641_v38 = vsel %vm7276_vm9, %v12582_v58, %v10530_v54  ;;  %v12553_v15 = vrot.slane %v10034_v31, 9  ;;  %v10072_v57 = vrot.slane %v18462_v30, 5 }
 0x4fa   : > { %v12604_v21 = vcombine.low %v10384_v2, %v10398_v49  ;;  %11030 = vmatprep.mubr.bf16.mxu0 %v10641_v38  ;;  %v10143_v39 = vsel %vm13824_vm15, %v10138_v12, %v10142_v14  ;;  %v10152_v48 = vrot.slane %v10151_v33, 4  ;;  %v10156_v42 = vrot.slane %v10154_v22, 5  ;;  %v10404_v22 = vld [vmem:[#allocation4 + $0x38] sm:$0xe] }
 0x4fb   : > { %11031 = vmatmul.mubr.bf16.gmra.mrb[68].mxu0 %v10625_v50  ;;  %v18629_v6 = vsel %vm13737_vm10, %v12553_v15, %v10072_v57  ;;  %v12554_v28 = vrot.slane %v10035_v45, 9  ;;  %v10076_v5 = vrot.slane %v18469_v1, 5  ;;  %v12575_v30 = vcombine.low %v18436_v7, %v18459_v17  ;;  %v10402_v17 = vld [vmem:[#allocation4 + $0x28] sm:$0xe] }
 0x4fc   : > { %10605 = vrot.lane.b32.xlu0 %v12604_v21, %s13561_s22  ;;  %v10157_v2 = vsel %vm13824_vm15, %v10152_v48, %v10156_v42  ;;  %v12555_v35 = vrot.slane %v10036_v59, 9  ;;  %v10080_v47 = vrot.slane %v18508_v25, 5  ;;  %v12556_v13 = vrot.slane %v10037_v60, 9  ;;  %v10405_v60 = vld [vmem:[#allocation4 + $0x40] sm:$0xe]  ;;  %s13492_s22 = sshll.u32 %s13566_s30, 4  ;;  %s13493_s22 = int_to_ptr.vmem [resolvable:$false] %s13492_s22 }
 0x4fd   : > { %v18638_v9 = vcombine.low %v10143_v39, %v10157_v2  ;;  %v18642_v4 = vsel %vm13737_vm10, %v12554_v28, %v10076_v5  ;;  %v10084_v1 = vrot.slane %v18525_v23, 5  ;;  %v12576_v61 = vcombine.low %v18506_v55, %v18518_v3  ;;  %v10406_v42 = vld [vmem:[#allocation4 + $0x48] sm:$0xe]  ;;  %s13494_s29 = scalar_lea.vmem %s13493_s22, 32  ;;  %p13495_p0 = scmp.lt.s32.totalorder %s18887_s24, %s13493_s22 }
 0x4fe   : > { %v10201_v51 = vshrl.u32 %v18511_v62, 16  ;;  %v12583_v54 = vcombine.low %v18629_v6, %v18642_v4  ;;  %v10204_v24 = vshll.u32 %v18511_v62, 16  ;;  %v18653_v25 = vsel %vm13737_vm10, %v12555_v35, %v10080_v47  ;;  %p13496_p1 = scmp.lt.s32.totalorder %s13494_s29, %s13488_s15 }
 0x4ff   : > { %v18657_v36 = vsel %vm13737_vm10, %v12556_v13, %v10084_v1  ;;  %v12599_v23 = vcombine.low %v18527_v32, %v18550_v41  ;;  %v19150_v40 = vshrl.u32 %v18498_v11, 16  ;;  %v10165_v62 = vor.u32 %v18492_v20, %v18472_v10 }
 0x500   : > { %v12584_v31 = vcombine.low %v18653_v25, %v18657_v36  ;;  %v10168_v8 = vshll.u32 %v18442_v52, 16  ;;  %v19151_v58 = vshll.u32 %v18498_v11, 16  ;;  %v10179_v12 = vor.u32 %v18513_v56, %v18494_v46  ;;  %p13497_p2 = por %p13496_p1, %p13495_p0 }
 0x501   : > { %v10189_v53 = vrot.slane %v19150_v40, 4  ;;  %v10182_v14 = vshll.u32 %v18450_v0, 16  ;;  %v12600_v33 = vcombine.low %v18569_v16, %v18594_v34  ;;  %v10203_v45 = vrot.slane %v10201_v51, 4 }
 0x502   : > { %v10192_v50 = vrot.slane %v19151_v58, 5  ;;  %v10166_v49 = vrot.slane %v10165_v62, 4  ;;  %v10170_v38 = vrot.slane %v10168_v8, 5  ;;  %v10206_v15 = vrot.slane %v10204_v24, 5  ;;  %v13483_v62 = vld [vmem:[#allocation4 + $0x20] sm:$0xf]  ;;  %p13498_p3 = pnand %p13497_p2, %p13491_p13 }
 0x503   : > { %v10180_v10 = vrot.slane %v10179_v12, 4  ;;  %v10184_v20 = vrot.slane %v10182_v14, 5  ;;  %v12569_v52 = vrot.slane %v10403_v44, 9  ;;  %v10441_v57 = vrot.slane %v18541_v43, 5  ;;  %v19152_v8 = vld [vmem:[#allocation12_spill] sm:$0xff] }
 0x504   : > { %v10171_v11 = vsel %vm13824_vm15, %v10166_v49, %v10170_v38  ;;  %v12570_v59 = vrot.slane %v10404_v22, 9  ;;  %v10445_v46 = vrot.slane %v18557_v27, 5  ;;  %v10193_v56 = vor.u32 %v10192_v50, %v10189_v53  ;;  %v10400_v49 = vld [vmem:[#allocation4 + $0x18] sm:$0xe] }
 0x505   : > { %v10185_v0 = vsel %vm13824_vm15, %v10180_v10, %v10184_v20  ;;  %v18685_v39 = vsel %vm13737_vm10, %v12569_v52, %v10441_v57  ;;  %v10196_v48 = vshll.u32 %v18500_v18, 16  ;;  %v10207_v28 = vor.u32 %v10206_v15, %v10203_v45  ;;  %v10399_v15 = vld [vmem:[#allocation4 + $0x10] sm:$0xe] }
 0x506   : > { %v18681_v21 = vcombine.low %v10171_v11, %v10185_v0  ;;  %v18690_v43 = vsel %vm13737_vm10, %v12570_v59, %v10445_v46  ;;  %v10194_v6 = vrot.slane %v10193_v56, 4  ;;  %v10210_v5 = vshll.u32 %v18504_v26, 16  ;;  %v13485_v11 = vld [vmem:[#allocation4 + $0x14] sm:$0x1]  ;;  %v10401_v0 = vld [vmem:[#allocation4 + $0x20] sm:$0xe] }
 0x507   : > { %v12607_v27 = vcombine.low %v18685_v39, %v18690_v43  ;;  %v10198_v2 = vrot.slane %v10196_v48, 5  ;;  %v12571_v35 = vrot.slane %v10405_v60, 9  ;;  %v10449_v47 = vrot.slane %v18563_v37, 5  ;;  %v13486_v46 = vld [vmem:[#allocation4 + $0x2c] sm:$0x1] }
 0x508   : > { %v10208_v13 = vrot.slane %v10207_v28, 4  ;;  %v10212_v4 = vrot.slane %v10210_v5, 5  ;;  %v12572_v1 = vrot.slane %v10406_v42, 9  ;;  %v10453_v18 = vrot.slane %v18598_v19, 5 }
 0x509   : > { %v10199_v51 = vsel %vm13824_vm15, %v10194_v6, %v10198_v2  ;;  %v18701_v24 = vsel %vm13737_vm10, %v12571_v35, %v10449_v47  ;;  %v12598_v44 = vcombine.low %v13483_v62, %v19152_v8  ;;  %v12566_v10 = vrot.slane %v10400_v49, 9  ;;  %v13487_v6 = vld [vmem:[#allocation4 + $0x24] sm:$0x1] }
 0x50a   : > { %v10213_v26 = vsel %vm13824_vm15, %v10208_v13, %v10212_v4  ;;  %v10454_v40 = vsel %vm13737_vm10, %v12572_v1, %v10453_v18  ;;  %v12565_v20 = vrot.slane %v10399_v15, 9  ;;  %v10425_v57 = vrot.slane %v13485_v11, 5  ;;  %v13371_v49 = vld [vmem:[%s18934_s7 + $0x30] sm:$0xff]   ;;  %v13374_v15 = vld [vmem:[%s18936_s9 + $0x8] sm:$0xff]  }
 0x50b   : > { %v12592_v53 = vcombine.low %v10199_v51, %v10213_v26  ;;  %v12608_v37 = vcombine.low %v18701_v24, %v10454_v40  ;;  %v10437_v56 = vrot.slane %v13486_v46, 5  ;;  %v12567_v48 = vrot.slane %v10401_v0, 9 }
 0x50c   : > { %v10426_v59 = vsel %vm13737_vm10, %v12565_v20, %v10425_v57  ;;  %v10433_v28 = vrot.slane %v13487_v6, 5  ;;  %vm11593_vm15 = vcmask 1041409  }
 0x546   : > { %v10602_v19 = vpop.permute.xlu1 %10601 }
 0x547   : > { %v10673_v58 = vsel %vm7276_vm9, %v12598_v44, %v10602_v19 }
 0x548   : > { %11095 = vmatprep.mubr.bf16.mxu1 %v10673_v58  ;;  %v10532_v50 = vpop.permute.xlu0 %10531  ;;  %v13365_v58 = vld [vmem:[%s18934_s7] sm:$0xff]  }
 0x549   : > { %v10645_v12 = vsel %vm7276_vm9, %v12583_v54, %v10532_v50  ;;  %v13564_v50 = vmov 0.0  }
 0x54a   : > { %v10562_v14 = vpop.permute.xlu1 %10561  ;;  %11038 = vmatprep.mubr.bf16.mxu0 %v10645_v12  ;;  %13144 = vmatprep.subr.bf16.mxu1 %v13564_v50  ;;  %v13366_v12 = vld [vmem:[%s18934_s7 + $0x8] sm:$0xff]  }
 0x54b   : > { %v10657_v63 = vsel %vm7276_vm9, %v18638_v9, %v10562_v14  ;;  %v13484_v9 = vld [vmem:[#allocation4 + $0x1c] sm:$0x1]  ;;  %13145 = vmatpush3.bf16.msra.mxu1 %v13365_v58  ;;  %13164 = vmatprep.subr.bf16.mxu0 %v13564_v50  ;;  %v13367_v14 = vld [vmem:[%s18934_s7 + $0x10] sm:$0xff]  }
 0x54c   : > { %11096 = vmatmul.mubr.bf16.gmra.mrb[68].mxu1 %v10657_v63  ;;  %v10429_v52 = vrot.slane %v13484_v9, 5  ;;  %13146 = vmatprep.subr.bf16.mxu1 %v13564_v50  ;;  %v13368_v63 = vld [vmem:[%s18934_s7 + $0x18] sm:$0xff]  }
 0x54e   : > { %v10430_v7 = vsel %vm13737_vm10, %v12566_v10, %v10429_v52  ;;  %v10564_v60 = vpop.permute.xlu1 %10563  ;;  %v13375_v10 = vld [vmem:[%s18936_s9 + $0x10] sm:$0xff]  }
 0x54f   : > { %v12605_v36 = vcombine.low %v10426_v59, %v10430_v7  ;;  %v10661_v3 = vsel %vm7276_vm9, %v18681_v21, %v10564_v60  ;;  %13147 = vmatpush3.bf16.msra.mxu1 %v13366_v12 }
 0x550   : > { %13148 = vmatprep.subr.bf16.mxu1 %v13564_v50 }
 0x553   : > { %13149 = vmatpush3.bf16.msra.mxu1 %v13367_v14 }
 0x554   : > { %13150 = vmatprep.subr.bf16.mxu1 %v13564_v50 }
 0x557   : > { %v10492_v22 = vpop.permute.xlu0 %10491  ;;  %13151 = vmatpush3.bf16.msra.mxu1 %v13368_v63 }
 0x558   : > { %v10629_v45 = vsel %vm7276_vm9, %v12575_v30, %v10492_v22  ;;  %v13369_v22 = vld [vmem:[%s18934_s7 + $0x20] sm:$0xff]   ;;  %13152 = vmatprep.subr.bf16.mxu1 %v13564_v50 }
 0x559   : > { %11039 = vmatmul.mubr.bf16.gmra.mrb[72].mxu0 %v10629_v45  ;;  %v10566_v32 = vpop.permute.xlu1 %10565  ;;  %v13370_v45 = vld [vmem:[%s18934_s7 + $0x28] sm:$0xff]  }
 0x55a   : > { %v10665_v21 = vsel %vm7276_vm9, %v12592_v53, %v10566_v32 }
 0x55b   : > { %v10534_v38 = vpop.permute.xlu0 %10533  ;;  %13153 = vmatpush3.bf16.msra.mxu1 %v13369_v22 }
 0x55c   : > { %v10649_v54 = vsel %vm7276_vm9, %v12584_v31, %v10534_v38  ;;  %v12568_v31 = vrot.slane %v10402_v17, 9  ;;  %13154 = vmatprep.subr.bf16.mxu1 %v13564_v50  ;;  %v13373_v38 = vld [vmem:[%s18936_s9] sm:$0xff]  }
 0x55d   : > { %11046 = vmatprep.mubr.bf16.mxu0 %v10649_v54  ;;  %v13372_v54 = vld [vmem:[%s18934_s7 + $0x38] sm:$0xff]  }
 0x55e   : > { %v10438_v55 = vsel %vm13737_vm10, %v12568_v31, %v10437_v56 }
 0x55f   : > { %13155 = vmatpush3.bf16.msra.mxu1 %v13370_v45 }
 0x560   : > { %13156 = vmatprep.subr.bf16.mxu1 %v13564_v50 }
 0x561   : > { %v10494_v30 = vpop.permute.xlu0 %10493 }
 0x562   : > { %v10633_v25 = vsel %vm7276_vm9, %v12576_v61, %v10494_v30  ;;  %v10434_v61 = vsel %vm13737_vm10, %v12567_v48, %v10433_v28  ;;  %vm13565_vm10 = vmmov 0  }
 0x563   : > { %11047 = vmatmul.mubr.bf16.gmra.mrb[76].mxu0 %v10633_v25  ;;  %v12606_v2 = vcombine.low %v10434_v61, %v10438_v55  ;;  %13157 = vmatpush3.bf16.msra.mxu1 %v13371_v49 }
 0x564   : > { %13136 = vmatprep.mubr.msk.bf16.mxu0 %vm7276_vm9, %v12605_v36  ;;  %13158 = vmatprep.subr.bf16.mxu1 %v13564_v50 }
 0x565   : > { %v10604_v42 = vpop.permute.xlu0 %10603 }
 0x566   : > { %v10677_v5 = vsel %vm7276_vm9, %v12599_v23, %v10604_v42 }
 0x567   : > { %11103 = vmatprep.mubr.bf16.mxu1 %v10677_v5  ;;  %13159 = vmatpush3.bf16.msra.mxu1 %v13372_v54 }
 0x568   : > { %11104 = vmatmul.mubr.bf16.gmra.mrb[72].mxu1 %v10661_v3 }
 0x56b   : > { %13137 = vmatmul.mubr.msk.bf16.vlgmr.msra.gmra.mrb[80].mxu0 %vm7276_vm9, %v12606_v2 }
 0x56c   : > { %13140 = vmatprep.mubr.msk.bf16.mxu0 %vm7276_vm9, %v12607_v27  ;;  %v18754_v27 = vld [vmem:[%s18933_s6] ss:$0 sm:$0xff]  ;;  %13165 = vmatpush3.bf16.msra.mxu0 %v13373_v38 }
 0x56d   : > { %13166 = vmatprep.subr.bf16.mxu0 %v13564_v50 }
 0x56e   : > { %v10606_v41 = vpop.permute.xlu0 %10605 }
 0x56f   : > { %v10681_v23 = vsel %vm7276_vm9, %v12600_v33, %v10606_v41 }
 0x570   : > { %11111 = vmatprep.mubr.bf16.mxu1 %v10681_v23  ;;  %13167 = vmatpush3.bf16.msra.mxu0 %v13374_v15 }
 0x571   : > { %11112 = vmatmul.mubr.bf16.gmra.mrb[76].mxu1 %v10665_v21  ;;  %13168 = vmatprep.subr.bf16.mxu0 %v13564_v50 }
 0x572   : > { %13160 = vmatprep.mubr.msk.bf16.mxu1 %vm13565_vm10, %v13564_v50 }
 0x573   : > { %13141 = vmatmul.mubr.msk.bf16.gmra.mrb[84].mxu0 %vm7276_vm9, %v12608_v37 }
 0x574   : > { %13172 = vmatprep.mubr.msk.bf16.mxu0 %vm13565_vm10, %v13564_v50  ;;  %13169 = vmatpush3.bf16.msra.mxu0 %v13375_v10 }
 0x575   : > { %13170 = vmatprep.subr.bf16.mxu0 %v13564_v50 }
 0x5b7   : > { %v12968_v29 = vpop.f32.mrb[64].mxu0 }
 0x5b8   : > { %v12969_v35 = vpop.f32.mrb[65].mxu0 }
 0x5b9   : > { %v12970_v47 = vadd.f32 %v12969_v35, %v12968_v29  ;;  %v12971_v13 = vpop.f32.mrb[66].mxu0 }
 0x5ba   : > { %v12972_v39 = vpop.f32.mrb[67].mxu0 }
 0x5bb   : > { %v12973_v43 = vadd.f32 %v12972_v39, %v12971_v13  ;;  %v11025_v33 = vadd.f32 %v12970_v47, %v18754_v27 }
 0x5bd   : > { %v11028_v62 = vadd.f32 %v12973_v43, %v18754_v27 }
 0x5cb   : > { %v13008_v16 = vpop.f32.mrb[64].mxu1 }
 0x5cc   : > { %v13009_v34 = vpop.f32.mrb[65].mxu1 }
 0x5cd   : > { %v13010_v4 = vadd.f32 %v13009_v34, %v13008_v16  ;;  %v13011_v1 = vpop.f32.mrb[66].mxu1 }
 0x5ce   : > { %v13012_v18 = vpop.f32.mrb[67].mxu1  ;;  %v12974_v51 = vpop.f32.mrb[68].mxu0 }
 0x5cf   : > { %v13013_v24 = vadd.f32 %v13012_v18, %v13011_v1  ;;  %v12975_v26 = vpop.f32.mrb[69].mxu0  ;;  %v18757_v40 = vadd.f32 %v13010_v4, %v11025_v33 }
 0x5d0   : > { %v12976_v53 = vadd.f32 %v12975_v26, %v12974_v51  ;;  %v12977_v37 = vpop.f32.mrb[70].mxu0  ;;  %v19153_v26 = vld [vmem:[#allocation20_spill] sm:$0xff] }
 0x5d1   : > { %v12978_v8 = vpop.f32.mrb[71].mxu0  ;;  %v18760_v19 = vadd.f32 %v13013_v24, %v11028_v62 }
 0x5d2   : > { %v12979_v44 = vadd.f32 %v12978_v8, %v12977_v37  ;;  %v11033_v52 = vadd.f32 %v12976_v53, %v18754_v27 }
 0x5d4   : > { %v11036_v17 = vadd.f32 %v12979_v44, %v18754_v27 }
 0x61f   : > { %v13014_v20 = vpop.f32.mrb[68].mxu1 }
 0x620   : > { %v13015_v9 = vpop.f32.mrb[69].mxu1 }
 0x621   : > { %v13016_v11 = vadd.f32 %v13015_v9, %v13014_v20  ;;  %v13017_v57 = vpop.f32.mrb[70].mxu1 }
 0x622   : > { %v13018_v7 = vpop.f32.mrb[71].mxu1 }
 0x623   : > { %v13019_v30 = vadd.f32 %v13018_v7, %v13017_v57  ;;  %v11098_v59 = vadd.f32 %v13016_v11, %v11033_v52 }
 0x625   : > { %v11101_v0 = vadd.f32 %v13019_v30, %v11036_v17 }
 0x62c   : > { %v12980_v25 = vpop.f32.mrb[72].mxu0 }
 0x62d   : > { %v12981_v36 = vpop.f32.mrb[73].mxu0 }
 0x62e   : > { %v12982_v31 = vadd.f32 %v12981_v36, %v12980_v25  ;;  %v12983_v46 = vpop.f32.mrb[74].mxu0 }
 0x62f   : > { %v12984_v56 = vpop.f32.mrb[75].mxu0 }
 0x630   : > { %v12985_v60 = vadd.f32 %v12984_v56, %v12983_v46  ;;  %v11041_v2 = vadd.f32 %v12982_v31, %v18754_v27 }
 0x632   : > { %v11044_v29 = vadd.f32 %v12985_v60, %v18754_v27 }
 0x636   : > { %v12986_v48 = vpop.f32.mrb[76].mxu0 }
 0x637   : > { %v12987_v42 = vpop.f32.mrb[77].mxu0 }
 0x638   : > { %v12988_v6 = vadd.f32 %v12987_v42, %v12986_v48  ;;  %v12989_v28 = vpop.f32.mrb[78].mxu0 }
 0x639   : > { %v12990_v5 = vpop.f32.mrb[79].mxu0 }
 0x63a   : > { %v12991_v55 = vadd.f32 %v12990_v5, %v12989_v28  ;;  %v11049_v54 = vadd.f32 %v12988_v6, %v18754_v27 }
 0x63b   : > { %v13020_v3 = vpop.f32.mrb[72].mxu1 }
 0x63c   : > { %v13021_v61 = vpop.f32.mrb[73].mxu1  ;;  %v11052_v57 = vadd.f32 %v12991_v55, %v18754_v27 }
 0x63d   : > { %v13022_v32 = vadd.f32 %v13021_v61, %v13020_v3  ;;  %v13023_v41 = vpop.f32.mrb[74].mxu1 }
 0x63e   : > { %v13024_v23 = vpop.f32.mrb[75].mxu1  ;;  %v13138_v21 = vpop.f32.mrb[80].mxu0 }
 0x63f   : > { %v13025_v35 = vadd.f32 %v13024_v23, %v13023_v41  ;;  %v11163_v47 = vadd.f32 %v13138_v21, %v11098_v59  ;;  %v11154_v13 = vpop.f32.mrb[81].mxu0  ;;  %v18799_v39 = vadd.f32 %v13022_v32, %v11041_v2 }
 0x640   : > { %v11155_v43 = vadd.f32 %v11154_v13, %v18757_v40  ;;  %v13139_v16 = vpop.f32.mrb[82].mxu0 }
 0x641   : > { %v11187_v34 = vmax.f32 %v11163_v47, 0.0  ;;  %v11166_v33 = vadd.f32 %v13139_v16, %v11101_v0  ;;  %v11157_v4 = vpop.f32.mrb[83].mxu0  ;;  %v18802_v1 = vadd.f32 %v13025_v35, %v11044_v29 }
 0x642   : > { %v11185_v18 = vmax.f32 %v11155_v43, 0.0  ;;  %v11158_v51 = vadd.f32 %v11157_v4, %v18760_v19  ;;  %v19154_v19 = vld [vmem:[#allocation30_spill] sm:$0xff] }
 0x643   : > { %v11235_v24 = vcombine.high %v11187_v34, %v11187_v34  ;;  %v11242_v53 = vrot.slane %v11187_v34, %v19153_v26  ;;  %v11188_v37 = vmax.f32 %v11166_v33, 0.0  ;;  %v18811_v49 = vsub.s32 0, %v19154_v19 }
 0x644   : > { %v11201_v62 = vcombine.high %v11185_v18, %v11185_v18  ;;  %v11208_v8 = vrot.slane %v11185_v18, %v19153_v26  ;;  %v13026_v44 = vpop.f32.mrb[76].mxu1  ;;  %v11186_v30 = vmax.f32 %v11158_v51, 0.0 }
 0x645   : > { %v11249_v58 = vrot.slane %v11235_v24, %v19153_v26  ;;  %v11250_v40 = vcombine.high %v11242_v53, %v11242_v53  ;;  %v12658_v50 = vrot.slane %v11242_v53, 9  ;;  %v11252_v12 = vcombine.high %v11188_v37, %v11188_v37  ;;  %v13027_v14 = vpop.f32.mrb[77].mxu1 }
 0x646   : > { %v11215_v63 = vrot.slane %v11201_v62, %v19153_v26  ;;  %v11216_v22 = vcombine.high %v11208_v8, %v11208_v8  ;;  %v11259_v45 = vrot.slane %v11188_v37, %v19153_v26  ;;  %v13029_v38 = vpop.f32.mrb[78].mxu1  ;;  %v18813_v15 = vpop.f32.mrb[84].mxu0  ;;  %v12650_v17 = vrot.slane %v11208_v8, 9 }
 0x647   : > { %v11251_v10 = vcombine.high %v11249_v58, %v11249_v58  ;;  %v12659_v20 = vrot.slane %v11250_v40, 9  ;;  %v12660_v9 = vrot.slane %v11249_v58, 9  ;;  %v13030_v52 = vpop.f32.mrb[79].mxu1  ;;  %v11170_v11 = vpop.f32.mrb[85].mxu0  ;;  %v11473_v25 = vmax.f32 %v11242_v53, %v12658_v50 }
 0x648   : > { %v11217_v7 = vcombine.high %v11215_v63, %v11215_v63  ;;  %v13143_v59 = vpop.f32.mrb[86].mxu0  ;;  %v12651_v36 = vrot.slane %v11216_v22, 9  ;;  %v11266_v31 = vrot.slane %v11252_v12, %v19153_v26  ;;  %v12652_v48 = vrot.slane %v11215_v63, 9 }
 0x649   : > { %v12661_v0 = vrot.slane %v11251_v10, 9  ;;  %v11173_v46 = vpop.f32.mrb[87].mxu0  ;;  %v18818_v56 = vmax.f32 %v11250_v40, %v12659_v20  ;;  %v11475_v60 = vmax.f32 %v11249_v58, %v12660_v9  ;;  %v11267_v42 = vcombine.high %v11259_v45, %v11259_v45 }
 0x64a   : > { %v12653_v6 = vrot.slane %v11217_v7, 9  ;;  %v11268_v28 = vcombine.high %v11266_v31, %v11266_v31  ;;  %v12662_v5 = vrot.slane %v11259_v45, 9  ;;  %v12664_v3 = vrot.slane %v11266_v31, 9 }
 0x64b   : > { %v18820_v27 = vmax.f32 %v11251_v10, %v12661_v0  ;;  %v12663_v55 = vrot.slane %v11267_v42, 9  ;;  %v11218_v61 = vcombine.high %v11186_v30, %v11186_v30  ;;  %v11225_v2 = vrot.slane %v11186_v30, %v19153_v26 }
 0x64c   : > { %v12665_v32 = vrot.slane %v11268_v28, 9  ;;  %v11477_v41 = vmax.f32 %v11259_v45, %v12662_v5  ;;  %v11479_v23 = vmax.f32 %v11266_v31, %v12664_v3  ;;  %v13028_v21 = vadd.f32 %v13027_v14, %v13026_v44 }
 0x64d   : > { %v11478_v29 = vmax.f32 %v11267_v42, %v12663_v55  ;;  %v11232_v35 = vrot.slane %v11218_v61, %v19153_v26  ;;  %v11233_v47 = vcombine.high %v11225_v2, %v11225_v2  ;;  %v12654_v13 = vrot.slane %v11225_v2, 9 }
 0x64e   : > { %v11480_v43 = vmax.f32 %v11268_v28, %v12665_v32  ;;  %v11501_v16 = vmax.f32 %v11473_v25, %v11477_v41  ;;  %v11503_v34 = vmax.f32 %v11475_v60, %v11479_v23  ;;  %v13031_v33 = vadd.f32 %v13030_v52, %v13029_v38 }
 0x64f   : > { %v11502_v4 = vmax.f32 %v18818_v56, %v11478_v29  ;;  %v11234_v18 = vcombine.high %v11232_v35, %v11232_v35  ;;  %v12655_v51 = vrot.slane %v11233_v47, 9  ;;  %v12656_v24 = vrot.slane %v11232_v35, 9 }
 0x650   : > { %v11465_v53 = vmax.f32 %v11208_v8, %v12650_v17  ;;  %v11466_v37 = vmax.f32 %v11216_v22, %v12651_v36  ;;  %v11504_v62 = vmax.f32 %v18820_v27, %v11480_v43  ;;  %v11469_v58 = vmax.f32 %v11225_v2, %v12654_v13 }
 0x651   : > { %v11467_v44 = vmax.f32 %v11215_v63, %v12652_v48  ;;  %v12657_v40 = vrot.slane %v11234_v18, 9  ;;  %v11470_v50 = vmax.f32 %v11233_v47, %v12655_v51  ;;  %v11471_v12 = vmax.f32 %v11232_v35, %v12656_v24 }
 0x652   : > { %v11468_v14 = vmax.f32 %v11217_v7, %v12653_v6  ;;  %v11497_v45 = vmax.f32 %v11465_v53, %v11469_v58  ;;  %v11114_v19 = vadd.f32 %v13028_v21, %v11049_v54  ;;  %v11171_v10 = vadd.f32 %v11170_v11, %v18799_v39 }
 0x653   : > { %v11472_v38 = vmax.f32 %v11234_v18, %v12657_v40  ;;  %v11498_v20 = vmax.f32 %v11466_v37, %v11470_v50  ;;  %v11499_v9 = vmax.f32 %v11467_v44, %v11471_v12  ;;  %v11117_v52 = vadd.f32 %v13031_v33, %v11052_v57 }
 0x654   : > { %v11532_v30 = vrot.slane %v11497_v45, %v18811_v49  ;;  %v11179_v8 = vadd.f32 %v18813_v15, %v11114_v19  ;;  %v11189_v22 = vmax.f32 %v11171_v10, 0.0  ;;  %v11174_v17 = vadd.f32 %v11173_v46, %v18802_v1 }
 0x655   : > { %v11500_v63 = vmax.f32 %v11468_v14, %v11472_v38  ;;  %v11536_v0 = vrot.slane %v11498_v20, %v18811_v49  ;;  %v11540_v7 = vrot.slane %v11499_v9, %v18811_v49  ;;  %v11182_v25 = vadd.f32 %v13143_v59, %v11117_v52 }
 0x656   : > { %v11548_v54 = vrot.slane %v11501_v16, %v18811_v49  ;;  %v11191_v39 = vmax.f32 %v11179_v8, 0.0  ;;  %v11269_v11 = vcombine.high %v11189_v22, %v11189_v22  ;;  %v11276_v36 = vrot.slane %v11189_v22, %v19153_v26 }
 0x657   : > { %v18835_v57 = vrot.slane %v11503_v34, %v18811_v49  ;;  %v11544_v15 = vrot.slane %v11500_v63, %v18811_v49  ;;  %v11594_v31 = vsel %vm11593_vm15, %v11536_v0, %v11532_v30  ;;  %v11192_v1 = vmax.f32 %v11182_v25, 0.0 }
 0x658   : > { %v11595_v46 = vsel %vm9711_vm14, %v11540_v7, %v11594_v31  ;;  %v11303_v56 = vcombine.high %v11191_v39, %v11191_v39  ;;  %v11310_v60 = vrot.slane %v11191_v39, %v19153_v26  ;;  %v11283_v59 = vrot.slane %v11269_v11, %v19153_v26 }
 0x659   : > { %v11596_v48 = vsel %vm9714_vm2, %v11544_v15, %v11595_v46  ;;  %v11284_v42 = vcombine.high %v11276_v36, %v11276_v36  ;;  %v12666_v6 = vrot.slane %v11276_v36, 9  ;;  %v11320_v28 = vcombine.high %v11192_v1, %v11192_v1 }
 0x65a   : > { %v11597_v5 = vsel %vm9717_vm11, %v11548_v54, %v11596_v48  ;;  %v11317_v3 = vrot.slane %v11303_v56, %v19153_v26  ;;  %v11318_v27 = vcombine.high %v11310_v60, %v11310_v60  ;;  %v12674_v55 = vrot.slane %v11310_v60, 9 }
 0x65b   : > { %v11552_v61 = vrot.slane %v11502_v4, %v18811_v49  ;;  %v11560_v2 = vrot.slane %v11504_v62, %v18811_v49  ;;  %v11285_v32 = vcombine.high %v11283_v59, %v11283_v59  ;;  %v11190_v41 = vmax.f32 %v11174_v17, 0.0 }
 0x65c   : > { %v11319_v23 = vcombine.high %v11317_v3, %v11317_v3  ;;  %v12675_v21 = vrot.slane %v11318_v27, 9  ;;  %v12676_v29 = vrot.slane %v11317_v3, 9  ;;  %v12667_v35 = vrot.slane %v11284_v42, 9 }
 0x65d   : > { %v11489_v47 = vmax.f32 %v11310_v60, %v12674_v55  ;;  %v12668_v13 = vrot.slane %v11283_v59, 9  ;;  %v11481_v43 = vmax.f32 %v11276_v36, %v12666_v6  ;;  %v11327_v16 = vrot.slane %v11192_v1, %v19153_v26 }
 0x65e   : > { %v12677_v34 = vrot.slane %v11319_v23, 9  ;;  %v11490_v33 = vmax.f32 %v11318_v27, %v12675_v21  ;;  %v12669_v18 = vrot.slane %v11285_v32, 9  ;;  %v11334_v51 = vrot.slane %v11320_v28, %v19153_v26 }
 0x65f   : > { %v11491_v24 = vmax.f32 %v11317_v3, %v12676_v29  ;;  %v11335_v4 = vcombine.high %v11327_v16, %v11327_v16  ;;  %v12678_v53 = vrot.slane %v11327_v16, 9  ;;  %v11286_v37 = vcombine.high %v11190_v41, %v11190_v41 }
 0x660   : > { %v11492_v62 = vmax.f32 %v11319_v23, %v12677_v34  ;;  %v11336_v58 = vcombine.high %v11334_v51, %v11334_v51  ;;  %v12680_v44 = vrot.slane %v11334_v51, 9  ;;  %v11293_v40 = vrot.slane %v11190_v41, %v19153_v26 }
 0x661   : > { %v12679_v50 = vrot.slane %v11335_v4, 9  ;;  %v11493_v12 = vmax.f32 %v11327_v16, %v12678_v53  ;;  %v11300_v14 = vrot.slane %v11286_v37, %v19153_v26  ;;  %v11598_v45 = vsel %vm9720_vm4, %v11552_v61, %v11597_v5 }
 0x662   : > { %v12681_v19 = vrot.slane %v11336_v58, 9  ;;  %v11495_v10 = vmax.f32 %v11334_v51, %v12680_v44  ;;  %v11301_v38 = vcombine.high %v11293_v40, %v11293_v40  ;;  %v12670_v20 = vrot.slane %v11293_v40, 9 }
 0x663   : > { %v11494_v9 = vmax.f32 %v11335_v4, %v12679_v50  ;;  %v11509_v52 = vmax.f32 %v11489_v47, %v11493_v12  ;;  %v11302_v30 = vcombine.high %v11300_v14, %v11300_v14  ;;  %v12672_v8 = vrot.slane %v11300_v14, 9  ;;  %v11734_v50 = vld [vmem:[%s18937_s10] sm:$0x1] }
 0x664   : > { %v11496_v22 = vmax.f32 %v11336_v58, %v12681_v19  ;;  %v11511_v17 = vmax.f32 %v11491_v24, %v11495_v10  ;;  %v12671_v63 = vrot.slane %v11301_v38, 9  ;;  %v11485_v0 = vmax.f32 %v11293_v40, %v12670_v20  ;;  %v11635_v24 = vld [vmem:[%s18935_s8] sm:$0x1] }
 0x665   : > { %v11483_v7 = vmax.f32 %v11283_v59, %v12668_v13  ;;  %v11510_v25 = vmax.f32 %v11490_v33, %v11494_v9  ;;  %v12673_v54 = vrot.slane %v11302_v30, 9  ;;  %v11487_v39 = vmax.f32 %v11300_v14, %v12672_v8 }
 0x666   : > { %v11482_v11 = vmax.f32 %v11284_v42, %v12667_v35  ;;  %v11512_v26 = vmax.f32 %v11492_v62, %v11496_v22  ;;  %v11486_v36 = vmax.f32 %v11301_v38, %v12671_v63  ;;  %v11505_v15 = vmax.f32 %v11481_v43, %v11485_v0 }
 0x667   : > { %v11484_v31 = vmax.f32 %v11285_v32, %v12669_v18  ;;  %v11488_v1 = vmax.f32 %v11302_v30, %v12673_v54  ;;  %v11507_v46 = vmax.f32 %v11483_v7, %v11487_v39  ;;  %v11599_v56 = vsel %vm9723_vm5, %v18835_v57, %v11598_v45 }
 0x668   : > { %v11506_v60 = vmax.f32 %v11482_v11, %v11486_v36  ;;  %v11600_v48 = vsel %vm9726_vm7, %v11560_v2, %v11599_v56  ;;  %v11564_v59 = vrot.slane %v11505_v15, %v18811_v49  ;;  %v11580_v27 = vrot.slane %v11509_v52, %v18811_v49 }
 0x669   : > { %v11508_v6 = vmax.f32 %v11484_v31, %v11488_v1  ;;  %v11572_v28 = vrot.slane %v11507_v46, %v18811_v49  ;;  %v11584_v57 = vrot.slane %v11510_v25, %v18811_v49  ;;  %v11588_v2 = vrot.slane %v11511_v17, %v18811_v49 }
 0x66a   : > { %v11568_v5 = vrot.slane %v11506_v60, %v18811_v49  ;;  %v11592_v41 = vrot.slane %v11512_v26, %v18811_v49 }
 0x66b   : > { %v11576_v42 = vrot.slane %v11508_v6, %v18811_v49  ;;  %v13376_v49 = vld [vmem:[%s18936_s9 + $0x18] sm:$0xff]  }
 0x66c   : > { %v11601_v3 = vsel %vm11593_vm15, %v11568_v5, %v11564_v59  ;;  %13171 = vmatpush3.bf16.msra.mxu0 %v13376_v49 }
 0x66d   : > { %v11602_v55 = vsel %vm9711_vm14, %v11572_v28, %v11601_v3 }
 0x66e   : > { %v11603_v61 = vsel %vm9714_vm2, %v11576_v42, %v11602_v55 }
 0x66f   : > { %v11604_v32 = vsel %vm9717_vm11, %v11580_v27, %v11603_v61 }
 0x670   : > { %v11605_v23 = vsel %vm9720_vm4, %v11584_v57, %v11604_v32 }
 0x671   : > { %v11606_v21 = vsel %vm9723_vm5, %v11588_v2, %v11605_v23 }
 0x672   : > { %v11607_v29 = vsel %vm9726_vm7, %v11592_v41, %v11606_v21 }
 0x673   : > { %v11610_v35 = vadd.f32 %v11607_v29, %v11600_v48 }
 0x675   : > { %v11611_v47 = vrot.slane %v11610_v35, 4 }
 0x677   : > { %v11612_v13 = vadd.f32 %v11611_v47, %v11610_v35 }
 0x679   : > { %v11613_v43 = vrot.slane %v11612_v13, 2 }
 0x67b   : > { %v11614_v16 = vadd.f32 %v11613_v43, %v11612_v13 }
 0x67d   : > { %v11615_v34 = vrot.slane %v11614_v16, 1 }
 0x67f   : > { %v11616_v33 = vadd.f32 %v11615_v34, %v11614_v16 }
 0x681   : > { %v11617_v18 = vmul.f32 0.0625, %v11616_v33 }
 0x683   : > { %v11618_v51 = vpack.c.bf16 %v11617_v18, %v11617_v18 }
 0x685   : > { %13161 = vmatmul.mubr.bf16.vlgmr.msra.gmra.mrb[80].mxu1 %v11618_v51 }
 0x758   : > { %v11718_v4 = vpop.f32.mrb[80].mxu1 }
 0x759   : > { %v11719_v53 = vadd.f32 %v11718_v4, %v11635_v24  ;;  %v13162_v37 = vpop.f32.mrb[81].mxu1 }
 0x75a   : > { %v11721_v62 = vpop.f32.mrb[82].mxu1 }
 0x75b   : > { %v11724_v58 = vmax.f32 %v11719_v53, 0.0  ;;  %v13163_v44 = vpop.f32.mrb[83].mxu1 }
 0x75d   : > { %v11725_v40 = vpack.c.bf16 %v11724_v58, %v11724_v58 }
 0x75f   : > { %13173 = vmatmul.mubr.msk.bf16.vlgmr.msra.gmra.mrb[88].mxu0 %vm7276_vm9, %v11725_v40 }
 0x832   : > { %v11796_v12 = vpop.f32.mrb[88].mxu0 }
 0x833   : > { %v11797_v14 = vadd.f32 %v11796_v12, %v11734_v50  ;;  %v13174_v45 = vpop.f32.mrb[89].mxu0 }
 0x834   : > { %v11799_v19 = vpop.f32.mrb[90].mxu0 }
 0x835   : > { %v13175_v10 = vpop.f32.mrb[91].mxu0  ;;  %11803 = vst.msk [vmem:[%s378_s16] sm:$0x1] %vm11802_vm12, %v11797_v14 }
 0x836   : > { %13501 = shalt.err (!%p13498_p3)
}
 0x837   : > { %s13502_s25 = scalar_lea.hbm %s18885_s14, 16  ;;  %s13506_s13 = scalar_lea.hbm %s18938_s11, 32 }
 0x838   : > { %p13503_p4 = scmp.ne.s32.totalorder %s18885_s14, %s13502_s25  ;;  %p13507_p9 = scmp.lt.u32.totalorder %s18885_s14, %s18938_s11 }
 0x839   : > { %p13508_p10 = scmp.lt.u32.totalorder %s13506_s13, %s13502_s25  ;;  %p13510_p12 = scmp.lt.u32.totalorder %s13502_s25, %s18885_s14 }
 0x83a   : > { %p13504_p7 = pnand %p13503_p4, %p13665_p5 }
 0x83b   : > { %p13509_p11 = por %p13508_p10, %p13507_p9 }
 0x83c   : > { %p13505_p8 = pneg %p13504_p7 }
 0x83d   : > { %p13511_p13 = por %p13510_p12, %p13509_p11 }
 0x83f   : > { %p13512_p0 = pnand %p13511_p13, %p13505_p8 }
 0x841   : > { %13515 = shalt.err (!%p13512_p0)
}
 0x842   : > { %13177 = dma.vmem_to_hbm [thread:$0]  (%p13665_p5), %s18887_s24, 16, %s18885_s14, %s11805_s21  }
 0x843 PF: > { %p13183_p1 = scmp.ge.s32.totalorder %s13550_s20, 2  ;;  %s11829_s15 = sand.u32 1, %s13538_s17  }
 0x844   : > { %s11830_s29 = scalar_lea.sflag [#allocation6], %s11829_s15 }
 0x845   : > { %p13180_p2 = pnand %p13183_p1, %p13669_p6 }
 0x847   : > { %13533 = dma.done.wait (!%p13180_p2), %s11830_s29, 16  }
 0x848   : > { %13535 = vsyncadd (!%p13180_p2), %s11830_s29, 4294967280  ;;  %p21_p3 = scmp.ge.s32.totalorder %s13652_s23, 4   ;;  %s19155_s17 = smov %s13542_s18 }
 0x849   : > { %s19156_s18 = smov %s13546_s19  ;;  %s19157_s19 = smov %s13663_s26 }
 0x84a   : > { %s19158_s20 = smov %s13652_s23  ;;  %23 = sbr.rel (!%p21_p3) target bundleno = 3 (0x3), region = 108 }
 0x851   :  { %11834 = vsyncpa [#allocation6], 1 }
 0x852   :  { %11836 = vsyncpa [#allocation6 + $0x1], 1 }

</bundles_post_ra>
